<compile_context>
chip_gen: v7x
topology: tpu7x:2x2x1
jax: 0.10.0
libtpu: 0.0.40
codegen_flags: <defaults>
</compile_context>

<pallas_src>
import functools

import numpy as np
import jax
import jax.numpy as jnp
from jax import lax
from jax.experimental import pallas as pl
from jax.experimental.pallas import tpu as pltpu

# Architecture constants (match the PyTorch module defaults).
C1, C2, C3 = 32, 64, 64
K1, K2, K3 = 8, 4, 3
S1, S2, S3 = 4, 2, 1
HID = 512            # fc hidden width
CP = 128             # conv channels padded to one full lane tile (lane dense)
TILE_B = 8           # batch elements per grid step (keeps sublane slices 8-aligned)


def _conv_out(size, k, s):
    return (size - (k - 1) - 1) // s + 1


def _layer_meta(input_dim):
    """Static per-conv-layer geometry: (H, W, Cin, kh, kw, stride, OH, OW)."""
    C, H, W = input_dim
    oh1, ow1 = _conv_out(H, K1, S1), _conv_out(W, K1, S1)
    oh2, ow2 = _conv_out(oh1, K2, S2), _conv_out(ow1, K2, S2)
    oh3, ow3 = _conv_out(oh2, K3, S3), _conv_out(ow2, K3, S3)
    return ((H, W, C, K1, K1, S1, oh1, ow1),
            (oh1, ow1, C1, K2, K2, S2, oh2, ow2),
            (oh2, ow2, C2, K3, K3, S3, oh3, ow3))


# -----------------------------------------------------------------------------
# Fused forward kernel: TILE_B batch elements per grid step, all in VMEM.
# -----------------------------------------------------------------------------
def _fused_qnet_kernel(x_ref, w1_ref, b1_ref, sel2_ref, w2_ref, b2_ref,
                       w3_ref, b3_ref, wh1_ref, bh1_ref, wh2_ref, bh2_ref,
                       amask_ref, vmask_ref, q_ref, *, tile_b, n_tap2, p2,
                       inv_actions):
    # ---- conv1: wrapper-side im2col -> one matmul, M = tile_b * P1 ----------
    a1 = jnp.dot(x_ref[...], w1_ref[...], preferred_element_type=jnp.float32)
    a1 = jnp.maximum(a1 + b1_ref[...], 0.0).astype(jnp.bfloat16)   # (tile_b*P1, CP)

    # ---- conv2: host-precomputed one-hot selection matmuls (MXU row picks),
    # taps kept at padded CP lanes so the concat is 128-aligned and free. -----
    cols = []
    for t in range(n_tap2):
        g = jnp.dot(sel2_ref[t], a1, preferred_element_type=jnp.float32)
        cols.append(g.astype(jnp.bfloat16))            # (p2*tile_b, CP)
    patches2 = jnp.concatenate(cols, axis=-1)          # (p2*tile_b, n_tap2*CP)
    a2 = jnp.dot(patches2, w2_ref[...], preferred_element_type=jnp.float32)
    a2 = jnp.maximum(a2 + b2_ref[...], 0.0)            # f32, rows pos-major/batch-minor

    # ---- conv3 (output 1x1): the 3x3 patch is conv2's whole output, so it is
    # a plain contraction accumulated over the p2 position blocks (no gather).
    acc3 = jnp.zeros((tile_b, CP), jnp.float32)
    for p in range(p2):
        a2_p = a2[p * tile_b:(p + 1) * tile_b, :].astype(jnp.bfloat16)
        acc3 = acc3 + jnp.dot(a2_p, w3_ref[p], preferred_element_type=jnp.float32)
    h3 = jnp.maximum(acc3 + b3_ref[...], 0.0)          # (tile_b, CP) f32

    # ---- dueling head (fused V/A), kept in f32 for action-ranking fidelity --
    hid = jnp.maximum(
        jnp.dot(h3, wh1_ref[...], preferred_element_type=jnp.float32) + bh1_ref[...],
        0.0)                                           # (tile_b, 2*HID)
    out2 = jnp.dot(hid, wh2_ref[...], preferred_element_type=jnp.float32) + bh2_ref[...]
    val = jnp.sum(out2 * vmask_ref[...], axis=-1, keepdims=True)      # V
    s_a = jnp.sum(out2 * amask_ref[...], axis=-1, keepdims=True)      # sum(A)
    # Lane-dense (tile_b, 128) store; wrapper slices [:, :action_dim].
    q_ref[...] = out2 + (val - s_a * inv_actions)


# -----------------------------------------------------------------------------
# Parameters: PyTorch layout -> fused-kernel layout.
# -----------------------------------------------------------------------------
def init_qnetwork_params(key, input_dim, action_dim):
    """PyTorch-style init: uniform(-1/sqrt(fan_in), 1/sqrt(fan_in))."""
    Cin = input_dim[0]
    _, _, l3 = _layer_meta(input_dim)
    flat = l3[6] * l3[7] * C3

    def uinit(k, shape, fan_in):
        b = 1.0 / float(np.sqrt(fan_in))
        return jax.random.uniform(k, shape, jnp.float32, -b, b)

    ks = jax.random.split(key, 14)
    return {
        "conv1_w": uinit(ks[0], (C1, Cin, K1, K1), Cin * K1 * K1),
        "conv1_b": uinit(ks[1], (C1,), Cin * K1 * K1),
        "conv2_w": uinit(ks[2], (C2, C1, K2, K2), C1 * K2 * K2),
        "conv2_b": uinit(ks[3], (C2,), C1 * K2 * K2),
        "conv3_w": uinit(ks[4], (C3, C2, K3, K3), C2 * K3 * K3),
        "conv3_b": uinit(ks[5], (C3,), C2 * K3 * K3),
        "v1_w": uinit(ks[6], (flat, HID), flat),
        "v1_b": uinit(ks[7], (HID,), flat),
        "v2_w": uinit(ks[8], (HID, 1), HID),
        "v2_b": uinit(ks[9], (1,), HID),
        "a1_w": uinit(ks[10], (flat, HID), flat),
        "a1_b": uinit(ks[11], (HID,), flat),
        "a2_w": uinit(ks[12], (HID, action_dim), HID),
        "a2_b": uinit(ks[13], (action_dim,), HID),
    }


def prepare_kernel_params(params, input_dim, action_dim, tile_b=TILE_B):
    """bf16 conv weights, f32 head, padded lane-dense layouts, host-built sel."""
    assert action_dim + 1 <= CP
    layers = _layer_meta(input_dim)
    l1, l2, l3 = layers
    P1 = l1[6] * l1[7]
    P2 = l2[6] * l2[7]
    # Fused conv3-as-contraction requires conv3 output 1x1 (kernel == conv2 out).
    assert l3[6] == 1 and l3[7] == 1, "this fused kernel assumes conv3 output 1x1"
    flat = C3  # P3 == 1

    def conv1_w(w):            # (C1, Cin, 8, 8) -> (K1*K1*Cin, CP)
        wk = jnp.transpose(w, (2, 3, 1, 0)).reshape(-1, C1)
        return jnp.pad(wk, ((0, 0), (0, CP - C1))).astype(jnp.bfloat16)

    def conv2_w(w):            # (C2, C1, 4, 4) -> (K2*K2*CP, CP), padded-row zeros
        wk = jnp.transpose(w, (2, 3, 1, 0))
        wk = jnp.pad(wk, ((0, 0), (0, 0), (0, CP - C1), (0, CP - C2)))
        return wk.reshape(K2 * K2 * CP, CP).astype(jnp.bfloat16)

    def conv3_w(w):            # (C3, C2, 3, 3) -> (9, CP, CP) per-position blocks
        wk = jnp.transpose(w, (2, 3, 1, 0)).reshape(K3 * K3, C2, C3)
        wk = jnp.pad(wk, ((0, 0), (0, CP - C2), (0, CP - C3)))
        return wk.astype(jnp.bfloat16)

    def bias(b):
        return jnp.pad(b, (0, CP - b.shape[0])).reshape(1, CP).astype(jnp.float32)

    # conv2 gather: one-hot row-selection per tap, block-diagonal over the batch
    # tile; static geometry precomputed once on the host (no in-kernel iota).
    H1, W1 = l2[0], l2[1]
    OW2 = l2[7]
    sel2 = np.zeros((K2 * K2, P2 * tile_b, tile_b * P1), np.float32)
    for di in range(K2):
        for dj in range(K2):
            t = di * K2 + dj
            for p in range(P2):
                oh, ow = p // OW2, p % OW2
                src = (S2 * oh + di) * W1 + (S2 * ow + dj)
                for b in range(tile_b):
                    sel2[t, p * tile_b + b, b * P1 + src] = 1.0
    sel2 = jnp.asarray(sel2, jnp.bfloat16)

    # Dueling head: V/A fc1 fused into one (CP, 2*HID) matmul; fc2 folded into
    # one lane-dense (2*HID, CP) matmul.  Kept in f32 (tiny, better Q fidelity).
    wh1 = jnp.concatenate([params["v1_w"], params["a1_w"]], axis=1)      # (flat, 2H)
    wh1 = jnp.pad(wh1, ((0, CP - flat), (0, 0))).astype(jnp.float32)     # (CP, 2H)
    bh1 = jnp.concatenate([params["v1_b"], params["a1_b"]]
                          ).reshape(1, 2 * HID).astype(jnp.float32)

    wh2 = jnp.zeros((2 * HID, CP), jnp.float32)
    wh2 = wh2.at[HID:, :action_dim].set(params["a2_w"])
    wh2 = wh2.at[:HID, action_dim].set(params["v2_w"][:, 0])
    bh2 = jnp.zeros((1, CP), jnp.float32)
    bh2 = bh2.at[0, :action_dim].set(params["a2_b"])
    bh2 = bh2.at[0, action_dim].set(params["v2_b"][0])

    amask = jnp.zeros((1, CP), jnp.float32).at[0, :action_dim].set(1.0)
    vmask = jnp.zeros((1, CP), jnp.float32).at[0, action_dim].set(1.0)

    kp = {
        "w1": conv1_w(params["conv1_w"]), "b1": bias(params["conv1_b"]),
        "sel2": sel2,
        "w2": conv2_w(params["conv2_w"]), "b2": bias(params["conv2_b"]),
        "w3": conv3_w(params["conv3_w"]), "b3": bias(params["conv3_b"]),
        "wh1": wh1, "bh1": bh1, "wh2": wh2, "bh2": bh2,
        "amask": amask, "vmask": vmask,
    }
    return kp, layers


# -----------------------------------------------------------------------------
# Forward wrapper.
# -----------------------------------------------------------------------------
def _im2col_conv1(x_nchw, l1):
    """(B, C, H, W) -> (B, OH*OW, K1*K1*C) bf16 patches, (di, dj, c) minor order."""
    B = x_nchw.shape[0]
    H, W, Cin, kh, kw, s, OH, OW = l1
    x = jnp.transpose(x_nchw, (0, 2, 3, 1)).astype(jnp.bfloat16)     # (B, H, W, C)
    cols = []
    for di in range(kh):
        for dj in range(kw):
            sl = lax.slice(x, (0, di, dj, 0),
                           (B, di + s * (OH - 1) + 1, dj + s * (OW - 1) + 1, Cin),
                           (1, s, s, 1))                             # (B, OH, OW, C)
            cols.append(sl)
    p = jnp.concatenate(cols, axis=-1)                               # (B, OH, OW, kkC)
    return p.reshape(B, OH * OW, kh * kw * Cin)


@functools.partial(jax.jit, static_argnames=("layers", "action_dim"))
def qnetwork_forward(kp, x_nchw, layers, action_dim):
    l1, l2, _ = layers
    Cin = l1[2]
    P1 = l1[6] * l1[7]
    P2 = l2[6] * l2[7]
    KKC = K1 * K1 * Cin
    B = x_nchw.shape[0]
    Bp = ((B + TILE_B - 1) // TILE_B) * TILE_B

    # conv1 im2col in the wrapper -> lane-dense bf16 patches for the kernel.
    patches1 = _im2col_conv1(x_nchw, l1)
    if Bp != B:
        patches1 = jnp.pad(patches1, ((0, Bp - B), (0, 0), (0, 0)))
    x_in = patches1.reshape(Bp * P1, KKC)

    def const_spec(a):
        zeros = (0,) * a.ndim
        # Constant block index: DMA'd once, VMEM-resident across the whole grid.
        # TODO(synk): add pipeline_mode=pl.Buffered(1) to drop the idle second
        # buffer when scaling to Atari-size weights (matters for v7x's 64 MiB VMEM).
        return pl.BlockSpec(a.shape, lambda i: zeros)

    consts = (kp["w1"], kp["b1"], kp["sel2"], kp["w2"], kp["b2"],
              kp["w3"], kp["b3"], kp["wh1"], kp["bh1"], kp["wh2"], kp["bh2"],
              kp["amask"], kp["vmask"])

    kernel = functools.partial(_fused_qnet_kernel, tile_b=TILE_B,
                               n_tap2=K2 * K2, p2=P2,
                               inv_actions=1.0 / action_dim)

    q = pl.pallas_call(
        kernel,
        out_shape=jax.ShapeDtypeStruct((Bp, CP), jnp.float32),
        grid=(Bp // TILE_B,),
        in_specs=[pl.BlockSpec((TILE_B * P1, KKC), lambda i: (i, 0))]
                 + [const_spec(a) for a in consts],
        out_specs=pl.BlockSpec((TILE_B, CP), lambda i: (i, 0)),       # lane-dense store
        compiler_params=pltpu.CompilerParams(
            dimension_semantics=("parallel",),      # split batch tiles over v7x's 2 TCs
            vmem_limit_bytes=32 * 1024 * 1024),
    )(x_in, *consts)
    return q[:B, :action_dim]


# -----------------------------------------------------------------------------
# Plain-JAX reference (PyTorch semantics) for a numerical sanity check.
# -----------------------------------------------------------------------------
def qnetwork_reference(params, x):
    def conv(x, w, b, s):
        y = lax.conv_general_dilated(x, w, (s, s), "VALID",
                                     dimension_numbers=("NCHW", "OIHW", "NCHW"))
        return jax.nn.relu(y + b[None, :, None, None])

    x = conv(x, params["conv1_w"], params["conv1_b"], S1)
    x = conv(x, params["conv2_w"], params["conv2_b"], S2)
    x = conv(x, params["conv3_w"], params["conv3_b"], S3)
    x = x.reshape(x.shape[0], -1)
    v = jax.nn.relu(x @ params["v1_w"] + params["v1_b"]) @ params["v2_w"] + params["v2_b"]
    a = jax.nn.relu(x @ params["a1_w"] + params["a1_b"]) @ params["a2_w"] + params["a2_b"]
    return v + a - jnp.mean(a, axis=-1, keepdims=True)


if __name__ == "__main__":
    # (C=4, H=36, W=36): smallest square input giving a valid conv stack
    # (conv3 output 1x1x64 -> flat size 64).
    input_dim = (4, 36, 36)
    action_dim = 6
    batch = 16          # 2 grid steps of TILE_B=8 -> both v7x TensorCores busy

    key = jax.random.PRNGKey(0)
    pkey, xkey = jax.random.split(key)
    params = init_qnetwork_params(pkey, input_dim, action_dim)
    kp, layers = prepare_kernel_params(params, input_dim, action_dim)
    x = jax.random.normal(xkey, (batch,) + input_dim, dtype=jnp.float32)

    Q = qnetwork_forward(kp, x, layers=layers, action_dim=action_dim)
    Q = jax.block_until_ready(Q)

    assert Q.shape == (batch, action_dim), Q.shape
    assert bool(jnp.all(jnp.isfinite(Q)))
    ref = qnetwork_reference(params, x)
    err = float(jnp.max(jnp.abs(Q - ref)))
    assert err < 5e-2, f"kernel vs reference max abs err {err}"
    print("KERNEL_OK")
</pallas_src>

<mosaic_0001>
module attributes {stable_mosaic.version = 11 : i64} {
  func.func @_fused_qnet_kernel(%arg0: i32, %arg1: memref<512x256xbf16, #tpu.memory_space<vmem>>, %arg2: memref<256x128xbf16, #tpu.memory_space<vmem>>, %arg3: memref<1x128xf32, #tpu.memory_space<vmem>>, %arg4: memref<16x72x512xbf16, #tpu.memory_space<vmem>>, %arg5: memref<2048x128xbf16, #tpu.memory_space<vmem>>, %arg6: memref<1x128xf32, #tpu.memory_space<vmem>>, %arg7: memref<9x128x128xbf16, #tpu.memory_space<vmem>>, %arg8: memref<1x128xf32, #tpu.memory_space<vmem>>, %arg9: memref<128x1024xf32, #tpu.memory_space<vmem>>, %arg10: memref<1x1024xf32, #tpu.memory_space<vmem>>, %arg11: memref<1024x128xf32, #tpu.memory_space<vmem>>, %arg12: memref<1x128xf32, #tpu.memory_space<vmem>>, %arg13: memref<1x128xf32, #tpu.memory_space<vmem>>, %arg14: memref<1x128xf32, #tpu.memory_space<vmem>>, %arg15: memref<8x128xf32, #tpu.memory_space<vmem>>) attributes {dimension_semantics = [#tpu.dimension_semantics<parallel>], iteration_bounds = array<i64: 2>, scalar_prefetch = 0 : i64, scratch_operands = 0 : i64, tpu.core_type = #tpu.core_type<tc>, window_params = [{transform_indices = @transform_0, window_bounds = array<i64: 512, 256>}, {pipeline_mode = #tpu.pipeline_mode<synchronous>, transform_indices = @transform_1, window_bounds = array<i64: 256, 128>}, {pipeline_mode = #tpu.pipeline_mode<synchronous>, transform_indices = @transform_2, window_bounds = array<i64: 1, 128>}, {pipeline_mode = #tpu.pipeline_mode<synchronous>, transform_indices = @transform_3, window_bounds = array<i64: 16, 72, 512>}, {pipeline_mode = #tpu.pipeline_mode<synchronous>, transform_indices = @transform_4, window_bounds = array<i64: 2048, 128>}, {pipeline_mode = #tpu.pipeline_mode<synchronous>, transform_indices = @transform_5, window_bounds = array<i64: 1, 128>}, {pipeline_mode = #tpu.pipeline_mode<synchronous>, transform_indices = @transform_6, window_bounds = array<i64: 9, 128, 128>}, {pipeline_mode = #tpu.pipeline_mode<synchronous>, transform_indices = @transform_7, window_bounds = array<i64: 1, 128>}, {pipeline_mode = #tpu.pipeline_mode<synchronous>, transform_indices = @transform_8, window_bounds = array<i64: 128, 1024>}, {pipeline_mode = #tpu.pipeline_mode<synchronous>, transform_indices = @transform_9, window_bounds = array<i64: 1, 1024>}, {pipeline_mode = #tpu.pipeline_mode<synchronous>, transform_indices = @transform_10, window_bounds = array<i64: 1024, 128>}, {pipeline_mode = #tpu.pipeline_mode<synchronous>, transform_indices = @transform_11, window_bounds = array<i64: 1, 128>}, {pipeline_mode = #tpu.pipeline_mode<synchronous>, transform_indices = @transform_12, window_bounds = array<i64: 1, 128>}, {pipeline_mode = #tpu.pipeline_mode<synchronous>, transform_indices = @transform_13, window_bounds = array<i64: 1, 128>}, {transform_indices = @transform_14, window_bounds = array<i64: 8, 128>}]} {
    %c0 = arith.constant 0 : index
    %c0_0 = arith.constant 0 : index
    %0 = vector.load %arg1[%c0, %c0_0] : memref<512x256xbf16, #tpu.memory_space<vmem>>, vector<512x256xbf16>
    %c0_1 = arith.constant 0 : index
    %c0_2 = arith.constant 0 : index
    %1 = vector.load %arg2[%c0_1, %c0_2] : memref<256x128xbf16, #tpu.memory_space<vmem>>, vector<256x128xbf16>
    %cst = arith.constant dense<0.000000e+00> : vector<512x128xf32>
    %2 = tpu.matmul %0, %1, %cst {dimension_numbers = #tpu.dot_dimension_numbers<[1], [0], [0], [1], [0, 0, 1, 1], [], []>} : vector<512x256xbf16>, vector<256x128xbf16>, vector<512x128xf32> -> vector<512x128xf32>
    %c0_3 = arith.constant 0 : index
    %c0_4 = arith.constant 0 : index
    %3 = vector.load %arg3[%c0_3, %c0_4] : memref<1x128xf32, #tpu.memory_space<vmem>>, vector<1x128xf32>
    %4 = vector.broadcast %3 : vector<1x128xf32> to vector<512x128xf32>
    %5 = arith.addf %2, %4 : vector<512x128xf32>
    %cst_5 = arith.constant 0.000000e+00 : f32
    %6 = vector.broadcast %cst_5 : f32 to vector<512x128xf32>
    %7 = arith.maximumf %5, %6 : vector<512x128xf32>
    %8 = arith.truncf %7 : vector<512x128xf32> to vector<512x128xbf16>
    %c0_6 = arith.constant 0 : index
    %c0_7 = arith.constant 0 : index
    %c0_8 = arith.constant 0 : index
    %9 = vector.load %arg4[%c0_6, %c0_7, %c0_8] : memref<16x72x512xbf16, #tpu.memory_space<vmem>>, vector<1x72x512xbf16>
    %10 = vector.shape_cast %9 : vector<1x72x512xbf16> to vector<72x512xbf16>
    %cst_9 = arith.constant dense<0.000000e+00> : vector<72x128xf32>
    %11 = tpu.matmul %10, %8, %cst_9 {dimension_numbers = #tpu.dot_dimension_numbers<[1], [0], [0], [1], [0, 0, 1, 1], [], []>} : vector<72x512xbf16>, vector<512x128xbf16>, vector<72x128xf32> -> vector<72x128xf32>
    %12 = arith.truncf %11 : vector<72x128xf32> to vector<72x128xbf16>
    %c1 = arith.constant 1 : index
    %c0_10 = arith.constant 0 : index
    %c0_11 = arith.constant 0 : index
    %13 = vector.load %arg4[%c1, %c0_10, %c0_11] : memref<16x72x512xbf16, #tpu.memory_space<vmem>>, vector<1x72x512xbf16>
    %14 = vector.shape_cast %13 : vector<1x72x512xbf16> to vector<72x512xbf16>
    %cst_12 = arith.constant dense<0.000000e+00> : vector<72x128xf32>
    %15 = tpu.matmul %14, %8, %cst_12 {dimension_numbers = #tpu.dot_dimension_numbers<[1], [0], [0], [1], [0, 0, 1, 1], [], []>} : vector<72x512xbf16>, vector<512x128xbf16>, vector<72x128xf32> -> vector<72x128xf32>
    %16 = arith.truncf %15 : vector<72x128xf32> to vector<72x128xbf16>
    %c2 = arith.constant 2 : index
    %c0_13 = arith.constant 0 : index
    %c0_14 = arith.constant 0 : index
    %17 = vector.load %arg4[%c2, %c0_13, %c0_14] : memref<16x72x512xbf16, #tpu.memory_space<vmem>>, vector<1x72x512xbf16>
    %18 = vector.shape_cast %17 : vector<1x72x512xbf16> to vector<72x512xbf16>
    %cst_15 = arith.constant dense<0.000000e+00> : vector<72x128xf32>
    %19 = tpu.matmul %18, %8, %cst_15 {dimension_numbers = #tpu.dot_dimension_numbers<[1], [0], [0], [1], [0, 0, 1, 1], [], []>} : vector<72x512xbf16>, vector<512x128xbf16>, vector<72x128xf32> -> vector<72x128xf32>
    %20 = arith.truncf %19 : vector<72x128xf32> to vector<72x128xbf16>
    %c3 = arith.constant 3 : index
    %c0_16 = arith.constant 0 : index
    %c0_17 = arith.constant 0 : index
    %21 = vector.load %arg4[%c3, %c0_16, %c0_17] : memref<16x72x512xbf16, #tpu.memory_space<vmem>>, vector<1x72x512xbf16>
    %22 = vector.shape_cast %21 : vector<1x72x512xbf16> to vector<72x512xbf16>
    %cst_18 = arith.constant dense<0.000000e+00> : vector<72x128xf32>
    %23 = tpu.matmul %22, %8, %cst_18 {dimension_numbers = #tpu.dot_dimension_numbers<[1], [0], [0], [1], [0, 0, 1, 1], [], []>} : vector<72x512xbf16>, vector<512x128xbf16>, vector<72x128xf32> -> vector<72x128xf32>
    %24 = arith.truncf %23 : vector<72x128xf32> to vector<72x128xbf16>
    %c4 = arith.constant 4 : index
    %c0_19 = arith.constant 0 : index
    %c0_20 = arith.constant 0 : index
    %25 = vector.load %arg4[%c4, %c0_19, %c0_20] : memref<16x72x512xbf16, #tpu.memory_space<vmem>>, vector<1x72x512xbf16>
    %26 = vector.shape_cast %25 : vector<1x72x512xbf16> to vector<72x512xbf16>
    %cst_21 = arith.constant dense<0.000000e+00> : vector<72x128xf32>
    %27 = tpu.matmul %26, %8, %cst_21 {dimension_numbers = #tpu.dot_dimension_numbers<[1], [0], [0], [1], [0, 0, 1, 1], [], []>} : vector<72x512xbf16>, vector<512x128xbf16>, vector<72x128xf32> -> vector<72x128xf32>
    %28 = arith.truncf %27 : vector<72x128xf32> to vector<72x128xbf16>
    %c5 = arith.constant 5 : index
    %c0_22 = arith.constant 0 : index
    %c0_23 = arith.constant 0 : index
    %29 = vector.load %arg4[%c5, %c0_22, %c0_23] : memref<16x72x512xbf16, #tpu.memory_space<vmem>>, vector<1x72x512xbf16>
    %30 = vector.shape_cast %29 : vector<1x72x512xbf16> to vector<72x512xbf16>
    %cst_24 = arith.constant dense<0.000000e+00> : vector<72x128xf32>
    %31 = tpu.matmul %30, %8, %cst_24 {dimension_numbers = #tpu.dot_dimension_numbers<[1], [0], [0], [1], [0, 0, 1, 1], [], []>} : vector<72x512xbf16>, vector<512x128xbf16>, vector<72x128xf32> -> vector<72x128xf32>
    %32 = arith.truncf %31 : vector<72x128xf32> to vector<72x128xbf16>
    %c6 = arith.constant 6 : index
    %c0_25 = arith.constant 0 : index
    %c0_26 = arith.constant 0 : index
    %33 = vector.load %arg4[%c6, %c0_25, %c0_26] : memref<16x72x512xbf16, #tpu.memory_space<vmem>>, vector<1x72x512xbf16>
    %34 = vector.shape_cast %33 : vector<1x72x512xbf16> to vector<72x512xbf16>
    %cst_27 = arith.constant dense<0.000000e+00> : vector<72x128xf32>
    %35 = tpu.matmul %34, %8, %cst_27 {dimension_numbers = #tpu.dot_dimension_numbers<[1], [0], [0], [1], [0, 0, 1, 1], [], []>} : vector<72x512xbf16>, vector<512x128xbf16>, vector<72x128xf32> -> vector<72x128xf32>
    %36 = arith.truncf %35 : vector<72x128xf32> to vector<72x128xbf16>
    %c7 = arith.constant 7 : index
    %c0_28 = arith.constant 0 : index
    %c0_29 = arith.constant 0 : index
    %37 = vector.load %arg4[%c7, %c0_28, %c0_29] : memref<16x72x512xbf16, #tpu.memory_space<vmem>>, vector<1x72x512xbf16>
    %38 = vector.shape_cast %37 : vector<1x72x512xbf16> to vector<72x512xbf16>
    %cst_30 = arith.constant dense<0.000000e+00> : vector<72x128xf32>
    %39 = tpu.matmul %38, %8, %cst_30 {dimension_numbers = #tpu.dot_dimension_numbers<[1], [0], [0], [1], [0, 0, 1, 1], [], []>} : vector<72x512xbf16>, vector<512x128xbf16>, vector<72x128xf32> -> vector<72x128xf32>
    %40 = arith.truncf %39 : vector<72x128xf32> to vector<72x128xbf16>
    %c8 = arith.constant 8 : index
    %c0_31 = arith.constant 0 : index
    %c0_32 = arith.constant 0 : index
    %41 = vector.load %arg4[%c8, %c0_31, %c0_32] : memref<16x72x512xbf16, #tpu.memory_space<vmem>>, vector<1x72x512xbf16>
    %42 = vector.shape_cast %41 : vector<1x72x512xbf16> to vector<72x512xbf16>
    %cst_33 = arith.constant dense<0.000000e+00> : vector<72x128xf32>
    %43 = tpu.matmul %42, %8, %cst_33 {dimension_numbers = #tpu.dot_dimension_numbers<[1], [0], [0], [1], [0, 0, 1, 1], [], []>} : vector<72x512xbf16>, vector<512x128xbf16>, vector<72x128xf32> -> vector<72x128xf32>
    %44 = arith.truncf %43 : vector<72x128xf32> to vector<72x128xbf16>
    %c9 = arith.constant 9 : index
    %c0_34 = arith.constant 0 : index
    %c0_35 = arith.constant 0 : index
    %45 = vector.load %arg4[%c9, %c0_34, %c0_35] : memref<16x72x512xbf16, #tpu.memory_space<vmem>>, vector<1x72x512xbf16>
    %46 = vector.shape_cast %45 : vector<1x72x512xbf16> to vector<72x512xbf16>
    %cst_36 = arith.constant dense<0.000000e+00> : vector<72x128xf32>
    %47 = tpu.matmul %46, %8, %cst_36 {dimension_numbers = #tpu.dot_dimension_numbers<[1], [0], [0], [1], [0, 0, 1, 1], [], []>} : vector<72x512xbf16>, vector<512x128xbf16>, vector<72x128xf32> -> vector<72x128xf32>
    %48 = arith.truncf %47 : vector<72x128xf32> to vector<72x128xbf16>
    %c10 = arith.constant 10 : index
    %c0_37 = arith.constant 0 : index
    %c0_38 = arith.constant 0 : index
    %49 = vector.load %arg4[%c10, %c0_37, %c0_38] : memref<16x72x512xbf16, #tpu.memory_space<vmem>>, vector<1x72x512xbf16>
    %50 = vector.shape_cast %49 : vector<1x72x512xbf16> to vector<72x512xbf16>
    %cst_39 = arith.constant dense<0.000000e+00> : vector<72x128xf32>
    %51 = tpu.matmul %50, %8, %cst_39 {dimension_numbers = #tpu.dot_dimension_numbers<[1], [0], [0], [1], [0, 0, 1, 1], [], []>} : vector<72x512xbf16>, vector<512x128xbf16>, vector<72x128xf32> -> vector<72x128xf32>
    %52 = arith.truncf %51 : vector<72x128xf32> to vector<72x128xbf16>
    %c11 = arith.constant 11 : index
    %c0_40 = arith.constant 0 : index
    %c0_41 = arith.constant 0 : index
    %53 = vector.load %arg4[%c11, %c0_40, %c0_41] : memref<16x72x512xbf16, #tpu.memory_space<vmem>>, vector<1x72x512xbf16>
    %54 = vector.shape_cast %53 : vector<1x72x512xbf16> to vector<72x512xbf16>
    %cst_42 = arith.constant dense<0.000000e+00> : vector<72x128xf32>
    %55 = tpu.matmul %54, %8, %cst_42 {dimension_numbers = #tpu.dot_dimension_numbers<[1], [0], [0], [1], [0, 0, 1, 1], [], []>} : vector<72x512xbf16>, vector<512x128xbf16>, vector<72x128xf32> -> vector<72x128xf32>
    %56 = arith.truncf %55 : vector<72x128xf32> to vector<72x128xbf16>
    %c12 = arith.constant 12 : index
    %c0_43 = arith.constant 0 : index
    %c0_44 = arith.constant 0 : index
    %57 = vector.load %arg4[%c12, %c0_43, %c0_44] : memref<16x72x512xbf16, #tpu.memory_space<vmem>>, vector<1x72x512xbf16>
    %58 = vector.shape_cast %57 : vector<1x72x512xbf16> to vector<72x512xbf16>
    %cst_45 = arith.constant dense<0.000000e+00> : vector<72x128xf32>
    %59 = tpu.matmul %58, %8, %cst_45 {dimension_numbers = #tpu.dot_dimension_numbers<[1], [0], [0], [1], [0, 0, 1, 1], [], []>} : vector<72x512xbf16>, vector<512x128xbf16>, vector<72x128xf32> -> vector<72x128xf32>
    %60 = arith.truncf %59 : vector<72x128xf32> to vector<72x128xbf16>
    %c13 = arith.constant 13 : index
    %c0_46 = arith.constant 0 : index
    %c0_47 = arith.constant 0 : index
    %61 = vector.load %arg4[%c13, %c0_46, %c0_47] : memref<16x72x512xbf16, #tpu.memory_space<vmem>>, vector<1x72x512xbf16>
    %62 = vector.shape_cast %61 : vector<1x72x512xbf16> to vector<72x512xbf16>
    %cst_48 = arith.constant dense<0.000000e+00> : vector<72x128xf32>
    %63 = tpu.matmul %62, %8, %cst_48 {dimension_numbers = #tpu.dot_dimension_numbers<[1], [0], [0], [1], [0, 0, 1, 1], [], []>} : vector<72x512xbf16>, vector<512x128xbf16>, vector<72x128xf32> -> vector<72x128xf32>
    %64 = arith.truncf %63 : vector<72x128xf32> to vector<72x128xbf16>
    %c14 = arith.constant 14 : index
    %c0_49 = arith.constant 0 : index
    %c0_50 = arith.constant 0 : index
    %65 = vector.load %arg4[%c14, %c0_49, %c0_50] : memref<16x72x512xbf16, #tpu.memory_space<vmem>>, vector<1x72x512xbf16>
    %66 = vector.shape_cast %65 : vector<1x72x512xbf16> to vector<72x512xbf16>
    %cst_51 = arith.constant dense<0.000000e+00> : vector<72x128xf32>
    %67 = tpu.matmul %66, %8, %cst_51 {dimension_numbers = #tpu.dot_dimension_numbers<[1], [0], [0], [1], [0, 0, 1, 1], [], []>} : vector<72x512xbf16>, vector<512x128xbf16>, vector<72x128xf32> -> vector<72x128xf32>
    %68 = arith.truncf %67 : vector<72x128xf32> to vector<72x128xbf16>
    %c15 = arith.constant 15 : index
    %c0_52 = arith.constant 0 : index
    %c0_53 = arith.constant 0 : index
    %69 = vector.load %arg4[%c15, %c0_52, %c0_53] : memref<16x72x512xbf16, #tpu.memory_space<vmem>>, vector<1x72x512xbf16>
    %70 = vector.shape_cast %69 : vector<1x72x512xbf16> to vector<72x512xbf16>
    %cst_54 = arith.constant dense<0.000000e+00> : vector<72x128xf32>
    %71 = tpu.matmul %70, %8, %cst_54 {dimension_numbers = #tpu.dot_dimension_numbers<[1], [0], [0], [1], [0, 0, 1, 1], [], []>} : vector<72x512xbf16>, vector<512x128xbf16>, vector<72x128xf32> -> vector<72x128xf32>
    %72 = arith.truncf %71 : vector<72x128xf32> to vector<72x128xbf16>
    %73 = tpu.concatenate %12, %16, %20, %24, %28, %32, %36, %40, %44, %48, %52, %56, %60, %64, %68, %72 in 1 : vector<72x128xbf16>, vector<72x128xbf16>, vector<72x128xbf16>, vector<72x128xbf16>, vector<72x128xbf16>, vector<72x128xbf16>, vector<72x128xbf16>, vector<72x128xbf16>, vector<72x128xbf16>, vector<72x128xbf16>, vector<72x128xbf16>, vector<72x128xbf16>, vector<72x128xbf16>, vector<72x128xbf16>, vector<72x128xbf16>, vector<72x128xbf16> -> vector<72x2048xbf16>
    %c0_55 = arith.constant 0 : index
    %c0_56 = arith.constant 0 : index
    %74 = vector.load %arg5[%c0_55, %c0_56] : memref<2048x128xbf16, #tpu.memory_space<vmem>>, vector<2048x128xbf16>
    %cst_57 = arith.constant dense<0.000000e+00> : vector<72x128xf32>
    %75 = tpu.matmul %73, %74, %cst_57 {dimension_numbers = #tpu.dot_dimension_numbers<[1], [0], [0], [1], [0, 0, 1, 1], [], []>} : vector<72x2048xbf16>, vector<2048x128xbf16>, vector<72x128xf32> -> vector<72x128xf32>
    %c0_58 = arith.constant 0 : index
    %c0_59 = arith.constant 0 : index
    %76 = vector.load %arg6[%c0_58, %c0_59] : memref<1x128xf32, #tpu.memory_space<vmem>>, vector<1x128xf32>
    %77 = vector.broadcast %76 : vector<1x128xf32> to vector<72x128xf32>
    %78 = arith.addf %75, %77 : vector<72x128xf32>
    %cst_60 = arith.constant 0.000000e+00 : f32
    %79 = vector.broadcast %cst_60 : f32 to vector<72x128xf32>
    %80 = arith.maximumf %78, %79 : vector<72x128xf32>
    %cst_61 = arith.constant 0.000000e+00 : f32
    %81 = vector.broadcast %cst_61 : f32 to vector<8x128xf32>
    %82 = vector.extract_strided_slice %80 {offsets = [0, 0], sizes = [8, 128], strides = [1, 1]} : vector<72x128xf32> to vector<8x128xf32>
    %83 = arith.truncf %82 : vector<8x128xf32> to vector<8x128xbf16>
    %c0_62 = arith.constant 0 : index
    %c0_63 = arith.constant 0 : index
    %c0_64 = arith.constant 0 : index
    %84 = vector.load %arg7[%c0_62, %c0_63, %c0_64] : memref<9x128x128xbf16, #tpu.memory_space<vmem>>, vector<1x128x128xbf16>
    %85 = vector.shape_cast %84 : vector<1x128x128xbf16> to vector<128x128xbf16>
    %cst_65 = arith.constant dense<0.000000e+00> : vector<8x128xf32>
    %86 = tpu.matmul %83, %85, %cst_65 {dimension_numbers = #tpu.dot_dimension_numbers<[1], [0], [0], [1], [0, 0, 1, 1], [], []>} : vector<8x128xbf16>, vector<128x128xbf16>, vector<8x128xf32> -> vector<8x128xf32>
    %87 = arith.addf %81, %86 : vector<8x128xf32>
    %88 = vector.extract_strided_slice %80 {offsets = [8, 0], sizes = [8, 128], strides = [1, 1]} : vector<72x128xf32> to vector<8x128xf32>
    %89 = arith.truncf %88 : vector<8x128xf32> to vector<8x128xbf16>
    %c1_66 = arith.constant 1 : index
    %c0_67 = arith.constant 0 : index
    %c0_68 = arith.constant 0 : index
    %90 = vector.load %arg7[%c1_66, %c0_67, %c0_68] : memref<9x128x128xbf16, #tpu.memory_space<vmem>>, vector<1x128x128xbf16>
    %91 = vector.shape_cast %90 : vector<1x128x128xbf16> to vector<128x128xbf16>
    %cst_69 = arith.constant dense<0.000000e+00> : vector<8x128xf32>
    %92 = tpu.matmul %89, %91, %cst_69 {dimension_numbers = #tpu.dot_dimension_numbers<[1], [0], [0], [1], [0, 0, 1, 1], [], []>} : vector<8x128xbf16>, vector<128x128xbf16>, vector<8x128xf32> -> vector<8x128xf32>
    %93 = arith.addf %87, %92 : vector<8x128xf32>
    %94 = vector.extract_strided_slice %80 {offsets = [16, 0], sizes = [8, 128], strides = [1, 1]} : vector<72x128xf32> to vector<8x128xf32>
    %95 = arith.truncf %94 : vector<8x128xf32> to vector<8x128xbf16>
    %c2_70 = arith.constant 2 : index
    %c0_71 = arith.constant 0 : index
    %c0_72 = arith.constant 0 : index
    %96 = vector.load %arg7[%c2_70, %c0_71, %c0_72] : memref<9x128x128xbf16, #tpu.memory_space<vmem>>, vector<1x128x128xbf16>
    %97 = vector.shape_cast %96 : vector<1x128x128xbf16> to vector<128x128xbf16>
    %cst_73 = arith.constant dense<0.000000e+00> : vector<8x128xf32>
    %98 = tpu.matmul %95, %97, %cst_73 {dimension_numbers = #tpu.dot_dimension_numbers<[1], [0], [0], [1], [0, 0, 1, 1], [], []>} : vector<8x128xbf16>, vector<128x128xbf16>, vector<8x128xf32> -> vector<8x128xf32>
    %99 = arith.addf %93, %98 : vector<8x128xf32>
    %100 = vector.extract_strided_slice %80 {offsets = [24, 0], sizes = [8, 128], strides = [1, 1]} : vector<72x128xf32> to vector<8x128xf32>
    %101 = arith.truncf %100 : vector<8x128xf32> to vector<8x128xbf16>
    %c3_74 = arith.constant 3 : index
    %c0_75 = arith.constant 0 : index
    %c0_76 = arith.constant 0 : index
    %102 = vector.load %arg7[%c3_74, %c0_75, %c0_76] : memref<9x128x128xbf16, #tpu.memory_space<vmem>>, vector<1x128x128xbf16>
    %103 = vector.shape_cast %102 : vector<1x128x128xbf16> to vector<128x128xbf16>
    %cst_77 = arith.constant dense<0.000000e+00> : vector<8x128xf32>
    %104 = tpu.matmul %101, %103, %cst_77 {dimension_numbers = #tpu.dot_dimension_numbers<[1], [0], [0], [1], [0, 0, 1, 1], [], []>} : vector<8x128xbf16>, vector<128x128xbf16>, vector<8x128xf32> -> vector<8x128xf32>
    %105 = arith.addf %99, %104 : vector<8x128xf32>
    %106 = vector.extract_strided_slice %80 {offsets = [32, 0], sizes = [8, 128], strides = [1, 1]} : vector<72x128xf32> to vector<8x128xf32>
    %107 = arith.truncf %106 : vector<8x128xf32> to vector<8x128xbf16>
    %c4_78 = arith.constant 4 : index
    %c0_79 = arith.constant 0 : index
    %c0_80 = arith.constant 0 : index
    %108 = vector.load %arg7[%c4_78, %c0_79, %c0_80] : memref<9x128x128xbf16, #tpu.memory_space<vmem>>, vector<1x128x128xbf16>
    %109 = vector.shape_cast %108 : vector<1x128x128xbf16> to vector<128x128xbf16>
    %cst_81 = arith.constant dense<0.000000e+00> : vector<8x128xf32>
    %110 = tpu.matmul %107, %109, %cst_81 {dimension_numbers = #tpu.dot_dimension_numbers<[1], [0], [0], [1], [0, 0, 1, 1], [], []>} : vector<8x128xbf16>, vector<128x128xbf16>, vector<8x128xf32> -> vector<8x128xf32>
    %111 = arith.addf %105, %110 : vector<8x128xf32>
    %112 = vector.extract_strided_slice %80 {offsets = [40, 0], sizes = [8, 128], strides = [1, 1]} : vector<72x128xf32> to vector<8x128xf32>
    %113 = arith.truncf %112 : vector<8x128xf32> to vector<8x128xbf16>
    %c5_82 = arith.constant 5 : index
    %c0_83 = arith.constant 0 : index
    %c0_84 = arith.constant 0 : index
    %114 = vector.load %arg7[%c5_82, %c0_83, %c0_84] : memref<9x128x128xbf16, #tpu.memory_space<vmem>>, vector<1x128x128xbf16>
    %115 = vector.shape_cast %114 : vector<1x128x128xbf16> to vector<128x128xbf16>
    %cst_85 = arith.constant dense<0.000000e+00> : vector<8x128xf32>
    %116 = tpu.matmul %113, %115, %cst_85 {dimension_numbers = #tpu.dot_dimension_numbers<[1], [0], [0], [1], [0, 0, 1, 1], [], []>} : vector<8x128xbf16>, vector<128x128xbf16>, vector<8x128xf32> -> vector<8x128xf32>
    %117 = arith.addf %111, %116 : vector<8x128xf32>
    %118 = vector.extract_strided_slice %80 {offsets = [48, 0], sizes = [8, 128], strides = [1, 1]} : vector<72x128xf32> to vector<8x128xf32>
    %119 = arith.truncf %118 : vector<8x128xf32> to vector<8x128xbf16>
    %c6_86 = arith.constant 6 : index
    %c0_87 = arith.constant 0 : index
    %c0_88 = arith.constant 0 : index
    %120 = vector.load %arg7[%c6_86, %c0_87, %c0_88] : memref<9x128x128xbf16, #tpu.memory_space<vmem>>, vector<1x128x128xbf16>
    %121 = vector.shape_cast %120 : vector<1x128x128xbf16> to vector<128x128xbf16>
    %cst_89 = arith.constant dense<0.000000e+00> : vector<8x128xf32>
    %122 = tpu.matmul %119, %121, %cst_89 {dimension_numbers = #tpu.dot_dimension_numbers<[1], [0], [0], [1], [0, 0, 1, 1], [], []>} : vector<8x128xbf16>, vector<128x128xbf16>, vector<8x128xf32> -> vector<8x128xf32>
    %123 = arith.addf %117, %122 : vector<8x128xf32>
    %124 = vector.extract_strided_slice %80 {offsets = [56, 0], sizes = [8, 128], strides = [1, 1]} : vector<72x128xf32> to vector<8x128xf32>
    %125 = arith.truncf %124 : vector<8x128xf32> to vector<8x128xbf16>
    %c7_90 = arith.constant 7 : index
    %c0_91 = arith.constant 0 : index
    %c0_92 = arith.constant 0 : index
    %126 = vector.load %arg7[%c7_90, %c0_91, %c0_92] : memref<9x128x128xbf16, #tpu.memory_space<vmem>>, vector<1x128x128xbf16>
    %127 = vector.shape_cast %126 : vector<1x128x128xbf16> to vector<128x128xbf16>
    %cst_93 = arith.constant dense<0.000000e+00> : vector<8x128xf32>
    %128 = tpu.matmul %125, %127, %cst_93 {dimension_numbers = #tpu.dot_dimension_numbers<[1], [0], [0], [1], [0, 0, 1, 1], [], []>} : vector<8x128xbf16>, vector<128x128xbf16>, vector<8x128xf32> -> vector<8x128xf32>
    %129 = arith.addf %123, %128 : vector<8x128xf32>
    %130 = vector.extract_strided_slice %80 {offsets = [64, 0], sizes = [8, 128], strides = [1, 1]} : vector<72x128xf32> to vector<8x128xf32>
    %131 = arith.truncf %130 : vector<8x128xf32> to vector<8x128xbf16>
    %c8_94 = arith.constant 8 : index
    %c0_95 = arith.constant 0 : index
    %c0_96 = arith.constant 0 : index
    %132 = vector.load %arg7[%c8_94, %c0_95, %c0_96] : memref<9x128x128xbf16, #tpu.memory_space<vmem>>, vector<1x128x128xbf16>
    %133 = vector.shape_cast %132 : vector<1x128x128xbf16> to vector<128x128xbf16>
    %cst_97 = arith.constant dense<0.000000e+00> : vector<8x128xf32>
    %134 = tpu.matmul %131, %133, %cst_97 {dimension_numbers = #tpu.dot_dimension_numbers<[1], [0], [0], [1], [0, 0, 1, 1], [], []>} : vector<8x128xbf16>, vector<128x128xbf16>, vector<8x128xf32> -> vector<8x128xf32>
    %135 = arith.addf %129, %134 : vector<8x128xf32>
    %c0_98 = arith.constant 0 : index
    %c0_99 = arith.constant 0 : index
    %136 = vector.load %arg8[%c0_98, %c0_99] : memref<1x128xf32, #tpu.memory_space<vmem>>, vector<1x128xf32>
    %137 = vector.broadcast %136 : vector<1x128xf32> to vector<8x128xf32>
    %138 = arith.addf %135, %137 : vector<8x128xf32>
    %cst_100 = arith.constant 0.000000e+00 : f32
    %139 = vector.broadcast %cst_100 : f32 to vector<8x128xf32>
    %140 = arith.maximumf %138, %139 : vector<8x128xf32>
    %c0_101 = arith.constant 0 : index
    %c0_102 = arith.constant 0 : index
    %141 = vector.load %arg9[%c0_101, %c0_102] : memref<128x1024xf32, #tpu.memory_space<vmem>>, vector<128x1024xf32>
    %cst_103 = arith.constant dense<0.000000e+00> : vector<8x1024xf32>
    %142 = tpu.matmul %140, %141, %cst_103 {dimension_numbers = #tpu.dot_dimension_numbers<[1], [0], [0], [1], [0, 0, 1, 1], [], []>} : vector<8x128xf32>, vector<128x1024xf32>, vector<8x1024xf32> -> vector<8x1024xf32>
    %c0_104 = arith.constant 0 : index
    %c0_105 = arith.constant 0 : index
    %143 = vector.load %arg10[%c0_104, %c0_105] : memref<1x1024xf32, #tpu.memory_space<vmem>>, vector<1x1024xf32>
    %144 = vector.broadcast %143 : vector<1x1024xf32> to vector<8x1024xf32>
    %145 = arith.addf %142, %144 : vector<8x1024xf32>
    %cst_106 = arith.constant 0.000000e+00 : f32
    %146 = vector.broadcast %cst_106 : f32 to vector<8x1024xf32>
    %147 = arith.maximumf %145, %146 : vector<8x1024xf32>
    %c0_107 = arith.constant 0 : index
    %c0_108 = arith.constant 0 : index
    %148 = vector.load %arg11[%c0_107, %c0_108] : memref<1024x128xf32, #tpu.memory_space<vmem>>, vector<1024x128xf32>
    %cst_109 = arith.constant dense<0.000000e+00> : vector<8x128xf32>
    %149 = tpu.matmul %147, %148, %cst_109 {dimension_numbers = #tpu.dot_dimension_numbers<[1], [0], [0], [1], [0, 0, 1, 1], [], []>} : vector<8x1024xf32>, vector<1024x128xf32>, vector<8x128xf32> -> vector<8x128xf32>
    %c0_110 = arith.constant 0 : index
    %c0_111 = arith.constant 0 : index
    %150 = vector.load %arg12[%c0_110, %c0_111] : memref<1x128xf32, #tpu.memory_space<vmem>>, vector<1x128xf32>
    %151 = vector.broadcast %150 : vector<1x128xf32> to vector<8x128xf32>
    %152 = arith.addf %149, %151 : vector<8x128xf32>
    %c0_112 = arith.constant 0 : index
    %c0_113 = arith.constant 0 : index
    %153 = vector.load %arg14[%c0_112, %c0_113] : memref<1x128xf32, #tpu.memory_space<vmem>>, vector<1x128xf32>
    %154 = vector.broadcast %153 : vector<1x128xf32> to vector<8x128xf32>
    %155 = arith.mulf %152, %154 : vector<8x128xf32>
    %cst_114 = arith.constant dense<0.000000e+00> : vector<8xf32>
    %156 = vector.multi_reduction <add>, %155, %cst_114 [1] : vector<8x128xf32> to vector<8xf32>
    %157 = vector.shape_cast %156 : vector<8xf32> to vector<8x1xf32>
    %c0_115 = arith.constant 0 : index
    %c0_116 = arith.constant 0 : index
    %158 = vector.load %arg13[%c0_115, %c0_116] : memref<1x128xf32, #tpu.memory_space<vmem>>, vector<1x128xf32>
    %159 = vector.broadcast %158 : vector<1x128xf32> to vector<8x128xf32>
    %160 = arith.mulf %152, %159 : vector<8x128xf32>
    %cst_117 = arith.constant dense<0.000000e+00> : vector<8xf32>
    %161 = vector.multi_reduction <add>, %160, %cst_117 [1] : vector<8x128xf32> to vector<8xf32>
    %162 = vector.shape_cast %161 : vector<8xf32> to vector<8x1xf32>
    %cst_118 = arith.constant 0.166666672 : f32
    %163 = vector.broadcast %cst_118 : f32 to vector<8x1xf32>
    %164 = arith.mulf %162, %163 : vector<8x1xf32>
    %165 = arith.subf %157, %164 : vector<8x1xf32>
    %166 = vector.broadcast %165 : vector<8x1xf32> to vector<8x128xf32>
    %167 = arith.addf %152, %166 : vector<8x128xf32>
    %c0_119 = arith.constant 0 : index
    %c0_120 = arith.constant 0 : index
    %168 = vector.load %arg15[%c0_119, %c0_120] : memref<8x128xf32, #tpu.memory_space<vmem>>, vector<8x128xf32>
    tpu.vector_store %arg15[%c0_119, %c0_120], %167 {strides = array<i32>} : memref<8x128xf32, #tpu.memory_space<vmem>>, vector<8x128xf32>,
    return
  }
  func.func @transform_0(%arg0: i32) -> (i32, i32) {
    %c0_i32 = arith.constant 0 : i32
    %c0_i32_0 = arith.constant 0 : i32
    return %arg0, %c0_i32 : i32, i32
  }
  func.func @transform_1(%arg0: i32) -> (i32, i32) {
    %c0_i32 = arith.constant 0 : i32
    %c0_i32_0 = arith.constant 0 : i32
    %c0_i32_1 = arith.constant 0 : i32
    return %c0_i32, %c0_i32_0 : i32, i32
  }
  func.func @transform_2(%arg0: i32) -> (i32, i32) {
    %c0_i32 = arith.constant 0 : i32
    %c0_i32_0 = arith.constant 0 : i32
    %c0_i32_1 = arith.constant 0 : i32
    return %c0_i32, %c0_i32_0 : i32, i32
  }
  func.func @transform_3(%arg0: i32) -> (i32, i32, i32) {
    %c0_i32 = arith.constant 0 : i32
    %c0_i32_0 = arith.constant 0 : i32
    %c0_i32_1 = arith.constant 0 : i32
    %c0_i32_2 = arith.constant 0 : i32
    return %c0_i32, %c0_i32_0, %c0_i32_1 : i32, i32, i32
  }
  func.func @transform_4(%arg0: i32) -> (i32, i32) {
    %c0_i32 = arith.constant 0 : i32
    %c0_i32_0 = arith.constant 0 : i32
    %c0_i32_1 = arith.constant 0 : i32
    return %c0_i32, %c0_i32_0 : i32, i32
  }
  func.func @transform_5(%arg0: i32) -> (i32, i32) {
    %c0_i32 = arith.constant 0 : i32
    %c0_i32_0 = arith.constant 0 : i32
    %c0_i32_1 = arith.constant 0 : i32
    return %c0_i32, %c0_i32_0 : i32, i32
  }
  func.func @transform_6(%arg0: i32) -> (i32, i32, i32) {
    %c0_i32 = arith.constant 0 : i32
    %c0_i32_0 = arith.constant 0 : i32
    %c0_i32_1 = arith.constant 0 : i32
    %c0_i32_2 = arith.constant 0 : i32
    return %c0_i32, %c0_i32_0, %c0_i32_1 : i32, i32, i32
  }
  func.func @transform_7(%arg0: i32) -> (i32, i32) {
    %c0_i32 = arith.constant 0 : i32
    %c0_i32_0 = arith.constant 0 : i32
    %c0_i32_1 = arith.constant 0 : i32
    return %c0_i32, %c0_i32_0 : i32, i32
  }
  func.func @transform_8(%arg0: i32) -> (i32, i32) {
    %c0_i32 = arith.constant 0 : i32
    %c0_i32_0 = arith.constant 0 : i32
    %c0_i32_1 = arith.constant 0 : i32
    return %c0_i32, %c0_i32_0 : i32, i32
  }
  func.func @transform_9(%arg0: i32) -> (i32, i32) {
    %c0_i32 = arith.constant 0 : i32
    %c0_i32_0 = arith.constant 0 : i32
    %c0_i32_1 = arith.constant 0 : i32
    return %c0_i32, %c0_i32_0 : i32, i32
  }
  func.func @transform_10(%arg0: i32) -> (i32, i32) {
    %c0_i32 = arith.constant 0 : i32
    %c0_i32_0 = arith.constant 0 : i32
    %c0_i32_1 = arith.constant 0 : i32
    return %c0_i32, %c0_i32_0 : i32, i32
  }
  func.func @transform_11(%arg0: i32) -> (i32, i32) {
    %c0_i32 = arith.constant 0 : i32
    %c0_i32_0 = arith.constant 0 : i32
    %c0_i32_1 = arith.constant 0 : i32
    return %c0_i32, %c0_i32_0 : i32, i32
  }
  func.func @transform_12(%arg0: i32) -> (i32, i32) {
    %c0_i32 = arith.constant 0 : i32
    %c0_i32_0 = arith.constant 0 : i32
    %c0_i32_1 = arith.constant 0 : i32
    return %c0_i32, %c0_i32_0 : i32, i32
  }
  func.func @transform_13(%arg0: i32) -> (i32, i32) {
    %c0_i32 = arith.constant 0 : i32
    %c0_i32_0 = arith.constant 0 : i32
    %c0_i32_1 = arith.constant 0 : i32
    return %c0_i32, %c0_i32_0 : i32, i32
  }
  func.func @transform_14(%arg0: i32) -> (i32, i32) {
    %c0_i32 = arith.constant 0 : i32
    %c0_i32_0 = arith.constant 0 : i32
    return %arg0, %c0_i32 : i32, i32
  }
}

</mosaic_0001>

<bundles_post_ra>
// kernel: qnetwork_forward.1
= control target key start
LH: loop header
LB: loop body
LE: loop exit
PB: predicated region body
PF: predicated region fallthrough
CT: control target
= control target key end

     0   :  { %s13477_s29 = smov 0   ;;  %s17700_s0 = inlined_call_operand.vmem [shape: bf16[1024,256], index: 0, kind: input, shape index: {}]   ;;  %s17701_s1 = inlined_call_operand.vmem [shape: bf16[256,128], index: 1, kind: input, shape index: {}]   ;;  %s17702_s2 = inlined_call_operand.vmem [shape: f32[1,128], index: 2, kind: input, shape index: {}]   ;;  %s17703_s3 = inlined_call_operand.vmem [shape: bf16[16,72,512], index: 3, kind: input, shape index: {}]   ;;  %s17704_s4 = inlined_call_operand.vmem [shape: bf16[2048,128], index: 4, kind: input, shape index: {}]   ;;  %s17705_s5 = inlined_call_operand.vmem [shape: f32[1,128], index: 5, kind: input, shape index: {}]   ;;  %s17706_s6 = inlined_call_operand.vmem [shape: bf16[9,128,128], index: 6, kind: input, shape index: {}]   ;;  %s17707_s7 = inlined_call_operand.vmem [shape: f32[1,128], index: 7, kind: input, shape index: {}]   ;;  %s17708_s8 = inlined_call_operand.vmem [shape: f32[128,1024], index: 8, kind: input, shape index: {}]   ;;  %s17709_s9 = inlined_call_operand.vmem [shape: f32[1,1024], index: 9, kind: input, shape index: {}]   ;;  %s17710_s10 = inlined_call_operand.vmem [shape: f32[1024,128], index: 10, kind: input, shape index: {}]   ;;  %s17711_s11 = inlined_call_operand.vmem [shape: f32[1,128], index: 11, kind: input, shape index: {}]   ;;  %s17712_s12 = inlined_call_operand.vmem [shape: f32[1,128], index: 12, kind: input, shape index: {}]   ;;  %s17713_s13 = inlined_call_operand.vmem [shape: f32[1,128], index: 13, kind: input, shape index: {}]   ;;  %s17714_s14 = inlined_call_operand.vmem [shape: f32[16,128], index: 14, kind: output, shape index: {}]  }
   0x1 LB: > { %s13483_s30 = sadd.s32 4294967295, %s13397_s29   ;;  %p9110_p0 = scmp.ge.s32.totalorder %s13397_s29, 1  ;;  %s13397_s29 = sphi %s13477_s29, %s24_s29  }
   0x2   : > { %p414_p1 = scmp.lt.s32.totalorder %s13397_s29, 3 }
   0x4   : > { %p415_p2 = pnand %p9110_p0, %p414_p1 }
   0x6   : > { %418 = sbr.rel (%p415_p2) target bundleno = 2685 (0xa7d), region = 76 }
   0xd   : > { %v12630_v0 = vld [vmem:[%s17701_s1] sm:$0xff]   ;;  %v13399_v1 = vmov 0   ;;  %s9111_s17 = sshll.u32 %s13483_s30, 6  ;;  %v12631_v2 = vld [vmem:[%s17701_s1 + $0x8] sm:$0xff]   ;;  %v12632_v3 = vld [vmem:[%s17701_s1 + $0x10] sm:$0xff]   ;;  %vm13401_vm0 = vmmov 0  }
   0xe   : > { %991 = vmatprep.subr.bf16.mxu0 %v13399_v1  ;;  %p461_p3 = scmp.lt.s32.totalorder %s9111_s17, 127  ;;  %v12633_v4 = vld [vmem:[%s17701_s1 + $0x18] sm:$0xff]   ;;  %v12634_v5 = vld [vmem:[%s17701_s1 + $0x20] sm:$0xff]   ;;  %v12635_v7 = vld [vmem:[%s17701_s1 + $0x28] sm:$0xff]   ;;  %p467_p4 = scmp.lt.s32.totalorder %s13483_s30, 1 }
   0xf   : > { %992 = vmatpush1.bf16.msra.mxu0 %v12630_v0  ;;  %v12636_v8 = vld [vmem:[%s17701_s1 + $0x30] sm:$0xff]   ;;  %v12637_v9 = vld [vmem:[%s17701_s1 + $0x38] sm:$0xff]   ;;  %v12638_v10 = vld [vmem:[%s17701_s1 + $0x40] sm:$0xff]  }
  0x10   : > { %993 = vmatprep.subr.bf16.mxu0 %v13399_v1  ;;  %s17986_s17 = smov (!%p461_p3, %s9111_s17), 127  ;;  %v12639_v11 = vld [vmem:[%s17701_s1 + $0x48] sm:$0xff]   ;;  %v12640_v12 = vld [vmem:[%s17701_s1 + $0x50] sm:$0xff]   ;;  %v12641_v13 = vld [vmem:[%s17701_s1 + $0x58] sm:$0xff]   ;;  %s17988_s30 = smov (!%p467_p4, %s13483_s30), 1 }
  0x11   : > { %s10121_s24 = sshll.u32 %s17986_s17, 3  ;;  %v12642_v14 = vld [vmem:[%s17701_s1 + $0x60] sm:$0xff]   ;;  %v12643_v15 = vld [vmem:[%s17701_s1 + $0x68] sm:$0xff]   ;;  %v12644_v16 = vld [vmem:[%s17701_s1 + $0x70] sm:$0xff]   ;;  %s9114_s18 = sshll.u32 %s17988_s30, 3 }
  0x12   : > { %s13506_s15 = scalar_lea.vmem %s17700_s0, %s10121_s24  ;;  %v12645_v17 = vld [vmem:[%s17701_s1 + $0x78] sm:$0xff]   ;;  %s470_s20 = scalar_lea.vmem %s17714_s14, %s9114_s18 }
  0x13   : > { %994 = vmatpush1.bf16.msra.mxu0 %v12631_v2  ;;  %v12648_v6 = vld [vmem:[%s13506_s15 + $0x4] ss:$8 sps:$4 sm:$0xff]   ;;  %v12646_v18 = vld [vmem:[%s13506_s15] ss:$8 sps:$4 sm:$0xff]   ;;  %v12649_v19 = vld [vmem:[%s13506_s15 + $0x14] ss:$8 sps:$4 sm:$0xff]  }
  0x14   : > { %995 = vmatprep.subr.bf16.mxu0 %v13399_v1  ;;  %1023 = vmatprep.mubr.bf16.mxu0 %v12648_v6  ;;  %v12651_v20 = vld [vmem:[%s13506_s15 + $0x10] ss:$8 sps:$4 sm:$0xff]   ;;  %v12652_v21 = vld [vmem:[%s13506_s15 + $0x24] ss:$8 sps:$4 sm:$0xff]   ;;  %v12654_v22 = vld [vmem:[%s13506_s15 + $0x20] ss:$8 sps:$4 sm:$0xff]  }
  0x15   : > { %v12655_v23 = vld [vmem:[%s13506_s15 + $0x34] ss:$8 sps:$4 sm:$0xff]   ;;  %v12657_v24 = vld [vmem:[%s13506_s15 + $0x30] ss:$8 sps:$4 sm:$0xff]   ;;  %v12658_v25 = vld [vmem:[%s13506_s15 + $0x44] ss:$8 sps:$4 sm:$0xff]  }
  0x16   : > { %v12660_v26 = vld [vmem:[%s13506_s15 + $0x40] ss:$8 sps:$4 sm:$0xff]   ;;  %v12661_v27 = vld [vmem:[%s13506_s15 + $0x54] ss:$8 sps:$4 sm:$0xff]   ;;  %v12663_v28 = vld [vmem:[%s13506_s15 + $0x50] ss:$8 sps:$4 sm:$0xff]  }
  0x17   : > { %996 = vmatpush1.bf16.msra.mxu0 %v12632_v3  ;;  %v12664_v29 = vld [vmem:[%s13506_s15 + $0x64] ss:$8 sps:$4 sm:$0xff]   ;;  %v12666_v30 = vld [vmem:[%s13506_s15 + $0x60] ss:$8 sps:$4 sm:$0xff]   ;;  %v12667_v31 = vld [vmem:[%s13506_s15 + $0x74] ss:$8 sps:$4 sm:$0xff]  }
  0x18   : > { %997 = vmatprep.subr.bf16.mxu0 %v13399_v1  ;;  %v12669_v32 = vld [vmem:[%s13506_s15 + $0x70] ss:$8 sps:$4 sm:$0xff]   ;;  %v12670_v33 = vld [vmem:[%s13506_s15 + $0x84] ss:$8 sps:$4 sm:$0xff]   ;;  %v12672_v34 = vld [vmem:[%s13506_s15 + $0x80] ss:$8 sps:$4 sm:$0xff]  }
  0x19   : > { %v12673_v35 = vld [vmem:[%s13506_s15 + $0x94] ss:$8 sps:$4 sm:$0xff]   ;;  %v12675_v36 = vld [vmem:[%s13506_s15 + $0x90] ss:$8 sps:$4 sm:$0xff]   ;;  %v12676_v37 = vld [vmem:[%s13506_s15 + $0xa4] ss:$8 sps:$4 sm:$0xff]  }
  0x1a   : > { %v12678_v38 = vld [vmem:[%s13506_s15 + $0xa0] ss:$8 sps:$4 sm:$0xff]   ;;  %v12679_v39 = vld [vmem:[%s13506_s15 + $0xb4] ss:$8 sps:$4 sm:$0xff]   ;;  %v12681_v40 = vld [vmem:[%s13506_s15 + $0xb0] ss:$8 sps:$4 sm:$0xff]  }
  0x1b   : > { %998 = vmatpush1.bf16.msra.mxu0 %v12633_v4  ;;  %v12682_v41 = vld [vmem:[%s13506_s15 + $0xc4] ss:$8 sps:$4 sm:$0xff]   ;;  %v12684_v42 = vld [vmem:[%s13506_s15 + $0xc0] ss:$8 sps:$4 sm:$0xff]   ;;  %v12685_v43 = vld [vmem:[%s13506_s15 + $0xd4] ss:$8 sps:$4 sm:$0xff]  }
  0x1c   : > { %999 = vmatprep.subr.bf16.mxu0 %v13399_v1  ;;  %v12687_v44 = vld [vmem:[%s13506_s15 + $0xd0] ss:$8 sps:$4 sm:$0xff]   ;;  %v12688_v45 = vld [vmem:[%s13506_s15 + $0xe4] ss:$8 sps:$4 sm:$0xff]   ;;  %v12690_v46 = vld [vmem:[%s13506_s15 + $0xe0] ss:$8 sps:$4 sm:$0xff]  }
  0x1d   : > { %v12691_v47 = vld [vmem:[%s13506_s15 + $0xf4] ss:$8 sps:$4 sm:$0xff]   ;;  %v12693_v48 = vld [vmem:[%s13506_s15 + $0xf0] ss:$8 sps:$4 sm:$0xff]   ;;  %v12694_v49 = vld [vmem:[%s13506_s15 + $0x104] ss:$8 sps:$4 sm:$0xff]  }
  0x1e   : > { %v12696_v50 = vld [vmem:[%s13506_s15 + $0x100] ss:$8 sps:$4 sm:$0xff]   ;;  %v12697_v51 = vld [vmem:[%s13506_s15 + $0x114] ss:$8 sps:$4 sm:$0xff]   ;;  %v12699_v52 = vld [vmem:[%s13506_s15 + $0x110] ss:$8 sps:$4 sm:$0xff]  }
  0x1f   : > { %1000 = vmatpush1.bf16.msra.mxu0 %v12634_v5  ;;  %v12700_v53 = vld [vmem:[%s13506_s15 + $0x124] ss:$8 sps:$4 sm:$0xff]   ;;  %v12702_v54 = vld [vmem:[%s13506_s15 + $0x120] ss:$8 sps:$4 sm:$0xff]   ;;  %v12703_v55 = vld [vmem:[%s13506_s15 + $0x134] ss:$8 sps:$4 sm:$0xff]  }
  0x20   : > { %1001 = vmatprep.subr.bf16.mxu0 %v13399_v1  ;;  %v12705_v56 = vld [vmem:[%s13506_s15 + $0x130] ss:$8 sps:$4 sm:$0xff]   ;;  %v12706_v57 = vld [vmem:[%s13506_s15 + $0x144] ss:$8 sps:$4 sm:$0xff]   ;;  %v12708_v58 = vld [vmem:[%s13506_s15 + $0x140] ss:$8 sps:$4 sm:$0xff]  }
  0x21   : > { %v12709_v59 = vld [vmem:[%s13506_s15 + $0x154] ss:$8 sps:$4 sm:$0xff]   ;;  %v12711_v60 = vld [vmem:[%s13506_s15 + $0x150] ss:$8 sps:$4 sm:$0xff]   ;;  %v12712_v61 = vld [vmem:[%s13506_s15 + $0x164] ss:$8 sps:$4 sm:$0xff]  }
  0x22   : > { %v12714_v62 = vld [vmem:[%s13506_s15 + $0x160] ss:$8 sps:$4 sm:$0xff]   ;;  %v12715_v63 = vld [vmem:[%s13506_s15 + $0x174] ss:$8 sps:$4 sm:$0xff]   ;;  %v12717_v0 = vld [vmem:[%s13506_s15 + $0x170] ss:$8 sps:$4 sm:$0xff]  }
  0x23   : > { %1002 = vmatpush1.bf16.msra.mxu0 %v12635_v7  ;;  %v12720_v2 = vld [vmem:[%s13506_s15 + $0x180] ss:$8 sps:$4 sm:$0xff]   ;;  %v12721_v3 = vld [vmem:[%s13506_s15 + $0x194] ss:$8 sps:$4 sm:$0xff]   ;;  %v12723_v4 = vld [vmem:[%s13506_s15 + $0x190] ss:$8 sps:$4 sm:$0xff]  }
  0x24   : > { %1003 = vmatprep.subr.bf16.mxu0 %v13399_v1  ;;  %v12724_v5 = vld [vmem:[%s13506_s15 + $0x1a4] ss:$8 sps:$4 sm:$0xff]   ;;  %v12726_v6 = vld [vmem:[%s13506_s15 + $0x1a0] ss:$8 sps:$4 sm:$0xff]   ;;  %v12727_v7 = vld [vmem:[%s13506_s15 + $0x1b4] ss:$8 sps:$4 sm:$0xff]  }
  0x27   : > { %1004 = vmatpush1.bf16.msra.mxu0 %v12636_v8  ;;  %v13599_v8 = vld [vmem:[%s17702_s2] ss:$0 sm:$0xff] }
  0x28   : > { %1005 = vmatprep.subr.bf16.mxu0 %v13399_v1 }
  0x2b   : > { %1006 = vmatpush1.bf16.msra.mxu0 %v12637_v9  ;;  %v12729_v9 = vld [vmem:[%s13506_s15 + $0x1b0] ss:$8 sps:$4 sm:$0xff]  }
  0x2c   : > { %1007 = vmatprep.subr.bf16.mxu0 %v13399_v1 }
  0x2f   : > { %1008 = vmatpush1.bf16.msra.mxu0 %v12638_v10 }
  0x30   : > { %1009 = vmatprep.subr.bf16.mxu0 %v13399_v1 }
  0x33   : > { %1010 = vmatpush1.bf16.msra.mxu0 %v12639_v11 }
  0x34   : > { %1011 = vmatprep.subr.bf16.mxu0 %v13399_v1 }
  0x37   : > { %1012 = vmatpush1.bf16.msra.mxu0 %v12640_v12 }
  0x38   : > { %1013 = vmatprep.subr.bf16.mxu0 %v13399_v1 }
  0x3b   : > { %1014 = vmatpush1.bf16.msra.mxu0 %v12641_v13 }
  0x3c   : > { %1015 = vmatprep.subr.bf16.mxu0 %v13399_v1 }
  0x3f   : > { %1016 = vmatpush1.bf16.msra.mxu0 %v12642_v14  ;;  %v12730_v14 = vld [vmem:[%s13506_s15 + $0x1c4] ss:$8 sps:$4 sm:$0xff]  }
  0x40   : > { %1017 = vmatprep.subr.bf16.mxu0 %v13399_v1 }
  0x43   : > { %1018 = vmatpush1.bf16.msra.mxu0 %v12643_v15 }
  0x44   : > { %1019 = vmatprep.subr.bf16.mxu0 %v13399_v1 }
  0x47   : > { %1020 = vmatpush1.bf16.msra.mxu0 %v12644_v16 }
  0x48   : > { %1021 = vmatprep.subr.bf16.mxu0 %v13399_v1  ;;  %v12718_v1 = vld [vmem:[%s13506_s15 + $0x184] ss:$8 sps:$4 sm:$0xff]  }
  0x4b   : > { %1022 = vmatpush1.bf16.msra.mxu0 %v12645_v17 }
  0x4e   : > { %1024 = vmatmul.mubr.bf16.vlgmr.msra.gmra.mrb[0].mxu0 %v12646_v18 }
  0x4f   : > { %1031 = vmatprep.mubr.bf16.mxu0 %v12649_v19 }
  0x56   : > { %1032 = vmatmul.mubr.bf16.gmra.mrb[4].mxu0 %v12651_v20 }
  0x57   : > { %1039 = vmatprep.mubr.bf16.mxu0 %v12652_v21 }
  0x5e   : > { %1040 = vmatmul.mubr.bf16.gmra.mrb[8].mxu0 %v12654_v22 }
  0x5f   : > { %1047 = vmatprep.mubr.bf16.mxu0 %v12655_v23  ;;  %v12732_v23 = vld [vmem:[%s13506_s15 + $0x1c0] ss:$8 sps:$4 sm:$0xff]  }
  0x66   : > { %1048 = vmatmul.mubr.bf16.gmra.mrb[12].mxu0 %v12657_v24 }
  0x67   : > { %1055 = vmatprep.mubr.bf16.mxu0 %v12658_v25  ;;  %v12733_v25 = vld [vmem:[%s13506_s15 + $0x1d4] ss:$8 sps:$4 sm:$0xff]  }
  0x6e   : > { %1056 = vmatmul.mubr.bf16.gmra.mrb[16].mxu0 %v12660_v26 }
  0x6f   : > { %1063 = vmatprep.mubr.bf16.mxu0 %v12661_v27 }
  0x76   : > { %1064 = vmatmul.mubr.bf16.gmra.mrb[20].mxu0 %v12663_v28 }
  0x77   : > { %1071 = vmatprep.mubr.bf16.mxu0 %v12664_v29 }
  0x7e   : > { %1072 = vmatmul.mubr.bf16.gmra.mrb[24].mxu0 %v12666_v30 }
  0x7f   : > { %1079 = vmatprep.mubr.bf16.mxu0 %v12667_v31 }
  0x86   : > { %1080 = vmatmul.mubr.bf16.gmra.mrb[28].mxu0 %v12669_v32 }
  0x87   : > { %1087 = vmatprep.mubr.bf16.mxu0 %v12670_v33 }
  0x8e   : > { %1088 = vmatmul.mubr.bf16.gmra.mrb[32].mxu0 %v12672_v34  ;;  %v12735_v34 = vld [vmem:[%s13506_s15 + $0x1d0] ss:$8 sps:$4 sm:$0xff]  }
  0x8f   : > { %1095 = vmatprep.mubr.bf16.mxu0 %v12673_v35 }
  0x96   : > { %1096 = vmatmul.mubr.bf16.gmra.mrb[36].mxu0 %v12675_v36  ;;  %v12736_v36 = vld [vmem:[%s13506_s15 + $0x1e4] ss:$8 sps:$4 sm:$0xff]  }
  0x97   : > { %1103 = vmatprep.mubr.bf16.mxu0 %v12676_v37 }
  0x9e   : > { %1104 = vmatmul.mubr.bf16.gmra.mrb[40].mxu0 %v12678_v38 }
  0x9f   : > { %1111 = vmatprep.mubr.bf16.mxu0 %v12679_v39 }
  0xa6   : > { %1112 = vmatmul.mubr.bf16.gmra.mrb[44].mxu0 %v12681_v40 }
  0xa7   : > { %1119 = vmatprep.mubr.bf16.mxu0 %v12682_v41 }
  0xae   : > { %1120 = vmatmul.mubr.bf16.gmra.mrb[48].mxu0 %v12684_v42 }
  0xaf   : > { %1127 = vmatprep.mubr.bf16.mxu0 %v12685_v43 }
  0xb6   : > { %1128 = vmatmul.mubr.bf16.gmra.mrb[52].mxu0 %v12687_v44 }
  0xb7   : > { %1135 = vmatprep.mubr.bf16.mxu0 %v12688_v45  ;;  %v12738_v45 = vld [vmem:[%s13506_s15 + $0x1e0] ss:$8 sps:$4 sm:$0xff]  }
  0xbe   : > { %1136 = vmatmul.mubr.bf16.gmra.mrb[56].mxu0 %v12690_v46 }
  0xbf   : > { %1143 = vmatprep.mubr.bf16.mxu0 %v12691_v47  ;;  %v12739_v47 = vld [vmem:[%s13506_s15 + $0x1f4] ss:$8 sps:$4 sm:$0xff]  }
  0xc6   : > { %1144 = vmatmul.mubr.bf16.gmra.mrb[60].mxu0 %v12693_v48 }
  0xc7   : > { %1151 = vmatprep.mubr.bf16.mxu0 %v12694_v49 }
  0xce   : > { %1152 = vmatmul.mubr.bf16.gmra.mrb[64].mxu0 %v12696_v50 }
  0xcf   : > { %1159 = vmatprep.mubr.bf16.mxu0 %v12697_v51 }
  0xd6   : > { %1160 = vmatmul.mubr.bf16.gmra.mrb[68].mxu0 %v12699_v52 }
  0xd7   : > { %1167 = vmatprep.mubr.bf16.mxu0 %v12700_v53 }
  0xde   : > { %1168 = vmatmul.mubr.bf16.gmra.mrb[72].mxu0 %v12702_v54 }
  0xdf   : > { %1175 = vmatprep.mubr.bf16.mxu0 %v12703_v55 }
  0xe6   : > { %1176 = vmatmul.mubr.bf16.gmra.mrb[76].mxu0 %v12705_v56  ;;  %v12741_v56 = vld [vmem:[%s13506_s15 + $0x1f0] ss:$8 sps:$4 sm:$0xff]  }
  0xe7   : > { %1183 = vmatprep.mubr.bf16.mxu0 %v12706_v57 }
  0xee   : > { %1184 = vmatmul.mubr.bf16.gmra.mrb[80].mxu0 %v12708_v58  ;;  %v12744_v58 = vld [vmem:[%s17703_s3 + $0x244] ss:$16 sps:$4 sm:$0xff]  }
  0xef   : > { %1191 = vmatprep.mubr.bf16.mxu0 %v12709_v59 }
  0xf6   : > { %1192 = vmatmul.mubr.bf16.gmra.mrb[84].mxu0 %v12711_v60 }
  0xf7   : > { %1199 = vmatprep.mubr.bf16.mxu0 %v12712_v61 }
  0xfe   : > { %1200 = vmatmul.mubr.bf16.gmra.mrb[88].mxu0 %v12714_v62 }
  0xff   : > { %1207 = vmatprep.mubr.bf16.mxu0 %v12715_v63 }
 0x106   : > { %1208 = vmatmul.mubr.bf16.gmra.mrb[92].mxu0 %v12717_v0 }
 0x107   : > { %1215 = vmatprep.mubr.bf16.mxu0 %v12718_v1 }
 0x10e   : > { %1216 = vmatmul.mubr.bf16.gmra.mrb[96].mxu0 %v12720_v2 }
 0x10f   : > { %1223 = vmatprep.mubr.bf16.mxu0 %v12721_v3 }
 0x116   : > { %1224 = vmatmul.mubr.bf16.gmra.mrb[100].mxu0 %v12723_v4 }
 0x117   : > { %1231 = vmatprep.mubr.bf16.mxu0 %v12724_v5 }
 0x11e   : > { %1232 = vmatmul.mubr.bf16.gmra.mrb[104].mxu0 %v12726_v6 }
 0x11f   : > { %1239 = vmatprep.mubr.bf16.mxu0 %v12727_v7 }
 0x121   : > { %v1025_v10 = vpop.f32.mrb[0].mxu0 }
 0x122   : > { %v1026_v11 = vadd.f32 %v13599_v8, %v1025_v10  ;;  %v1027_v12 = vpop.f32.mrb[1].mxu0 }
 0x123   : > { %v1028_v13 = vpop.f32.mrb[2].mxu0 }
 0x124   : > { %v1029_v15 = vadd.f32 %v13599_v8, %v1028_v13  ;;  %v1030_v16 = vpop.f32.mrb[3].mxu0  ;;  %v1280_v17 = vmax.f32 %v1026_v11, 0.0 }
 0x126   : > { %v1281_v18 = vmax.f32 %v1029_v15, 0.0  ;;  %1240 = vmatmul.mubr.bf16.gmra.mrb[108].mxu0 %v12729_v9 }
 0x127   : > { %1247 = vmatprep.mubr.bf16.mxu0 %v12730_v14 }
 0x128   : > { %v13605_v19 = vpack.c.bf16 %v1281_v18, %v1280_v17 }
 0x129   : > { %v1033_v20 = vpop.f32.mrb[4].mxu0 }
 0x12a   : > { %v1034_v21 = vadd.f32 %v13599_v8, %v1033_v20  ;;  %v1035_v22 = vpop.f32.mrb[5].mxu0 }
 0x12b   : > { %v1036_v24 = vpop.f32.mrb[6].mxu0 }
 0x12c   : > { %v1037_v26 = vadd.f32 %v13599_v8, %v1036_v24  ;;  %v1038_v27 = vpop.f32.mrb[7].mxu0  ;;  %v1282_v28 = vmax.f32 %v1034_v21, 0.0 }
 0x12e   : > { %v1283_v29 = vmax.f32 %v1037_v26, 0.0  ;;  %1248 = vmatmul.mubr.bf16.gmra.mrb[112].mxu0 %v12732_v23 }
 0x12f   : > { %1255 = vmatprep.mubr.bf16.mxu0 %v12733_v25 }
 0x130   : > { %v13611_v30 = vpack.c.bf16 %v1283_v29, %v1282_v28 }
 0x131   : > { %v1041_v31 = vpop.f32.mrb[8].mxu0 }
 0x132   : > { %v1042_v32 = vadd.f32 %v13599_v8, %v1041_v31  ;;  %v1043_v33 = vpop.f32.mrb[9].mxu0 }
 0x133   : > { %v1044_v35 = vpop.f32.mrb[10].mxu0 }
 0x134   : > { %v1045_v37 = vadd.f32 %v13599_v8, %v1044_v35  ;;  %v1046_v38 = vpop.f32.mrb[11].mxu0  ;;  %v1284_v39 = vmax.f32 %v1042_v32, 0.0 }
 0x136   : > { %v1285_v40 = vmax.f32 %v1045_v37, 0.0  ;;  %1256 = vmatmul.mubr.bf16.gmra.mrb[116].mxu0 %v12735_v34 }
 0x137   : > { %1263 = vmatprep.mubr.bf16.mxu0 %v12736_v36 }
 0x138   : > { %v13617_v41 = vpack.c.bf16 %v1285_v40, %v1284_v39  ;;  %v12770_v40 = vld [vmem:[%s17703_s3 + $0x4] ss:$16 sps:$4 sm:$0xff]  }
 0x139   : > { %v1049_v42 = vpop.f32.mrb[12].mxu0  ;;  %1520 = vmatprep.mubr.bf16.mxu1 %v12770_v40 }
 0x13a   : > { %v1050_v43 = vadd.f32 %v13599_v8, %v1049_v42  ;;  %v1051_v44 = vpop.f32.mrb[13].mxu0 }
 0x13b   : > { %v1052_v46 = vpop.f32.mrb[14].mxu0 }
 0x13c   : > { %v1053_v48 = vadd.f32 %v13599_v8, %v1052_v46  ;;  %v1054_v49 = vpop.f32.mrb[15].mxu0  ;;  %v1286_v50 = vmax.f32 %v1050_v43, 0.0 }
 0x13e   : > { %v1287_v51 = vmax.f32 %v1053_v48, 0.0  ;;  %1264 = vmatmul.mubr.bf16.gmra.mrb[120].mxu0 %v12738_v45 }
 0x13f   : > { %1271 = vmatprep.mubr.bf16.mxu0 %v12739_v47 }
 0x140   : > { %v13623_v52 = vpack.c.bf16 %v1287_v51, %v1286_v50 }
 0x141   : > { %v1057_v53 = vpop.f32.mrb[16].mxu0 }
 0x142   : > { %v1058_v54 = vadd.f32 %v13599_v8, %v1057_v53  ;;  %v1059_v55 = vpop.f32.mrb[17].mxu0 }
 0x143   : > { %v1060_v57 = vpop.f32.mrb[18].mxu0 }
 0x144   : > { %v1061_v59 = vadd.f32 %v13599_v8, %v1060_v57  ;;  %v1062_v60 = vpop.f32.mrb[19].mxu0  ;;  %v1288_v61 = vmax.f32 %v1058_v54, 0.0 }
 0x146   : > { %v1289_v62 = vmax.f32 %v1061_v59, 0.0  ;;  %1272 = vmatmul.mubr.bf16.gmra.mrb[124].mxu0 %v12741_v56 }
 0x147   : > { %2568 = vmatprep.mubr.bf16.mxu0 %v12744_v58 }
 0x148   : > { %v13631_v63 = vpack.c.bf16 %v1289_v62, %v1288_v61 }
 0x149   : > { %v1065_v0 = vpop.f32.mrb[20].mxu0 }
 0x14a   : > { %v1066_v1 = vadd.f32 %v13599_v8, %v1065_v0  ;;  %v1067_v2 = vpop.f32.mrb[21].mxu0 }
 0x14b   : > { %v1068_v3 = vpop.f32.mrb[22].mxu0 }
 0x14c   : > { %v1069_v4 = vadd.f32 %v13599_v8, %v1068_v3  ;;  %v1070_v5 = vpop.f32.mrb[23].mxu0  ;;  %v1290_v6 = vmax.f32 %v1066_v1, 0.0 }
 0x14e   : > { %v1291_v7 = vmax.f32 %v1069_v4, 0.0 }
 0x150   : > { %v13635_v9 = vpack.c.bf16 %v1291_v7, %v1290_v6 }
 0x151   : > { %v1073_v10 = vpop.f32.mrb[24].mxu0 }
 0x152   : > { %v1074_v11 = vadd.f32 %v13599_v8, %v1073_v10  ;;  %v1075_v12 = vpop.f32.mrb[25].mxu0 }
 0x153   : > { %v1076_v13 = vpop.f32.mrb[26].mxu0 }
 0x154   : > { %v1077_v14 = vadd.f32 %v13599_v8, %v1076_v13  ;;  %v1078_v15 = vpop.f32.mrb[27].mxu0  ;;  %v1292_v16 = vmax.f32 %v1074_v11, 0.0 }
 0x156   : > { %v1293_v17 = vmax.f32 %v1077_v14, 0.0 }
 0x158   : > { %v13639_v18 = vpack.c.bf16 %v1293_v17, %v1292_v16 }
 0x159   : > { %v1081_v20 = vpop.f32.mrb[28].mxu0 }
 0x15a   : > { %v1082_v21 = vadd.f32 %v13599_v8, %v1081_v20  ;;  %v1083_v22 = vpop.f32.mrb[29].mxu0 }
 0x15b   : > { %v1084_v23 = vpop.f32.mrb[30].mxu0 }
 0x15c   : > { %v1085_v24 = vadd.f32 %v13599_v8, %v1084_v23  ;;  %v1086_v25 = vpop.f32.mrb[31].mxu0  ;;  %v1294_v26 = vmax.f32 %v1082_v21, 0.0 }
 0x15e   : > { %v1295_v27 = vmax.f32 %v1085_v24, 0.0 }
 0x160   : > { %v13643_v28 = vpack.c.bf16 %v1295_v27, %v1294_v26 }
 0x161   : > { %v1089_v29 = vpop.f32.mrb[32].mxu0 }
 0x162   : > { %v1090_v31 = vadd.f32 %v13599_v8, %v1089_v29  ;;  %v1091_v32 = vpop.f32.mrb[33].mxu0 }
 0x163   : > { %v1092_v33 = vpop.f32.mrb[34].mxu0 }
 0x164   : > { %v1093_v34 = vadd.f32 %v13599_v8, %v1092_v33  ;;  %v1094_v35 = vpop.f32.mrb[35].mxu0  ;;  %v1296_v36 = vmax.f32 %v1090_v31, 0.0 }
 0x166   : > { %v1297_v37 = vmax.f32 %v1093_v34, 0.0 }
 0x168   : > { %v13647_v38 = vpack.c.bf16 %v1297_v37, %v1296_v36 }
 0x169   : > { %v1097_v39 = vpop.f32.mrb[36].mxu0 }
 0x16a   : > { %v1098_v42 = vadd.f32 %v13599_v8, %v1097_v39  ;;  %v1099_v43 = vpop.f32.mrb[37].mxu0  ;;  %10122 = vmatprep.subr.bf16.mxu1 %v13647_v38  ;;  %10490 = vmatprep.subr.bf16.mxu0 %v13647_v38 }
 0x16b   : > { %v1100_v44 = vpop.f32.mrb[38].mxu0  ;;  %10123 = vmatpush3.bf16.msra.mxu1 %v13605_v19  ;;  %10491 = vmatpush3.bf16.msra.mxu0 %v13605_v19 }
 0x16c   : > { %v1101_v45 = vadd.f32 %v13599_v8, %v1100_v44  ;;  %v1102_v46 = vpop.f32.mrb[39].mxu0  ;;  %v1298_v47 = vmax.f32 %v1098_v42, 0.0 }
 0x16e   : > { %v1299_v48 = vmax.f32 %v1101_v45, 0.0 }
 0x170   : > { %v13658_v49 = vpack.c.bf16 %v1299_v48, %v1298_v47 }
 0x171   : > { %v1105_v50 = vpop.f32.mrb[40].mxu0 }
 0x172   : > { %v1106_v51 = vadd.f32 %v13599_v8, %v1105_v50  ;;  %v1107_v53 = vpop.f32.mrb[41].mxu0  ;;  %10124 = vmatprep.subr.bf16.mxu1 %v13658_v49  ;;  %10492 = vmatprep.subr.bf16.mxu0 %v13658_v49 }
 0x173   : > { %v1108_v54 = vpop.f32.mrb[42].mxu0  ;;  %10125 = vmatpush3.bf16.msra.mxu1 %v13611_v30  ;;  %10493 = vmatpush3.bf16.msra.mxu0 %v13611_v30 }
 0x174   : > { %v1109_v55 = vadd.f32 %v13599_v8, %v1108_v54  ;;  %v1110_v56 = vpop.f32.mrb[43].mxu0  ;;  %v1300_v57 = vmax.f32 %v1106_v51, 0.0 }
 0x175   : > { %v12768_v56 = vld [vmem:[%s17703_s3] ss:$16 sps:$4 sm:$0xff]  }
 0x176   : > { %v1301_v58 = vmax.f32 %v1109_v55, 0.0  ;;  %v12742_v55 = vld [vmem:[%s17703_s3 + $0x240] ss:$16 sps:$4 sm:$0xff]  }
 0x178   : > { %v13666_v59 = vpack.c.bf16 %v1301_v58, %v1300_v57  ;;  %v12745_v58 = vld [vmem:[%s17703_s3 + $0x264] ss:$16 sps:$4 sm:$0xff]  }
 0x179   : > { %v1113_v60 = vpop.f32.mrb[44].mxu0 }
 0x17a   : > { %v1114_v61 = vadd.f32 %v13599_v8, %v1113_v60  ;;  %v1115_v62 = vpop.f32.mrb[45].mxu0  ;;  %10126 = vmatprep.subr.bf16.mxu1 %v13666_v59  ;;  %10494 = vmatprep.subr.bf16.mxu0 %v13666_v59 }
 0x17b   : > { %v1116_v0 = vpop.f32.mrb[46].mxu0  ;;  %10127 = vmatpush3.bf16.msra.mxu1 %v13617_v41  ;;  %10495 = vmatpush3.bf16.msra.mxu0 %v13617_v41  ;;  %v12779_v62 = vld [vmem:[%s17703_s3 + $0x24] ss:$16 sps:$4 sm:$0xff]  }
 0x17c   : > { %v1117_v1 = vadd.f32 %v13599_v8, %v1116_v0  ;;  %v1118_v2 = vpop.f32.mrb[47].mxu0  ;;  %v1302_v3 = vmax.f32 %v1114_v61, 0.0 }
 0x17e   : > { %v1303_v4 = vmax.f32 %v1117_v1, 0.0 }
 0x180   : > { %v13674_v5 = vpack.c.bf16 %v1303_v4, %v1302_v3 }
 0x181   : > { %v1121_v6 = vpop.f32.mrb[48].mxu0 }
 0x182   : > { %v1122_v7 = vadd.f32 %v13599_v8, %v1121_v6  ;;  %v1123_v10 = vpop.f32.mrb[49].mxu0  ;;  %10128 = vmatprep.subr.bf16.mxu1 %v13674_v5  ;;  %10496 = vmatprep.subr.bf16.mxu0 %v13674_v5 }
 0x183   : > { %v1124_v11 = vpop.f32.mrb[50].mxu0  ;;  %10129 = vmatpush3.bf16.msra.mxu1 %v13623_v52  ;;  %10497 = vmatpush3.bf16.msra.mxu0 %v13623_v52  ;;  %v12781_v10 = vld [vmem:[%s17703_s3 + $0x20] ss:$16 sps:$4 sm:$0xff]  }
 0x184   : > { %v1125_v12 = vadd.f32 %v13599_v8, %v1124_v11  ;;  %v1126_v13 = vpop.f32.mrb[51].mxu0  ;;  %v1304_v14 = vmax.f32 %v1122_v7, 0.0  ;;  %v12747_v7 = vld [vmem:[%s17703_s3 + $0x260] ss:$16 sps:$4 sm:$0xff]  }
 0x186   : > { %v1305_v15 = vmax.f32 %v1125_v12, 0.0  ;;  %v12748_v12 = vld [vmem:[%s17703_s3 + $0x284] ss:$16 sps:$4 sm:$0xff]  }
 0x188   : > { %v13682_v16 = vpack.c.bf16 %v1305_v15, %v1304_v14  ;;  %v12785_v15 = vld [vmem:[%s17703_s3 + $0x44] ss:$16 sps:$4 sm:$0xff]  }
 0x189   : > { %v1129_v17 = vpop.f32.mrb[52].mxu0 }
 0x18a   : > { %v1130_v20 = vadd.f32 %v13599_v8, %v1129_v17  ;;  %v1131_v21 = vpop.f32.mrb[53].mxu0  ;;  %10130 = vmatprep.subr.bf16.mxu1 %v13682_v16  ;;  %10498 = vmatprep.subr.bf16.mxu0 %v13682_v16 }
 0x18b   : > { %v1132_v22 = vpop.f32.mrb[54].mxu0  ;;  %10131 = vmatpush3.bf16.msra.mxu1 %v13631_v63  ;;  %10499 = vmatpush3.bf16.msra.mxu0 %v13631_v63 }
 0x18c   : > { %v1133_v23 = vadd.f32 %v13599_v8, %v1132_v22  ;;  %v1134_v24 = vpop.f32.mrb[55].mxu0  ;;  %v1306_v25 = vmax.f32 %v1130_v20, 0.0 }
 0x18e   : > { %v1307_v26 = vmax.f32 %v1133_v23, 0.0 }
 0x190   : > { %v13690_v27 = vpack.c.bf16 %v1307_v26, %v1306_v25  ;;  %v12750_v25 = vld [vmem:[%s17703_s3 + $0x280] ss:$16 sps:$4 sm:$0xff]  }
 0x191   : > { %v1137_v29 = vpop.f32.mrb[56].mxu0  ;;  %v12787_v26 = vld [vmem:[%s17703_s3 + $0x40] ss:$16 sps:$4 sm:$0xff]  }
 0x192   : > { %v1138_v31 = vadd.f32 %v13599_v8, %v1137_v29  ;;  %v1139_v32 = vpop.f32.mrb[57].mxu0  ;;  %10132 = vmatprep.subr.bf16.mxu1 %v13690_v27  ;;  %10500 = vmatprep.subr.bf16.mxu0 %v13690_v27 }
 0x193   : > { %v1140_v33 = vpop.f32.mrb[58].mxu0  ;;  %10133 = vmatpush3.bf16.msra.mxu1 %v13635_v9  ;;  %10501 = vmatpush3.bf16.msra.mxu0 %v13635_v9 }
 0x194   : > { %v1141_v34 = vadd.f32 %v13599_v8, %v1140_v33  ;;  %v1142_v35 = vpop.f32.mrb[59].mxu0  ;;  %v1308_v36 = vmax.f32 %v1138_v31, 0.0  ;;  %v12751_v31 = vld [vmem:[%s17703_s3 + $0x2a4] ss:$16 sps:$4 sm:$0xff]  }
 0x196   : > { %v1309_v37 = vmax.f32 %v1141_v34, 0.0  ;;  %v12791_v34 = vld [vmem:[%s17703_s3 + $0x64] ss:$16 sps:$4 sm:$0xff]  }
 0x198   : > { %v13698_v39 = vpack.c.bf16 %v1309_v37, %v1308_v36 }
 0x199   : > { %v1145_v40 = vpop.f32.mrb[60].mxu0 }
 0x19a   : > { %v1146_v42 = vadd.f32 %v13599_v8, %v1145_v40  ;;  %v1147_v43 = vpop.f32.mrb[61].mxu0  ;;  %10134 = vmatprep.subr.bf16.mxu1 %v13698_v39  ;;  %10502 = vmatprep.subr.bf16.mxu0 %v13698_v39  ;;  %v9346_v40 = vld [vmem:[%s17703_s3 + $0x2c0] sm:$0xff] }
 0x19b   : > { %v1148_v44 = vpop.f32.mrb[62].mxu0  ;;  %10135 = vmatpush3.bf16.msra.mxu1 %v13639_v18  ;;  %10503 = vmatpush3.bf16.msra.mxu0 %v13639_v18  ;;  %v1392_v43 = vld [vmem:[%s17703_s3 + $0x80] sm:$0xff] }
 0x19c   : > { %v1149_v45 = vadd.f32 %v13599_v8, %v1148_v44  ;;  %v1150_v46 = vpop.f32.mrb[63].mxu0  ;;  %v1310_v47 = vmax.f32 %v1146_v42, 0.0 }
 0x19d   : > { %v12753_v46 = vld [vmem:[%s17703_s3 + $0x2a0] ss:$16 sps:$4 sm:$0xff]  }
 0x19e   : > { %v1311_v48 = vmax.f32 %v1149_v45, 0.0 }
 0x1a0   : > { %v13706_v50 = vpack.c.bf16 %v1311_v48, %v1310_v47  ;;  %v12793_v47 = vld [vmem:[%s17703_s3 + $0x60] ss:$16 sps:$4 sm:$0xff]  }
 0x1a1   : > { %v1153_v51 = vpop.f32.mrb[64].mxu0 }
 0x1a2   : > { %v1154_v53 = vadd.f32 %v13599_v8, %v1153_v51  ;;  %v1155_v54 = vpop.f32.mrb[65].mxu0  ;;  %10136 = vmatprep.subr.bf16.mxu1 %v13706_v50  ;;  %10504 = vmatprep.subr.bf16.mxu0 %v13706_v50  ;;  %v9365_v51 = vcombine.high %v9346_v40, %v9346_v40 }
 0x1a3   : > { %v1156_v57 = vpop.f32.mrb[66].mxu0  ;;  %10137 = vmatpush3.bf16.msra.mxu1 %v13643_v28  ;;  %10505 = vmatpush3.bf16.msra.mxu0 %v13643_v28 }
 0x1a4   : > { %v1157_v60 = vadd.f32 %v13599_v8, %v1156_v57  ;;  %v1158_v61 = vpop.f32.mrb[67].mxu0  ;;  %10582 = vmatprep.subr.bf16.mxu0 %v13647_v38  ;;  %v1312_v0 = vmax.f32 %v1154_v53, 0.0 }
 0x1a6   : > { %v1313_v1 = vmax.f32 %v1157_v60, 0.0  ;;  %2569 = vmatmul.mubr.bf16.vlgmr.msra.gmra.mrb[128].mxu0 %v12742_v55  ;;  %1521 = vmatmul.mubr.bf16.vlgmr.msra.gmra.mrb[0].mxu1 %v12768_v56  ;;  %v9213_v55 = vcombine.high %v1392_v43, %v1392_v43 }
 0x1a7   : > { %10583 = vmatpush3.bf16.msra.mxu0 %v13605_v19  ;;  %2576 = vmatprep.mubr.bf16.mxu0 %v12745_v58 }
 0x1a8   : > { %v13728_v2 = vpack.c.bf16 %v1313_v1, %v1312_v0  ;;  %10584 = vmatprep.subr.bf16.mxu0 %v13658_v49  ;;  %1528 = vmatprep.mubr.bf16.mxu1 %v12779_v62  ;;  %v9364_v0 = vcombine.low %v9346_v40, %v9346_v40  ;;  %v9212_v1 = vcombine.low %v1392_v43, %v1392_v43  ;;  %v12762_v40 = vld [vmem:[%s17703_s3 + $0x314] ss:$16 sps:$4 sm:$0xff]  }
 0x1a9   : > { %v1161_v3 = vpop.f32.mrb[68].mxu0 }
 0x1aa   : > { %v1162_v4 = vadd.f32 %v13599_v8, %v1161_v3  ;;  %v1163_v6 = vpop.f32.mrb[69].mxu0 }
 0x1ab   : > { %v1164_v11 = vpop.f32.mrb[70].mxu0  ;;  %10585 = vmatpush3.bf16.msra.mxu0 %v13611_v30  ;;  %v12803_v6 = vld [vmem:[%s17703_s3 + $0xc] ss:$16 sps:$4 sm:$0xff]  }
 0x1ac   : > { %v1165_v13 = vadd.f32 %v13599_v8, %v1164_v11  ;;  %v1166_v14 = vpop.f32.mrb[71].mxu0  ;;  %10586 = vmatprep.subr.bf16.mxu0 %v13666_v59  ;;  %v1314_v17 = vmax.f32 %v1162_v4, 0.0  ;;  %v12758_v4 = vld [vmem:[%s17703_s3 + $0x2d4] ss:$16 sps:$4 sm:$0xff]  }
 0x1ae   : > { %v1315_v20 = vmax.f32 %v1165_v13, 0.0  ;;  %2577 = vmatmul.mubr.bf16.gmra.mrb[132].mxu0 %v12747_v7  ;;  %1529 = vmatmul.mubr.bf16.gmra.mrb[4].mxu1 %v12781_v10 }
 0x1af   : > { %10587 = vmatpush3.bf16.msra.mxu0 %v13617_v41  ;;  %2584 = vmatprep.mubr.bf16.mxu0 %v12748_v12 }
 0x1b0   : > { %v13748_v21 = vpack.c.bf16 %v1315_v20, %v1314_v17  ;;  %10588 = vmatprep.subr.bf16.mxu0 %v13674_v5  ;;  %1536 = vmatprep.mubr.bf16.mxu1 %v12785_v15  ;;  %v12756_v20 = vld [vmem:[%s17703_s3 + $0x2d0] ss:$16 sps:$4 sm:$0xff]  }
 0x1b1   : > { %v1169_v22 = vpop.f32.mrb[72].mxu0 }
 0x1b2   : > { %v1170_v23 = vadd.f32 %v13599_v8, %v1169_v22  ;;  %v1171_v24 = vpop.f32.mrb[73].mxu0 }
 0x1b3   : > { %v1172_v29 = vpop.f32.mrb[74].mxu0  ;;  %10589 = vmatpush3.bf16.msra.mxu0 %v13623_v52 }
 0x1b4   : > { %v1173_v32 = vadd.f32 %v13599_v8, %v1172_v29  ;;  %v1174_v33 = vpop.f32.mrb[75].mxu0  ;;  %10590 = vmatprep.subr.bf16.mxu0 %v13682_v16  ;;  %v1316_v35 = vmax.f32 %v1170_v23, 0.0  ;;  %v12759_v23 = vld [vmem:[%s17703_s3 + $0x2f4] ss:$16 sps:$4 sm:$0xff]  }
 0x1b6   : > { %v1317_v36 = vmax.f32 %v1173_v32, 0.0  ;;  %2585 = vmatmul.mubr.bf16.gmra.mrb[136].mxu0 %v12750_v25  ;;  %1537 = vmatmul.mubr.bf16.gmra.mrb[8].mxu1 %v12787_v26 }
 0x1b7   : > { %10591 = vmatpush3.bf16.msra.mxu0 %v13631_v63  ;;  %2592 = vmatprep.mubr.bf16.mxu0 %v12751_v31 }
 0x1b8   : > { %v13768_v37 = vpack.c.bf16 %v1317_v36, %v1316_v35  ;;  %10592 = vmatprep.subr.bf16.mxu0 %v13690_v27  ;;  %1544 = vmatprep.mubr.bf16.mxu1 %v12791_v34  ;;  %v12761_v35 = vld [vmem:[%s17703_s3 + $0x2f0] ss:$16 sps:$4 sm:$0xff]  }
 0x1b9   : > { %v1177_v42 = vpop.f32.mrb[76].mxu0 }
 0x1ba   : > { %v1178_v44 = vadd.f32 %v13599_v8, %v1177_v42  ;;  %v1179_v45 = vpop.f32.mrb[77].mxu0 }
 0x1bb   : > { %v1180_v48 = vpop.f32.mrb[78].mxu0  ;;  %10593 = vmatpush3.bf16.msra.mxu0 %v13635_v9 }
 0x1bc   : > { %v1181_v53 = vadd.f32 %v13599_v8, %v1180_v48  ;;  %v1182_v54 = vpop.f32.mrb[79].mxu0  ;;  %10594 = vmatprep.subr.bf16.mxu0 %v13698_v39  ;;  %v1318_v56 = vmax.f32 %v1178_v44, 0.0 }
 0x1be   : > { %v1319_v57 = vmax.f32 %v1181_v53, 0.0  ;;  %2593 = vmatmul.mubr.bf16.gmra.mrb[140].mxu0 %v12753_v46  ;;  %1545 = vmatmul.mubr.bf16.gmra.mrb[12].mxu1 %v12793_v47  ;;  %v12764_v53 = vld [vmem:[%s17703_s3 + $0x310] ss:$16 sps:$4 sm:$0xff]  }
 0x1bf   : > { %10595 = vmatpush3.bf16.msra.mxu0 %v13639_v18  ;;  %2600 = vmatprep.mubr.bf16.mxu0 %v9365_v51 }
 0x1c0   : > { %v13788_v58 = vpack.c.bf16 %v1319_v57, %v1318_v56  ;;  %10596 = vmatprep.subr.bf16.mxu0 %v13706_v50  ;;  %1552 = vmatprep.mubr.bf16.mxu1 %v9213_v55  ;;  %v12765_v55 = vld [vmem:[%s17703_s3 + $0x334] ss:$16 sps:$4 sm:$0xff]  }
 0x1c1   : > { %v1185_v60 = vpop.f32.mrb[80].mxu0 }
 0x1c2   : > { %v1186_v61 = vadd.f32 %v13599_v8, %v1185_v60  ;;  %v1187_v62 = vpop.f32.mrb[81].mxu0 }
 0x1c3   : > { %v1188_v3 = vpop.f32.mrb[82].mxu0  ;;  %10597 = vmatpush3.bf16.msra.mxu0 %v13643_v28 }
 0x1c4   : > { %v1189_v7 = vadd.f32 %v13599_v8, %v1188_v3  ;;  %v1190_v10 = vpop.f32.mrb[83].mxu0  ;;  %10674 = vmatprep.subr.bf16.mxu0 %v13647_v38  ;;  %v1320_v11 = vmax.f32 %v1186_v61, 0.0 }
 0x1c6   : > { %v1321_v12 = vmax.f32 %v1189_v7, 0.0  ;;  %2601 = vmatmul.mubr.bf16.gmra.mrb[144].mxu0 %v9364_v0  ;;  %1553 = vmatmul.mubr.bf16.gmra.mrb[16].mxu1 %v9212_v1  ;;  %v9384_v0 = vld [vmem:[%s17703_s3 + $0x350] sm:$0xff] }
 0x1c7   : > { %2830 = vmatprep.mubr.bf16.mxu0 %v12758_v4  ;;  %1592 = vmatprep.mubr.bf16.mxu1 %v12803_v6  ;;  %v12767_v6 = vld [vmem:[%s17703_s3 + $0x330] ss:$16 sps:$4 sm:$0xff]   ;;  %v9403_v10 = vcombine.high %v9384_v0, %v9384_v0 }
 0x1c8   : > { %v13801_v13 = vpack.c.bf16 %v1321_v12, %v1320_v11 }
 0x1c9   : > { %v1193_v14 = vpop.f32.mrb[84].mxu0 }
 0x1ca   : > { %v1194_v15 = vadd.f32 %v13599_v8, %v1193_v14  ;;  %v1195_v17 = vpop.f32.mrb[85].mxu0 }
 0x1cb   : > { %v1196_v22 = vpop.f32.mrb[86].mxu0 }
 0x1cc   : > { %v1197_v24 = vadd.f32 %v13599_v8, %v1196_v22  ;;  %v1198_v25 = vpop.f32.mrb[87].mxu0  ;;  %v1322_v26 = vmax.f32 %v1194_v15, 0.0 }
 0x1ce   : > { %v1323_v29 = vmax.f32 %v1197_v24, 0.0  ;;  %2831 = vmatmul.mubr.bf16.vlgmr.msra.gmra.mrb[148].mxu0 %v12756_v20  ;;  %v9402_v24 = vcombine.low %v9384_v0, %v9384_v0  ;;  %v12782_v0 = vld [vmem:[%s17703_s3 + $0x3a4] ss:$16 sps:$4 sm:$0xff]  }
 0x1cf   : > { %10675 = vmatpush3.bf16.msra.mxu0 %v13605_v19  ;;  %2838 = vmatprep.mubr.bf16.mxu0 %v12759_v23 }
 0x1d0   : > { %v13812_v31 = vpack.c.bf16 %v1323_v29, %v1322_v26  ;;  %10676 = vmatprep.subr.bf16.mxu0 %v13658_v49  ;;  %v12775_v26 = vld [vmem:[%s17703_s3 + $0x364] ss:$16 sps:$4 sm:$0xff]  }
 0x1d1   : > { %v1201_v32 = vpop.f32.mrb[88].mxu0 }
 0x1d2   : > { %v1202_v33 = vadd.f32 %v13599_v8, %v1201_v32  ;;  %v1203_v34 = vpop.f32.mrb[89].mxu0 }
 0x1d3   : > { %10677 = vmatpush3.bf16.msra.mxu0 %v13611_v30  ;;  %v1204_v36 = vpop.f32.mrb[90].mxu0 }
 0x1d4   : > { %v1205_v42 = vadd.f32 %v13599_v8, %v1204_v36  ;;  %10678 = vmatprep.subr.bf16.mxu0 %v13666_v59  ;;  %v1206_v43 = vpop.f32.mrb[91].mxu0  ;;  %v1324_v44 = vmax.f32 %v1202_v33, 0.0 }
 0x1d5   : > { %v12773_v43 = vld [vmem:[%s17703_s3 + $0x360] ss:$16 sps:$4 sm:$0xff]  }
 0x1d6   : > { %v1325_v45 = vmax.f32 %v1205_v42, 0.0  ;;  %2839 = vmatmul.mubr.bf16.gmra.mrb[152].mxu0 %v12761_v35 }
 0x1d7   : > { %10679 = vmatpush3.bf16.msra.mxu0 %v13617_v41  ;;  %2846 = vmatprep.mubr.bf16.mxu0 %v12762_v40 }
 0x1d8   : > { %v13826_v46 = vpack.c.bf16 %v1325_v45, %v1324_v44  ;;  %10680 = vmatprep.subr.bf16.mxu0 %v13674_v5  ;;  %v12776_v45 = vld [vmem:[%s17703_s3 + $0x384] ss:$16 sps:$4 sm:$0xff]  }
 0x1d9   : > { %v1209_v47 = vpop.f32.mrb[92].mxu0 }
 0x1da   : > { %v1210_v48 = vadd.f32 %v13599_v8, %v1209_v47  ;;  %v1211_v51 = vpop.f32.mrb[93].mxu0 }
 0x1db   : > { %10681 = vmatpush3.bf16.msra.mxu0 %v13623_v52  ;;  %v1212_v54 = vpop.f32.mrb[94].mxu0 }
 0x1dc   : > { %v1213_v56 = vadd.f32 %v13599_v8, %v1212_v54  ;;  %10682 = vmatprep.subr.bf16.mxu0 %v13682_v16  ;;  %v1214_v57 = vpop.f32.mrb[95].mxu0  ;;  %v1326_v60 = vmax.f32 %v1210_v48, 0.0 }
 0x1de   : > { %v1327_v61 = vmax.f32 %v1213_v56, 0.0  ;;  %2847 = vmatmul.mubr.bf16.gmra.mrb[156].mxu0 %v12764_v53 }
 0x1df   : > { %10683 = vmatpush3.bf16.msra.mxu0 %v13631_v63  ;;  %2854 = vmatprep.mubr.bf16.mxu0 %v12765_v55 }
 0x1e0   : > { %v13840_v62 = vpack.c.bf16 %v1327_v61, %v1326_v60  ;;  %10684 = vmatprep.subr.bf16.mxu0 %v13690_v27  ;;  %v12778_v60 = vld [vmem:[%s17703_s3 + $0x380] ss:$16 sps:$4 sm:$0xff]  }
 0x1e1   : > { %v1217_v1 = vpop.f32.mrb[96].mxu0 }
 0x1e2   : > { %v1218_v3 = vadd.f32 %v13599_v8, %v1217_v1  ;;  %v1219_v4 = vpop.f32.mrb[97].mxu0 }
 0x1e3   : > { %10685 = vmatpush3.bf16.msra.mxu0 %v13635_v9  ;;  %v1220_v7 = vpop.f32.mrb[98].mxu0 }
 0x1e4   : > { %v1221_v11 = vadd.f32 %v13599_v8, %v1220_v7  ;;  %10686 = vmatprep.subr.bf16.mxu0 %v13698_v39  ;;  %v1222_v12 = vpop.f32.mrb[99].mxu0  ;;  %v1328_v14 = vmax.f32 %v1218_v3, 0.0 }
 0x1e6   : > { %v1329_v15 = vmax.f32 %v1221_v11, 0.0  ;;  %2855 = vmatmul.mubr.bf16.gmra.mrb[160].mxu0 %v12767_v6 }
 0x1e7   : > { %10687 = vmatpush3.bf16.msra.mxu0 %v13639_v18  ;;  %2862 = vmatprep.mubr.bf16.mxu0 %v9403_v10 }
 0x1e8   : > { %v13854_v17 = vpack.c.bf16 %v1329_v15, %v1328_v14  ;;  %10688 = vmatprep.subr.bf16.mxu0 %v13706_v50  ;;  %v12784_v14 = vld [vmem:[%s17703_s3 + $0x3a0] ss:$16 sps:$4 sm:$0xff]  }
 0x1e9   : > { %v1225_v20 = vpop.f32.mrb[100].mxu0 }
 0x1ea   : > { %v1226_v22 = vadd.f32 %v13599_v8, %v1225_v20  ;;  %v1227_v23 = vpop.f32.mrb[101].mxu0  ;;  %10168 = vmatprep.subr.bf16.mxu1 %v13854_v17  ;;  %v12788_v20 = vld [vmem:[%s17703_s3 + $0x3c4] ss:$16 sps:$4 sm:$0xff]  }
 0x1eb   : > { %10689 = vmatpush3.bf16.msra.mxu0 %v13643_v28  ;;  %v1228_v25 = vpop.f32.mrb[102].mxu0  ;;  %10169 = vmatpush3.bf16.msra.mxu1 %v13728_v2 }
 0x1ec   : > { %v1229_v29 = vadd.f32 %v13599_v8, %v1228_v25  ;;  %10766 = vmatprep.subr.bf16.mxu0 %v13647_v38  ;;  %v1230_v32 = vpop.f32.mrb[103].mxu0  ;;  %v1330_v33 = vmax.f32 %v1226_v22, 0.0 }
 0x1ee   : > { %v1331_v34 = vmax.f32 %v1229_v29, 0.0  ;;  %2863 = vmatmul.mubr.bf16.gmra.mrb[164].mxu0 %v9402_v24  ;;  %v9422_v29 = vld [vmem:[%s17703_s3 + $0x3e0] sm:$0xff] }
 0x1ef   : > { %3092 = vmatprep.mubr.bf16.mxu0 %v12775_v26 }
 0x1f0   : > { %v13866_v35 = vpack.c.bf16 %v1331_v34, %v1330_v33 }
 0x1f1   : > { %v1233_v36 = vpop.f32.mrb[104].mxu0 }
 0x1f2   : > { %v1234_v40 = vadd.f32 %v13599_v8, %v1233_v36  ;;  %v1235_v42 = vpop.f32.mrb[105].mxu0  ;;  %10170 = vmatprep.subr.bf16.mxu1 %v13866_v35  ;;  %v12790_v36 = vld [vmem:[%s17703_s3 + $0x3c0] ss:$16 sps:$4 sm:$0xff]  }
 0x1f3   : > { %v1236_v44 = vpop.f32.mrb[106].mxu0  ;;  %10171 = vmatpush3.bf16.msra.mxu1 %v13748_v21  ;;  %v9441_v42 = vcombine.high %v9422_v29, %v9422_v29 }
 0x1f4   : > { %v1237_v47 = vadd.f32 %v13599_v8, %v1236_v44  ;;  %v1238_v48 = vpop.f32.mrb[107].mxu0  ;;  %v1332_v51 = vmax.f32 %v1234_v40, 0.0 }
 0x1f6   : > { %v1333_v53 = vmax.f32 %v1237_v47, 0.0  ;;  %3093 = vmatmul.mubr.bf16.vlgmr.msra.gmra.mrb[168].mxu0 %v12773_v43 }
 0x1f7   : > { %10767 = vmatpush3.bf16.msra.mxu0 %v13605_v19  ;;  %3100 = vmatprep.mubr.bf16.mxu0 %v12776_v45 }
 0x1f8   : > { %v13879_v54 = vpack.c.bf16 %v1333_v53, %v1332_v51  ;;  %10768 = vmatprep.subr.bf16.mxu0 %v13658_v49 }
 0x1f9   : > { %v1241_v55 = vpop.f32.mrb[108].mxu0 }
 0x1fa   : > { %v1242_v56 = vadd.f32 %v13599_v8, %v1241_v55  ;;  %v1243_v57 = vpop.f32.mrb[109].mxu0  ;;  %10172 = vmatprep.subr.bf16.mxu1 %v13879_v54 }
 0x1fb   : > { %10769 = vmatpush3.bf16.msra.mxu0 %v13611_v30  ;;  %v1244_v61 = vpop.f32.mrb[110].mxu0  ;;  %10173 = vmatpush3.bf16.msra.mxu1 %v13768_v37 }
 0x1fc   : > { %v1245_v1 = vadd.f32 %v13599_v8, %v1244_v61  ;;  %10770 = vmatprep.subr.bf16.mxu0 %v13666_v59  ;;  %v1246_v3 = vpop.f32.mrb[111].mxu0  ;;  %v1334_v4 = vmax.f32 %v1242_v56, 0.0  ;;  %v9440_v56 = vcombine.low %v9422_v29, %v9422_v29  ;;  %v12801_v29 = vld [vmem:[%s17703_s3 + $0x8] ss:$16 sps:$4 sm:$0xff]  }
 0x1fe   : > { %v1335_v6 = vmax.f32 %v1245_v1, 0.0  ;;  %3101 = vmatmul.mubr.bf16.gmra.mrb[172].mxu0 %v12778_v60  ;;  %v12800_v60 = vld [vmem:[%s17703_s3 + $0x3f4] ss:$16 sps:$4 sm:$0xff]  }
 0x1ff   : > { %10771 = vmatpush3.bf16.msra.mxu0 %v13617_v41  ;;  %3108 = vmatprep.mubr.bf16.mxu0 %v12782_v0 }
 0x200   : > { %v13895_v7 = vpack.c.bf16 %v1335_v6, %v1334_v4  ;;  %10772 = vmatprep.subr.bf16.mxu0 %v13674_v5 }
 0x201   : > { %v1249_v10 = vpop.f32.mrb[112].mxu0 }
 0x202   : > { %v1250_v11 = vadd.f32 %v13599_v8, %v1249_v10  ;;  %v1251_v12 = vpop.f32.mrb[113].mxu0  ;;  %10174 = vmatprep.subr.bf16.mxu1 %v13895_v7 }
 0x203   : > { %10773 = vmatpush3.bf16.msra.mxu0 %v13623_v52  ;;  %v1252_v15 = vpop.f32.mrb[114].mxu0  ;;  %10175 = vmatpush3.bf16.msra.mxu1 %v13788_v58  ;;  %v12798_v12 = vld [vmem:[%s17703_s3 + $0x3f0] ss:$16 sps:$4 sm:$0xff]  }
 0x204   : > { %v1253_v22 = vadd.f32 %v13599_v8, %v1252_v15  ;;  %10774 = vmatprep.subr.bf16.mxu0 %v13682_v16  ;;  %v1254_v23 = vpop.f32.mrb[115].mxu0  ;;  %v1336_v24 = vmax.f32 %v1250_v11, 0.0  ;;  %v12804_v15 = vld [vmem:[%s17703_s3 + $0x414] ss:$16 sps:$4 sm:$0xff]  }
 0x206   : > { %v1337_v25 = vmax.f32 %v1253_v22, 0.0  ;;  %3109 = vmatmul.mubr.bf16.gmra.mrb[176].mxu0 %v12784_v14 }
 0x207   : > { %10775 = vmatpush3.bf16.msra.mxu0 %v13631_v63  ;;  %3116 = vmatprep.mubr.bf16.mxu0 %v12788_v20 }
 0x208   : > { %v13911_v26 = vpack.c.bf16 %v1337_v25, %v1336_v24  ;;  %10776 = vmatprep.subr.bf16.mxu0 %v13690_v27 }
 0x209   : > { %v1257_v32 = vpop.f32.mrb[116].mxu0 }
 0x20a   : > { %v1258_v33 = vadd.f32 %v13599_v8, %v1257_v32  ;;  %v1259_v34 = vpop.f32.mrb[117].mxu0  ;;  %10176 = vmatprep.subr.bf16.mxu1 %v13911_v26  ;;  %v12807_v32 = vld [vmem:[%s17703_s3 + $0x2c] ss:$16 sps:$4 sm:$0xff]  }
 0x20b   : > { %10777 = vmatpush3.bf16.msra.mxu0 %v13635_v9  ;;  %v1260_v40 = vpop.f32.mrb[118].mxu0  ;;  %10177 = vmatpush3.bf16.msra.mxu1 %v13801_v13  ;;  %v12811_v34 = vld [vmem:[%s17703_s3 + $0x28] ss:$16 sps:$4 sm:$0xff]  }
 0x20c   : > { %v1261_v43 = vadd.f32 %v13599_v8, %v1260_v40  ;;  %10778 = vmatprep.subr.bf16.mxu0 %v13698_v39  ;;  %v1262_v44 = vpop.f32.mrb[119].mxu0  ;;  %v1338_v45 = vmax.f32 %v1258_v33, 0.0  ;;  %v12809_v33 = vld [vmem:[%s17703_s3 + $0x434] ss:$16 sps:$4 sm:$0xff]   ;;  %v12813_v40 = vld [vmem:[%s17703_s3 + $0x4c] ss:$16 sps:$4 sm:$0xff]  }
 0x20d   : > { %v12818_v44 = vld [vmem:[%s17703_s3 + $0x450] ss:$16 sps:$4 sm:$0xff]  }
 0x20e   : > { %v1339_v47 = vmax.f32 %v1261_v43, 0.0  ;;  %3117 = vmatmul.mubr.bf16.gmra.mrb[180].mxu0 %v12790_v36  ;;  %v12812_v36 = vld [vmem:[%s17703_s3 + $0x430] ss:$16 sps:$4 sm:$0xff]   ;;  %v12817_v43 = vld [vmem:[%s17703_s3 + $0x48] ss:$16 sps:$4 sm:$0xff]  }
 0x20f   : > { %10779 = vmatpush3.bf16.msra.mxu0 %v13639_v18  ;;  %3124 = vmatprep.mubr.bf16.mxu0 %v9441_v42  ;;  %v12815_v42 = vld [vmem:[%s17703_s3 + $0x454] ss:$16 sps:$4 sm:$0xff]  }
 0x210   : > { %v13927_v48 = vpack.c.bf16 %v1339_v47, %v1338_v45  ;;  %10780 = vmatprep.subr.bf16.mxu0 %v13706_v50  ;;  %v9460_v45 = vld [vmem:[%s17703_s3 + $0x470] sm:$0xff]  ;;  %v12819_v47 = vld [vmem:[%s17703_s3 + $0x6c] ss:$16 sps:$4 sm:$0xff]  }
 0x211   : > { %v1265_v51 = vpop.f32.mrb[120].mxu0 }
 0x212   : > { %v1266_v53 = vadd.f32 %v13599_v8, %v1265_v51  ;;  %v1267_v55 = vpop.f32.mrb[121].mxu0  ;;  %10178 = vmatprep.subr.bf16.mxu1 %v13927_v48  ;;  %v9479_v51 = vcombine.high %v9460_v45, %v9460_v45 }
 0x213   : > { %10781 = vmatpush3.bf16.msra.mxu0 %v13643_v28  ;;  %v1268_v57 = vpop.f32.mrb[122].mxu0  ;;  %10179 = vmatpush3.bf16.msra.mxu1 %v13812_v31  ;;  %v12822_v55 = vld [vmem:[%s17703_s3 + $0x68] ss:$16 sps:$4 sm:$0xff]  }
 0x214   : > { %v1269_v61 = vadd.f32 %v13599_v8, %v1268_v57  ;;  %10858 = vmatprep.subr.bf16.mxu0 %v13647_v38  ;;  %v1270_v0 = vpop.f32.mrb[123].mxu0  ;;  %v1340_v1 = vmax.f32 %v1266_v53, 0.0  ;;  %v1393_v53 = vld [vmem:[%s17703_s3 + $0x88] sm:$0xff] }
 0x215   : > { %v9215_v57 = vcombine.high %v1393_v53, %v1393_v53  ;;  %v9214_v0 = vcombine.low %v1393_v53, %v1393_v53  ;;  %v12862_v53 = vld [vmem:[%s17703_s3 + $0x530] ss:$16 sps:$4 sm:$0xff]  }
 0x216   : > { %v1341_v3 = vmax.f32 %v1269_v61, 0.0  ;;  %3125 = vmatmul.mubr.bf16.gmra.mrb[184].mxu0 %v9440_v56  ;;  %v9478_v56 = vcombine.low %v9460_v45, %v9460_v45  ;;  %v12825_v61 = vld [vmem:[%s17703_s3 + $0x480] ss:$16 sps:$4 sm:$0xff]   ;;  %v12859_v45 = vld [vmem:[%s17703_s3 + $0x9c] ss:$16 sps:$4 sm:$0xff]  }
 0x217   : > { %3354 = vmatprep.mubr.bf16.mxu0 %v12800_v60  ;;  %v12827_v60 = vld [vmem:[%s17703_s3 + $0x484] ss:$16 sps:$4 sm:$0xff]  }
 0x218   : > { %v13939_v4 = vpack.c.bf16 %v1341_v3, %v1340_v1  ;;  %v12831_v1 = vld [vmem:[%s17703_s3 + $0x94] ss:$16 sps:$4 sm:$0xff]  }
 0x219   : > { %v1273_v6 = vpop.f32.mrb[124].mxu0  ;;  %v12832_v3 = vld [vmem:[%s17703_s3 + $0x4a4] ss:$16 sps:$4 sm:$0xff]  }
 0x21a   : > { %v1274_v10 = vadd.f32 %v13599_v8, %v1273_v6  ;;  %v1275_v11 = vpop.f32.mrb[125].mxu0  ;;  %10180 = vmatprep.subr.bf16.mxu1 %v13939_v4  ;;  %v12829_v6 = vld [vmem:[%s17703_s3 + $0x90] ss:$16 sps:$4 sm:$0xff]  }
 0x21b   : > { %v1276_v14 = vpop.f32.mrb[126].mxu0  ;;  %10181 = vmatpush3.bf16.msra.mxu1 %v13826_v46  ;;  %v12835_v11 = vld [vmem:[%s17703_s3 + $0xb4] ss:$16 sps:$4 sm:$0xff]  }
 0x21c   : > { %v1277_v20 = vadd.f32 %v13599_v8, %v1276_v14  ;;  %v1278_v22 = vpop.f32.mrb[127].mxu0  ;;  %v1342_v23 = vmax.f32 %v1274_v10, 0.0  ;;  %v12806_v8 = vld [vmem:[%s17703_s3 + $0x410] ss:$16 sps:$4 sm:$0xff]  }
 0x21d   : > { %v12834_v10 = vld [vmem:[%s17703_s3 + $0x4a0] ss:$16 sps:$4 sm:$0xff]   ;;  %v12843_v22 = vld [vmem:[%s17703_s3 + $0x4e4] ss:$16 sps:$4 sm:$0xff]  }
 0x21e   : > { %v1343_v24 = vmax.f32 %v1277_v20, 0.0  ;;  %3355 = vmatmul.mubr.bf16.vlgmr.msra.gmra.mrb[188].mxu0 %v12798_v12  ;;  %v12837_v12 = vld [vmem:[%s17703_s3 + $0x4c4] ss:$16 sps:$4 sm:$0xff]   ;;  %v12839_v14 = vld [vmem:[%s17703_s3 + $0xb0] ss:$16 sps:$4 sm:$0xff]  }
 0x21f   : > { %10859 = vmatpush3.bf16.msra.mxu0 %v13605_v19  ;;  %3362 = vmatprep.mubr.bf16.mxu0 %v12804_v15  ;;  %v12840_v15 = vld [vmem:[%s17703_s3 + $0x4c0] ss:$16 sps:$4 sm:$0xff]   ;;  %v12841_v20 = vld [vmem:[%s17703_s3 + $0xd4] ss:$16 sps:$4 sm:$0xff]  }
 0x220   : > { %v13952_v25 = vpack.c.bf16 %v1343_v24, %v1342_v23  ;;  %10860 = vmatprep.subr.bf16.mxu0 %v13658_v49  ;;  %v12845_v23 = vld [vmem:[%s17703_s3 + $0xd0] ss:$16 sps:$4 sm:$0xff]  }
 0x221   : > { %v12846_v24 = vld [vmem:[%s17703_s3 + $0x4e0] ss:$16 sps:$4 sm:$0xff]  }
 0x222   : > { %10182 = vmatprep.subr.bf16.mxu1 %v13952_v25 }
 0x223   : > { %10861 = vmatpush3.bf16.msra.mxu0 %v13611_v30  ;;  %10183 = vmatpush3.bf16.msra.mxu1 %v13840_v62 }
 0x224   : > { %10862 = vmatprep.subr.bf16.mxu0 %v13666_v59  ;;  %10214 = vmatprep.subr.bf16.mxu1 %v13647_v38 }
 0x226   : > { %1593 = vmatmul.mubr.bf16.vlgmr.msra.gmra.mrb[20].mxu1 %v12801_v29  ;;  %3363 = vmatmul.mubr.bf16.gmra.mrb[192].mxu0 %v12806_v8  ;;  %v9498_v29 = vld [vmem:[%s17703_s3 + $0x500] sm:$0xff] }
 0x227   : > { %10863 = vmatpush3.bf16.msra.mxu0 %v13617_v41  ;;  %10215 = vmatpush3.bf16.msra.mxu1 %v13605_v19  ;;  %v12847_v8 = vld [vmem:[%s17703_s3 + $0xf4] ss:$16 sps:$4 sm:$0xff]  }
 0x228   : > { %10864 = vmatprep.subr.bf16.mxu0 %v13674_v5  ;;  %10216 = vmatprep.subr.bf16.mxu1 %v13658_v49 }
 0x229   : > { %1600 = vmatprep.mubr.bf16.mxu1 %v12807_v32  ;;  %3370 = vmatprep.mubr.bf16.mxu0 %v12809_v33  ;;  %v9517_v32 = vcombine.high %v9498_v29, %v9498_v29  ;;  %v9232_v33 = vld [vmem:[%s17703_s3 + $0x110] sm:$0xff] }
 0x22b   : > { %10865 = vmatpush3.bf16.msra.mxu0 %v13623_v52  ;;  %10217 = vmatpush3.bf16.msra.mxu1 %v13611_v30 }
 0x22c   : > { %10866 = vmatprep.subr.bf16.mxu0 %v13682_v16  ;;  %10218 = vmatprep.subr.bf16.mxu1 %v13666_v59 }
 0x22e   : > { %1601 = vmatmul.mubr.bf16.gmra.mrb[24].mxu1 %v12811_v34  ;;  %3371 = vmatmul.mubr.bf16.gmra.mrb[196].mxu0 %v12812_v36  ;;  %v12850_v34 = vld [vmem:[%s17703_s3 + $0xf0] ss:$16 sps:$4 sm:$0xff]   ;;  %v9516_v36 = vcombine.low %v9498_v29, %v9498_v29 }
 0x22f   : > { %10867 = vmatpush3.bf16.msra.mxu0 %v13631_v63  ;;  %10219 = vmatpush3.bf16.msra.mxu1 %v13617_v41 }
 0x230   : > { %10868 = vmatprep.subr.bf16.mxu0 %v13690_v27  ;;  %10220 = vmatprep.subr.bf16.mxu1 %v13674_v5 }
 0x231   : > { %1608 = vmatprep.mubr.bf16.mxu1 %v12813_v40  ;;  %3378 = vmatprep.mubr.bf16.mxu0 %v12815_v42  ;;  %v9251_v40 = vcombine.high %v9232_v33, %v9232_v33  ;;  %v12855_v42 = vld [vmem:[%s17703_s3 + $0x514] ss:$16 sps:$4 sm:$0xff]  }
 0x233   : > { %10869 = vmatpush3.bf16.msra.mxu0 %v13635_v9  ;;  %10221 = vmatpush3.bf16.msra.mxu1 %v13623_v52 }
 0x234   : > { %10870 = vmatprep.subr.bf16.mxu0 %v13698_v39  ;;  %10222 = vmatprep.subr.bf16.mxu1 %v13682_v16 }
 0x236   : > { %1609 = vmatmul.mubr.bf16.gmra.mrb[28].mxu1 %v12817_v43  ;;  %3379 = vmatmul.mubr.bf16.gmra.mrb[200].mxu0 %v12818_v44  ;;  %v12853_v43 = vld [vmem:[%s17703_s3 + $0x510] ss:$16 sps:$4 sm:$0xff]   ;;  %v9250_v44 = vcombine.low %v9232_v33, %v9232_v33 }
 0x237   : > { %10871 = vmatpush3.bf16.msra.mxu0 %v13639_v18  ;;  %10223 = vmatpush3.bf16.msra.mxu1 %v13631_v63 }
 0x238   : > { %10872 = vmatprep.subr.bf16.mxu0 %v13706_v50  ;;  %10224 = vmatprep.subr.bf16.mxu1 %v13690_v27 }
 0x239   : > { %1616 = vmatprep.mubr.bf16.mxu1 %v12819_v47  ;;  %3386 = vmatprep.mubr.bf16.mxu0 %v9479_v51  ;;  %v12860_v47 = vld [vmem:[%s17703_s3 + $0x534] ss:$16 sps:$4 sm:$0xff]   ;;  %v12857_v51 = vld [vmem:[%s17703_s3 + $0x98] ss:$16 sps:$4 sm:$0xff]  }
 0x23b   : > { %10873 = vmatpush3.bf16.msra.mxu0 %v13643_v28  ;;  %10225 = vmatpush3.bf16.msra.mxu1 %v13635_v9 }
 0x23c   : > { %10950 = vmatprep.subr.bf16.mxu0 %v13647_v38  ;;  %10226 = vmatprep.subr.bf16.mxu1 %v13698_v39 }
 0x23e   : > { %1617 = vmatmul.mubr.bf16.gmra.mrb[32].mxu1 %v12822_v55  ;;  %3387 = vmatmul.mubr.bf16.gmra.mrb[204].mxu0 %v9478_v56  ;;  %v12863_v55 = vld [vmem:[%s17703_s3 + $0xbc] ss:$16 sps:$4 sm:$0xff]   ;;  %v12865_v56 = vld [vmem:[%s17703_s3 + $0x554] ss:$16 sps:$4 sm:$0xff]  }
 0x23f   : > { %10227 = vmatpush3.bf16.msra.mxu1 %v13639_v18  ;;  %1624 = vmatprep.mubr.bf16.mxu1 %v9215_v57 }
 0x240   : > { %10228 = vmatprep.subr.bf16.mxu1 %v13706_v50  ;;  %3616 = vmatprep.mubr.bf16.mxu0 %v12827_v60  ;;  %v12867_v60 = vld [vmem:[%s17703_s3 + $0xb8] ss:$16 sps:$4 sm:$0xff]  }
 0x243   : > { %10229 = vmatpush3.bf16.msra.mxu1 %v13643_v28 }
 0x244   : > { %10260 = vmatprep.subr.bf16.mxu1 %v13854_v17 }
 0x246   : > { %1625 = vmatmul.mubr.bf16.gmra.mrb[36].mxu1 %v9214_v0  ;;  %3617 = vmatmul.mubr.bf16.vlgmr.msra.gmra.mrb[208].mxu0 %v12825_v61  ;;  %v12868_v61 = vld [vmem:[%s17703_s3 + $0x550] ss:$16 sps:$4 sm:$0xff]  }
 0x247   : > { %10951 = vmatpush3.bf16.msra.mxu0 %v13605_v19  ;;  %1782 = vmatprep.mubr.bf16.mxu1 %v12831_v1 }
 0x248   : > { %10952 = vmatprep.subr.bf16.mxu0 %v13658_v49  ;;  %3624 = vmatprep.mubr.bf16.mxu0 %v12832_v3 }
 0x24b   : > { %10953 = vmatpush3.bf16.msra.mxu0 %v13611_v30 }
 0x24c   : > { %10954 = vmatprep.subr.bf16.mxu0 %v13666_v59 }
 0x24e   : > { %1783 = vmatmul.mubr.bf16.vlgmr.msra.gmra.mrb[40].mxu1 %v12829_v6  ;;  %3625 = vmatmul.mubr.bf16.gmra.mrb[212].mxu0 %v12834_v10  ;;  %v12869_v10 = vld [vmem:[%s17703_s3 + $0xdc] ss:$16 sps:$4 sm:$0xff]  }
 0x24f   : > { %10261 = vmatpush3.bf16.msra.mxu1 %v13728_v2  ;;  %10955 = vmatpush3.bf16.msra.mxu0 %v13617_v41 }
 0x250   : > { %10262 = vmatprep.subr.bf16.mxu1 %v13866_v35  ;;  %10956 = vmatprep.subr.bf16.mxu0 %v13674_v5 }
 0x251   : > { %1790 = vmatprep.mubr.bf16.mxu1 %v12835_v11  ;;  %3632 = vmatprep.mubr.bf16.mxu0 %v12837_v12  ;;  %v12871_v11 = vld [vmem:[%s17703_s3 + $0x574] ss:$16 sps:$4 sm:$0xff]  }
 0x253   : > { %10263 = vmatpush3.bf16.msra.mxu1 %v13748_v21  ;;  %10957 = vmatpush3.bf16.msra.mxu0 %v13623_v52 }
 0x254   : > { %10264 = vmatprep.subr.bf16.mxu1 %v13879_v54  ;;  %10958 = vmatprep.subr.bf16.mxu0 %v13682_v16 }
 0x256   : > { %1791 = vmatmul.mubr.bf16.gmra.mrb[44].mxu1 %v12839_v14  ;;  %3633 = vmatmul.mubr.bf16.gmra.mrb[216].mxu0 %v12840_v15  ;;  %v12873_v15 = vld [vmem:[%s17703_s3 + $0xd8] ss:$16 sps:$4 sm:$0xff]  }
 0x257   : > { %10265 = vmatpush3.bf16.msra.mxu1 %v13768_v37  ;;  %10959 = vmatpush3.bf16.msra.mxu0 %v13631_v63 }
 0x258   : > { %10266 = vmatprep.subr.bf16.mxu1 %v13895_v7  ;;  %10960 = vmatprep.subr.bf16.mxu0 %v13690_v27 }
 0x259   : > { %1798 = vmatprep.mubr.bf16.mxu1 %v12841_v20  ;;  %3640 = vmatprep.mubr.bf16.mxu0 %v12843_v22  ;;  %v12874_v20 = vld [vmem:[%s17703_s3 + $0x570] ss:$16 sps:$4 sm:$0xff]  }
 0x25a   : > { %v9536_v22 = vld [vmem:[%s17703_s3 + $0x590] sm:$0xff] }
 0x25b   : > { %10267 = vmatpush3.bf16.msra.mxu1 %v13788_v58  ;;  %10961 = vmatpush3.bf16.msra.mxu0 %v13635_v9  ;;  %v9555_v33 = vcombine.high %v9536_v22, %v9536_v22 }
 0x25c   : > { %10268 = vmatprep.subr.bf16.mxu1 %v13911_v26  ;;  %10962 = vmatprep.subr.bf16.mxu0 %v13698_v39 }
 0x25e   : > { %1799 = vmatmul.mubr.bf16.gmra.mrb[48].mxu1 %v12845_v23  ;;  %3641 = vmatmul.mubr.bf16.gmra.mrb[220].mxu0 %v12846_v24 }
 0x25f   : > { %10269 = vmatpush3.bf16.msra.mxu1 %v13801_v13  ;;  %10963 = vmatpush3.bf16.msra.mxu0 %v13639_v18 }
 0x260   : > { %10270 = vmatprep.subr.bf16.mxu1 %v13927_v48  ;;  %10964 = vmatprep.subr.bf16.mxu0 %v13706_v50 }
 0x261   : > { %1806 = vmatprep.mubr.bf16.mxu1 %v12847_v8  ;;  %3648 = vmatprep.mubr.bf16.mxu0 %v9517_v32  ;;  %v12875_v32 = vld [vmem:[%s17703_s3 + $0xfc] ss:$16 sps:$4 sm:$0xff]  }
 0x263   : > { %10271 = vmatpush3.bf16.msra.mxu1 %v13812_v31  ;;  %10965 = vmatpush3.bf16.msra.mxu0 %v13643_v28 }
 0x264   : > { %10272 = vmatprep.subr.bf16.mxu1 %v13939_v4  ;;  %11042 = vmatprep.subr.bf16.mxu0 %v13647_v38 }
 0x266   : > { %1807 = vmatmul.mubr.bf16.gmra.mrb[52].mxu1 %v12850_v34  ;;  %3649 = vmatmul.mubr.bf16.gmra.mrb[224].mxu0 %v9516_v36  ;;  %v9233_v36 = vld [vmem:[%s17703_s3 + $0x118] sm:$0xff] }
 0x267   : > { %10273 = vmatpush3.bf16.msra.mxu1 %v13826_v46  ;;  %1814 = vmatprep.mubr.bf16.mxu1 %v9251_v40 }
 0x268   : > { %10274 = vmatprep.subr.bf16.mxu1 %v13952_v25  ;;  %3878 = vmatprep.mubr.bf16.mxu0 %v12855_v42  ;;  %v12878_v42 = vld [vmem:[%s17703_s3 + $0xf8] ss:$16 sps:$4 sm:$0xff]  }
 0x26b   : > { %10275 = vmatpush3.bf16.msra.mxu1 %v13840_v62 }
 0x26c   : > { %10306 = vmatprep.subr.bf16.mxu1 %v13647_v38 }
 0x26e   : > { %1815 = vmatmul.mubr.bf16.gmra.mrb[56].mxu1 %v9250_v44  ;;  %3879 = vmatmul.mubr.bf16.vlgmr.msra.gmra.mrb[228].mxu0 %v12853_v43  ;;  %v9554_v43 = vcombine.low %v9536_v22, %v9536_v22  ;;  %v12885_v22 = vld [vmem:[%s17703_s3 + $0x120] ss:$16 sps:$4 sm:$0xff]  }
 0x26f   : > { %11043 = vmatpush3.bf16.msra.mxu0 %v13605_v19  ;;  %1854 = vmatprep.mubr.bf16.mxu1 %v12859_v45  ;;  %v9253_v45 = vcombine.high %v9233_v36, %v9233_v36 }
 0x270   : > { %11044 = vmatprep.subr.bf16.mxu0 %v13658_v49  ;;  %3886 = vmatprep.mubr.bf16.mxu0 %v12860_v47 }
 0x273   : > { %11045 = vmatpush3.bf16.msra.mxu0 %v13611_v30 }
 0x274   : > { %11046 = vmatprep.subr.bf16.mxu0 %v13666_v59 }
 0x276   : > { %1855 = vmatmul.mubr.bf16.vlgmr.msra.gmra.mrb[60].mxu1 %v12857_v51  ;;  %3887 = vmatmul.mubr.bf16.gmra.mrb[232].mxu0 %v12862_v53  ;;  %v12883_v53 = vld [vmem:[%s17703_s3 + $0x5a4] ss:$16 sps:$4 sm:$0xff]  }
 0x277   : > { %10307 = vmatpush3.bf16.msra.mxu1 %v13605_v19  ;;  %11047 = vmatpush3.bf16.msra.mxu0 %v13617_v41 }
 0x278   : > { %10308 = vmatprep.subr.bf16.mxu1 %v13658_v49  ;;  %11048 = vmatprep.subr.bf16.mxu0 %v13674_v5 }
 0x279   : > { %1862 = vmatprep.mubr.bf16.mxu1 %v12863_v55  ;;  %3894 = vmatprep.mubr.bf16.mxu0 %v12865_v56  ;;  %v10138_v57 = vpop.f32.mrb[0].mxu1 }
 0x27a   : > { %v10139_v0 = vpop.f32.mrb[1].mxu1 }
 0x27b   : > { %10309 = vmatpush3.bf16.msra.mxu1 %v13611_v30  ;;  %11049 = vmatpush3.bf16.msra.mxu0 %v13623_v52  ;;  %v14156_v1 = vadd.f32 %v10139_v0, %v10138_v57  ;;  %v10141_v3 = vpop.f32.mrb[2].mxu1 }
 0x27c   : > { %10310 = vmatprep.subr.bf16.mxu1 %v13666_v59  ;;  %11050 = vmatprep.subr.bf16.mxu0 %v13682_v16  ;;  %v10142_v6 = vpop.f32.mrb[3].mxu1 }
 0x27d   : > { %v14166_v12 = vadd.f32 %v10142_v6, %v10141_v3  ;;  %v12887_v3 = vld [vmem:[%s17703_s3 + $0x124] ss:$16 sps:$4 sm:$0xff]  }
 0x27e   : > { %1863 = vmatmul.mubr.bf16.gmra.mrb[64].mxu1 %v12867_v60  ;;  %3895 = vmatmul.mubr.bf16.gmra.mrb[236].mxu0 %v12868_v61  ;;  %v12881_v60 = vld [vmem:[%s17703_s3 + $0x5a0] ss:$16 sps:$4 sm:$0xff]   ;;  %v9252_v61 = vcombine.low %v9233_v36, %v9233_v36  ;;  %v12891_v36 = vld [vmem:[%s17703_s3 + $0x144] ss:$16 sps:$4 sm:$0xff]  }
 0x27f   : > { %10311 = vmatpush3.bf16.msra.mxu1 %v13617_v41  ;;  %11051 = vmatpush3.bf16.msra.mxu0 %v13631_v63 }
 0x280   : > { %10312 = vmatprep.subr.bf16.mxu1 %v13674_v5  ;;  %11052 = vmatprep.subr.bf16.mxu0 %v13690_v27 }
 0x281   : > { %1870 = vmatprep.mubr.bf16.mxu1 %v12869_v10  ;;  %3902 = vmatprep.mubr.bf16.mxu0 %v12871_v11  ;;  %v10144_v14 = vpop.f32.mrb[4].mxu1  ;;  %v12888_v11 = vld [vmem:[%s17703_s3 + $0x5c4] ss:$16 sps:$4 sm:$0xff]  }
 0x282   : > { %v10145_v23 = vpop.f32.mrb[5].mxu1 }
 0x283   : > { %10313 = vmatpush3.bf16.msra.mxu1 %v13623_v52  ;;  %11053 = vmatpush3.bf16.msra.mxu0 %v13635_v9  ;;  %v14183_v24 = vadd.f32 %v10145_v23, %v10144_v14  ;;  %v10147_v29 = vpop.f32.mrb[6].mxu1  ;;  %v12890_v23 = vld [vmem:[%s17703_s3 + $0x5c0] ss:$16 sps:$4 sm:$0xff]  }
 0x284   : > { %10314 = vmatprep.subr.bf16.mxu1 %v13682_v16  ;;  %11054 = vmatprep.subr.bf16.mxu0 %v13698_v39  ;;  %v10148_v8 = vpop.f32.mrb[7].mxu1 }
 0x285   : > { %v14190_v34 = vadd.f32 %v10148_v8, %v10147_v29 }
 0x286   : > { %1871 = vmatmul.mubr.bf16.gmra.mrb[68].mxu1 %v12873_v15  ;;  %3903 = vmatmul.mubr.bf16.gmra.mrb[240].mxu0 %v12874_v20 }
 0x287   : > { %10315 = vmatpush3.bf16.msra.mxu1 %v13631_v63  ;;  %11055 = vmatpush3.bf16.msra.mxu0 %v13639_v18 }
 0x288   : > { %10316 = vmatprep.subr.bf16.mxu1 %v13690_v27  ;;  %11056 = vmatprep.subr.bf16.mxu0 %v13706_v50 }
 0x289   : > { %1878 = vmatprep.mubr.bf16.mxu1 %v12875_v32  ;;  %3910 = vmatprep.mubr.bf16.mxu0 %v9555_v33  ;;  %v10150_v40 = vpop.f32.mrb[8].mxu1 }
 0x28a   : > { %v10151_v44 = vpop.f32.mrb[9].mxu1 }
 0x28b   : > { %10317 = vmatpush3.bf16.msra.mxu1 %v13635_v9  ;;  %11057 = vmatpush3.bf16.msra.mxu0 %v13643_v28  ;;  %v14204_v47 = vadd.f32 %v10151_v44, %v10150_v40  ;;  %v10153_v51 = vpop.f32.mrb[10].mxu1  ;;  %v12895_v40 = vld [vmem:[%s17703_s3 + $0x5e4] ss:$16 sps:$4 sm:$0xff]  }
 0x28c   : > { %10318 = vmatprep.subr.bf16.mxu1 %v13698_v39  ;;  %11134 = vmatprep.subr.bf16.mxu0 %v13647_v38  ;;  %v10154_v55 = vpop.f32.mrb[11].mxu1  ;;  %v12897_v44 = vld [vmem:[%s17703_s3 + $0x164] ss:$16 sps:$4 sm:$0xff]  }
 0x28d   : > { %v14211_v56 = vadd.f32 %v10154_v55, %v10153_v51  ;;  %v12899_v51 = vld [vmem:[%s17703_s3 + $0x600] ss:$16 sps:$4 sm:$0xff]  }
 0x28e   : > { %1879 = vmatmul.mubr.bf16.gmra.mrb[72].mxu1 %v12878_v42  ;;  %3911 = vmatmul.mubr.bf16.gmra.mrb[244].mxu0 %v9554_v43  ;;  %v12893_v42 = vld [vmem:[%s17703_s3 + $0x5e0] ss:$16 sps:$4 sm:$0xff]  }
 0x28f   : > { %10319 = vmatpush3.bf16.msra.mxu1 %v13639_v18  ;;  %1886 = vmatprep.mubr.bf16.mxu1 %v9253_v45  ;;  %v12896_v43 = vld [vmem:[%s17703_s3 + $0x140] ss:$16 sps:$4 sm:$0xff]   ;;  %v12901_v45 = vld [vmem:[%s17703_s3 + $0x604] ss:$16 sps:$4 sm:$0xff]  }
 0x290   : > { %10320 = vmatprep.subr.bf16.mxu1 %v13706_v50  ;;  %4140 = vmatprep.mubr.bf16.mxu0 %v12883_v53  ;;  %v12902_v53 = vld [vmem:[%s17703_s3 + $0x160] ss:$16 sps:$4 sm:$0xff]  }
 0x291   : > { %v10156_v57 = vpop.f32.mrb[12].mxu1  ;;  %v9574_v55 = vld [vmem:[%s17703_s3 + $0x620] sm:$0xff] }
 0x292   : > { %v10157_v0 = vpop.f32.mrb[13].mxu1 }
 0x293   : > { %10321 = vmatpush3.bf16.msra.mxu1 %v13643_v28  ;;  %v14222_v6 = vadd.f32 %v10157_v0, %v10156_v57  ;;  %v10159_v10 = vpop.f32.mrb[14].mxu1  ;;  %v12903_v57 = vld [vmem:[%s17703_s3 + $0x184] ss:$16 sps:$4 sm:$0xff]   ;;  %v9592_v0 = vcombine.low %v9574_v55, %v9574_v55 }
 0x294   : > { %10352 = vmatprep.subr.bf16.mxu1 %v13854_v17  ;;  %v10160_v14 = vpop.f32.mrb[15].mxu1 }
 0x295   : > { %v14228_v15 = vadd.f32 %v10160_v14, %v10159_v10  ;;  %v12909_v14 = vld [vmem:[%s17703_s3 + $0x630] ss:$16 sps:$4 sm:$0xff]  }
 0x296   : > { %1887 = vmatmul.mubr.bf16.gmra.mrb[76].mxu1 %v9252_v61  ;;  %4141 = vmatmul.mubr.bf16.vlgmr.msra.gmra.mrb[248].mxu0 %v12881_v60  ;;  %v9593_v60 = vcombine.high %v9574_v55, %v9574_v55  ;;  %v9270_v61 = vld [vmem:[%s17703_s3 + $0x1a0] sm:$0xff]  ;;  %v12931_v55 = vld [vmem:[%s17703_s3 + $0x18c] ss:$16 sps:$4 sm:$0xff]  }
 0x297   : > { %11135 = vmatpush3.bf16.msra.mxu0 %v13605_v19  ;;  %2044 = vmatprep.mubr.bf16.mxu1 %v12887_v3  ;;  %v12907_v3 = vld [vmem:[%s17703_s3 + $0x180] ss:$16 sps:$4 sm:$0xff]   ;;  %v9289_v10 = vcombine.high %v9270_v61, %v9270_v61 }
 0x298   : > { %11136 = vmatprep.subr.bf16.mxu0 %v13658_v49  ;;  %4148 = vmatprep.mubr.bf16.mxu0 %v12888_v11  ;;  %v12911_v11 = vld [vmem:[%s17703_s3 + $0x634] ss:$16 sps:$4 sm:$0xff]  }
 0x299   : > { %v10162_v20 = vpop.f32.mrb[16].mxu1 }
 0x29a   : > { %v10163_v29 = vpop.f32.mrb[17].mxu1 }
 0x29b   : > { %11137 = vmatpush3.bf16.msra.mxu0 %v13611_v30  ;;  %v14239_v8 = vadd.f32 %v10163_v29, %v10162_v20  ;;  %v10165_v32 = vpop.f32.mrb[18].mxu1  ;;  %v9288_v20 = vcombine.low %v9270_v61, %v9270_v61  ;;  %v12913_v29 = vld [vmem:[%s17703_s3 + $0x128] ss:$16 sps:$4 sm:$0xff]  }
 0x29c   : > { %11138 = vmatprep.subr.bf16.mxu0 %v13666_v59  ;;  %v10166_v33 = vpop.f32.mrb[19].mxu1  ;;  %v12916_v32 = vld [vmem:[%s17703_s3 + $0x650] ss:$16 sps:$4 sm:$0xff]  }
 0x29d   : > { %v12919_v33 = vld [vmem:[%s17703_s3 + $0x14c] ss:$16 sps:$4 sm:$0xff]  }
 0x29e   : > { %2045 = vmatmul.mubr.bf16.vlgmr.msra.gmra.mrb[80].mxu1 %v12885_v22  ;;  %4149 = vmatmul.mubr.bf16.gmra.mrb[252].mxu0 %v12890_v23  ;;  %v12915_v22 = vld [vmem:[%s17703_s3 + $0x12c] ss:$16 sps:$4 sm:$0xff]   ;;  %v12918_v23 = vld [vmem:[%s17703_s3 + $0x654] ss:$16 sps:$4 sm:$0xff]  }
 0x29f   : > { %10353 = vmatpush3.bf16.msra.mxu1 %v13728_v2  ;;  %11139 = vmatpush3.bf16.msra.mxu0 %v13617_v41 }
 0x2a0   : > { %10354 = vmatprep.subr.bf16.mxu1 %v13866_v35  ;;  %11140 = vmatprep.subr.bf16.mxu0 %v13674_v5 }
 0x2a1   : > { %2052 = vmatprep.mubr.bf16.mxu1 %v12891_v36  ;;  %4156 = vmatprep.mubr.bf16.mxu0 %v12895_v40  ;;  %v12923_v36 = vld [vmem:[%s17703_s3 + $0x674] ss:$16 sps:$4 sm:$0xff]   ;;  %v12921_v40 = vld [vmem:[%s17703_s3 + $0x670] ss:$16 sps:$4 sm:$0xff]  }
 0x2a3   : > { %10355 = vmatpush3.bf16.msra.mxu1 %v13748_v21  ;;  %11141 = vmatpush3.bf16.msra.mxu0 %v13623_v52 }
 0x2a4   : > { %10356 = vmatprep.subr.bf16.mxu1 %v13879_v54  ;;  %11142 = vmatprep.subr.bf16.mxu0 %v13682_v16 }
 0x2a6   : > { %2053 = vmatmul.mubr.bf16.gmra.mrb[84].mxu1 %v12896_v43  ;;  %4157 = vmatmul.mubr.bf16.gmra.mrb[0].mxu0 %v12893_v42  ;;  %v12924_v42 = vld [vmem:[%s17703_s3 + $0x148] ss:$16 sps:$4 sm:$0xff]   ;;  %v12925_v43 = vld [vmem:[%s17703_s3 + $0x16c] ss:$16 sps:$4 sm:$0xff]  }
 0x2a7   : > { %10357 = vmatpush3.bf16.msra.mxu1 %v13768_v37  ;;  %11143 = vmatpush3.bf16.msra.mxu0 %v13631_v63 }
 0x2a8   : > { %10358 = vmatprep.subr.bf16.mxu1 %v13895_v7  ;;  %11144 = vmatprep.subr.bf16.mxu0 %v13690_v27 }
 0x2a9   : > { %2060 = vmatprep.mubr.bf16.mxu1 %v12897_v44  ;;  %4164 = vmatprep.mubr.bf16.mxu0 %v12901_v45  ;;  %v12929_v44 = vld [vmem:[%s17703_s3 + $0x694] ss:$16 sps:$4 sm:$0xff]   ;;  %v12927_v45 = vld [vmem:[%s17703_s3 + $0x690] ss:$16 sps:$4 sm:$0xff]  }
 0x2ab   : > { %10359 = vmatpush3.bf16.msra.mxu1 %v13788_v58  ;;  %11145 = vmatpush3.bf16.msra.mxu0 %v13635_v9 }
 0x2ac   : > { %10360 = vmatprep.subr.bf16.mxu1 %v13911_v26  ;;  %11146 = vmatprep.subr.bf16.mxu0 %v13698_v39 }
 0x2ae   : > { %2061 = vmatmul.mubr.bf16.gmra.mrb[88].mxu1 %v12902_v53  ;;  %4165 = vmatmul.mubr.bf16.gmra.mrb[4].mxu0 %v12899_v51  ;;  %v12930_v51 = vld [vmem:[%s17703_s3 + $0x168] ss:$16 sps:$4 sm:$0xff]   ;;  %v9612_v53 = vld [vmem:[%s17703_s3 + $0x6b0] sm:$0xff] }
 0x2af   : > { %10361 = vmatpush3.bf16.msra.mxu1 %v13801_v13  ;;  %11147 = vmatpush3.bf16.msra.mxu0 %v13639_v18  ;;  %v9630_v61 = vcombine.low %v9612_v53, %v9612_v53 }
 0x2b0   : > { %10362 = vmatprep.subr.bf16.mxu1 %v13927_v48  ;;  %11148 = vmatprep.subr.bf16.mxu0 %v13706_v50 }
 0x2b1   : > { %2068 = vmatprep.mubr.bf16.mxu1 %v12903_v57  ;;  %4172 = vmatprep.mubr.bf16.mxu0 %v9593_v60  ;;  %v9631_v57 = vcombine.high %v9612_v53, %v9612_v53  ;;  %v9271_v60 = vld [vmem:[%s17703_s3 + $0x1a8] sm:$0xff] }
 0x2b3   : > { %10363 = vmatpush3.bf16.msra.mxu1 %v13812_v31  ;;  %11149 = vmatpush3.bf16.msra.mxu0 %v13643_v28 }
 0x2b4   : > { %10364 = vmatprep.subr.bf16.mxu1 %v13939_v4  ;;  %11226 = vmatprep.subr.bf16.mxu0 %v13647_v38 }
 0x2b6   : > { %2069 = vmatmul.mubr.bf16.gmra.mrb[92].mxu1 %v12907_v3  ;;  %4173 = vmatmul.mubr.bf16.gmra.mrb[8].mxu0 %v9592_v0  ;;  %v12935_v0 = vld [vmem:[%s17703_s3 + $0x188] ss:$16 sps:$4 sm:$0xff]   ;;  %v9291_v3 = vcombine.high %v9271_v60, %v9271_v60 }
 0x2b7   : > { %10365 = vmatpush3.bf16.msra.mxu1 %v13826_v46  ;;  %2076 = vmatprep.mubr.bf16.mxu1 %v9289_v10  ;;  %v12939_v10 = vld [vmem:[%s17703_s3 + $0x6c4] ss:$16 sps:$4 sm:$0xff]  }
 0x2b8   : > { %10366 = vmatprep.subr.bf16.mxu1 %v13952_v25  ;;  %4402 = vmatprep.mubr.bf16.mxu0 %v12911_v11  ;;  %v12937_v11 = vld [vmem:[%s17703_s3 + $0x6c0] ss:$16 sps:$4 sm:$0xff]  }
 0x2bb   : > { %10367 = vmatpush3.bf16.msra.mxu1 %v13840_v62 }
 0x2bc   : > { %10398 = vmatprep.subr.bf16.mxu1 %v13647_v38 }
 0x2be   : > { %2077 = vmatmul.mubr.bf16.gmra.mrb[96].mxu1 %v9288_v20  ;;  %4403 = vmatmul.mubr.bf16.vlgmr.msra.gmra.mrb[12].mxu0 %v12909_v14  ;;  %v9290_v14 = vcombine.low %v9271_v60, %v9271_v60  ;;  %v12943_v20 = vld [vmem:[%s17703_s3 + $0x1b4] ss:$16 sps:$4 sm:$0xff]  }
 0x2bf   : > { %11227 = vmatpush3.bf16.msra.mxu0 %v13605_v19  ;;  %2116 = vmatprep.mubr.bf16.mxu1 %v12915_v22  ;;  %v12946_v22 = vld [vmem:[%s17703_s3 + $0x6e4] ss:$16 sps:$4 sm:$0xff]  }
 0x2c0   : > { %11228 = vmatprep.subr.bf16.mxu0 %v13658_v49  ;;  %4410 = vmatprep.mubr.bf16.mxu0 %v12918_v23  ;;  %v10506_v23 = vpop.f32.mrb[128].mxu0 }
 0x2c3   : > { %11229 = vmatpush3.bf16.msra.mxu0 %v13611_v30 }
 0x2c4   : > { %11230 = vmatprep.subr.bf16.mxu0 %v13666_v59 }
 0x2c6   : > { %2117 = vmatmul.mubr.bf16.vlgmr.msra.gmra.mrb[100].mxu1 %v12913_v29  ;;  %4411 = vmatmul.mubr.bf16.gmra.mrb[16].mxu0 %v12916_v32  ;;  %v12941_v29 = vld [vmem:[%s17703_s3 + $0x1b0] ss:$16 sps:$4 sm:$0xff]  }
 0x2c7   : > { %10399 = vmatpush3.bf16.msra.mxu1 %v13605_v19  ;;  %11231 = vmatpush3.bf16.msra.mxu0 %v13617_v41  ;;  %v12944_v32 = vld [vmem:[%s17703_s3 + $0x6e0] ss:$16 sps:$4 sm:$0xff]  }
 0x2c8   : > { %10400 = vmatprep.subr.bf16.mxu1 %v13658_v49  ;;  %11232 = vmatprep.subr.bf16.mxu0 %v13674_v5 }
 0x2c9   : > { %2124 = vmatprep.mubr.bf16.mxu1 %v12919_v33  ;;  %4418 = vmatprep.mubr.bf16.mxu0 %v12923_v36  ;;  %v10507_v33 = vpop.f32.mrb[129].mxu0 }
 0x2ca   : > { %v14414_v36 = vadd.f32 %v10507_v33, %v10506_v23  ;;  %v12957_v23 = vld [vmem:[%s17703_s3 + $0x724] ss:$16 sps:$4 sm:$0xff]  }
 0x2cb   : > { %10401 = vmatpush3.bf16.msra.mxu1 %v13611_v30  ;;  %11233 = vmatpush3.bf16.msra.mxu0 %v13623_v52 }
 0x2cc   : > { %10402 = vmatprep.subr.bf16.mxu1 %v13666_v59  ;;  %11234 = vmatprep.subr.bf16.mxu0 %v13682_v16 }
 0x2ce   : > { %2125 = vmatmul.mubr.bf16.gmra.mrb[104].mxu1 %v12924_v42  ;;  %4419 = vmatmul.mubr.bf16.gmra.mrb[20].mxu0 %v12921_v40  ;;  %v10509_v40 = vpop.f32.mrb[130].mxu0  ;;  %v12947_v42 = vld [vmem:[%s17703_s3 + $0x1d4] ss:$16 sps:$4 sm:$0xff]  }
 0x2cf   : > { %10403 = vmatpush3.bf16.msra.mxu1 %v13617_v41  ;;  %11235 = vmatpush3.bf16.msra.mxu0 %v13631_v63 }
 0x2d0   : > { %10404 = vmatprep.subr.bf16.mxu1 %v13674_v5  ;;  %11236 = vmatprep.subr.bf16.mxu0 %v13690_v27 }
 0x2d1   : > { %2132 = vmatprep.mubr.bf16.mxu1 %v12925_v43  ;;  %4426 = vmatprep.mubr.bf16.mxu0 %v12929_v44  ;;  %v12951_v43 = vld [vmem:[%s17703_s3 + $0x704] ss:$16 sps:$4 sm:$0xff]   ;;  %v10510_v44 = vpop.f32.mrb[131].mxu0 }
 0x2d3   : > { %10405 = vmatpush3.bf16.msra.mxu1 %v13623_v52  ;;  %11237 = vmatpush3.bf16.msra.mxu0 %v13635_v9 }
 0x2d4   : > { %10406 = vmatprep.subr.bf16.mxu1 %v13682_v16  ;;  %11238 = vmatprep.subr.bf16.mxu0 %v13698_v39 }
 0x2d6   : > { %2133 = vmatmul.mubr.bf16.gmra.mrb[108].mxu1 %v12930_v51  ;;  %4427 = vmatmul.mubr.bf16.gmra.mrb[24].mxu0 %v12927_v45  ;;  %v14422_v45 = vadd.f32 %v10510_v44, %v10509_v40  ;;  %v10512_v51 = vpop.f32.mrb[132].mxu0 }
 0x2d7   : > { %10407 = vmatpush3.bf16.msra.mxu1 %v13631_v63  ;;  %11239 = vmatpush3.bf16.msra.mxu0 %v13639_v18  ;;  %v10513_v53 = vpop.f32.mrb[133].mxu0 }
 0x2d8   : > { %10408 = vmatprep.subr.bf16.mxu1 %v13690_v27  ;;  %11240 = vmatprep.subr.bf16.mxu0 %v13706_v50  ;;  %17725 = vst [vmem:[#allocation2_spill] sm:$0xff] %v14422_v45 }
 0x2d9   : > { %2140 = vmatprep.mubr.bf16.mxu1 %v12931_v55  ;;  %4434 = vmatprep.mubr.bf16.mxu0 %v9631_v57  ;;  %v14428_v55 = vadd.f32 %v10513_v53, %v10512_v51  ;;  %v10515_v57 = vpop.f32.mrb[134].mxu0  ;;  %v12955_v51 = vld [vmem:[%s17703_s3 + $0x720] ss:$16 sps:$4 sm:$0xff]  }
 0x2da   : > { %v10516_v60 = vpop.f32.mrb[135].mxu0 }
 0x2db   : > { %10409 = vmatpush3.bf16.msra.mxu1 %v13635_v9  ;;  %11241 = vmatpush3.bf16.msra.mxu0 %v13643_v28  ;;  %17726 = vst [vmem:[#allocation3_spill] sm:$0xff] %v14428_v55 }
 0x2dc   : > { %10410 = vmatprep.subr.bf16.mxu1 %v13698_v39  ;;  %11318 = vmatprep.subr.bf16.mxu0 %v13647_v38 }
 0x2de   : > { %2141 = vmatmul.mubr.bf16.gmra.mrb[112].mxu1 %v12935_v0  ;;  %4435 = vmatmul.mubr.bf16.gmra.mrb[28].mxu0 %v9630_v61  ;;  %v12949_v61 = vld [vmem:[%s17703_s3 + $0x700] ss:$16 sps:$4 sm:$0xff]  }
 0x2df   : > { %10411 = vmatpush3.bf16.msra.mxu1 %v13639_v18  ;;  %2148 = vmatprep.mubr.bf16.mxu1 %v9291_v3  ;;  %v12952_v0 = vld [vmem:[%s17703_s3 + $0x1d0] ss:$16 sps:$4 sm:$0xff]   ;;  %v14436_v3 = vadd.f32 %v10516_v60, %v10515_v57 }
 0x2e0   : > { %10412 = vmatprep.subr.bf16.mxu1 %v13706_v50  ;;  %4664 = vmatprep.mubr.bf16.mxu0 %v12939_v10  ;;  %v10518_v10 = vpop.f32.mrb[136].mxu0  ;;  %v12958_v60 = vld [vmem:[%s17703_s3 + $0x1f0] ss:$16 sps:$4 sm:$0xff]  }
 0x2e1   : > { %17727 = vst [vmem:[#allocation4_spill] sm:$0xff] %v14436_v3 }
 0x2e3   : > { %10413 = vmatpush3.bf16.msra.mxu1 %v13643_v28 }
 0x2e4   : > { %10444 = vmatprep.subr.bf16.mxu1 %v13854_v17 }
 0x2e6   : > { %2149 = vmatmul.mubr.bf16.gmra.mrb[116].mxu1 %v9290_v14  ;;  %4665 = vmatmul.mubr.bf16.vlgmr.msra.gmra.mrb[32].mxu0 %v12937_v11  ;;  %v10519_v11 = vpop.f32.mrb[137].mxu0 }
 0x2e7   : > { %11319 = vmatpush3.bf16.msra.mxu0 %v13605_v19  ;;  %2306 = vmatprep.mubr.bf16.mxu1 %v12943_v20  ;;  %v14442_v14 = vadd.f32 %v10519_v11, %v10518_v10  ;;  %v10521_v20 = vpop.f32.mrb[138].mxu0 }
 0x2e8   : > { %11320 = vmatprep.subr.bf16.mxu0 %v13658_v49  ;;  %4672 = vmatprep.mubr.bf16.mxu0 %v12946_v22  ;;  %v12953_v22 = vld [vmem:[%s17703_s3 + $0x1f4] ss:$16 sps:$4 sm:$0xff]  }
 0x2e9   : > { %17728 = vst [vmem:[#allocation5_spill] sm:$0xff] %v14442_v14 }
 0x2eb   : > { %11321 = vmatpush3.bf16.msra.mxu0 %v13611_v30 }
 0x2ec   : > { %11322 = vmatprep.subr.bf16.mxu0 %v13666_v59 }
 0x2ee   : > { %2307 = vmatmul.mubr.bf16.vlgmr.msra.gmra.mrb[120].mxu1 %v12941_v29  ;;  %4673 = vmatmul.mubr.bf16.gmra.mrb[36].mxu0 %v12944_v32  ;;  %v10522_v29 = vpop.f32.mrb[139].mxu0 }
 0x2ef   : > { %10445 = vmatpush3.bf16.msra.mxu1 %v13728_v2  ;;  %11323 = vmatpush3.bf16.msra.mxu0 %v13617_v41  ;;  %v14450_v32 = vadd.f32 %v10522_v29, %v10521_v20  ;;  %v10524_v33 = vpop.f32.mrb[140].mxu0 }
 0x2f0   : > { %10446 = vmatprep.subr.bf16.mxu1 %v13866_v35  ;;  %11324 = vmatprep.subr.bf16.mxu0 %v13674_v5  ;;  %v10525_v40 = vpop.f32.mrb[141].mxu0 }
 0x2f1   : > { %2314 = vmatprep.mubr.bf16.mxu1 %v12947_v42  ;;  %4680 = vmatprep.mubr.bf16.mxu0 %v12951_v43  ;;  %17729 = vst [vmem:[#allocation6_spill] sm:$0xff] %v14450_v32  ;;  %v14456_v42 = vadd.f32 %v10525_v40, %v10524_v33  ;;  %v10527_v43 = vpop.f32.mrb[142].mxu0 }
 0x2f2   : > { %v10528_v53 = vpop.f32.mrb[143].mxu0 }
 0x2f3   : > { %10447 = vmatpush3.bf16.msra.mxu1 %v13748_v21  ;;  %11325 = vmatpush3.bf16.msra.mxu0 %v13623_v52  ;;  %17730 = vst [vmem:[#allocation7_spill] sm:$0xff] %v14456_v42  ;;  %v10530_v10 = vpop.f32.mrb[144].mxu0 }
 0x2f4   : > { %10448 = vmatprep.subr.bf16.mxu1 %v13879_v54  ;;  %11326 = vmatprep.subr.bf16.mxu0 %v13682_v16 }
 0x2f6   : > { %2315 = vmatmul.mubr.bf16.gmra.mrb[124].mxu1 %v12952_v0  ;;  %4681 = vmatmul.mubr.bf16.gmra.mrb[40].mxu0 %v12949_v61  ;;  %v9650_v61 = vld [vmem:[%s17703_s3 + $0x740] sm:$0xff]  ;;  %v14467_v0 = vadd.f32 %v10528_v53, %v10527_v43 }
 0x2f7   : > { %10449 = vmatpush3.bf16.msra.mxu1 %v13768_v37  ;;  %11327 = vmatpush3.bf16.msra.mxu0 %v13631_v63  ;;  %v9669_v53 = vcombine.high %v9650_v61, %v9650_v61 }
 0x2f8   : > { %10450 = vmatprep.subr.bf16.mxu1 %v13895_v7  ;;  %11328 = vmatprep.subr.bf16.mxu0 %v13690_v27  ;;  %17731 = vst [vmem:[#allocation8_spill] sm:$0xff] %v14467_v0 }
 0x2f9   : > { %v10184_v44 = vpop.f32.mrb[20].mxu1  ;;  %2322 = vmatprep.mubr.bf16.mxu1 %v12953_v22  ;;  %4688 = vmatprep.mubr.bf16.mxu0 %v12957_v23  ;;  %v10531_v22 = vpop.f32.mrb[145].mxu0 }
 0x2fa   : > { %v10185_v57 = vpop.f32.mrb[21].mxu1  ;;  %v14473_v29 = vadd.f32 %v10531_v22, %v10530_v10  ;;  %v10533_v33 = vpop.f32.mrb[146].mxu0 }
 0x2fb   : > { %v10186_v11 = vadd.f32 %v10185_v57, %v10184_v44  ;;  %10451 = vmatpush3.bf16.msra.mxu1 %v13788_v58  ;;  %11329 = vmatpush3.bf16.msra.mxu0 %v13635_v9  ;;  %v10187_v20 = vpop.f32.mrb[22].mxu1  ;;  %v12959_v44 = vld [vmem:[%s17703_s3 + $0x214] ss:$16 sps:$4 sm:$0xff]   ;;  %v10534_v57 = vpop.f32.mrb[147].mxu0  ;;  %v12963_v33 = vld [vmem:[%s17703_s3 + $0x210] ss:$16 sps:$4 sm:$0xff]  }
 0x2fc   : > { %10452 = vmatprep.subr.bf16.mxu1 %v13911_v26  ;;  %11330 = vmatprep.subr.bf16.mxu0 %v13698_v39  ;;  %v10188_v23 = vpop.f32.mrb[23].mxu1  ;;  %17732 = vst [vmem:[#allocation9_spill] sm:$0xff] %v14473_v29  ;;  %v10598_v0 = vpop.f32.mrb[148].mxu0 }
 0x2fd   : > { %v14476_v40 = vadd.f32 %v10186_v11, %v14156_v1  ;;  %v10189_v43 = vadd.f32 %v10188_v23, %v10187_v20  ;;  %v10599_v10 = vpop.f32.mrb[149].mxu0  ;;  %v9308_v1 = vld [vmem:[%s17703_s3 + $0x230] sm:$0xff]  ;;  %v9668_v23 = vcombine.low %v9650_v61, %v9650_v61 }
 0x2fe   : > { %2323 = vmatmul.mubr.bf16.gmra.mrb[128].mxu1 %v12958_v60  ;;  %4689 = vmatmul.mubr.bf16.gmra.mrb[44].mxu0 %v12955_v51  ;;  %v14491_v11 = vadd.f32 %v10599_v10, %v10598_v0  ;;  %v10601_v51 = vpop.f32.mrb[150].mxu0  ;;  %v9327_v10 = vcombine.high %v9308_v1, %v9308_v1 }
 0x2ff   : > { %v14482_v42 = vadd.f32 %v10189_v43, %v14166_v12  ;;  %10453 = vmatpush3.bf16.msra.mxu1 %v13801_v13  ;;  %11331 = vmatpush3.bf16.msra.mxu0 %v13639_v18  ;;  %v10602_v20 = vpop.f32.mrb[151].mxu0 }
 0x300   : > { %10454 = vmatprep.subr.bf16.mxu1 %v13927_v48  ;;  %11332 = vmatprep.subr.bf16.mxu0 %v13706_v50  ;;  %17733 = vst [vmem:[#allocation10_spill] sm:$0xff] %v14491_v11  ;;  %v14498_v43 = vadd.f32 %v10602_v20, %v10601_v51  ;;  %v10604_v57 = vpop.f32.mrb[152].mxu0 }
 0x301   : > { %v10190_v60 = vpop.f32.mrb[24].mxu1  ;;  %2330 = vmatprep.mubr.bf16.mxu1 %v12959_v44  ;;  %4696 = vmatprep.mubr.bf16.mxu0 %v9669_v53  ;;  %v10605_v12 = vpop.f32.mrb[153].mxu0  ;;  %v12967_v44 = vld [vmem:[%s17703_s3 + $0x754] ss:$16 sps:$4 sm:$0xff]  }
 0x302   : > { %v10191_v22 = vpop.f32.mrb[25].mxu1  ;;  %17734 = vst [vmem:[#allocation11_spill] sm:$0xff] %v14498_v43  ;;  %v14507_v53 = vadd.f32 %v10605_v12, %v10604_v57  ;;  %v10607_v51 = vpop.f32.mrb[154].mxu0 }
 0x303   : > { %v10192_v29 = vadd.f32 %v10191_v22, %v10190_v60  ;;  %10455 = vmatpush3.bf16.msra.mxu1 %v13812_v31  ;;  %11333 = vmatpush3.bf16.msra.mxu0 %v13643_v28  ;;  %v10193_v0 = vpop.f32.mrb[26].mxu1  ;;  %v10608_v22 = vpop.f32.mrb[155].mxu0 }
 0x304   : > { %10456 = vmatprep.subr.bf16.mxu1 %v13939_v4  ;;  %11410 = vmatprep.subr.bf16.mxu0 %v13647_v38  ;;  %v10194_v61 = vpop.f32.mrb[27].mxu1  ;;  %17735 = vst [vmem:[#allocation12_spill] sm:$0xff] %v14507_v53  ;;  %v14512_v43 = vadd.f32 %v10608_v22, %v10607_v51  ;;  %v10610_v11 = vpop.f32.mrb[156].mxu0  ;;  %v12974_v22 = vld [vmem:[%s17703_s3 + $0x774] ss:$16 sps:$4 sm:$0xff]  }
 0x305   : > { %v14510_v60 = vadd.f32 %v10192_v29, %v14183_v24  ;;  %v10195_v20 = vadd.f32 %v10194_v61, %v10193_v0  ;;  %v10611_v14 = vpop.f32.mrb[157].mxu0  ;;  %v9326_v0 = vcombine.low %v9308_v1, %v9308_v1 }
 0x306   : > { %2331 = vmatmul.mubr.bf16.gmra.mrb[132].mxu1 %v12963_v33  ;;  %4697 = vmatmul.mubr.bf16.gmra.mrb[48].mxu0 %v9668_v23  ;;  %17736 = vst [vmem:[#allocation13_spill] sm:$0xff] %v14512_v43  ;;  %v14519_v12 = vadd.f32 %v10611_v14, %v10610_v11  ;;  %v10613_v24 = vpop.f32.mrb[158].mxu0  ;;  %v12971_v11 = vld [vmem:[%s17703_s3 + $0x1bc] ss:$16 sps:$4 sm:$0xff]  }
 0x307   : > { %v14515_v32 = vadd.f32 %v10195_v20, %v14190_v34  ;;  %10457 = vmatpush3.bf16.msra.mxu1 %v13826_v46  ;;  %2338 = vmatprep.mubr.bf16.mxu1 %v9327_v10  ;;  %v10614_v33 = vpop.f32.mrb[159].mxu0  ;;  %v12965_v34 = vld [vmem:[%s17703_s3 + $0x750] ss:$16 sps:$4 sm:$0xff]  }
 0x308   : > { %10458 = vmatprep.subr.bf16.mxu1 %v13952_v25  ;;  %4926 = vmatprep.mubr.bf16.mxu0 %v12967_v44  ;;  %17737 = vst [vmem:[#allocation14_spill] sm:$0xff] %v14519_v12  ;;  %v14526_v61 = vadd.f32 %v10614_v33, %v10613_v24  ;;  %v10616_v10 = vpop.f32.mrb[160].mxu0 }
 0x309   : > { %v10196_v23 = vpop.f32.mrb[28].mxu1  ;;  %v10617_v44 = vpop.f32.mrb[161].mxu0 }
 0x30a   : > { %v10197_v57 = vpop.f32.mrb[29].mxu1  ;;  %17738 = vst [vmem:[#allocation15_spill] sm:$0xff] %v14526_v61  ;;  %v14536_v1 = vadd.f32 %v10617_v44, %v10616_v10  ;;  %v10619_v24 = vpop.f32.mrb[162].mxu0 }
 0x30b   : > { %v10198_v51 = vadd.f32 %v10197_v57, %v10196_v23  ;;  %10459 = vmatpush3.bf16.msra.mxu1 %v13840_v62  ;;  %v10199_v14 = vpop.f32.mrb[30].mxu1  ;;  %v10620_v57 = vpop.f32.mrb[163].mxu0 }
 0x30c   : > { %10536 = vmatprep.subr.bf16.mxu1 %v13854_v17  ;;  %v10200_v20 = vpop.f32.mrb[31].mxu1  ;;  %17739 = vst [vmem:[#allocation16_spill] sm:$0xff] %v14536_v1  ;;  %v14541_v29 = vadd.f32 %v10620_v57, %v10619_v24  ;;  %v10622_v61 = vpop.f32.mrb[164].mxu0 }
 0x30d   : > { %v14539_v23 = vadd.f32 %v10198_v51, %v14204_v47  ;;  %v10201_v33 = vadd.f32 %v10200_v20, %v10199_v14  ;;  %v10623_v43 = vpop.f32.mrb[165].mxu0 }
 0x30e   : > { %2339 = vmatmul.mubr.bf16.gmra.mrb[136].mxu1 %v9326_v0  ;;  %4927 = vmatmul.mubr.bf16.vlgmr.msra.gmra.mrb[52].mxu0 %v12965_v34  ;;  %17740 = vst [vmem:[#allocation17_spill] sm:$0xff] %v14541_v29  ;;  %v14548_v10 = vadd.f32 %v10623_v43, %v10622_v61  ;;  %v10625_v47 = vpop.f32.mrb[166].mxu0 }
 0x30f   : > { %v14544_v12 = vadd.f32 %v10201_v33, %v14211_v56  ;;  %11411 = vmatpush3.bf16.msra.mxu0 %v13605_v19  ;;  %2378 = vmatprep.mubr.bf16.mxu1 %v12971_v11  ;;  %v10626_v51 = vpop.f32.mrb[167].mxu0  ;;  %v12969_v56 = vld [vmem:[%s17703_s3 + $0x1b8] ss:$16 sps:$4 sm:$0xff]   ;;  %v12972_v11 = vld [vmem:[%s17703_s3 + $0x770] ss:$16 sps:$4 sm:$0xff]  }
 0x310   : > { %11412 = vmatprep.subr.bf16.mxu0 %v13658_v49  ;;  %4934 = vmatprep.mubr.bf16.mxu0 %v12974_v22  ;;  %17741 = vst [vmem:[#allocation18_spill] sm:$0xff] %v14548_v10  ;;  %v10690_v44 = vpop.f32.mrb[168].mxu0  ;;  %v12975_v51 = vld [vmem:[%s17703_s3 + $0x1dc] ss:$16 sps:$4 sm:$0xff]  }
 0x311   : > { %v10202_v34 = vpop.f32.mrb[32].mxu1  ;;  %v10691_v61 = vpop.f32.mrb[169].mxu0 }
 0x312   : > { %v10203_v14 = vpop.f32.mrb[33].mxu1  ;;  %v14560_v24 = vadd.f32 %v10691_v61, %v10690_v44  ;;  %v10693_v33 = vpop.f32.mrb[170].mxu0 }
 0x313   : > { %v10204_v20 = vadd.f32 %v10203_v14, %v10202_v34  ;;  %11413 = vmatpush3.bf16.msra.mxu0 %v13611_v30  ;;  %v10205_v43 = vpop.f32.mrb[34].mxu1  ;;  %v12979_v34 = vld [vmem:[%s17703_s3 + $0x794] ss:$16 sps:$4 sm:$0xff]   ;;  %v10694_v14 = vpop.f32.mrb[171].mxu0 }
 0x314   : > { %11414 = vmatprep.subr.bf16.mxu0 %v13666_v59  ;;  %v10206_v22 = vpop.f32.mrb[35].mxu1  ;;  %17742 = vst [vmem:[#allocation19_spill] sm:$0xff] %v14560_v24  ;;  %v14571_v0 = vadd.f32 %v10694_v14, %v10693_v33  ;;  %v10696_v44 = vpop.f32.mrb[172].mxu0  ;;  %v12977_v33 = vld [vmem:[%s17703_s3 + $0x790] ss:$16 sps:$4 sm:$0xff]  }
 0x315   : > { %v14563_v57 = vadd.f32 %v10204_v20, %v14222_v6  ;;  %v10207_v47 = vadd.f32 %v10206_v22, %v10205_v43  ;;  %v10697_v6 = vpop.f32.mrb[173].mxu0  ;;  %v9688_v24 = vld [vmem:[%s17703_s3 + $0x7d0] sm:$0xff] }
 0x316   : > { %2379 = vmatmul.mubr.bf16.vlgmr.msra.gmra.mrb[140].mxu1 %v12969_v56  ;;  %4935 = vmatmul.mubr.bf16.gmra.mrb[56].mxu0 %v12972_v11  ;;  %17743 = vst [vmem:[#allocation20_spill] sm:$0xff] %v14571_v0  ;;  %v14580_v20 = vadd.f32 %v10697_v6, %v10696_v44  ;;  %v10699_v43 = vpop.f32.mrb[174].mxu0 }
 0x317   : > { %v14574_v61 = vadd.f32 %v10207_v47, %v14228_v15  ;;  %10537 = vmatpush3.bf16.msra.mxu1 %v13728_v2  ;;  %11415 = vmatpush3.bf16.msra.mxu0 %v13617_v41  ;;  %v10700_v15 = vpop.f32.mrb[175].mxu0  ;;  %v12980_v47 = vld [vmem:[%s17703_s3 + $0x1d8] ss:$16 sps:$4 sm:$0xff]  }
 0x318   : > { %10538 = vmatprep.subr.bf16.mxu1 %v13866_v35  ;;  %11416 = vmatprep.subr.bf16.mxu0 %v13674_v5  ;;  %17744 = vst [vmem:[#allocation21_spill] sm:$0xff] %v14580_v20  ;;  %v14590_v14 = vadd.f32 %v10700_v15, %v10699_v43  ;;  %v10702_v44 = vpop.f32.mrb[176].mxu0  ;;  %v12981_v43 = vld [vmem:[%s17703_s3 + $0x1fc] ss:$16 sps:$4 sm:$0xff]  }
 0x319   : > { %v10208_v11 = vpop.f32.mrb[36].mxu1  ;;  %2386 = vmatprep.mubr.bf16.mxu1 %v12975_v51  ;;  %4942 = vmatprep.mubr.bf16.mxu0 %v12979_v34  ;;  %v10703_v34 = vpop.f32.mrb[177].mxu0 }
 0x31a   : > { %v10209_v22 = vpop.f32.mrb[37].mxu1  ;;  %17745 = vst [vmem:[#allocation22_spill] sm:$0xff] %v14590_v14  ;;  %v10705_v20 = vpop.f32.mrb[178].mxu0  ;;  %v14605_v15 = vadd.f32 %v10703_v34, %v10702_v44  ;;  %v12983_v44 = vld [vmem:[%s17703_s3 + $0x7b0] ss:$16 sps:$4 sm:$0xff]  }
 0x31b   : > { %v10210_v6 = vadd.f32 %v10209_v22, %v10208_v11  ;;  %10539 = vmatpush3.bf16.msra.mxu1 %v13748_v21  ;;  %11417 = vmatpush3.bf16.msra.mxu0 %v13623_v52  ;;  %v10211_v51 = vpop.f32.mrb[38].mxu1  ;;  %v12985_v11 = vld [vmem:[%s17703_s3 + $0x7b4] ss:$16 sps:$4 sm:$0xff]   ;;  %v10706_v22 = vpop.f32.mrb[179].mxu0  ;;  %v12986_v14 = vld [vmem:[%s17703_s3 + $0x1f8] ss:$16 sps:$4 sm:$0xff]  }
 0x31c   : > { %10540 = vmatprep.subr.bf16.mxu1 %v13879_v54  ;;  %11418 = vmatprep.subr.bf16.mxu0 %v13682_v16  ;;  %v10212_v56 = vpop.f32.mrb[39].mxu1  ;;  %17746 = vst [vmem:[#allocation23_spill] sm:$0xff] %v14605_v15  ;;  %v10708_v51 = vpop.f32.mrb[180].mxu0 }
 0x31d   : > { %v14597_v0 = vadd.f32 %v10210_v6, %v14239_v8  ;;  %v10709_v8 = vpop.f32.mrb[181].mxu0 }
 0x31e   : > { %2387 = vmatmul.mubr.bf16.gmra.mrb[144].mxu1 %v12980_v47  ;;  %4943 = vmatmul.mubr.bf16.gmra.mrb[60].mxu0 %v12977_v33  ;;  %v10711_v56 = vpop.f32.mrb[182].mxu0  ;;  %v14614_v47 = vadd.f32 %v10706_v22, %v10705_v20  ;;  %v14616_v33 = vadd.f32 %v10709_v8, %v10708_v51 }
 0x31f   : > { %10541 = vmatpush3.bf16.msra.mxu1 %v13768_v37  ;;  %11419 = vmatpush3.bf16.msra.mxu0 %v13631_v63  ;;  %v10712_v34 = vpop.f32.mrb[183].mxu0 }
 0x320   : > { %10542 = vmatprep.subr.bf16.mxu1 %v13895_v7  ;;  %11420 = vmatprep.subr.bf16.mxu0 %v13690_v27  ;;  %17747 = vst [vmem:[#allocation24_spill] sm:$0xff] %v14614_v47  ;;  %17748 = vst [vmem:[#allocation25_spill] sm:$0xff] %v14616_v33  ;;  %v10714_v10 = vpop.f32.mrb[184].mxu0 }
 0x321   : > { %v10230_v6 = vpop.f32.mrb[40].mxu1  ;;  %2394 = vmatprep.mubr.bf16.mxu1 %v12981_v43  ;;  %4950 = vmatprep.mubr.bf16.mxu0 %v12985_v11  ;;  %v14624_v43 = vadd.f32 %v10712_v34, %v10711_v56  ;;  %v10715_v11 = vpop.f32.mrb[185].mxu0  ;;  %v12987_v56 = vld [vmem:[%s17703_s3 + $0x21c] ss:$16 sps:$4 sm:$0xff]  }
 0x322   : > { %v10231_v15 = vpop.f32.mrb[41].mxu1  ;;  %v10717_v51 = vpop.f32.mrb[186].mxu0 }
 0x323   : > { %17749 = vst [vmem:[#allocation26_spill] sm:$0xff] %v14624_v43  ;;  %v14626_v29 = vadd.f32 %v10231_v15, %v10230_v6  ;;  %10543 = vmatpush3.bf16.msra.mxu1 %v13788_v58  ;;  %11421 = vmatpush3.bf16.msra.mxu0 %v13635_v9  ;;  %v10233_v20 = vpop.f32.mrb[42].mxu1  ;;  %v9707_v15 = vcombine.high %v9688_v24, %v9688_v24  ;;  %v10718_v34 = vpop.f32.mrb[187].mxu0 }
 0x324   : > { %10544 = vmatprep.subr.bf16.mxu1 %v13911_v26  ;;  %11422 = vmatprep.subr.bf16.mxu0 %v13698_v39  ;;  %v10234_v22 = vpop.f32.mrb[43].mxu1  ;;  %v14637_v6 = vadd.f32 %v10715_v11, %v10714_v10  ;;  %v10782_v43 = vpop.f32.mrb[188].mxu0  ;;  %v9706_v51 = vcombine.low %v9688_v24, %v9688_v24  ;;  %v12991_v34 = vld [vmem:[%s17703_s3 + $0x218] ss:$16 sps:$4 sm:$0xff]  }
 0x325   : > { %v14632_v8 = vadd.f32 %v10234_v22, %v10233_v20  ;;  %v10783_v33 = vpop.f32.mrb[189].mxu0  ;;  %v9309_v20 = vld [vmem:[%s17703_s3 + $0x238] sm:$0xff] }
 0x326   : > { %17750 = vst [vmem:[#allocation27_spill] sm:$0xff] %v14637_v6  ;;  %2395 = vmatmul.mubr.bf16.gmra.mrb[148].mxu1 %v12986_v14  ;;  %4951 = vmatmul.mubr.bf16.gmra.mrb[64].mxu0 %v12983_v44  ;;  %v10785_v22 = vpop.f32.mrb[190].mxu0  ;;  %v14646_v14 = vadd.f32 %v10783_v33, %v10782_v43  ;;  %v12995_v43 = vld [vmem:[%s17703_s3 + $0x7e4] ss:$16 sps:$4 sm:$0xff]  }
 0x327   : > { %10545 = vmatpush3.bf16.msra.mxu1 %v13801_v13  ;;  %11423 = vmatpush3.bf16.msra.mxu0 %v13639_v18  ;;  %v10786_v44 = vpop.f32.mrb[191].mxu0 }
 0x328   : > { %10546 = vmatprep.subr.bf16.mxu1 %v13927_v48  ;;  %11424 = vmatprep.subr.bf16.mxu0 %v13706_v50  ;;  %17751 = vst [vmem:[#allocation28_spill] sm:$0xff] %v14646_v14  ;;  %v14651_v6 = vadd.f32 %v10786_v44, %v10785_v22  ;;  %v10788_v47 = vpop.f32.mrb[192].mxu0 }
 0x329   : > { %v10236_v10 = vpop.f32.mrb[44].mxu1  ;;  %2402 = vmatprep.mubr.bf16.mxu1 %v12987_v56  ;;  %4958 = vmatprep.mubr.bf16.mxu0 %v9707_v15  ;;  %v9329_v15 = vcombine.high %v9309_v20, %v9309_v20  ;;  %v10789_v33 = vpop.f32.mrb[193].mxu0 }
 0x32a   : > { %v10237_v11 = vpop.f32.mrb[45].mxu1  ;;  %17752 = vst [vmem:[#allocation29_spill] sm:$0xff] %v14651_v6  ;;  %v10791_v22 = vpop.f32.mrb[194].mxu0 }
 0x32b   : > { %v14653_v1 = vadd.f32 %v10237_v11, %v10236_v10  ;;  %10547 = vmatpush3.bf16.msra.mxu1 %v13812_v31  ;;  %11425 = vmatpush3.bf16.msra.mxu0 %v13643_v28  ;;  %v10239_v56 = vpop.f32.mrb[46].mxu1  ;;  %v14664_v10 = vadd.f32 %v10789_v33, %v10788_v47  ;;  %v10792_v11 = vpop.f32.mrb[195].mxu0 }
 0x32c   : > { %10548 = vmatprep.subr.bf16.mxu1 %v13939_v4  ;;  %11502 = vmatprep.subr.bf16.mxu0 %v13647_v38  ;;  %v10240_v24 = vpop.f32.mrb[47].mxu1  ;;  %v10794_v6 = vpop.f32.mrb[196].mxu0  ;;  %v14668_v3 = vadd.f32 %v10792_v11, %v10791_v22 }
 0x32d   : > { %v14662_v44 = vadd.f32 %v10240_v24, %v10239_v56  ;;  %17753 = vst [vmem:[#allocation30_spill] sm:$0xff] %v14664_v10  ;;  %v10795_v14 = vpop.f32.mrb[197].mxu0 }
 0x32e   : > { %2403 = vmatmul.mubr.bf16.gmra.mrb[152].mxu1 %v12991_v34  ;;  %4959 = vmatmul.mubr.bf16.gmra.mrb[68].mxu0 %v9706_v51  ;;  %v10797_v38 = vpop.f32.mrb[198].mxu0  ;;  %17754 = vst [vmem:[#allocation31_spill] sm:$0xff] %v14668_v3  ;;  %v14670_v55 = vadd.f32 %v10795_v14, %v10794_v6  ;;  %v12993_v51 = vld [vmem:[%s17703_s3 + $0x7e0] ss:$16 sps:$4 sm:$0xff]   ;;  %v9328_v34 = vcombine.low %v9309_v20, %v9309_v20  ;;  %v12999_v6 = vld [vmem:[%s17703_s3 + $0x24c] ss:$16 sps:$4 sm:$0xff]  }
 0x32f   : > { %10549 = vmatpush3.bf16.msra.mxu1 %v13826_v46  ;;  %2410 = vmatprep.mubr.bf16.mxu1 %v9329_v15  ;;  %v10798_v56 = vpop.f32.mrb[199].mxu0  ;;  %v13002_v20 = vld [vmem:[%s17703_s3 + $0x804] ss:$16 sps:$4 sm:$0xff]  }
 0x330   : > { %10550 = vmatprep.subr.bf16.mxu1 %v13952_v25  ;;  %5188 = vmatprep.mubr.bf16.mxu0 %v12995_v43  ;;  %17755 = vst [vmem:[#allocation32_spill] sm:$0xff] %v14670_v55  ;;  %v14675_v33 = vadd.f32 %v10798_v56, %v10797_v38  ;;  %v10800_v15 = vpop.f32.mrb[200].mxu0 }
 0x331   : > { %v10242_v53 = vpop.f32.mrb[48].mxu1  ;;  %v10801_v14 = vpop.f32.mrb[201].mxu0 }
 0x332   : > { %v10243_v47 = vpop.f32.mrb[49].mxu1  ;;  %17756 = vst [vmem:[#allocation33_spill] sm:$0xff] %v14675_v33  ;;  %v10803_v11 = vpop.f32.mrb[202].mxu0 }
 0x333   : > { %v14677_v24 = vadd.f32 %v10243_v47, %v10242_v53  ;;  %10551 = vmatpush3.bf16.msra.mxu1 %v13840_v62  ;;  %v10245_v43 = vpop.f32.mrb[50].mxu1  ;;  %v14689_v53 = vadd.f32 %v10801_v14, %v10800_v15  ;;  %v10804_v56 = vpop.f32.mrb[203].mxu0 }
 0x334   : > { %10628 = vmatprep.subr.bf16.mxu1 %v13854_v17  ;;  %v10246_v22 = vpop.f32.mrb[51].mxu1  ;;  %v10806_v47 = vpop.f32.mrb[204].mxu0  ;;  %v14693_v10 = vadd.f32 %v10804_v56, %v10803_v11  ;;  %v13007_v11 = vld [vmem:[%s17703_s3 + $0x824] ss:$16 sps:$4 sm:$0xff]  }
 0x335   : > { %v14687_v38 = vadd.f32 %v10246_v22, %v10245_v43  ;;  %v10807_v33 = vpop.f32.mrb[205].mxu0 }
 0x336   : > { %2411 = vmatmul.mubr.bf16.gmra.mrb[156].mxu1 %v9328_v34  ;;  %5189 = vmatmul.mubr.bf16.vlgmr.msra.gmra.mrb[72].mxu0 %v12993_v51  ;;  %v10809_v55 = vpop.f32.mrb[206].mxu0  ;;  %v14695_v45 = vadd.f32 %v10807_v33, %v10806_v47  ;;  %v12997_v51 = vld [vmem:[%s17703_s3 + $0x248] ss:$16 sps:$4 sm:$0xff]  }
 0x337   : > { %11503 = vmatpush3.bf16.msra.mxu0 %v13605_v19  ;;  %2640 = vmatprep.mubr.bf16.mxu1 %v12999_v6  ;;  %v10810_v43 = vpop.f32.mrb[207].mxu0  ;;  %v13000_v19 = vld [vmem:[%s17703_s3 + $0x800] ss:$16 sps:$4 sm:$0xff]  }
 0x338   : > { %11504 = vmatprep.subr.bf16.mxu0 %v13658_v49  ;;  %5196 = vmatprep.mubr.bf16.mxu0 %v13002_v20  ;;  %v10874_v34 = vpop.f32.mrb[208].mxu0  ;;  %v13003_v20 = vld [vmem:[%s17703_s3 + $0x26c] ss:$16 sps:$4 sm:$0xff]  }
 0x339   : > { %v10248_v3 = vpop.f32.mrb[52].mxu1  ;;  %v10875_v55 = vpop.f32.mrb[209].mxu0 }
 0x33a   : > { %v10249_v15 = vpop.f32.mrb[53].mxu1  ;;  %v10877_v14 = vpop.f32.mrb[210].mxu0 }
 0x33b   : > { %v14703_v6 = vadd.f32 %v10249_v15, %v10248_v3  ;;  %11505 = vmatpush3.bf16.msra.mxu0 %v13611_v30  ;;  %v10251_v49 = vpop.f32.mrb[54].mxu1  ;;  %v10878_v3 = vpop.f32.mrb[211].mxu0 }
 0x33c   : > { %11506 = vmatprep.subr.bf16.mxu0 %v13666_v59  ;;  %v10252_v33 = vpop.f32.mrb[55].mxu1  ;;  %v10880_v30 = vpop.f32.mrb[212].mxu0  ;;  %v14717_v59 = vadd.f32 %v10875_v55, %v10874_v34  ;;  %v14719_v56 = vadd.f32 %v10878_v3, %v10877_v14  ;;  %v13008_v34 = vld [vmem:[%s17703_s3 + $0x268] ss:$16 sps:$4 sm:$0xff]  }
 0x33d   : > { %v14707_v22 = vadd.f32 %v10252_v33, %v10251_v49  ;;  %v10881_v47 = vpop.f32.mrb[213].mxu0 }
 0x33e   : > { %2641 = vmatmul.mubr.bf16.vlgmr.msra.gmra.mrb[160].mxu1 %v12997_v51  ;;  %5197 = vmatmul.mubr.bf16.gmra.mrb[76].mxu0 %v13000_v19  ;;  %v14723_v43 = vadd.f32 %v10881_v47, %v10880_v30  ;;  %v10883_v15 = vpop.f32.mrb[214].mxu0  ;;  %v13009_v47 = vld [vmem:[%s17703_s3 + $0x28c] ss:$16 sps:$4 sm:$0xff]  }
 0x33f   : > { %10629 = vmatpush3.bf16.msra.mxu1 %v13728_v2  ;;  %11507 = vmatpush3.bf16.msra.mxu0 %v13617_v41  ;;  %v10884_v51 = vpop.f32.mrb[215].mxu0  ;;  %v13005_v41 = vld [vmem:[%s17703_s3 + $0x820] ss:$16 sps:$4 sm:$0xff]  }
 0x340   : > { %10630 = vmatprep.subr.bf16.mxu1 %v13866_v35  ;;  %11508 = vmatprep.subr.bf16.mxu0 %v13674_v5  ;;  %v14731_v55 = vadd.f32 %v10884_v51, %v10883_v15  ;;  %v10886_v33 = vpop.f32.mrb[216].mxu0  ;;  %v13013_v15 = vld [vmem:[%s17703_s3 + $0x844] ss:$16 sps:$4 sm:$0xff]  }
 0x341   : > { %v10254_v49 = vpop.f32.mrb[56].mxu1  ;;  %2648 = vmatprep.mubr.bf16.mxu1 %v13003_v20  ;;  %5204 = vmatprep.mubr.bf16.mxu0 %v13007_v11  ;;  %v10887_v20 = vpop.f32.mrb[217].mxu0 }
 0x342   : > { %v10255_v19 = vpop.f32.mrb[57].mxu1  ;;  %v14739_v3 = vadd.f32 %v10887_v20, %v10886_v33  ;;  %v10889_v30 = vpop.f32.mrb[218].mxu0 }
 0x343   : > { %v14733_v5 = vadd.f32 %v10255_v19, %v10254_v49  ;;  %10631 = vmatpush3.bf16.msra.mxu1 %v13748_v21  ;;  %11509 = vmatpush3.bf16.msra.mxu0 %v13623_v52  ;;  %v10257_v14 = vpop.f32.mrb[58].mxu1  ;;  %v10890_v49 = vpop.f32.mrb[219].mxu0 }
 0x344   : > { %10632 = vmatprep.subr.bf16.mxu1 %v13879_v54  ;;  %11510 = vmatprep.subr.bf16.mxu0 %v13682_v16  ;;  %v10258_v11 = vpop.f32.mrb[59].mxu1  ;;  %v14747_v52 = vadd.f32 %v10890_v49, %v10889_v30  ;;  %v10892_v51 = vpop.f32.mrb[220].mxu0 }
 0x345   : > { %v10893_v16 = vpop.f32.mrb[221].mxu0 }
 0x346   : > { %2649 = vmatmul.mubr.bf16.gmra.mrb[164].mxu1 %v13008_v34  ;;  %5205 = vmatmul.mubr.bf16.gmra.mrb[80].mxu0 %v13005_v41  ;;  %17757 = vst [vmem:[#allocation34_spill] sm:$0xff] %v14747_v52  ;;  %v14753_v19 = vadd.f32 %v10893_v16, %v10892_v51  ;;  %v10895_v33 = vpop.f32.mrb[222].mxu0  ;;  %v13011_v41 = vld [vmem:[%s17703_s3 + $0x840] ss:$16 sps:$4 sm:$0xff]  }
 0x347   : > { %10633 = vmatpush3.bf16.msra.mxu1 %v13768_v37  ;;  %11511 = vmatpush3.bf16.msra.mxu0 %v13631_v63  ;;  %v10896_v34 = vpop.f32.mrb[223].mxu0  ;;  %v13014_v63 = vld [vmem:[%s17703_s3 + $0x288] ss:$16 sps:$4 sm:$0xff]  }
 0x348   : > { %10634 = vmatprep.subr.bf16.mxu1 %v13895_v7  ;;  %11512 = vmatprep.subr.bf16.mxu0 %v13690_v27  ;;  %17758 = vst [vmem:[#allocation35_spill] sm:$0xff] %v14753_v19  ;;  %v9726_v27 = vld [vmem:[%s17703_s3 + $0x860] sm:$0xff]  ;;  %v14764_v11 = vadd.f32 %v10896_v34, %v10895_v33  ;;  %v10898_v30 = vpop.f32.mrb[224].mxu0 }
 0x349   : > { %v10276_v14 = vpop.f32.mrb[60].mxu1  ;;  %2656 = vmatprep.mubr.bf16.mxu1 %v13009_v47  ;;  %5212 = vmatprep.mubr.bf16.mxu0 %v13013_v15  ;;  %v10899_v15 = vpop.f32.mrb[225].mxu0  ;;  %v9745_v34 = vcombine.high %v9726_v27, %v9726_v27 }
 0x34a   : > { %v10277_v20 = vpop.f32.mrb[61].mxu1  ;;  %17759 = vst [vmem:[#allocation36_spill] sm:$0xff] %v14764_v11  ;;  %v14770_v16 = vadd.f32 %v10899_v15, %v10898_v30  ;;  %v10901_v19 = vpop.f32.mrb[226].mxu0 }
 0x34b   : > { %v10278_v49 = vadd.f32 %v10277_v20, %v10276_v14  ;;  %10635 = vmatpush3.bf16.msra.mxu1 %v13788_v58  ;;  %11513 = vmatpush3.bf16.msra.mxu0 %v13635_v9  ;;  %v10279_v47 = vpop.f32.mrb[62].mxu1  ;;  %v13015_v14 = vld [vmem:[%s17703_s3 + $0x2ac] ss:$16 sps:$4 sm:$0xff]   ;;  %v10902_v9 = vpop.f32.mrb[227].mxu0  ;;  %v13031_v19 = vld [vmem:[%s17704_s4 + $0x40] sm:$0xff]  }
 0x34c   : > { %10636 = vmatprep.subr.bf16.mxu1 %v13911_v26  ;;  %11514 = vmatprep.subr.bf16.mxu0 %v13698_v39  ;;  %v10280_v51 = vpop.f32.mrb[63].mxu1  ;;  %v10966_v20 = vpop.f32.mrb[228].mxu0 }
 0x34d   : > { %v14773_v52 = vadd.f32 %v10278_v49, %v14626_v29  ;;  %v10281_v33 = vadd.f32 %v10280_v51, %v10279_v47  ;;  %v10967_v39 = vpop.f32.mrb[229].mxu0  ;;  %v14788_v29 = vld [vmem:[%s17703_s3 + $0x2c8] sm:$0xff]  ;;  %v9744_v49 = vcombine.low %v9726_v27, %v9726_v27 }
 0x34e   : > { %2657 = vmatmul.mubr.bf16.gmra.mrb[168].mxu1 %v13014_v63  ;;  %5213 = vmatmul.mubr.bf16.gmra.mrb[84].mxu0 %v13011_v41  ;;  %v10969_v41 = vpop.f32.mrb[230].mxu0  ;;  %v13019_v47 = vld [vmem:[%s17703_s3 + $0x2a8] ss:$16 sps:$4 sm:$0xff]  }
 0x34f   : > { %v14779_v11 = vadd.f32 %v10281_v33, %v14632_v8  ;;  %10637 = vmatpush3.bf16.msra.mxu1 %v13801_v13  ;;  %11515 = vmatpush3.bf16.msra.mxu0 %v13639_v18  ;;  %v14793_v8 = vadd.f32 %v10967_v39, %v10966_v20  ;;  %v10970_v30 = vpop.f32.mrb[231].mxu0  ;;  %v13023_v20 = vld [vmem:[%s17703_s3 + $0x874] ss:$16 sps:$4 sm:$0xff]  }
 0x350   : > { %10638 = vmatprep.subr.bf16.mxu1 %v13927_v48  ;;  %11516 = vmatprep.subr.bf16.mxu0 %v13706_v50  ;;  %v14800_v15 = vadd.f32 %v10970_v30, %v10969_v41  ;;  %v10972_v51 = vpop.f32.mrb[232].mxu0 }
 0x351   : > { %v10282_v63 = vpop.f32.mrb[64].mxu1  ;;  %2664 = vmatprep.mubr.bf16.mxu1 %v13015_v14  ;;  %5220 = vmatprep.mubr.bf16.mxu0 %v9745_v34  ;;  %v9367_v34 = vcombine.high %v14788_v29, %v14788_v29  ;;  %v10973_v9 = vpop.f32.mrb[233].mxu0 }
 0x352   : > { %v10283_v50 = vpop.f32.mrb[65].mxu1  ;;  %17760 = vst [vmem:[#allocation37_spill] sm:$0xff] %v14800_v15  ;;  %v14810_v39 = vadd.f32 %v10973_v9, %v10972_v51  ;;  %v10975_v41 = vpop.f32.mrb[234].mxu0 }
 0x353   : > { %v10284_v33 = vadd.f32 %v10283_v50, %v10282_v63  ;;  %10639 = vmatpush3.bf16.msra.mxu1 %v13812_v31  ;;  %11517 = vmatpush3.bf16.msra.mxu0 %v13643_v28  ;;  %v10285_v14 = vpop.f32.mrb[66].mxu1  ;;  %v10976_v30 = vpop.f32.mrb[235].mxu0 }
 0x354   : > { %10640 = vmatprep.subr.bf16.mxu1 %v13939_v4  ;;  %v10286_v27 = vpop.f32.mrb[67].mxu1  ;;  %11594 = vmatprep.subr.bf16.mxu0 %v13031_v19  ;;  %17761 = vst [vmem:[#allocation38_spill] sm:$0xff] %v14810_v39  ;;  %v14815_v50 = vadd.f32 %v10976_v30, %v10975_v41  ;;  %v10978_v18 = vpop.f32.mrb[236].mxu0  ;;  %v13027_v41 = vld [vmem:[%s17703_s3 + $0x2dc] ss:$16 sps:$4 sm:$0xff]  }
 0x355   : > { %v14813_v63 = vadd.f32 %v10284_v33, %v14653_v1  ;;  %v10287_v28 = vadd.f32 %v10286_v27, %v10285_v14  ;;  %v10979_v19 = vpop.f32.mrb[237].mxu0 }
 0x356   : > { %2665 = vmatmul.mubr.bf16.gmra.mrb[172].mxu1 %v13019_v47  ;;  %5221 = vmatmul.mubr.bf16.gmra.mrb[88].mxu0 %v9744_v49  ;;  %17762 = vst [vmem:[#allocation39_spill] sm:$0xff] %v14815_v50  ;;  %v14822_v51 = vadd.f32 %v10979_v19, %v10978_v18  ;;  %v10981_v1 = vpop.f32.mrb[238].mxu0  ;;  %v13033_v49 = vld [vmem:[%s17704_s4 + $0x48] sm:$0xff]  }
 0x357   : > { %v14818_v15 = vadd.f32 %v10287_v28, %v14662_v44  ;;  %10641 = vmatpush3.bf16.msra.mxu1 %v13826_v46  ;;  %2672 = vmatprep.mubr.bf16.mxu1 %v9367_v34  ;;  %v10982_v47 = vpop.f32.mrb[239].mxu0  ;;  %v13021_v44 = vld [vmem:[%s17703_s3 + $0x870] ss:$16 sps:$4 sm:$0xff]   ;;  %v9366_v34 = vcombine.low %v14788_v29, %v14788_v29  ;;  %v13030_v28 = vld [vmem:[%s17703_s3 + $0x894] ss:$16 sps:$4 sm:$0xff]  }
 0x358   : > { %10642 = vmatprep.subr.bf16.mxu1 %v13952_v25  ;;  %5450 = vmatprep.mubr.bf16.mxu0 %v13023_v20  ;;  %17763 = vst [vmem:[#allocation40_spill] sm:$0xff] %v14822_v51  ;;  %v14831_v9 = vadd.f32 %v10982_v47, %v10981_v1  ;;  %v13032_v29 = vld [vmem:[%s17704_s4] sm:$0xff]  }
 0x359   : > { %v10288_v33 = vpop.f32.mrb[68].mxu1  ;;  %v10984_v27 = vpop.f32.mrb[240].mxu0 }
 0x35a   : > { %v10289_v14 = vpop.f32.mrb[69].mxu1  ;;  %17764 = vst [vmem:[#allocation41_spill] sm:$0xff] %v14831_v9  ;;  %v10985_v30 = vpop.f32.mrb[241].mxu0 }
 0x35b   : > { %v10290_v20 = vadd.f32 %v10289_v14, %v10288_v33  ;;  %10643 = vmatpush3.bf16.msra.mxu1 %v13840_v62  ;;  %v10291_v18 = vpop.f32.mrb[70].mxu1  ;;  %v14844_v1 = vadd.f32 %v10985_v30, %v10984_v27  ;;  %v10987_v33 = vpop.f32.mrb[242].mxu0  ;;  %v13035_v30 = vld [vmem:[%s17703_s3 + $0x2fc] ss:$16 sps:$4 sm:$0xff]  }
 0x35c   : > { %10720 = vmatprep.subr.bf16.mxu1 %v13854_v17  ;;  %v10292_v19 = vpop.f32.mrb[71].mxu1  ;;  %v10988_v9 = vpop.f32.mrb[243].mxu0 }
 0x35d   : > { %17765 = vst [vmem:[#allocation42_spill] sm:$0xff] %v14844_v1  ;;  %v14847_v47 = vadd.f32 %v10290_v20, %v14677_v24  ;;  %v10293_v14 = vadd.f32 %v10292_v19, %v10291_v18  ;;  %v14852_v51 = vadd.f32 %v10988_v9, %v10987_v33  ;;  %v13034_v24 = vld [vmem:[%s17704_s4 + $0x8] sm:$0xff]   ;;  %v13041_v20 = vld [vmem:[%s17704_s4 + $0x50] sm:$0xff]  }
 0x35e   : > { %2673 = vmatmul.mubr.bf16.gmra.mrb[176].mxu1 %v9366_v34  ;;  %5451 = vmatmul.mubr.bf16.vlgmr.msra.gmra.mrb[92].mxu0 %v13021_v44  ;;  %v13028_v18 = vld [vmem:[%s17703_s3 + $0x890] ss:$16 sps:$4 sm:$0xff]  }
 0x35f   : > { %17766 = vst [vmem:[#allocation43_spill] sm:$0xff] %v14852_v51  ;;  %v14855_v50 = vadd.f32 %v10293_v14, %v14687_v38  ;;  %2902 = vmatprep.mubr.bf16.mxu1 %v13027_v41  ;;  %5458 = vmatprep.mubr.bf16.mxu0 %v13030_v28  ;;  %v13025_v38 = vld [vmem:[%s17703_s3 + $0x2d8] ss:$16 sps:$4 sm:$0xff]   ;;  %v13039_v14 = vld [vmem:[%s17703_s3 + $0x8b4] ss:$16 sps:$4 sm:$0xff]  }
 0x360   : > { %11595 = vmatpush3.bf16.msra.mxu0 %v13032_v29 }
 0x361   : > { %v10294_v27 = vpop.f32.mrb[72].mxu1  ;;  %11596 = vmatprep.subr.bf16.mxu0 %v13033_v49  ;;  %v10990_v34 = vpop.f32.mrb[244].mxu0 }
 0x362   : > { %v10295_v9 = vpop.f32.mrb[73].mxu1  ;;  %v10991_v41 = vpop.f32.mrb[245].mxu0 }
 0x363   : > { %v10296_v28 = vadd.f32 %v10295_v9, %v10294_v27  ;;  %v10297_v49 = vpop.f32.mrb[74].mxu1  ;;  %v14874_v19 = vadd.f32 %v10991_v41, %v10990_v34  ;;  %v10993_v29 = vpop.f32.mrb[246].mxu0  ;;  %v13042_v27 = vld [vmem:[%s17704_s4 + $0x10] sm:$0xff]  }
 0x364   : > { %v10298_v33 = vpop.f32.mrb[75].mxu1  ;;  %11597 = vmatpush3.bf16.msra.mxu0 %v13034_v24  ;;  %v10994_v44 = vpop.f32.mrb[247].mxu0  ;;  %v13043_v24 = vld [vmem:[%s17704_s4 + $0x58] sm:$0xff]  }
 0x365   : > { %17767 = vst [vmem:[#allocation44_spill] sm:$0xff] %v14874_v19  ;;  %v14880_v51 = vadd.f32 %v10296_v28, %v14703_v6  ;;  %v10299_v1 = vadd.f32 %v10298_v33, %v10297_v49  ;;  %11598 = vmatprep.subr.bf16.mxu0 %v13041_v20  ;;  %v13044_v20 = vld [vmem:[%s17704_s4 + $0x18] sm:$0xff]  }
 0x366   : > { %2903 = vmatmul.mubr.bf16.vlgmr.msra.gmra.mrb[180].mxu1 %v13025_v38  ;;  %5459 = vmatmul.mubr.bf16.gmra.mrb[96].mxu0 %v13028_v18  ;;  %v13045_v49 = vld [vmem:[%s17703_s3 + $0x31c] ss:$16 sps:$4 sm:$0xff]  }
 0x367   : > { %v14889_v34 = vadd.f32 %v10299_v1, %v14707_v22  ;;  %10721 = vmatpush3.bf16.msra.mxu1 %v13728_v2  ;;  %2910 = vmatprep.mubr.bf16.mxu1 %v13035_v30  ;;  %v13037_v22 = vld [vmem:[%s17703_s3 + $0x8b0] ss:$16 sps:$4 sm:$0xff]   ;;  %v13040_v1 = vld [vmem:[%s17703_s3 + $0x2f8] ss:$16 sps:$4 sm:$0xff]   ;;  %v13055_v44 = vld [vmem:[%s17703_s3 + $0x33c] ss:$16 sps:$4 sm:$0xff]  }
 0x368   : > { %10722 = vmatprep.subr.bf16.mxu1 %v13866_v35  ;;  %5466 = vmatprep.mubr.bf16.mxu0 %v13039_v14  ;;  %v13049_v14 = vld [vmem:[%s17703_s3 + $0x8d4] ss:$16 sps:$4 sm:$0xff]  }
 0x369   : > { %v10300_v6 = vpop.f32.mrb[76].mxu1  ;;  %11599 = vmatpush3.bf16.msra.mxu0 %v13042_v27  ;;  %v11058_v9 = vpop.f32.mrb[248].mxu0 }
 0x36a   : > { %v10301_v38 = vpop.f32.mrb[77].mxu1  ;;  %11600 = vmatprep.subr.bf16.mxu0 %v13043_v24  ;;  %v11059_v18 = vpop.f32.mrb[249].mxu0  ;;  %v13051_v24 = vld [vmem:[%s17704_s4 + $0x60] sm:$0xff]  }
 0x36b   : > { %v10302_v41 = vadd.f32 %v10301_v38, %v10300_v6  ;;  %10723 = vmatpush3.bf16.msra.mxu1 %v13748_v21  ;;  %v10303_v28 = vpop.f32.mrb[78].mxu1  ;;  %v14908_v30 = vadd.f32 %v11059_v18, %v11058_v9  ;;  %v11061_v29 = vpop.f32.mrb[250].mxu0  ;;  %v13052_v9 = vld [vmem:[%s17704_s4 + $0x20] sm:$0xff]  }
 0x36c   : > { %10724 = vmatprep.subr.bf16.mxu1 %v13879_v54  ;;  %v10304_v33 = vpop.f32.mrb[79].mxu1  ;;  %v11062_v27 = vpop.f32.mrb[251].mxu0  ;;  %v9764_v28 = vld [vmem:[%s17703_s3 + $0x8f0] sm:$0xff] }
 0x36d   : > { %17768 = vst [vmem:[#allocation45_spill] sm:$0xff] %v14908_v30  ;;  %11601 = vmatpush3.bf16.msra.mxu0 %v13044_v20  ;;  %v14918_v6 = vadd.f32 %v10302_v41, %v14733_v5  ;;  %v14920_v38 = vadd.f32 %v11062_v27, %v11061_v29  ;;  %v13053_v20 = vld [vmem:[%s17704_s4 + $0x68] sm:$0xff]  }
 0x36e   : > { %2911 = vmatmul.mubr.bf16.gmra.mrb[184].mxu1 %v13040_v1  ;;  %5467 = vmatmul.mubr.bf16.gmra.mrb[100].mxu0 %v13037_v22  ;;  %v13047_v1 = vld [vmem:[%s17703_s3 + $0x8d0] ss:$16 sps:$4 sm:$0xff]   ;;  %v13050_v41 = vld [vmem:[%s17703_s3 + $0x318] ss:$16 sps:$4 sm:$0xff]  }
 0x36f   : > { %17769 = vst [vmem:[#allocation46_spill] sm:$0xff] %v14920_v38  ;;  %10725 = vmatpush3.bf16.msra.mxu1 %v13768_v37  ;;  %2918 = vmatprep.mubr.bf16.mxu1 %v13045_v49  ;;  %v9783_v38 = vcombine.high %v9764_v28, %v9764_v28 }
 0x370   : > { %10726 = vmatprep.subr.bf16.mxu1 %v13895_v7  ;;  %5474 = vmatprep.mubr.bf16.mxu0 %v13049_v14  ;;  %v13054_v14 = vld [vmem:[%s17704_s4 + $0x28] sm:$0xff]  }
 0x371   : > { %v10322_v5 = vpop.f32.mrb[80].mxu1  ;;  %11602 = vmatprep.subr.bf16.mxu0 %v13051_v24  ;;  %v11064_v22 = vpop.f32.mrb[252].mxu0 }
 0x372   : > { %v10323_v18 = vpop.f32.mrb[81].mxu1  ;;  %11603 = vmatpush3.bf16.msra.mxu0 %v13052_v9  ;;  %v11065_v49 = vpop.f32.mrb[253].mxu0 }
 0x373   : > { %v14939_v29 = vadd.f32 %v10323_v18, %v10322_v5  ;;  %10727 = vmatpush3.bf16.msra.mxu1 %v13788_v58  ;;  %v10325_v33 = vpop.f32.mrb[82].mxu1  ;;  %11604 = vmatprep.subr.bf16.mxu0 %v13053_v20  ;;  %v14945_v27 = vadd.f32 %v11065_v49, %v11064_v22  ;;  %v11067_v24 = vpop.f32.mrb[254].mxu0  ;;  %v13060_v20 = vld [vmem:[%s17704_s4 + $0x70] sm:$0xff]   ;;  %v13062_v49 = vld [vmem:[%s17704_s4 + $0x78] sm:$0xff]  }
 0x374   : > { %10728 = vmatprep.subr.bf16.mxu1 %v13911_v26  ;;  %v10326_v9 = vpop.f32.mrb[83].mxu1  ;;  %v11068_v5 = vpop.f32.mrb[255].mxu0  ;;  %v13061_v22 = vld [vmem:[%s17704_s4 + $0x30] sm:$0xff]  }
 0x375   : > { %17770 = vst [vmem:[#allocation47_spill] sm:$0xff] %v14945_v27  ;;  %v14951_v18 = vadd.f32 %v10326_v9, %v10325_v33  ;;  %v14956_v30 = vadd.f32 %v11068_v5, %v11067_v24  ;;  %v9385_v9 = vld [vmem:[%s17703_s3 + $0x358] sm:$0xff] }
 0x376   : > { %2919 = vmatmul.mubr.bf16.gmra.mrb[188].mxu1 %v13050_v41  ;;  %5475 = vmatmul.mubr.bf16.gmra.mrb[104].mxu0 %v13047_v1  ;;  %v9782_v1 = vcombine.low %v9764_v28, %v9764_v28  ;;  %v13063_v27 = vld [vmem:[%s17704_s4 + $0x38] sm:$0xff]  }
 0x377   : > { %17771 = vst [vmem:[#allocation48_spill] sm:$0xff] %v14956_v30  ;;  %10729 = vmatpush3.bf16.msra.mxu1 %v13801_v13  ;;  %11605 = vmatpush3.bf16.msra.mxu0 %v13054_v14  ;;  %v13059_v14 = vld [vmem:[%s17703_s3 + $0x338] ss:$16 sps:$4 sm:$0xff]  }
 0x378   : > { %10730 = vmatprep.subr.bf16.mxu1 %v13927_v48  ;;  %2926 = vmatprep.mubr.bf16.mxu1 %v13055_v44 }
 0x379   : > { %v10328_v33 = vpop.f32.mrb[84].mxu1  ;;  %5482 = vmatprep.mubr.bf16.mxu0 %v9783_v38  ;;  %11606 = vmatprep.subr.bf16.mxu0 %v13060_v20  ;;  %v11070_v24 = vpop.f32.mrb[0].mxu0 }
 0x37a   : > { %v10329_v41 = vpop.f32.mrb[85].mxu1  ;;  %v11071_v5 = vpop.f32.mrb[1].mxu0 }
 0x37b   : > { %v14972_v44 = vadd.f32 %v10329_v41, %v10328_v33  ;;  %10731 = vmatpush3.bf16.msra.mxu1 %v13812_v31  ;;  %v10331_v30 = vpop.f32.mrb[86].mxu1  ;;  %11607 = vmatpush3.bf16.msra.mxu0 %v13061_v22  ;;  %v14975_v38 = vadd.f32 %v11071_v5, %v11070_v24  ;;  %v11073_v20 = vpop.f32.mrb[2].mxu0  ;;  %v9405_v33 = vcombine.high %v9385_v9, %v9385_v9 }
 0x37c   : > { %10732 = vmatprep.subr.bf16.mxu1 %v13939_v4  ;;  %v10332_v28 = vpop.f32.mrb[87].mxu1  ;;  %11608 = vmatprep.subr.bf16.mxu0 %v13062_v49  ;;  %v11074_v19 = vpop.f32.mrb[3].mxu0  ;;  %v17773_v22 = vpack.c.bf16 %v14779_v11, %v14773_v52 }
 0x37d   : > { %17772 = vst [vmem:[#allocation49_spill] sm:$0xff] %v14975_v38  ;;  %v14981_v39 = vadd.f32 %v10332_v28, %v10331_v30  ;;  %v14983_v41 = vadd.f32 %v11074_v19, %v11073_v20  ;;  %v9404_v30 = vcombine.low %v9385_v9, %v9385_v9 }
 0x37e   : > { %2927 = vmatmul.mubr.bf16.gmra.mrb[192].mxu1 %v13059_v14  ;;  %5483 = vmatmul.mubr.bf16.gmra.mrb[108].mxu0 %v9782_v1  ;;  %v13068_v1 = vld [vmem:[%s17703_s3 + $0x36c] ss:$16 sps:$4 sm:$0xff]  }
 0x37f   : > { %10733 = vmatpush3.bf16.msra.mxu1 %v13826_v46  ;;  %6630 = vmatprep.mubr.bf16.mxu0 %v17773_v22  ;;  %v17775_v22 = vpack.c.bf16 %v14818_v15, %v14813_v63  ;;  %v13069_v15 = vld [vmem:[%s17703_s3 + $0x38c] ss:$16 sps:$4 sm:$0xff]  }
 0x380   : > { %10734 = vmatprep.subr.bf16.mxu1 %v13952_v25  ;;  %11609 = vmatpush3.bf16.msra.mxu0 %v13063_v27 }
 0x381   : > { %v10334_v49 = vpop.f32.mrb[88].mxu1  ;;  %2934 = vmatprep.mubr.bf16.mxu1 %v9405_v33  ;;  %v11076_v24 = vpop.f32.mrb[4].mxu0  ;;  %v17774_v33 = vpack.c.bf16 %v14482_v42, %v14476_v40 }
 0x382   : > { %v10335_v5 = vpop.f32.mrb[89].mxu1  ;;  %v11077_v28 = vpop.f32.mrb[5].mxu0 }
 0x383   : > { %v14990_v38 = vadd.f32 %v10335_v5, %v10334_v49  ;;  %10735 = vmatpush3.bf16.msra.mxu1 %v13840_v62  ;;  %v10337_v19 = vpop.f32.mrb[90].mxu1  ;;  %v14996_v52 = vadd.f32 %v11077_v28, %v11076_v24  ;;  %v11079_v11 = vpop.f32.mrb[6].mxu0  ;;  %v13066_v28 = vld [vmem:[%s17703_s3 + $0x368] ss:$16 sps:$4 sm:$0xff]  }
 0x384   : > { %10812 = vmatprep.subr.bf16.mxu1 %v13854_v17  ;;  %v10338_v27 = vpop.f32.mrb[91].mxu1  ;;  %v11080_v14 = vpop.f32.mrb[7].mxu0 }
 0x385   : > { %v14999_v20 = vadd.f32 %v10338_v27, %v10337_v19  ;;  %v15001_v9 = vadd.f32 %v11080_v14, %v11079_v11  ;;  %v17776_v14 = vpack.c.bf16 %v14515_v32, %v14510_v60 }
 0x386   : > { %2935 = vmatmul.mubr.bf16.gmra.mrb[196].mxu1 %v9404_v30  ;;  %6631 = vmatmul.mubr.bf16.vlgmr.msra.gmra.mrb[112].mxu0 %v17774_v33  ;;  %v17777_v33 = vpack.c.bf16 %v14855_v50, %v14847_v47 }
 0x387   : > { %6638 = vmatprep.mubr.bf16.mxu0 %v17775_v22  ;;  %3164 = vmatprep.mubr.bf16.mxu1 %v13068_v1 }
 0x389   : > { %v10340_v49 = vpop.f32.mrb[92].mxu1  ;;  %v11082_v24 = vpop.f32.mrb[8].mxu0 }
 0x38a   : > { %v10341_v5 = vpop.f32.mrb[93].mxu1  ;;  %v11083_v19 = vpop.f32.mrb[9].mxu0 }
 0x38b   : > { %v15012_v11 = vadd.f32 %v10341_v5, %v10340_v49  ;;  %v10343_v30 = vpop.f32.mrb[94].mxu1  ;;  %v15014_v27 = vadd.f32 %v11083_v19, %v11082_v24  ;;  %v11085_v42 = vpop.f32.mrb[10].mxu0  ;;  %v13071_v5 = vld [vmem:[%s17703_s3 + $0x388] ss:$16 sps:$4 sm:$0xff]  }
 0x38c   : > { %v10344_v40 = vpop.f32.mrb[95].mxu1  ;;  %v11086_v63 = vpop.f32.mrb[11].mxu0 }
 0x38d   : > { %v15019_v1 = vadd.f32 %v10344_v40, %v10343_v30  ;;  %v13072_v30 = vld [vmem:[%s17703_s3 + $0x3ac] ss:$16 sps:$4 sm:$0xff]   ;;  %v17781_v63 = vpack.c.bf16 %v14889_v34, %v14880_v51 }
 0x38e   : > { %3165 = vmatmul.mubr.bf16.vlgmr.msra.gmra.mrb[200].mxu1 %v13066_v28  ;;  %6639 = vmatmul.mubr.bf16.gmra.mrb[116].mxu0 %v17776_v14  ;;  %v13075_v34 = vld [vmem:[%s17703_s3 + $0x3cc] ss:$16 sps:$4 sm:$0xff]  }
 0x38f   : > { %10813 = vmatpush3.bf16.msra.mxu1 %v13728_v2  ;;  %6646 = vmatprep.mubr.bf16.mxu0 %v17777_v33 }
 0x390   : > { %10814 = vmatprep.subr.bf16.mxu1 %v13866_v35  ;;  %3172 = vmatprep.mubr.bf16.mxu1 %v13069_v15  ;;  %v17780_v15 = vpack.c.bf16 %v14544_v12, %v14539_v23 }
 0x391   : > { %v10346_v22 = vpop.f32.mrb[96].mxu1  ;;  %v11150_v49 = vpop.f32.mrb[12].mxu0 }
 0x392   : > { %v10347_v24 = vpop.f32.mrb[97].mxu1  ;;  %v11151_v28 = vpop.f32.mrb[13].mxu0 }
 0x393   : > { %v15032_v19 = vadd.f32 %v10347_v24, %v10346_v22  ;;  %10815 = vmatpush3.bf16.msra.mxu1 %v13748_v21  ;;  %v10349_v32 = vpop.f32.mrb[98].mxu1  ;;  %v15035_v60 = vadd.f32 %v11151_v28, %v11150_v49  ;;  %v11153_v50 = vpop.f32.mrb[14].mxu0  ;;  %v13074_v49 = vld [vmem:[%s17703_s3 + $0x3a8] ss:$16 sps:$4 sm:$0xff]  }
 0x394   : > { %10816 = vmatprep.subr.bf16.mxu1 %v13879_v54  ;;  %v10350_v47 = vpop.f32.mrb[99].mxu1  ;;  %v11154_v42 = vpop.f32.mrb[15].mxu0 }
 0x395   : > { %17778 = vst [vmem:[#allocation50_spill] sm:$0xff] %v15035_v60  ;;  %v15041_v40 = vadd.f32 %v11154_v42, %v11153_v50 }
 0x396   : > { %3173 = vmatmul.mubr.bf16.gmra.mrb[204].mxu1 %v13071_v5  ;;  %6647 = vmatmul.mubr.bf16.gmra.mrb[120].mxu0 %v17780_v15  ;;  %v17784_v15 = vpack.c.bf16 %v14574_v61, %v14563_v57  ;;  %v13077_v61 = vld [vmem:[%s17703_s3 + $0x3c8] ss:$16 sps:$4 sm:$0xff]  }
 0x397   : > { %17779 = vst [vmem:[#allocation51_spill] sm:$0xff] %v15041_v40  ;;  %10817 = vmatpush3.bf16.msra.mxu1 %v13768_v37  ;;  %6654 = vmatprep.mubr.bf16.mxu0 %v17781_v63 }
 0x398   : > { %10818 = vmatprep.subr.bf16.mxu1 %v13895_v7  ;;  %3180 = vmatprep.mubr.bf16.mxu1 %v13072_v30  ;;  %v1898_v30 = vpack.c.bf16 %v14918_v6, %v14918_v6  ;;  %v9423_v6 = vld [vmem:[%s17703_s3 + $0x3e8] sm:$0xff] }
 0x399   : > { %v10368_v14 = vpop.f32.mrb[100].mxu1  ;;  %v11156_v33 = vpop.f32.mrb[16].mxu0 }
 0x39a   : > { %v10369_v22 = vpop.f32.mrb[101].mxu1  ;;  %v11157_v24 = vpop.f32.mrb[17].mxu0 }
 0x39b   : > { %v10370_v5 = vadd.f32 %v10369_v22, %v10368_v14  ;;  %10819 = vmatpush3.bf16.msra.mxu1 %v13788_v58  ;;  %v10371_v12 = vpop.f32.mrb[102].mxu1  ;;  %v15055_v23 = vadd.f32 %v11157_v24, %v11156_v33  ;;  %v11159_v28 = vpop.f32.mrb[18].mxu0  ;;  %v9443_v24 = vcombine.high %v9423_v6, %v9423_v6 }
 0x39c   : > { %10820 = vmatprep.subr.bf16.mxu1 %v13911_v26  ;;  %v10372_v51 = vpop.f32.mrb[103].mxu1  ;;  %v11160_v32 = vpop.f32.mrb[19].mxu0 }
 0x39d   : > { %17782 = vst [vmem:[#allocation52_spill] sm:$0xff] %v15055_v23  ;;  %v15062_v50 = vadd.f32 %v10370_v5, %v14939_v29  ;;  %v10373_v47 = vadd.f32 %v10372_v51, %v10371_v12  ;;  %v15066_v42 = vadd.f32 %v11160_v32, %v11159_v28  ;;  %v13120_v28 = vld [vmem:[%s17704_s4 + $0x140] sm:$0xff]   ;;  %v1636_v51 = vpack.c.bf16 %v14597_v0, %v14597_v0  ;;  %v13124_v0 = vld [vmem:[%s17704_s4 + $0x148] sm:$0xff]  }
 0x39e   : > { %3181 = vmatmul.mubr.bf16.gmra.mrb[208].mxu1 %v13074_v49  ;;  %6655 = vmatmul.mubr.bf16.gmra.mrb[124].mxu0 %v17784_v15 }
 0x39f   : > { %17783 = vst [vmem:[#allocation53_spill] sm:$0xff] %v15066_v42  ;;  %v15072_v63 = vadd.f32 %v10373_v47, %v14951_v18  ;;  %10821 = vmatpush3.bf16.msra.mxu1 %v13801_v13  ;;  %6662 = vmatprep.mubr.bf16.mxu0 %v1898_v30  ;;  %v13123_v47 = vld [vmem:[%s17704_s4 + $0x100] sm:$0xff]  }
 0x3a0   : > { %10822 = vmatprep.subr.bf16.mxu1 %v13927_v48  ;;  %3188 = vmatprep.mubr.bf16.mxu1 %v13075_v34 }
 0x3a1   : > { %v10374_v14 = vpop.f32.mrb[104].mxu1  ;;  %v11162_v33 = vpop.f32.mrb[20].mxu0  ;;  %11686 = vmatprep.subr.bf16.mxu0 %v13120_v28  ;;  %v13082_v28 = vld [vmem:[%s17703_s3 + $0x3fc] ss:$16 sps:$4 sm:$0xff]  }
 0x3a2   : > { %v10375_v57 = vpop.f32.mrb[105].mxu1  ;;  %v11163_v18 = vpop.f32.mrb[21].mxu0  ;;  %11687 = vmatpush3.bf16.msra.mxu0 %v13123_v47 }
 0x3a3   : > { %v10376_v22 = vadd.f32 %v10375_v57, %v10374_v14  ;;  %10823 = vmatpush3.bf16.msra.mxu1 %v13812_v31  ;;  %v10377_v49 = vpop.f32.mrb[106].mxu1  ;;  %v15085_v5 = vadd.f32 %v11163_v18, %v11162_v33  ;;  %v11165_v12 = vpop.f32.mrb[22].mxu0  ;;  %11688 = vmatprep.subr.bf16.mxu0 %v13124_v0  ;;  %v13137_v57 = vld [vmem:[%s17704_s4 + $0x120] sm:$0xff]  }
 0x3a4   : > { %10824 = vmatprep.subr.bf16.mxu1 %v13939_v4  ;;  %v10378_v34 = vpop.f32.mrb[107].mxu1  ;;  %v11166_v32 = vpop.f32.mrb[23].mxu0 }
 0x3a5   : > { %17785 = vst [vmem:[#allocation54_spill] sm:$0xff] %v15085_v5  ;;  %v15097_v30 = vadd.f32 %v10376_v22, %v14972_v44  ;;  %v10379_v15 = vadd.f32 %v10378_v34, %v10377_v49  ;;  %v15099_v14 = vadd.f32 %v11166_v32, %v11165_v12  ;;  %v13125_v44 = vld [vmem:[%s17704_s4 + $0x108] sm:$0xff]   ;;  %v9442_v22 = vcombine.low %v9423_v6, %v9423_v6  ;;  %v13126_v32 = vld [vmem:[%s17704_s4 + $0x150] sm:$0xff]  }
 0x3a6   : > { %3189 = vmatmul.mubr.bf16.gmra.mrb[212].mxu1 %v13077_v61  ;;  %6663 = vmatmul.mubr.bf16.gmra.mrb[128].mxu0 %v1636_v51  ;;  %v13094_v5 = vld [vmem:[%s17703_s3 + $0x488] ss:$16 sps:$4 sm:$0xff]  }
 0x3a7   : > { %17786 = vst [vmem:[#allocation55_spill] sm:$0xff] %v15097_v30  ;;  %17787 = vst [vmem:[#allocation56_spill] sm:$0xff] %v15099_v14  ;;  %v15102_v33 = vadd.f32 %v10379_v15, %v14981_v39  ;;  %10825 = vmatpush3.bf16.msra.mxu1 %v13826_v46  ;;  %3196 = vmatprep.mubr.bf16.mxu1 %v9443_v24  ;;  %v13130_v15 = vld [vmem:[%s17704_s4 + $0x110] sm:$0xff]  }
 0x3a8   : > { %10826 = vmatprep.subr.bf16.mxu1 %v13952_v25  ;;  %11689 = vmatpush3.bf16.msra.mxu0 %v13125_v44  ;;  %v13131_v44 = vld [vmem:[%s17704_s4 + $0x158] sm:$0xff]  }
 0x3a9   : > { %v10380_v61 = vpop.f32.mrb[108].mxu1  ;;  %v11168_v39 = vpop.f32.mrb[24].mxu0  ;;  %11690 = vmatprep.subr.bf16.mxu0 %v13126_v32 }
 0x3aa   : > { %v10381_v18 = vpop.f32.mrb[109].mxu1  ;;  %v11169_v49 = vpop.f32.mrb[25].mxu0 }
 0x3ab   : > { %v10382_v24 = vadd.f32 %v10381_v18, %v10380_v61  ;;  %10827 = vmatpush3.bf16.msra.mxu1 %v13840_v62  ;;  %v10383_v12 = vpop.f32.mrb[110].mxu1  ;;  %v15118_v51 = vadd.f32 %v11169_v49, %v11168_v39  ;;  %v11171_v34 = vpop.f32.mrb[26].mxu0  ;;  %v13132_v49 = vld [vmem:[%s17704_s4 + $0x118] sm:$0xff]  }
 0x3ac   : > { %10904 = vmatprep.subr.bf16.mxu1 %v13854_v17  ;;  %v10384_v47 = vpop.f32.mrb[111].mxu1  ;;  %v11172_v6 = vpop.f32.mrb[27].mxu0  ;;  %11691 = vmatpush3.bf16.msra.mxu0 %v13130_v15 }
 0x3ad   : > { %17788 = vst [vmem:[#allocation57_spill] sm:$0xff] %v15118_v51  ;;  %v15128_v0 = vadd.f32 %v10382_v24, %v14990_v38  ;;  %v10385_v61 = vadd.f32 %v10384_v47, %v10383_v12  ;;  %v15130_v39 = vadd.f32 %v11172_v6, %v11171_v34  ;;  %11692 = vmatprep.subr.bf16.mxu0 %v13131_v44  ;;  %v13083_v47 = vld [vmem:[%s17703_s3 + $0x41c] ss:$16 sps:$4 sm:$0xff]  }
 0x3ae   : > { %3197 = vmatmul.mubr.bf16.gmra.mrb[216].mxu1 %v9442_v22 }
 0x3af   : > { %17789 = vst [vmem:[#allocation58_spill] sm:$0xff] %v15128_v0  ;;  %17790 = vst [vmem:[#allocation59_spill] sm:$0xff] %v15130_v39  ;;  %v15133_v18 = vadd.f32 %v10385_v61, %v14999_v20  ;;  %3426 = vmatprep.mubr.bf16.mxu1 %v13082_v28  ;;  %v13080_v20 = vld [vmem:[%s17703_s3 + $0x3f8] ss:$16 sps:$4 sm:$0xff]   ;;  %v13133_v61 = vld [vmem:[%s17704_s4 + $0x160] sm:$0xff]  }
 0x3b0   : > { %11693 = vmatpush3.bf16.msra.mxu0 %v13132_v49  ;;  %v13138_v49 = vld [vmem:[%s17704_s4 + $0x168] sm:$0xff]  }
 0x3b1   : > { %17791 = vst [vmem:[#allocation60_spill] sm:$0xff] %v15133_v18  ;;  %v10386_v24 = vpop.f32.mrb[112].mxu1  ;;  %v11174_v12 = vpop.f32.mrb[28].mxu0  ;;  %11694 = vmatprep.subr.bf16.mxu0 %v13133_v61  ;;  %v13127_v0 = vld [vmem:[%s17703_s3 + $0x5a8] ss:$16 sps:$4 sm:$0xff]  }
 0x3b2   : > { %v10387_v22 = vpop.f32.mrb[113].mxu1  ;;  %v11175_v28 = vpop.f32.mrb[29].mxu0 }
 0x3b3   : > { %v10388_v34 = vadd.f32 %v10387_v22, %v10386_v24  ;;  %v10389_v32 = vpop.f32.mrb[114].mxu1  ;;  %v15149_v6 = vadd.f32 %v11175_v28, %v11174_v12  ;;  %v11177_v15 = vpop.f32.mrb[30].mxu0 }
 0x3b4   : > { %v10390_v44 = vpop.f32.mrb[115].mxu1  ;;  %v11178_v38 = vpop.f32.mrb[31].mxu0  ;;  %11695 = vmatpush3.bf16.msra.mxu0 %v13137_v57  ;;  %v13086_v15 = vld [vmem:[%s17703_s3 + $0x43c] ss:$16 sps:$4 sm:$0xff]  }
 0x3b5   : > { %17792 = vst [vmem:[#allocation61_spill] sm:$0xff] %v15149_v6  ;;  %v15158_v24 = vadd.f32 %v10388_v34, %v15012_v11  ;;  %v10391_v22 = vadd.f32 %v10390_v44, %v10389_v32  ;;  %v13139_v11 = vld [vmem:[%s17704_s4 + $0x128] sm:$0xff]   ;;  %11696 = vmatprep.subr.bf16.mxu0 %v13138_v49 }
 0x3b6   : > { %3427 = vmatmul.mubr.bf16.vlgmr.msra.gmra.mrb[220].mxu1 %v13080_v20  ;;  %v13085_v34 = vld [vmem:[%s17703_s3 + $0x418] ss:$16 sps:$4 sm:$0xff]  }
 0x3b7   : > { %17793 = vst [vmem:[#allocation62_spill] sm:$0xff] %v15158_v24  ;;  %v15161_v12 = vadd.f32 %v10391_v22, %v15019_v1  ;;  %10905 = vmatpush3.bf16.msra.mxu1 %v13728_v2  ;;  %3434 = vmatprep.mubr.bf16.mxu1 %v13083_v47  ;;  %v13140_v22 = vld [vmem:[%s17704_s4 + $0x170] sm:$0xff]  }
 0x3b8   : > { %10906 = vmatprep.subr.bf16.mxu1 %v13866_v35  ;;  %11697 = vmatpush3.bf16.msra.mxu0 %v13139_v11  ;;  %v13146_v11 = vld [vmem:[%s17704_s4 + $0x138] sm:$0xff]  }
 0x3b9   : > { %17794 = vst [vmem:[#allocation63_spill] sm:$0xff] %v15161_v12  ;;  %v10392_v20 = vpop.f32.mrb[116].mxu1  ;;  %v11242_v1 = vpop.f32.mrb[32].mxu0  ;;  %11698 = vmatprep.subr.bf16.mxu0 %v13140_v22  ;;  %v13089_v22 = vld [vmem:[%s17703_s3 + $0x45c] ss:$16 sps:$4 sm:$0xff]  }
 0x3ba   : > { %v10393_v28 = vpop.f32.mrb[117].mxu1  ;;  %v11243_v32 = vpop.f32.mrb[33].mxu0 }
 0x3bb   : > { %v10394_v47 = vadd.f32 %v10393_v28, %v10392_v20  ;;  %10907 = vmatpush3.bf16.msra.mxu1 %v13748_v21  ;;  %v10395_v57 = vpop.f32.mrb[118].mxu1  ;;  %v15180_v61 = vadd.f32 %v11243_v32, %v11242_v1  ;;  %v11245_v44 = vpop.f32.mrb[34].mxu0  ;;  %v13144_v20 = vld [vmem:[%s17704_s4 + $0x130] sm:$0xff]   ;;  %v13145_v1 = vld [vmem:[%s17704_s4 + $0x178] sm:$0xff]  }
 0x3bc   : > { %10908 = vmatprep.subr.bf16.mxu1 %v13879_v54  ;;  %v10396_v49 = vpop.f32.mrb[119].mxu1  ;;  %v11246_v38 = vpop.f32.mrb[35].mxu0  ;;  %11699 = vmatpush3.bf16.msra.mxu0 %v13144_v20 }
 0x3bd   : > { %17795 = vst [vmem:[#allocation64_spill] sm:$0xff] %v15180_v61  ;;  %v15190_v28 = vadd.f32 %v10394_v47, %v15032_v19  ;;  %v15192_v57 = vadd.f32 %v11246_v38, %v11245_v44  ;;  %11700 = vmatprep.subr.bf16.mxu0 %v13145_v1 }
 0x3be   : > { %3435 = vmatmul.mubr.bf16.gmra.mrb[224].mxu1 %v13085_v34  ;;  %v13088_v34 = vld [vmem:[%s17703_s3 + $0x438] ss:$16 sps:$4 sm:$0xff]  }
 0x3bf   : > { %17796 = vst [vmem:[#allocation65_spill] sm:$0xff] %v15190_v28  ;;  %17797 = vst [vmem:[#allocation66_spill] sm:$0xff] %v15192_v57  ;;  %10909 = vmatpush3.bf16.msra.mxu1 %v13768_v37  ;;  %3442 = vmatprep.mubr.bf16.mxu1 %v13086_v15  ;;  %v13099_v28 = vld [vmem:[%s17703_s3 + $0x4a8] ss:$16 sps:$4 sm:$0xff]  }
 0x3c0   : > { %10910 = vmatprep.subr.bf16.mxu1 %v13895_v7  ;;  %11701 = vmatpush3.bf16.msra.mxu0 %v13146_v11  ;;  %v13091_v11 = vld [vmem:[%s17703_s3 + $0x458] ss:$16 sps:$4 sm:$0xff]  }
 0x3c1   : > { %v10414_v19 = vpop.f32.mrb[120].mxu1  ;;  %v11248_v32 = vpop.f32.mrb[36].mxu0 }
 0x3c2   : > { %v10415_v38 = vpop.f32.mrb[121].mxu1  ;;  %v11249_v47 = vpop.f32.mrb[37].mxu0 }
 0x3c3   : > { %v15205_v15 = vadd.f32 %v10415_v38, %v10414_v19  ;;  %10911 = vmatpush3.bf16.msra.mxu1 %v13788_v58  ;;  %v10417_v44 = vpop.f32.mrb[122].mxu1  ;;  %v15211_v49 = vadd.f32 %v11249_v47, %v11248_v32  ;;  %v11251_v20 = vpop.f32.mrb[38].mxu0  ;;  %v9461_v19 = vld [vmem:[%s17703_s3 + $0x478] sm:$0xff] }
 0x3c4   : > { %10912 = vmatprep.subr.bf16.mxu1 %v13911_v26  ;;  %v10418_v1 = vpop.f32.mrb[123].mxu1  ;;  %v11252_v29 = vpop.f32.mrb[39].mxu0 }
 0x3c5   : > { %17798 = vst [vmem:[#allocation67_spill] sm:$0xff] %v15211_v49  ;;  %v15214_v57 = vadd.f32 %v10418_v1, %v10417_v44  ;;  %v15216_v61 = vadd.f32 %v11252_v29, %v11251_v20 }
 0x3c6   : > { %3443 = vmatmul.mubr.bf16.gmra.mrb[228].mxu1 %v13088_v34 }
 0x3c7   : > { %17799 = vst [vmem:[#allocation68_spill] sm:$0xff] %v15216_v61  ;;  %10913 = vmatpush3.bf16.msra.mxu1 %v13801_v13  ;;  %3450 = vmatprep.mubr.bf16.mxu1 %v13089_v22  ;;  %v9481_v22 = vcombine.high %v9461_v19, %v9461_v19 }
 0x3c8   : > { %10914 = vmatprep.subr.bf16.mxu1 %v13927_v48 }
 0x3c9   : > { %v10420_v32 = vpop.f32.mrb[124].mxu1  ;;  %v11254_v38 = vpop.f32.mrb[40].mxu0 }
 0x3ca   : > { %v10421_v47 = vpop.f32.mrb[125].mxu1  ;;  %v11255_v44 = vpop.f32.mrb[41].mxu0 }
 0x3cb   : > { %v15226_v29 = vadd.f32 %v10421_v47, %v10420_v32  ;;  %10915 = vmatpush3.bf16.msra.mxu1 %v13812_v31  ;;  %v10423_v34 = vpop.f32.mrb[126].mxu1  ;;  %v15229_v20 = vadd.f32 %v11255_v44, %v11254_v38  ;;  %v11257_v1 = vpop.f32.mrb[42].mxu0  ;;  %v9480_v38 = vcombine.low %v9461_v19, %v9461_v19 }
 0x3cc   : > { %10916 = vmatprep.subr.bf16.mxu1 %v13939_v4  ;;  %v10424_v61 = vpop.f32.mrb[127].mxu1  ;;  %v11258_v49 = vpop.f32.mrb[43].mxu0 }
 0x3cd   : > { %17800 = vst [vmem:[#allocation69_spill] sm:$0xff] %v15229_v20  ;;  %v15232_v6 = vadd.f32 %v10424_v61, %v10423_v34  ;;  %v15234_v39 = vadd.f32 %v11258_v49, %v11257_v1  ;;  %v13096_v61 = vld [vmem:[%s17703_s3 + $0x48c] ss:$16 sps:$4 sm:$0xff]  }
 0x3ce   : > { %3451 = vmatmul.mubr.bf16.gmra.mrb[232].mxu1 %v13091_v11 }
 0x3cf   : > { %17801 = vst [vmem:[#allocation70_spill] sm:$0xff] %v15234_v39  ;;  %10917 = vmatpush3.bf16.msra.mxu1 %v13826_v46  ;;  %3458 = vmatprep.mubr.bf16.mxu1 %v9481_v22 }
 0x3d0   : > { %10918 = vmatprep.subr.bf16.mxu1 %v13952_v25 }
 0x3d1   : > { %v10426_v32 = vpop.f32.mrb[128].mxu1  ;;  %v11260_v47 = vpop.f32.mrb[44].mxu0 }
 0x3d2   : > { %v10427_v51 = vpop.f32.mrb[129].mxu1  ;;  %v11261_v44 = vpop.f32.mrb[45].mxu0 }
 0x3d3   : > { %v15238_v20 = vadd.f32 %v10427_v51, %v10426_v32  ;;  %10919 = vmatpush3.bf16.msra.mxu1 %v13840_v62  ;;  %v10429_v14 = vpop.f32.mrb[130].mxu1  ;;  %v15244_v49 = vadd.f32 %v11261_v44, %v11260_v47  ;;  %v11263_v11 = vpop.f32.mrb[46].mxu0 }
 0x3d4   : > { %10996 = vmatprep.subr.bf16.mxu1 %v13854_v17  ;;  %v10430_v34 = vpop.f32.mrb[131].mxu1  ;;  %v11264_v22 = vpop.f32.mrb[47].mxu0 }
 0x3d5   : > { %17802 = vst [vmem:[#allocation71_spill] sm:$0xff] %v15244_v49  ;;  %v15247_v1 = vadd.f32 %v10430_v34, %v10429_v14  ;;  %v15249_v19 = vadd.f32 %v11264_v22, %v11263_v11  ;;  %v13097_v14 = vld [vmem:[%s17703_s3 + $0x4ac] ss:$16 sps:$4 sm:$0xff]  }
 0x3d6   : > { %3459 = vmatmul.mubr.bf16.gmra.mrb[236].mxu1 %v9480_v38 }
 0x3d7   : > { %17803 = vst [vmem:[#allocation72_spill] sm:$0xff] %v15249_v19  ;;  %3688 = vmatprep.mubr.bf16.mxu1 %v13096_v61 }
 0x3d9   : > { %v10432_v51 = vpop.f32.mrb[132].mxu1  ;;  %v11266_v32 = vpop.f32.mrb[48].mxu0 }
 0x3da   : > { %v10433_v39 = vpop.f32.mrb[133].mxu1  ;;  %v11267_v47 = vpop.f32.mrb[49].mxu0 }
 0x3db   : > { %v15254_v44 = vadd.f32 %v10433_v39, %v10432_v51  ;;  %v10435_v49 = vpop.f32.mrb[134].mxu1  ;;  %v15259_v34 = vadd.f32 %v11267_v47, %v11266_v32  ;;  %v11269_v11 = vpop.f32.mrb[50].mxu0 }
 0x3dc   : > { %v10436_v38 = vpop.f32.mrb[135].mxu1  ;;  %v11270_v61 = vpop.f32.mrb[51].mxu0 }
 0x3dd   : > { %17804 = vst [vmem:[#allocation73_spill] sm:$0xff] %v15259_v34  ;;  %v15261_v22 = vadd.f32 %v10436_v38, %v10435_v49 }
 0x3de   : > { %3689 = vmatmul.mubr.bf16.vlgmr.msra.gmra.mrb[240].mxu1 %v13094_v5  ;;  %v13100_v5 = vld [vmem:[%s17703_s3 + $0x4cc] ss:$16 sps:$4 sm:$0xff]  }
 0x3df   : > { %10997 = vmatpush3.bf16.msra.mxu1 %v13728_v2  ;;  %3696 = vmatprep.mubr.bf16.mxu1 %v13097_v14 }
 0x3e0   : > { %10998 = vmatprep.subr.bf16.mxu1 %v13866_v35 }
 0x3e1   : > { %v10438_v39 = vpop.f32.mrb[136].mxu1  ;;  %v11334_v51 = vpop.f32.mrb[52].mxu0 }
 0x3e2   : > { %v10439_v19 = vpop.f32.mrb[137].mxu1  ;;  %v11335_v32 = vpop.f32.mrb[53].mxu0 }
 0x3e3   : > { %v15268_v47 = vadd.f32 %v10439_v19, %v10438_v39  ;;  %10999 = vmatpush3.bf16.msra.mxu1 %v13748_v21  ;;  %v10441_v49 = vpop.f32.mrb[138].mxu1  ;;  %v15274_v14 = vadd.f32 %v11335_v32, %v11334_v51  ;;  %v11337_v11 = vpop.f32.mrb[54].mxu0  ;;  %v13102_v51 = vld [vmem:[%s17703_s3 + $0x4c8] ss:$16 sps:$4 sm:$0xff]  }
 0x3e4   : > { %11000 = vmatprep.subr.bf16.mxu1 %v13879_v54  ;;  %v10442_v38 = vpop.f32.mrb[139].mxu1  ;;  %v11338_v61 = vpop.f32.mrb[55].mxu0 }
 0x3e5   : > { %17805 = vst [vmem:[#allocation74_spill] sm:$0xff] %v15274_v14  ;;  %v15277_v34 = vadd.f32 %v11338_v61, %v11337_v11 }
 0x3e6   : > { %3697 = vmatmul.mubr.bf16.gmra.mrb[244].mxu1 %v13099_v28  ;;  %v13103_v28 = vld [vmem:[%s17703_s3 + $0x4ec] ss:$16 sps:$4 sm:$0xff]  }
 0x3e7   : > { %17806 = vst [vmem:[#allocation75_spill] sm:$0xff] %v15277_v34  ;;  %11001 = vmatpush3.bf16.msra.mxu1 %v13768_v37  ;;  %3704 = vmatprep.mubr.bf16.mxu1 %v13100_v5 }
 0x3e8   : > { %11002 = vmatprep.subr.bf16.mxu1 %v13895_v7 }
 0x3e9   : > { %v10460_v19 = vpop.f32.mrb[140].mxu1  ;;  %v11340_v39 = vpop.f32.mrb[56].mxu0 }
 0x3ea   : > { %v10461_v49 = vpop.f32.mrb[141].mxu1  ;;  %v11341_v32 = vpop.f32.mrb[57].mxu0 }
 0x3eb   : > { %v10462_v14 = vadd.f32 %v10461_v49, %v10460_v19  ;;  %11003 = vmatpush3.bf16.msra.mxu1 %v13788_v58  ;;  %v10463_v38 = vpop.f32.mrb[142].mxu1  ;;  %v15288_v11 = vadd.f32 %v11341_v32, %v11340_v39  ;;  %v11343_v5 = vpop.f32.mrb[58].mxu0  ;;  %v9499_v39 = vld [vmem:[%s17703_s3 + $0x508] sm:$0xff] }
 0x3ec   : > { %11004 = vmatprep.subr.bf16.mxu1 %v13911_v26  ;;  %v10464_v61 = vpop.f32.mrb[143].mxu1  ;;  %v11344_v34 = vpop.f32.mrb[59].mxu0 }
 0x3ed   : > { %17807 = vst [vmem:[#allocation76_spill] sm:$0xff] %v15288_v11  ;;  %v15292_v42 = vadd.f32 %v10462_v14, %v15205_v15  ;;  %v10465_v24 = vadd.f32 %v10464_v61, %v10463_v38  ;;  %v15294_v12 = vadd.f32 %v11344_v34, %v11343_v5  ;;  %v9519_v38 = vcombine.high %v9499_v39, %v9499_v39 }
 0x3ee   : > { %3705 = vmatmul.mubr.bf16.gmra.mrb[248].mxu1 %v13102_v51 }
 0x3ef   : > { %17808 = vst [vmem:[#allocation77_spill] sm:$0xff] %v15294_v12  ;;  %v15297_v19 = vadd.f32 %v10465_v24, %v15214_v57  ;;  %11005 = vmatpush3.bf16.msra.mxu1 %v13801_v13  ;;  %3712 = vmatprep.mubr.bf16.mxu1 %v13103_v28  ;;  %v13105_v24 = vld [vmem:[%s17703_s3 + $0x4e8] ss:$16 sps:$4 sm:$0xff]  }
 0x3f0   : > { %11006 = vmatprep.subr.bf16.mxu1 %v13927_v48 }
 0x3f1   : > { %v10466_v49 = vpop.f32.mrb[144].mxu1  ;;  %v11346_v32 = vpop.f32.mrb[60].mxu0 }
 0x3f2   : > { %v10467_v34 = vpop.f32.mrb[145].mxu1  ;;  %v11347_v57 = vpop.f32.mrb[61].mxu0 }
 0x3f3   : > { %v10468_v14 = vadd.f32 %v10467_v34, %v10466_v49  ;;  %11007 = vmatpush3.bf16.msra.mxu1 %v13812_v31  ;;  %v10469_v51 = vpop.f32.mrb[146].mxu1  ;;  %v15310_v28 = vadd.f32 %v11347_v57, %v11346_v32  ;;  %v11349_v5 = vpop.f32.mrb[62].mxu0 }
 0x3f4   : > { %11008 = vmatprep.subr.bf16.mxu1 %v13939_v4  ;;  %v10470_v61 = vpop.f32.mrb[147].mxu1  ;;  %v11350_v12 = vpop.f32.mrb[63].mxu0 }
 0x3f5   : > { %17809 = vst [vmem:[#allocation78_spill] sm:$0xff] %v15310_v28  ;;  %v15314_v15 = vadd.f32 %v10468_v14, %v15226_v29  ;;  %v10471_v11 = vadd.f32 %v10470_v61, %v10469_v51  ;;  %v15316_v23 = vadd.f32 %v11350_v12, %v11349_v5  ;;  %v9518_v29 = vcombine.low %v9499_v39, %v9499_v39 }
 0x3f6   : > { %3713 = vmatmul.mubr.bf16.gmra.mrb[252].mxu1 %v13105_v24 }
 0x3f7   : > { %17810 = vst [vmem:[#allocation79_spill] sm:$0xff] %v15316_v23  ;;  %v15319_v49 = vadd.f32 %v10471_v11, %v15232_v6  ;;  %11009 = vmatpush3.bf16.msra.mxu1 %v13826_v46  ;;  %3720 = vmatprep.mubr.bf16.mxu1 %v9519_v38  ;;  %v13110_v6 = vld [vmem:[%s17703_s3 + $0x51c] ss:$16 sps:$4 sm:$0xff]  }
 0x3f8   : > { %11010 = vmatprep.subr.bf16.mxu1 %v13952_v25 }
 0x3f9   : > { %v10472_v32 = vpop.f32.mrb[148].mxu1  ;;  %v11352_v34 = vpop.f32.mrb[64].mxu0 }
 0x3fa   : > { %v10473_v28 = vpop.f32.mrb[149].mxu1  ;;  %v11353_v14 = vpop.f32.mrb[65].mxu0 }
 0x3fb   : > { %v10474_v51 = vadd.f32 %v10473_v28, %v10472_v32  ;;  %11011 = vmatpush3.bf16.msra.mxu1 %v13840_v62  ;;  %v10475_v12 = vpop.f32.mrb[150].mxu1  ;;  %v15329_v11 = vadd.f32 %v11353_v14, %v11352_v34  ;;  %v11355_v24 = vpop.f32.mrb[66].mxu0 }
 0x3fc   : > { %11088 = vmatprep.subr.bf16.mxu1 %v13854_v17  ;;  %v10476_v38 = vpop.f32.mrb[151].mxu1  ;;  %v11356_v5 = vpop.f32.mrb[67].mxu0 }
 0x3fd   : > { %17811 = vst [vmem:[#allocation80_spill] sm:$0xff] %v15329_v11  ;;  %v15333_v61 = vadd.f32 %v10474_v51, %v15238_v20  ;;  %v10477_v39 = vadd.f32 %v10476_v38, %v10475_v12  ;;  %v15335_v57 = vadd.f32 %v11356_v5, %v11355_v24  ;;  %v13108_v11 = vld [vmem:[%s17703_s3 + $0x518] ss:$16 sps:$4 sm:$0xff]  }
 0x3fe   : > { %3721 = vmatmul.mubr.bf16.gmra.mrb[0].mxu1 %v9518_v29  ;;  %v13113_v29 = vld [vmem:[%s17703_s3 + $0x53c] ss:$16 sps:$4 sm:$0xff]  }
 0x3ff   : > { %17812 = vst [vmem:[#allocation81_spill] sm:$0xff] %v15333_v61  ;;  %17813 = vst [vmem:[#allocation82_spill] sm:$0xff] %v15335_v57  ;;  %v15338_v28 = vadd.f32 %v10477_v39, %v15247_v1  ;;  %3950 = vmatprep.mubr.bf16.mxu1 %v13110_v6 }
 0x401   : > { %17814 = vst [vmem:[#allocation83_spill] sm:$0xff] %v15338_v28  ;;  %v10478_v32 = vpop.f32.mrb[152].mxu1  ;;  %v11358_v23 = vpop.f32.mrb[68].mxu0 }
 0x402   : > { %v10479_v14 = vpop.f32.mrb[153].mxu1  ;;  %v11359_v20 = vpop.f32.mrb[69].mxu0 }
 0x403   : > { %v10480_v51 = vadd.f32 %v10479_v14, %v10478_v32  ;;  %v10481_v12 = vpop.f32.mrb[154].mxu1  ;;  %v15348_v1 = vadd.f32 %v11359_v20, %v11358_v23  ;;  %v11361_v6 = vpop.f32.mrb[70].mxu0 }
 0x404   : > { %v10482_v24 = vpop.f32.mrb[155].mxu1  ;;  %v11362_v38 = vpop.f32.mrb[71].mxu0 }
 0x405   : > { %17815 = vst [vmem:[#allocation84_spill] sm:$0xff] %v15348_v1  ;;  %v15351_v5 = vadd.f32 %v10480_v51, %v15254_v44  ;;  %v10483_v39 = vadd.f32 %v10482_v24, %v10481_v12  ;;  %v13111_v44 = vld [vmem:[%s17703_s3 + $0x538] ss:$16 sps:$4 sm:$0xff]   ;;  %v13116_v12 = vld [vmem:[%s17703_s3 + $0x55c] ss:$16 sps:$4 sm:$0xff]  }
 0x406   : > { %3951 = vmatmul.mubr.bf16.vlgmr.msra.gmra.mrb[4].mxu1 %v13108_v11 }
 0x407   : > { %17816 = vst [vmem:[#allocation85_spill] sm:$0xff] %v15351_v5  ;;  %v15354_v34 = vadd.f32 %v10483_v39, %v15261_v22  ;;  %11089 = vmatpush3.bf16.msra.mxu1 %v13728_v2  ;;  %3958 = vmatprep.mubr.bf16.mxu1 %v13113_v29 }
 0x408   : > { %11090 = vmatprep.subr.bf16.mxu1 %v13866_v35 }
 0x409   : > { %17817 = vst [vmem:[#allocation86_spill] sm:$0xff] %v15354_v34  ;;  %v10484_v32 = vpop.f32.mrb[156].mxu1  ;;  %v11426_v14 = vpop.f32.mrb[72].mxu0  ;;  %v17827_v34 = vld [vmem:[#allocation4_spill] sm:$0xff] }
 0x40a   : > { %v10485_v20 = vpop.f32.mrb[157].mxu1  ;;  %v11427_v51 = vpop.f32.mrb[73].mxu0 }
 0x40b   : > { %v10486_v11 = vadd.f32 %v10485_v20, %v10484_v32  ;;  %11091 = vmatpush3.bf16.msra.mxu1 %v13748_v21  ;;  %v10487_v22 = vpop.f32.mrb[158].mxu1  ;;  %v15367_v29 = vadd.f32 %v11427_v51, %v11426_v14  ;;  %v11429_v6 = vpop.f32.mrb[74].mxu0  ;;  %v13114_v51 = vld [vmem:[%s17703_s3 + $0x558] ss:$16 sps:$4 sm:$0xff]  }
 0x40c   : > { %11092 = vmatprep.subr.bf16.mxu1 %v13879_v54  ;;  %v10488_v24 = vpop.f32.mrb[159].mxu1  ;;  %v11430_v38 = vpop.f32.mrb[75].mxu0 }
 0x40d   : > { %17818 = vst [vmem:[#allocation87_spill] sm:$0xff] %v15367_v29  ;;  %v15370_v39 = vadd.f32 %v11430_v38, %v11429_v6  ;;  %v15373_v23 = vadd.f32 %v10486_v11, %v15268_v47  ;;  %v13119_v47 = vld [vmem:[%s17703_s3 + $0x57c] ss:$16 sps:$4 sm:$0xff]  }
 0x40e   : > { %3959 = vmatmul.mubr.bf16.gmra.mrb[8].mxu1 %v13111_v44 }
 0x40f   : > { %17819 = vst [vmem:[#allocation88_spill] sm:$0xff] %v15370_v39  ;;  %17820 = vst [vmem:[#allocation89_spill] sm:$0xff] %v15373_v23  ;;  %11093 = vmatpush3.bf16.msra.mxu1 %v13768_v37  ;;  %3966 = vmatprep.mubr.bf16.mxu1 %v13116_v12 }
 0x410   : > { %11094 = vmatprep.subr.bf16.mxu1 %v13895_v7 }
 0x411   : > { %v10552_v32 = vpop.f32.mrb[160].mxu1  ;;  %v11432_v20 = vpop.f32.mrb[76].mxu0 }
 0x412   : > { %v10553_v14 = vpop.f32.mrb[161].mxu1  ;;  %v11433_v22 = vpop.f32.mrb[77].mxu0 }
 0x413   : > { %v10554_v24 = vadd.f32 %v10553_v14, %v10552_v32  ;;  %11095 = vmatpush3.bf16.msra.mxu1 %v13788_v58  ;;  %v10555_v6 = vpop.f32.mrb[162].mxu1  ;;  %v15384_v44 = vadd.f32 %v11433_v22, %v11432_v20  ;;  %v11435_v11 = vpop.f32.mrb[78].mxu0  ;;  %v17823_v32 = vld [vmem:[#allocation2_spill] sm:$0xff]  ;;  %v9537_v20 = vld [vmem:[%s17703_s3 + $0x598] sm:$0xff] }
 0x414   : > { %11096 = vmatprep.subr.bf16.mxu1 %v13911_v26  ;;  %v10556_v12 = vpop.f32.mrb[163].mxu1  ;;  %v11436_v38 = vpop.f32.mrb[79].mxu0 }
 0x415   : > { %17821 = vst [vmem:[#allocation90_spill] sm:$0xff] %v15384_v44  ;;  %v15388_v39 = vadd.f32 %v10554_v24, %v14414_v36  ;;  %v10557_v29 = vadd.f32 %v10556_v12, %v10555_v6  ;;  %v15390_v1 = vadd.f32 %v11436_v38, %v11435_v11  ;;  %v9557_v12 = vcombine.high %v9537_v20, %v9537_v20  ;;  %v17825_v44 = vld [vmem:[#allocation3_spill] sm:$0xff] }
 0x416   : > { %3967 = vmatmul.mubr.bf16.gmra.mrb[12].mxu1 %v13114_v51 }
 0x417   : > { %17822 = vst [vmem:[#allocation91_spill] sm:$0xff] %v15390_v1  ;;  %v15393_v14 = vadd.f32 %v10557_v29, %v17823_v32  ;;  %11097 = vmatpush3.bf16.msra.mxu1 %v13801_v13  ;;  %3974 = vmatprep.mubr.bf16.mxu1 %v13119_v47  ;;  %v13117_v29 = vld [vmem:[%s17703_s3 + $0x578] ss:$16 sps:$4 sm:$0xff]  }
 0x418   : > { %11098 = vmatprep.subr.bf16.mxu1 %v13927_v48 }
 0x419   : > { %v10558_v22 = vpop.f32.mrb[164].mxu1  ;;  %v11438_v24 = vpop.f32.mrb[80].mxu0 }
 0x41a   : > { %v10559_v6 = vpop.f32.mrb[165].mxu1  ;;  %v11439_v51 = vpop.f32.mrb[81].mxu0 }
 0x41b   : > { %v10560_v11 = vadd.f32 %v10559_v6, %v10558_v22  ;;  %11099 = vmatpush3.bf16.msra.mxu1 %v13812_v31  ;;  %v10561_v47 = vpop.f32.mrb[166].mxu1  ;;  %v15406_v38 = vadd.f32 %v11439_v51, %v11438_v24  ;;  %v11441_v32 = vpop.f32.mrb[82].mxu0 }
 0x41c   : > { %11100 = vmatprep.subr.bf16.mxu1 %v13939_v4  ;;  %v10562_v1 = vpop.f32.mrb[167].mxu1  ;;  %v11442_v36 = vpop.f32.mrb[83].mxu0 }
 0x41d   : > { %17824 = vst [vmem:[#allocation2_spill] sm:$0xff] %v15406_v38  ;;  %v15410_v57 = vadd.f32 %v10560_v11, %v17825_v44  ;;  %v10563_v23 = vadd.f32 %v10562_v1, %v10561_v47  ;;  %v15412_v5 = vadd.f32 %v11442_v36, %v11441_v32  ;;  %v9556_v44 = vcombine.low %v9537_v20, %v9537_v20  ;;  %v17829_v32 = vld [vmem:[#allocation5_spill] sm:$0xff] }
 0x41e   : > { %3975 = vmatmul.mubr.bf16.gmra.mrb[16].mxu1 %v13117_v29 }
 0x41f   : > { %17826 = vst [vmem:[#allocation3_spill] sm:$0xff] %v15412_v5  ;;  %v15415_v22 = vadd.f32 %v10563_v23, %v17827_v34  ;;  %11101 = vmatpush3.bf16.msra.mxu1 %v13826_v46  ;;  %3982 = vmatprep.mubr.bf16.mxu1 %v9557_v12  ;;  %v13129_v34 = vld [vmem:[%s17703_s3 + $0x5ac] ss:$16 sps:$4 sm:$0xff]  }
 0x420   : > { %11102 = vmatprep.subr.bf16.mxu1 %v13952_v25 }
 0x421   : > { %v10564_v6 = vpop.f32.mrb[168].mxu1  ;;  %v11444_v51 = vpop.f32.mrb[84].mxu0 }
 0x422   : > { %v10565_v38 = vpop.f32.mrb[169].mxu1  ;;  %v11445_v11 = vpop.f32.mrb[85].mxu0 }
 0x423   : > { %v10566_v1 = vadd.f32 %v10565_v38, %v10564_v6  ;;  %11103 = vmatpush3.bf16.msra.mxu1 %v13840_v62  ;;  %v10567_v36 = vpop.f32.mrb[170].mxu1  ;;  %v15425_v23 = vadd.f32 %v11445_v11, %v11444_v51  ;;  %v11447_v29 = vpop.f32.mrb[86].mxu0  ;;  %v17831_v38 = vld [vmem:[#allocation6_spill] sm:$0xff] }
 0x424   : > { %11180 = vmatprep.subr.bf16.mxu1 %v13854_v17  ;;  %v10568_v47 = vpop.f32.mrb[171].mxu1  ;;  %v11448_v12 = vpop.f32.mrb[87].mxu0 }
 0x425   : > { %17828 = vst [vmem:[#allocation4_spill] sm:$0xff] %v15425_v23  ;;  %v15429_v24 = vadd.f32 %v10566_v1, %v17829_v32  ;;  %v10569_v20 = vadd.f32 %v10568_v47, %v10567_v36  ;;  %v15431_v5 = vadd.f32 %v11448_v12, %v11447_v29 }
 0x426   : > { %3983 = vmatmul.mubr.bf16.gmra.mrb[20].mxu1 %v9556_v44  ;;  %v13136_v44 = vld [vmem:[%s17703_s3 + $0x5cc] ss:$16 sps:$4 sm:$0xff]  }
 0x427   : > { %17830 = vst [vmem:[#allocation5_spill] sm:$0xff] %v15431_v5  ;;  %v15434_v6 = vadd.f32 %v10569_v20, %v17831_v38  ;;  %4212 = vmatprep.mubr.bf16.mxu1 %v13129_v34  ;;  %v17833_v20 = vld [vmem:[#allocation7_spill] sm:$0xff]  ;;  %v17834_v5 = vld [vmem:[#allocation8_spill] sm:$0xff] }
 0x429   : > { %v10570_v11 = vpop.f32.mrb[172].mxu1  ;;  %v11450_v23 = vpop.f32.mrb[88].mxu0 }
 0x42a   : > { %v10571_v40 = vpop.f32.mrb[173].mxu1  ;;  %v11451_v1 = vpop.f32.mrb[89].mxu0 }
 0x42b   : > { %v10572_v32 = vadd.f32 %v10571_v40, %v10570_v11  ;;  %v10573_v36 = vpop.f32.mrb[174].mxu1  ;;  %v15444_v29 = vadd.f32 %v11451_v1, %v11450_v23  ;;  %v11453_v34 = vpop.f32.mrb[90].mxu0 }
 0x42c   : > { %v10574_v47 = vpop.f32.mrb[175].mxu1  ;;  %v11454_v12 = vpop.f32.mrb[91].mxu0 }
 0x42d   : > { %17832 = vst [vmem:[#allocation6_spill] sm:$0xff] %v15444_v29  ;;  %v15447_v38 = vadd.f32 %v10572_v32, %v17833_v20  ;;  %v10575_v51 = vadd.f32 %v10574_v47, %v10573_v36  ;;  %v13134_v32 = vld [vmem:[%s17703_s3 + $0x5c8] ss:$16 sps:$4 sm:$0xff]  }
 0x42e   : > { %4213 = vmatmul.mubr.bf16.vlgmr.msra.gmra.mrb[24].mxu1 %v13127_v0  ;;  %v17836_v20 = vld [vmem:[#allocation9_spill] sm:$0xff] }
 0x42f   : > { %v15450_v18 = vadd.f32 %v10575_v51, %v17834_v5  ;;  %11181 = vmatpush3.bf16.msra.mxu1 %v13728_v2  ;;  %4220 = vmatprep.mubr.bf16.mxu1 %v13136_v44  ;;  %v13143_v51 = vld [vmem:[%s17703_s3 + $0x5ec] ss:$16 sps:$4 sm:$0xff]  }
 0x430   : > { %11182 = vmatprep.subr.bf16.mxu1 %v13866_v35 }
 0x431   : > { %v10576_v23 = vpop.f32.mrb[176].mxu1  ;;  %v11518_v11 = vpop.f32.mrb[92].mxu0 }
 0x432   : > { %v10577_v1 = vpop.f32.mrb[177].mxu1  ;;  %v11519_v36 = vpop.f32.mrb[93].mxu0 }
 0x433   : > { %v10578_v0 = vadd.f32 %v10577_v1, %v10576_v23  ;;  %11183 = vmatpush3.bf16.msra.mxu1 %v13748_v21  ;;  %v10579_v5 = vpop.f32.mrb[178].mxu1  ;;  %v15463_v44 = vadd.f32 %v11519_v36, %v11518_v11  ;;  %v11521_v34 = vpop.f32.mrb[94].mxu0  ;;  %v13141_v36 = vld [vmem:[%s17703_s3 + $0x5e8] ss:$16 sps:$4 sm:$0xff]  }
 0x434   : > { %11184 = vmatprep.subr.bf16.mxu1 %v13879_v54  ;;  %v10580_v47 = vpop.f32.mrb[179].mxu1  ;;  %v11522_v12 = vpop.f32.mrb[95].mxu0 }
 0x435   : > { %17835 = vst [vmem:[#allocation7_spill] sm:$0xff] %v15463_v44  ;;  %v15467_v40 = vadd.f32 %v10578_v0, %v17836_v20  ;;  %v15469_v29 = vadd.f32 %v11522_v12, %v11521_v34 }
 0x436   : > { %4221 = vmatmul.mubr.bf16.gmra.mrb[28].mxu1 %v13134_v32  ;;  %v13149_v32 = vld [vmem:[%s17703_s3 + $0x60c] ss:$16 sps:$4 sm:$0xff]  }
 0x437   : > { %17837 = vst [vmem:[#allocation8_spill] sm:$0xff] %v15469_v29  ;;  %11185 = vmatpush3.bf16.msra.mxu1 %v13768_v37  ;;  %4228 = vmatprep.mubr.bf16.mxu1 %v13143_v51  ;;  %v17839_v29 = vld [vmem:[#allocation10_spill] sm:$0xff] }
 0x438   : > { %11186 = vmatprep.subr.bf16.mxu1 %v13895_v7 }
 0x439   : > { %v10644_v23 = vpop.f32.mrb[180].mxu1  ;;  %v11524_v1 = vpop.f32.mrb[96].mxu0 }
 0x43a   : > { %v10645_v11 = vpop.f32.mrb[181].mxu1  ;;  %v11525_v5 = vpop.f32.mrb[97].mxu0 }
 0x43b   : > { %v10646_v47 = vadd.f32 %v10645_v11, %v10644_v23  ;;  %11187 = vmatpush3.bf16.msra.mxu1 %v13788_v58  ;;  %v10647_v0 = vpop.f32.mrb[182].mxu1  ;;  %v15480_v34 = vadd.f32 %v11525_v5, %v11524_v1  ;;  %v11527_v51 = vpop.f32.mrb[98].mxu0  ;;  %v17841_v23 = vld [vmem:[#allocation11_spill] sm:$0xff] }
 0x43c   : > { %11188 = vmatprep.subr.bf16.mxu1 %v13911_v26  ;;  %v10648_v12 = vpop.f32.mrb[183].mxu1  ;;  %v11528_v20 = vpop.f32.mrb[99].mxu0  ;;  %v9575_v1 = vld [vmem:[%s17703_s3 + $0x628] sm:$0xff] }
 0x43d   : > { %17838 = vst [vmem:[#allocation9_spill] sm:$0xff] %v15480_v34  ;;  %v2905_v44 = vadd.f32 %v10646_v47, %v17839_v29  ;;  %v10649_v60 = vadd.f32 %v10648_v12, %v10647_v0  ;;  %v15484_v61 = vadd.f32 %v11528_v20, %v11527_v51  ;;  %v13147_v29 = vld [vmem:[%s17703_s3 + $0x608] ss:$16 sps:$4 sm:$0xff]   ;;  %v9595_v0 = vcombine.high %v9575_v1, %v9575_v1 }
 0x43e   : > { %4229 = vmatmul.mubr.bf16.gmra.mrb[32].mxu1 %v13141_v36  ;;  %v17843_v20 = vpack.c.bf16 %v15393_v14, %v15388_v39  ;;  %v13196_v39 = vld [vmem:[%s17704_s4 + $0x248] sm:$0xff]  }
 0x43f   : > { %17840 = vst [vmem:[#allocation10_spill] sm:$0xff] %v15484_v61  ;;  %v2908_v11 = vadd.f32 %v10649_v60, %v17841_v23  ;;  %11189 = vmatpush3.bf16.msra.mxu1 %v13801_v13  ;;  %4236 = vmatprep.mubr.bf16.mxu1 %v13149_v32  ;;  %v17844_v23 = vld [vmem:[#allocation12_spill] sm:$0xff]  ;;  %v13197_v14 = vld [vmem:[%s17704_s4 + $0x208] sm:$0xff]  }
 0x440   : > { %11190 = vmatprep.subr.bf16.mxu1 %v13927_v48 }
 0x441   : > { %v10650_v5 = vpop.f32.mrb[184].mxu1  ;;  %v2942_v34 = vpack.c.bf16 %v2908_v11, %v2905_v44  ;;  %v11530_v28 = vpop.f32.mrb[100].mxu0  ;;  %v13192_v44 = vld [vmem:[%s17704_s4 + $0x240] sm:$0xff]  }
 0x442   : > { %v10651_v30 = vpop.f32.mrb[185].mxu1  ;;  %v11531_v36 = vpop.f32.mrb[101].mxu0  ;;  %11778 = vmatprep.subr.bf16.mxu0 %v13192_v44  ;;  %v9594_v44 = vcombine.low %v9575_v1, %v9575_v1 }
 0x443   : > { %v10652_v47 = vadd.f32 %v10651_v30, %v10650_v5  ;;  %11191 = vmatpush3.bf16.msra.mxu1 %v13812_v31  ;;  %v10653_v60 = vpop.f32.mrb[186].mxu1  ;;  %6774 = vmatprep.mubr.bf16.mxu0 %v2942_v34  ;;  %v15496_v32 = vadd.f32 %v11531_v36, %v11530_v28  ;;  %v11533_v51 = vpop.f32.mrb[102].mxu0  ;;  %v13195_v34 = vld [vmem:[%s17704_s4 + $0x200] sm:$0xff]   ;;  %v17846_v36 = vld [vmem:[#allocation13_spill] sm:$0xff] }
 0x444   : > { %11192 = vmatprep.subr.bf16.mxu1 %v13939_v4  ;;  %v10654_v12 = vpop.f32.mrb[187].mxu1  ;;  %6775 = vmatmul.mubr.bf16.vlgmr.msra.gmra.mrb[132].mxu0 %v17843_v20  ;;  %v11534_v30 = vpop.f32.mrb[103].mxu0 }
 0x445   : > { %17842 = vst [vmem:[#allocation11_spill] sm:$0xff] %v15496_v32  ;;  %v2913_v28 = vadd.f32 %v10652_v47, %v17844_v23  ;;  %v10655_v11 = vadd.f32 %v10654_v12, %v10653_v60  ;;  %v15509_v5 = vadd.f32 %v11534_v30, %v11533_v51  ;;  %11779 = vmatpush3.bf16.msra.mxu0 %v13195_v34  ;;  %v13154_v23 = vld [vmem:[%s17703_s3 + $0x63c] ss:$16 sps:$4 sm:$0xff]  }
 0x446   : > { %4237 = vmatmul.mubr.bf16.gmra.mrb[36].mxu1 %v13147_v29  ;;  %11780 = vmatprep.subr.bf16.mxu0 %v13196_v39  ;;  %v17849_v39 = vld [vmem:[#allocation14_spill] sm:$0xff] }
 0x447   : > { %17845 = vst [vmem:[#allocation12_spill] sm:$0xff] %v15509_v5  ;;  %v2916_v32 = vadd.f32 %v10655_v11, %v17846_v36  ;;  %11193 = vmatpush3.bf16.msra.mxu1 %v13826_v46  ;;  %4244 = vmatprep.mubr.bf16.mxu1 %v9595_v0  ;;  %v13202_v36 = vld [vmem:[%s17704_s4 + $0x210] sm:$0xff]  }
 0x448   : > { %11194 = vmatprep.subr.bf16.mxu1 %v13952_v25 }
 0x449   : > { %v10656_v47 = vpop.f32.mrb[188].mxu1  ;;  %v2943_v60 = vpack.c.bf16 %v2916_v32, %v2913_v28  ;;  %v11536_v51 = vpop.f32.mrb[104].mxu0  ;;  %11781 = vmatpush3.bf16.msra.mxu0 %v13197_v14  ;;  %v13198_v32 = vld [vmem:[%s17704_s4 + $0x250] sm:$0xff]   ;;  %v17848_v28 = vpack.c.bf16 %v15415_v22, %v15410_v57  ;;  %v13203_v57 = vld [vmem:[%s17704_s4 + $0x258] sm:$0xff]  }
 0x44a   : > { %v10657_v29 = vpop.f32.mrb[189].mxu1  ;;  %v11537_v12 = vpop.f32.mrb[105].mxu0  ;;  %11782 = vmatprep.subr.bf16.mxu0 %v13198_v32  ;;  %v13204_v22 = vld [vmem:[%s17704_s4 + $0x218] sm:$0xff]  }
 0x44b   : > { %v10658_v20 = vadd.f32 %v10657_v29, %v10656_v47  ;;  %11195 = vmatpush3.bf16.msra.mxu1 %v13840_v62  ;;  %v10659_v0 = vpop.f32.mrb[190].mxu1  ;;  %6782 = vmatprep.mubr.bf16.mxu0 %v2943_v60  ;;  %v15521_v30 = vadd.f32 %v11537_v12, %v11536_v51  ;;  %v11539_v34 = vpop.f32.mrb[106].mxu0  ;;  %v17851_v51 = vld [vmem:[#allocation15_spill] sm:$0xff] }
 0x44c   : > { %11272 = vmatprep.subr.bf16.mxu1 %v13854_v17  ;;  %v10660_v1 = vpop.f32.mrb[191].mxu1  ;;  %6783 = vmatmul.mubr.bf16.gmra.mrb[136].mxu0 %v17848_v28  ;;  %v11540_v11 = vpop.f32.mrb[107].mxu0 }
 0x44d   : > { %17847 = vst [vmem:[#allocation13_spill] sm:$0xff] %v15521_v30  ;;  %v2921_v14 = vadd.f32 %v10658_v20, %v17849_v39  ;;  %v10661_v47 = vadd.f32 %v10660_v1, %v10659_v0  ;;  %v15537_v60 = vadd.f32 %v11540_v11, %v11539_v34  ;;  %11783 = vmatpush3.bf16.msra.mxu0 %v13202_v36  ;;  %v13157_v36 = vld [vmem:[%s17703_s3 + $0x65c] ss:$16 sps:$4 sm:$0xff]   ;;  %v13205_v39 = vld [vmem:[%s17704_s4 + $0x260] sm:$0xff]  }
 0x44e   : > { %4245 = vmatmul.mubr.bf16.gmra.mrb[40].mxu1 %v9594_v44  ;;  %11784 = vmatprep.subr.bf16.mxu0 %v13203_v57  ;;  %v13152_v44 = vld [vmem:[%s17703_s3 + $0x638] ss:$16 sps:$4 sm:$0xff]   ;;  %v17854_v57 = vld [vmem:[#allocation16_spill] sm:$0xff] }
 0x44f   : > { %17850 = vst [vmem:[#allocation14_spill] sm:$0xff] %v15537_v60  ;;  %v2924_v29 = vadd.f32 %v10661_v47, %v17851_v51  ;;  %4474 = vmatprep.mubr.bf16.mxu1 %v13154_v23  ;;  %v17853_v47 = vpack.c.bf16 %v15434_v6, %v15429_v24  ;;  %v13210_v24 = vld [vmem:[%s17704_s4 + $0x268] sm:$0xff]  }
 0x450   : > { %v13211_v6 = vld [vmem:[%s17704_s4 + $0x228] sm:$0xff]  }
 0x451   : > { %v10662_v12 = vpop.f32.mrb[192].mxu1  ;;  %v2944_v28 = vpack.c.bf16 %v2924_v29, %v2921_v14  ;;  %v11542_v20 = vpop.f32.mrb[108].mxu0  ;;  %11785 = vmatpush3.bf16.msra.mxu0 %v13204_v22  ;;  %v13209_v29 = vld [vmem:[%s17704_s4 + $0x220] sm:$0xff]  }
 0x452   : > { %v10663_v0 = vpop.f32.mrb[193].mxu1  ;;  %v11543_v34 = vpop.f32.mrb[109].mxu0  ;;  %11786 = vmatprep.subr.bf16.mxu0 %v13205_v39 }
 0x453   : > { %v10664_v23 = vadd.f32 %v10663_v0, %v10662_v12  ;;  %v10665_v32 = vpop.f32.mrb[194].mxu1  ;;  %6790 = vmatprep.mubr.bf16.mxu0 %v2944_v28  ;;  %v15549_v1 = vadd.f32 %v11543_v34, %v11542_v20  ;;  %v11545_v11 = vpop.f32.mrb[110].mxu0  ;;  %v17855_v28 = vld [vmem:[#allocation17_spill] sm:$0xff] }
 0x454   : > { %v10666_v14 = vpop.f32.mrb[195].mxu1  ;;  %6791 = vmatmul.mubr.bf16.gmra.mrb[140].mxu0 %v17853_v47  ;;  %v11546_v51 = vpop.f32.mrb[111].mxu0  ;;  %v13155_v11 = vld [vmem:[%s17703_s3 + $0x658] ss:$16 sps:$4 sm:$0xff]  }
 0x455   : > { %17852 = vst [vmem:[#allocation15_spill] sm:$0xff] %v15549_v1  ;;  %v2929_v22 = vadd.f32 %v10664_v23, %v17854_v57  ;;  %v10667_v12 = vadd.f32 %v10666_v14, %v10665_v32  ;;  %11787 = vmatpush3.bf16.msra.mxu0 %v13209_v29  ;;  %v13160_v51 = vld [vmem:[%s17703_s3 + $0x67c] ss:$16 sps:$4 sm:$0xff]   ;;  %v13212_v29 = vld [vmem:[%s17704_s4 + $0x270] sm:$0xff]  }
 0x456   : > { %4475 = vmatmul.mubr.bf16.vlgmr.msra.gmra.mrb[44].mxu1 %v13152_v44  ;;  %11788 = vmatprep.subr.bf16.mxu0 %v13210_v24  ;;  %v17859_v24 = vld [vmem:[#allocation18_spill] sm:$0xff] }
 0x457   : > { %v2932_v20 = vadd.f32 %v10667_v12, %v17855_v28  ;;  %11273 = vmatpush3.bf16.msra.mxu1 %v13728_v2  ;;  %4482 = vmatprep.mubr.bf16.mxu1 %v13157_v36  ;;  %v17857_v12 = vpack.c.bf16 %v15450_v18, %v15447_v38  ;;  %v13216_v28 = vld [vmem:[%s17704_s4 + $0x230] sm:$0xff]   ;;  %v13217_v18 = vld [vmem:[%s17704_s4 + $0x278] sm:$0xff]  }
 0x458   : > { %11274 = vmatprep.subr.bf16.mxu1 %v13866_v35  ;;  %v13218_v38 = vld [vmem:[%s17704_s4 + $0x238] sm:$0xff]  }
 0x459   : > { %v10668_v0 = vpop.f32.mrb[196].mxu1  ;;  %v11610_v34 = vpop.f32.mrb[112].mxu0  ;;  %v2945_v23 = vpack.c.bf16 %v2932_v20, %v2929_v22  ;;  %11789 = vmatpush3.bf16.msra.mxu0 %v13211_v6 }
 0x45a   : > { %v10669_v44 = vpop.f32.mrb[197].mxu1  ;;  %v11611_v32 = vpop.f32.mrb[113].mxu0  ;;  %11790 = vmatprep.subr.bf16.mxu0 %v13212_v29 }
 0x45b   : > { %v10670_v36 = vadd.f32 %v10669_v44, %v10668_v0  ;;  %11275 = vmatpush3.bf16.msra.mxu1 %v13748_v21  ;;  %v15577_v39 = vadd.f32 %v11611_v32, %v11610_v34  ;;  %v10671_v14 = vpop.f32.mrb[198].mxu1  ;;  %v11613_v47 = vpop.f32.mrb[114].mxu0  ;;  %6798 = vmatprep.mubr.bf16.mxu0 %v2945_v23  ;;  %v2684_v44 = vpack.c.bf16 %v15467_v40, %v15467_v40 }
 0x45c   : > { %11276 = vmatprep.subr.bf16.mxu1 %v13879_v54  ;;  %v10672_v57 = vpop.f32.mrb[199].mxu1  ;;  %v11614_v22 = vpop.f32.mrb[115].mxu0  ;;  %6799 = vmatmul.mubr.bf16.gmra.mrb[144].mxu0 %v17857_v12  ;;  %v17861_v12 = vld [vmem:[#allocation19_spill] sm:$0xff] }
 0x45d   : > { %17856 = vst [vmem:[#allocation16_spill] sm:$0xff] %v15577_v39  ;;  %v15592_v20 = vadd.f32 %v11614_v22, %v11613_v47  ;;  %v2937_v6 = vadd.f32 %v10670_v36, %v17859_v24  ;;  %11791 = vmatpush3.bf16.msra.mxu0 %v13216_v28  ;;  %v13158_v36 = vld [vmem:[%s17703_s3 + $0x678] ss:$16 sps:$4 sm:$0xff]   ;;  %v13163_v57 = vld [vmem:[%s17703_s3 + $0x69c] ss:$16 sps:$4 sm:$0xff]  }
 0x45e   : > { %4483 = vmatmul.mubr.bf16.gmra.mrb[48].mxu1 %v13155_v11  ;;  %11792 = vmatprep.subr.bf16.mxu0 %v13217_v18  ;;  %v17862_v18 = vld [vmem:[#allocation20_spill] sm:$0xff] }
 0x45f   : > { %17858 = vst [vmem:[#allocation17_spill] sm:$0xff] %v15592_v20  ;;  %11277 = vmatpush3.bf16.msra.mxu1 %v13768_v37  ;;  %v2946_v0 = vpack.c.bf16 %v2937_v6, %v2937_v6  ;;  %4490 = vmatprep.mubr.bf16.mxu1 %v13160_v51  ;;  %v17866_v20 = vld [vmem:[#allocation22_spill] sm:$0xff] }
 0x460   : > { %11278 = vmatprep.subr.bf16.mxu1 %v13895_v7 }
 0x461   : > { %v10736_v34 = vpop.f32.mrb[200].mxu1  ;;  %v11616_v23 = vpop.f32.mrb[116].mxu0  ;;  %6806 = vmatprep.mubr.bf16.mxu0 %v2946_v0  ;;  %11793 = vmatpush3.bf16.msra.mxu0 %v13218_v38  ;;  %v15621_v0 = vld [vmem:[%s17705_s5] ss:$0 sm:$0xff] }
 0x462   : > { %v10737_v32 = vpop.f32.mrb[201].mxu1  ;;  %v11617_v11 = vpop.f32.mrb[117].mxu0 }
 0x463   : > { %v10738_v14 = vadd.f32 %v10737_v32, %v10736_v34  ;;  %11279 = vmatpush3.bf16.msra.mxu1 %v13788_v58  ;;  %v15609_v47 = vadd.f32 %v11617_v11, %v11616_v23  ;;  %v10739_v51 = vpop.f32.mrb[202].mxu1  ;;  %v11619_v29 = vpop.f32.mrb[118].mxu0  ;;  %v9613_v23 = vld [vmem:[%s17703_s3 + $0x6b8] sm:$0xff] }
 0x464   : > { %11280 = vmatprep.subr.bf16.mxu1 %v13911_v26  ;;  %v10740_v40 = vpop.f32.mrb[203].mxu1  ;;  %v11620_v22 = vpop.f32.mrb[119].mxu0  ;;  %6807 = vmatmul.mubr.bf16.gmra.mrb[148].mxu0 %v2684_v44 }
 0x465   : > { %17860 = vst [vmem:[#allocation18_spill] sm:$0xff] %v15609_v47  ;;  %v15616_v28 = vadd.f32 %v10738_v14, %v17861_v12  ;;  %v10741_v24 = vadd.f32 %v10740_v40, %v10739_v51  ;;  %v11621_v6 = vadd.f32 %v11620_v22, %v11619_v29  ;;  %v13161_v51 = vld [vmem:[%s17703_s3 + $0x698] ss:$16 sps:$4 sm:$0xff]   ;;  %v9633_v12 = vcombine.high %v9613_v23, %v9613_v23 }
 0x466   : > { %4491 = vmatmul.mubr.bf16.gmra.mrb[52].mxu1 %v13158_v36 }
 0x467   : > { %v15624_v38 = vadd.f32 %v10741_v24, %v17862_v18  ;;  %v15627_v34 = vadd.f32 %v11621_v6, %v15621_v0  ;;  %11281 = vmatpush3.bf16.msra.mxu1 %v13801_v13  ;;  %4498 = vmatprep.mubr.bf16.mxu1 %v13163_v57  ;;  %v17865_v18 = vld [vmem:[#allocation21_spill] sm:$0xff] }
 0x468   : > { %11282 = vmatprep.subr.bf16.mxu1 %v13927_v48 }
 0x469   : > { %17863 = vst [vmem:[#allocation19_spill] sm:$0xff] %v15627_v34  ;;  %v10742_v32 = vpop.f32.mrb[204].mxu1  ;;  %v11622_v11 = vpop.f32.mrb[120].mxu0 }
 0x46a   : > { %v10743_v36 = vpop.f32.mrb[205].mxu1  ;;  %v11623_v14 = vpop.f32.mrb[121].mxu0 }
 0x46b   : > { %v10744_v29 = vadd.f32 %v10743_v36, %v10742_v32  ;;  %11283 = vmatpush3.bf16.msra.mxu1 %v13812_v31  ;;  %v15640_v57 = vadd.f32 %v11623_v14, %v11622_v11  ;;  %v10745_v40 = vpop.f32.mrb[206].mxu1  ;;  %v11625_v22 = vpop.f32.mrb[122].mxu0 }
 0x46c   : > { %11284 = vmatprep.subr.bf16.mxu1 %v13939_v4  ;;  %v10746_v24 = vpop.f32.mrb[207].mxu1  ;;  %v11626_v6 = vpop.f32.mrb[123].mxu0 }
 0x46d   : > { %17864 = vst [vmem:[#allocation20_spill] sm:$0xff] %v15640_v57  ;;  %v15644_v44 = vadd.f32 %v10744_v29, %v17865_v18  ;;  %v10747_v34 = vadd.f32 %v10746_v24, %v10745_v40  ;;  %v11627_v47 = vadd.f32 %v11626_v6, %v11625_v22  ;;  %v9632_v22 = vcombine.low %v9613_v23, %v9613_v23  ;;  %v17868_v18 = vld [vmem:[#allocation23_spill] sm:$0xff] }
 0x46e   : > { %4499 = vmatmul.mubr.bf16.gmra.mrb[56].mxu1 %v13161_v51 }
 0x46f   : > { %v15647_v39 = vadd.f32 %v10747_v34, %v17866_v20  ;;  %v15650_v32 = vadd.f32 %v11627_v47, %v15621_v0  ;;  %11285 = vmatpush3.bf16.msra.mxu1 %v13826_v46  ;;  %4506 = vmatprep.mubr.bf16.mxu1 %v9633_v12  ;;  %v13168_v12 = vld [vmem:[%s17703_s3 + $0x6cc] ss:$16 sps:$4 sm:$0xff]  }
 0x470   : > { %11286 = vmatprep.subr.bf16.mxu1 %v13952_v25 }
 0x471   : > { %17867 = vst [vmem:[#allocation21_spill] sm:$0xff] %v15650_v32  ;;  %v10748_v36 = vpop.f32.mrb[208].mxu1  ;;  %v11628_v14 = vpop.f32.mrb[124].mxu0 }
 0x472   : > { %v10749_v29 = vpop.f32.mrb[209].mxu1  ;;  %v11629_v40 = vpop.f32.mrb[125].mxu0 }
 0x473   : > { %v10750_v51 = vadd.f32 %v10749_v29, %v10748_v36  ;;  %11287 = vmatpush3.bf16.msra.mxu1 %v13840_v62  ;;  %v11630_v20 = vadd.f32 %v11629_v40, %v11628_v14  ;;  %v10751_v34 = vpop.f32.mrb[210].mxu1  ;;  %v11631_v47 = vpop.f32.mrb[126].mxu0  ;;  %v17870_v14 = vld [vmem:[#allocation24_spill] sm:$0xff] }
 0x474   : > { %11364 = vmatprep.subr.bf16.mxu1 %v13854_v17  ;;  %v10752_v24 = vpop.f32.mrb[211].mxu1  ;;  %v11632_v6 = vpop.f32.mrb[127].mxu0 }
 0x475   : > { %v15662_v11 = vadd.f32 %v10750_v51, %v17868_v18  ;;  %v15665_v32 = vadd.f32 %v11630_v20, %v15621_v0  ;;  %v10753_v23 = vadd.f32 %v10752_v24, %v10751_v34  ;;  %v11633_v36 = vadd.f32 %v11632_v6, %v11631_v47  ;;  %v13166_v20 = vld [vmem:[%s17703_s3 + $0x6c8] ss:$16 sps:$4 sm:$0xff]   ;;  %v13171_v6 = vld [vmem:[%s17703_s3 + $0x6ec] ss:$16 sps:$4 sm:$0xff]  }
 0x476   : > { %4507 = vmatmul.mubr.bf16.gmra.mrb[60].mxu1 %v9632_v22 }
 0x477   : > { %17869 = vst [vmem:[#allocation22_spill] sm:$0xff] %v15665_v32  ;;  %v15668_v29 = vadd.f32 %v10753_v23, %v17870_v14  ;;  %v15671_v40 = vadd.f32 %v11633_v36, %v15621_v0  ;;  %4736 = vmatprep.mubr.bf16.mxu1 %v13168_v12  ;;  %v17872_v36 = vld [vmem:[#allocation25_spill] sm:$0xff]  ;;  %v17875_v32 = vld [vmem:[#allocation26_spill] sm:$0xff] }
 0x479   : > { %17871 = vst [vmem:[#allocation23_spill] sm:$0xff] %v15671_v40  ;;  %v10754_v1 = vpop.f32.mrb[212].mxu1  ;;  %v11634_v60 = vpop.f32.mrb[128].mxu0 }
 0x47a   : > { %v10755_v51 = vpop.f32.mrb[213].mxu1  ;;  %v11635_v18 = vpop.f32.mrb[129].mxu0 }
 0x47b   : > { %v10756_v34 = vadd.f32 %v10755_v51, %v10754_v1  ;;  %v11636_v22 = vadd.f32 %v11635_v18, %v11634_v60  ;;  %v10757_v47 = vpop.f32.mrb[214].mxu1  ;;  %v11637_v24 = vpop.f32.mrb[130].mxu0  ;;  %v17881_v60 = vld [vmem:[#allocation31_spill] sm:$0xff] }
 0x47c   : > { %v10758_v12 = vpop.f32.mrb[215].mxu1  ;;  %v11638_v23 = vpop.f32.mrb[131].mxu0 }
 0x47d   : > { %v15682_v14 = vadd.f32 %v10756_v34, %v17872_v36  ;;  %v15685_v57 = vadd.f32 %v11636_v22, %v15621_v0  ;;  %v10759_v40 = vadd.f32 %v10758_v12, %v10757_v47  ;;  %v13169_v0 = vld [vmem:[%s17703_s3 + $0x6e8] ss:$16 sps:$4 sm:$0xff]   ;;  %v13177_v36 = vld [vmem:[%s17703_s3 + $0x72c] ss:$16 sps:$4 sm:$0xff]  }
 0x47e   : > { %4737 = vmatmul.mubr.bf16.vlgmr.msra.gmra.mrb[64].mxu1 %v13166_v20  ;;  %v17876_v34 = vld [vmem:[#allocation27_spill] sm:$0xff] }
 0x47f   : > { %17873 = vst [vmem:[#allocation24_spill] sm:$0xff] %v15682_v14  ;;  %17874 = vst [vmem:[#allocation25_spill] sm:$0xff] %v15685_v57  ;;  %v15688_v30 = vadd.f32 %v10759_v40, %v17875_v32  ;;  %11365 = vmatpush3.bf16.msra.mxu1 %v13728_v2  ;;  %4744 = vmatprep.mubr.bf16.mxu1 %v13171_v6  ;;  %v13174_v32 = vld [vmem:[%s17703_s3 + $0x70c] ss:$16 sps:$4 sm:$0xff]   ;;  %v13172_v6 = vld [vmem:[%s17703_s3 + $0x708] ss:$16 sps:$4 sm:$0xff]  }
 0x480   : > { %11366 = vmatprep.subr.bf16.mxu1 %v13866_v35 }
 0x481   : > { %v10760_v1 = vpop.f32.mrb[216].mxu1 }
 0x482   : > { %v10761_v51 = vpop.f32.mrb[217].mxu1 }
 0x483   : > { %v10762_v18 = vadd.f32 %v10761_v51, %v10760_v1  ;;  %11367 = vmatpush3.bf16.msra.mxu1 %v13748_v21  ;;  %v10763_v20 = vpop.f32.mrb[218].mxu1  ;;  %v17878_v51 = vld [vmem:[#allocation28_spill] sm:$0xff] }
 0x484   : > { %11368 = vmatprep.subr.bf16.mxu1 %v13879_v54  ;;  %v10764_v40 = vpop.f32.mrb[219].mxu1  ;;  %v17879_v20 = vld [vmem:[#allocation29_spill] sm:$0xff] }
 0x485   : > { %v15703_v22 = vadd.f32 %v10762_v18, %v17876_v34  ;;  %v9651_v40 = vld [vmem:[%s17703_s3 + $0x748] sm:$0xff] }
 0x486   : > { %4745 = vmatmul.mubr.bf16.gmra.mrb[68].mxu1 %v13169_v0  ;;  %v9670_v5 = vcombine.low %v9651_v40, %v9651_v40 }
 0x487   : > { %17877 = vst [vmem:[#allocation26_spill] sm:$0xff] %v15703_v22  ;;  %11369 = vmatpush3.bf16.msra.mxu1 %v13768_v37  ;;  %4752 = vmatprep.mubr.bf16.mxu1 %v13174_v32 }
 0x488   : > { %11370 = vmatprep.subr.bf16.mxu1 %v13895_v7 }
 0x489   : > { %v10828_v47 = vpop.f32.mrb[220].mxu1 }
 0x48a   : > { %v10829_v24 = vpop.f32.mrb[221].mxu1 }
 0x48b   : > { %v10830_v12 = vadd.f32 %v10829_v24, %v10828_v47  ;;  %11371 = vmatpush3.bf16.msra.mxu1 %v13788_v58  ;;  %v10831_v23 = vpop.f32.mrb[222].mxu1 }
 0x48c   : > { %11372 = vmatprep.subr.bf16.mxu1 %v13911_v26  ;;  %v10832_v1 = vpop.f32.mrb[223].mxu1 }
 0x48d   : > { %v15716_v0 = vadd.f32 %v10830_v12, %v17878_v51  ;;  %v10833_v18 = vadd.f32 %v10832_v1, %v10831_v23  ;;  %v17880_v51 = vld [vmem:[#allocation30_spill] sm:$0xff] }
 0x48e   : > { %4753 = vmatmul.mubr.bf16.gmra.mrb[72].mxu1 %v13172_v6  ;;  %v13175_v6 = vld [vmem:[%s17703_s3 + $0x728] ss:$16 sps:$4 sm:$0xff]  }
 0x48f   : > { %v15719_v32 = vadd.f32 %v10833_v18, %v17879_v20  ;;  %11373 = vmatpush3.bf16.msra.mxu1 %v13801_v13  ;;  %4760 = vmatprep.mubr.bf16.mxu1 %v13177_v36  ;;  %v9671_v36 = vcombine.high %v9651_v40, %v9651_v40 }
 0x490   : > { %11374 = vmatprep.subr.bf16.mxu1 %v13927_v48 }
 0x491   : > { %v10834_v34 = vpop.f32.mrb[224].mxu1 }
 0x492   : > { %v10835_v24 = vpop.f32.mrb[225].mxu1 }
 0x493   : > { %v10836_v12 = vadd.f32 %v10835_v24, %v10834_v34  ;;  %11375 = vmatpush3.bf16.msra.mxu1 %v13812_v31  ;;  %v10837_v23 = vpop.f32.mrb[226].mxu1  ;;  %v13180_v24 = vld [vmem:[%s17703_s3 + $0x758] ss:$16 sps:$4 sm:$0xff]  }
 0x494   : > { %11376 = vmatprep.subr.bf16.mxu1 %v13939_v4  ;;  %v10838_v1 = vpop.f32.mrb[227].mxu1 }
 0x495   : > { %v15734_v18 = vadd.f32 %v10836_v12, %v17880_v51  ;;  %v10839_v20 = vadd.f32 %v10838_v1, %v10837_v23  ;;  %v17882_v23 = vld [vmem:[#allocation32_spill] sm:$0xff]  ;;  %v17883_v51 = vld [vmem:[#allocation33_spill] sm:$0xff] }
 0x496   : > { %4761 = vmatmul.mubr.bf16.gmra.mrb[76].mxu1 %v13175_v6 }
 0x497   : > { %v15737_v47 = vadd.f32 %v10839_v20, %v17881_v60  ;;  %11377 = vmatpush3.bf16.msra.mxu1 %v13826_v46  ;;  %4768 = vmatprep.mubr.bf16.mxu1 %v9671_v36  ;;  %v13182_v60 = vld [vmem:[%s17703_s3 + $0x75c] ss:$16 sps:$4 sm:$0xff]  }
 0x498   : > { %11378 = vmatprep.subr.bf16.mxu1 %v13952_v25 }
 0x499   : > { %v10840_v34 = vpop.f32.mrb[228].mxu1 }
 0x49a   : > { %v10841_v57 = vpop.f32.mrb[229].mxu1 }
 0x49b   : > { %v10842_v61 = vadd.f32 %v10841_v57, %v10840_v34  ;;  %11379 = vmatpush3.bf16.msra.mxu1 %v13840_v62  ;;  %v10843_v12 = vpop.f32.mrb[230].mxu1 }
 0x49c   : > { %11456 = vmatprep.subr.bf16.mxu1 %v13854_v17  ;;  %v10844_v6 = vpop.f32.mrb[231].mxu1 }
 0x49d   : > { %v15749_v36 = vadd.f32 %v10842_v61, %v17882_v23  ;;  %v10845_v1 = vadd.f32 %v10844_v6, %v10843_v12  ;;  %v13185_v61 = vld [vmem:[%s17703_s3 + $0x77c] ss:$16 sps:$4 sm:$0xff]  }
 0x49e   : > { %4769 = vmatmul.mubr.bf16.gmra.mrb[80].mxu1 %v9670_v5 }
 0x49f   : > { %v15752_v20 = vadd.f32 %v10845_v1, %v17883_v51  ;;  %4998 = vmatprep.mubr.bf16.mxu1 %v13182_v60 }
 0x4a1   : > { %v10846_v57 = vpop.f32.mrb[232].mxu1 }
 0x4a2   : > { %v10847_v34 = vpop.f32.mrb[233].mxu1 }
 0x4a3   : > { %v10848_v22 = vadd.f32 %v10847_v34, %v10846_v57  ;;  %v10849_v14 = vpop.f32.mrb[234].mxu1 }
 0x4a4   : > { %v10850_v5 = vpop.f32.mrb[235].mxu1 }
 0x4a5   : > { %v15763_v12 = vadd.f32 %v10848_v22, %v14689_v53  ;;  %v10851_v60 = vadd.f32 %v10850_v5, %v10849_v14  ;;  %v13183_v53 = vld [vmem:[%s17703_s3 + $0x778] ss:$16 sps:$4 sm:$0xff]  }
 0x4a6   : > { %4999 = vmatmul.mubr.bf16.vlgmr.msra.gmra.mrb[84].mxu1 %v13180_v24  ;;  %v13186_v5 = vld [vmem:[%s17703_s3 + $0x798] ss:$16 sps:$4 sm:$0xff]  }
 0x4a7   : > { %v15766_v6 = vadd.f32 %v10851_v60, %v14693_v10  ;;  %11457 = vmatpush3.bf16.msra.mxu1 %v13728_v2  ;;  %5006 = vmatprep.mubr.bf16.mxu1 %v13185_v61  ;;  %v13188_v10 = vld [vmem:[%s17703_s3 + $0x79c] ss:$16 sps:$4 sm:$0xff]  }
 0x4a8   : > { %11458 = vmatprep.subr.bf16.mxu1 %v13866_v35 }
 0x4a9   : > { %v10852_v23 = vpop.f32.mrb[236].mxu1 }
 0x4aa   : > { %v10853_v51 = vpop.f32.mrb[237].mxu1 }
 0x4ab   : > { %v10854_v22 = vadd.f32 %v10853_v51, %v10852_v23  ;;  %11459 = vmatpush3.bf16.msra.mxu1 %v13748_v21  ;;  %v10855_v14 = vpop.f32.mrb[238].mxu1 }
 0x4ac   : > { %11460 = vmatprep.subr.bf16.mxu1 %v13879_v54  ;;  %v10856_v24 = vpop.f32.mrb[239].mxu1 }
 0x4ad   : > { %v15781_v57 = vadd.f32 %v10854_v22, %v14695_v45  ;;  %v13191_v45 = vld [vmem:[%s17703_s3 + $0x7bc] ss:$16 sps:$4 sm:$0xff]  }
 0x4ae   : > { %5007 = vmatmul.mubr.bf16.gmra.mrb[88].mxu1 %v13183_v53 }
 0x4af   : > { %11461 = vmatpush3.bf16.msra.mxu1 %v13768_v37  ;;  %5014 = vmatprep.mubr.bf16.mxu1 %v13188_v10  ;;  %v9689_v10 = vld [vmem:[%s17703_s3 + $0x7d8] sm:$0xff] }
 0x4b0   : > { %11462 = vmatprep.subr.bf16.mxu1 %v13895_v7  ;;  %v9708_v40 = vcombine.low %v9689_v10, %v9689_v10 }
 0x4b1   : > { %v10920_v34 = vpop.f32.mrb[240].mxu1 }
 0x4b2   : > { %v10921_v61 = vpop.f32.mrb[241].mxu1 }
 0x4b3   : > { %v10922_v60 = vadd.f32 %v10921_v61, %v10920_v34  ;;  %11463 = vmatpush3.bf16.msra.mxu1 %v13788_v58  ;;  %v10923_v23 = vpop.f32.mrb[242].mxu1  ;;  %v13189_v61 = vld [vmem:[%s17703_s3 + $0x7b8] ss:$16 sps:$4 sm:$0xff]  }
 0x4b4   : > { %11464 = vmatprep.subr.bf16.mxu1 %v13911_v26  ;;  %v10924_v51 = vpop.f32.mrb[243].mxu1 }
 0x4b5   : > { %v15794_v53 = vadd.f32 %v10922_v60, %v14717_v59  ;;  %v10925_v22 = vadd.f32 %v10924_v51, %v10923_v23  ;;  %v9709_v60 = vcombine.high %v9689_v10, %v9689_v10 }
 0x4b6   : > { %5015 = vmatmul.mubr.bf16.gmra.mrb[92].mxu1 %v13186_v5 }
 0x4b7   : > { %v15797_v14 = vadd.f32 %v10925_v22, %v14719_v56  ;;  %11465 = vmatpush3.bf16.msra.mxu1 %v13801_v13  ;;  %5022 = vmatprep.mubr.bf16.mxu1 %v13191_v45 }
 0x4b8   : > { %11466 = vmatprep.subr.bf16.mxu1 %v13927_v48 }
 0x4b9   : > { %v10926_v34 = vpop.f32.mrb[244].mxu1 }
 0x4ba   : > { %v10927_v59 = vpop.f32.mrb[245].mxu1 }
 0x4bb   : > { %v10928_v56 = vadd.f32 %v10927_v59, %v10926_v34  ;;  %11467 = vmatpush3.bf16.msra.mxu1 %v13812_v31  ;;  %v10929_v5 = vpop.f32.mrb[246].mxu1 }
 0x4bc   : > { %11468 = vmatprep.subr.bf16.mxu1 %v13939_v4  ;;  %v10930_v23 = vpop.f32.mrb[247].mxu1 }
 0x4bd   : > { %v15812_v45 = vadd.f32 %v10928_v56, %v14723_v43  ;;  %v10931_v51 = vadd.f32 %v10930_v23, %v10929_v5 }
 0x4be   : > { %5023 = vmatmul.mubr.bf16.gmra.mrb[96].mxu1 %v13189_v61 }
 0x4bf   : > { %v15815_v22 = vadd.f32 %v10931_v51, %v14731_v55  ;;  %11469 = vmatpush3.bf16.msra.mxu1 %v13826_v46  ;;  %5030 = vmatprep.mubr.bf16.mxu1 %v9709_v60  ;;  %v13201_v55 = vld [vmem:[%s17703_s3 + $0x7ec] ss:$16 sps:$4 sm:$0xff]   ;;  %v17884_v60 = vld [vmem:[#allocation34_spill] sm:$0xff] }
 0x4c0   : > { %11470 = vmatprep.subr.bf16.mxu1 %v13952_v25 }
 0x4c1   : > { %v10932_v59 = vpop.f32.mrb[248].mxu1 }
 0x4c2   : > { %v10933_v1 = vpop.f32.mrb[249].mxu1 }
 0x4c3   : > { %v10934_v24 = vadd.f32 %v10933_v1, %v10932_v59  ;;  %11471 = vmatpush3.bf16.msra.mxu1 %v13840_v62  ;;  %v10935_v43 = vpop.f32.mrb[250].mxu1  ;;  %v13199_v59 = vld [vmem:[%s17703_s3 + $0x7e8] ss:$16 sps:$4 sm:$0xff]  }
 0x4c4   : > { %11548 = vmatprep.subr.bf16.mxu1 %v13854_v17  ;;  %v10936_v61 = vpop.f32.mrb[251].mxu1 }
 0x4c5   : > { %v15827_v56 = vadd.f32 %v10934_v24, %v14739_v3  ;;  %v10937_v5 = vadd.f32 %v10936_v61, %v10935_v43  ;;  %v13208_v3 = vld [vmem:[%s17703_s3 + $0x80c] ss:$16 sps:$4 sm:$0xff]   ;;  %v17886_v61 = vld [vmem:[#allocation36_spill] sm:$0xff] }
 0x4c6   : > { %5031 = vmatmul.mubr.bf16.gmra.mrb[100].mxu1 %v9708_v40  ;;  %v17885_v24 = vld [vmem:[#allocation35_spill] sm:$0xff] }
 0x4c7   : > { %v15830_v23 = vadd.f32 %v10937_v5, %v17884_v60  ;;  %5260 = vmatprep.mubr.bf16.mxu1 %v13201_v55 }
 0x4c9   : > { %v3730_v1 = vpack.c.bf16 %v15830_v23, %v15827_v56  ;;  %v10938_v10 = vpop.f32.mrb[252].mxu1  ;;  %v13233_v56 = vld [vmem:[%s17704_s4 + $0x88] sm:$0xff]  }
 0x4ca   : > { %v10939_v51 = vpop.f32.mrb[253].mxu1  ;;  %v13296_v23 = vld [vmem:[%s17704_s4 + $0x368] sm:$0xff]  }
 0x4cb   : > { %v10940_v17 = vadd.f32 %v10939_v51, %v10938_v10  ;;  %v10941_v34 = vpop.f32.mrb[254].mxu1 }
 0x4cc   : > { %v10942_v40 = vpop.f32.mrb[255].mxu1 }
 0x4cd   : > { %v15841_v43 = vadd.f32 %v10940_v17, %v17885_v24  ;;  %v10943_v55 = vadd.f32 %v10942_v40, %v10941_v34  ;;  %v13206_v17 = vld [vmem:[%s17703_s3 + $0x808] ss:$16 sps:$4 sm:$0xff]  }
 0x4ce   : > { %5261 = vmatmul.mubr.bf16.vlgmr.msra.gmra.mrb[104].mxu1 %v13199_v59 }
 0x4cf   : > { %v15844_v5 = vadd.f32 %v10943_v55, %v17886_v61  ;;  %11549 = vmatpush3.bf16.msra.mxu1 %v13728_v2  ;;  %5268 = vmatprep.mubr.bf16.mxu1 %v13208_v3  ;;  %v13215_v2 = vld [vmem:[%s17703_s3 + $0x82c] ss:$16 sps:$4 sm:$0xff]  }
 0x4d0   : > { %11550 = vmatprep.subr.bf16.mxu1 %v13866_v35 }
 0x4d1   : > { %v3731_v60 = vpack.c.bf16 %v15844_v5, %v15841_v43  ;;  %v10944_v10 = vpop.f32.mrb[0].mxu1  ;;  %v13240_v43 = vld [vmem:[%s17704_s4 + $0x98] sm:$0xff]  }
 0x4d2   : > { %v10945_v51 = vpop.f32.mrb[1].mxu1  ;;  %v13300_v5 = vld [vmem:[%s17704_s4 + $0x378] sm:$0xff]  }
 0x4d3   : > { %v10946_v24 = vadd.f32 %v10945_v51, %v10944_v10  ;;  %11551 = vmatpush3.bf16.msra.mxu1 %v13748_v21  ;;  %v10947_v34 = vpop.f32.mrb[2].mxu1  ;;  %v13213_v21 = vld [vmem:[%s17703_s3 + $0x828] ss:$16 sps:$4 sm:$0xff]  }
 0x4d4   : > { %11552 = vmatprep.subr.bf16.mxu1 %v13879_v54  ;;  %v10948_v35 = vpop.f32.mrb[3].mxu1  ;;  %v17887_v10 = vld [vmem:[#allocation37_spill] sm:$0xff] }
 0x4d5   : > { %v15859_v59 = vadd.f32 %v10946_v24, %v14770_v16  ;;  %v13221_v16 = vld [vmem:[%s17703_s3 + $0x84c] ss:$16 sps:$4 sm:$0xff]  }
 0x4d6   : > { %5269 = vmatmul.mubr.bf16.gmra.mrb[108].mxu1 %v13206_v17 }
 0x4d7   : > { %11553 = vmatpush3.bf16.msra.mxu1 %v13768_v37  ;;  %5276 = vmatprep.mubr.bf16.mxu1 %v13215_v2 }
 0x4d8   : > { %11554 = vmatprep.subr.bf16.mxu1 %v13895_v7 }
 0x4d9   : > { %v11012_v3 = vpop.f32.mrb[4].mxu1 }
 0x4da   : > { %v11013_v40 = vpop.f32.mrb[5].mxu1 }
 0x4db   : > { %v11014_v55 = vadd.f32 %v11013_v40, %v11012_v3  ;;  %11555 = vmatpush3.bf16.msra.mxu1 %v13788_v58  ;;  %v11015_v54 = vpop.f32.mrb[6].mxu1  ;;  %v9727_v58 = vld [vmem:[%s17703_s3 + $0x868] sm:$0xff]  ;;  %v17888_v3 = vpack.c.bf16 %v15797_v14, %v15794_v53  ;;  %v13283_v40 = vld [vmem:[%s17704_s4 + $0x300] sm:$0xff]  }
 0x4dc   : > { %11556 = vmatprep.subr.bf16.mxu1 %v13911_v26  ;;  %v11016_v37 = vpop.f32.mrb[7].mxu1  ;;  %v13219_v26 = vld [vmem:[%s17703_s3 + $0x848] ss:$16 sps:$4 sm:$0xff]   ;;  %v13230_v53 = vld [vmem:[%s17704_s4 + $0xc0] sm:$0xff]  }
 0x4dd   : > { %v3953_v61 = vadd.f32 %v11014_v55, %v14793_v8  ;;  %v11017_v7 = vadd.f32 %v11016_v37, %v11015_v54  ;;  %v17890_v54 = vld [vmem:[#allocation39_spill] sm:$0xff] }
 0x4de   : > { %5277 = vmatmul.mubr.bf16.gmra.mrb[112].mxu1 %v13213_v21  ;;  %v17889_v21 = vld [vmem:[#allocation38_spill] sm:$0xff]  ;;  %v13287_v14 = vld [vmem:[%s17704_s4 + $0x308] sm:$0xff]  }
 0x4df   : > { %v3956_v51 = vadd.f32 %v11017_v7, %v17887_v10  ;;  %11557 = vmatpush3.bf16.msra.mxu1 %v13801_v13  ;;  %5284 = vmatprep.mubr.bf16.mxu1 %v13221_v16  ;;  %v9747_v13 = vcombine.high %v9727_v58, %v9727_v58 }
 0x4e0   : > { %11558 = vmatprep.subr.bf16.mxu1 %v13927_v48  ;;  %v13282_v48 = vld [vmem:[%s17704_s4 + $0x340] sm:$0xff]  }
 0x4e1   : > { %v11018_v17 = vpop.f32.mrb[8].mxu1  ;;  %v3990_v24 = vpack.c.bf16 %v3956_v51, %v3953_v61  ;;  %11870 = vmatprep.subr.bf16.mxu0 %v13282_v48  ;;  %v13292_v48 = vld [vmem:[%s17704_s4 + $0x358] sm:$0xff]  }
 0x4e2   : > { %v11019_v34 = vpop.f32.mrb[9].mxu1 }
 0x4e3   : > { %v11020_v8 = vadd.f32 %v11019_v34, %v11018_v17  ;;  %11559 = vmatpush3.bf16.msra.mxu1 %v13812_v31  ;;  %v11021_v2 = vpop.f32.mrb[10].mxu1  ;;  %6918 = vmatprep.mubr.bf16.mxu0 %v3990_v24  ;;  %v13290_v17 = vld [vmem:[%s17704_s4 + $0x350] sm:$0xff]   ;;  %v17891_v34 = vpack.c.bf16 %v15815_v22, %v15812_v45  ;;  %v13293_v45 = vld [vmem:[%s17704_s4 + $0x318] sm:$0xff]  }
 0x4e4   : > { %11560 = vmatprep.subr.bf16.mxu1 %v13939_v4  ;;  %v11022_v35 = vpop.f32.mrb[11].mxu1  ;;  %6919 = vmatmul.mubr.bf16.vlgmr.msra.gmra.mrb[152].mxu0 %v17888_v3  ;;  %v13286_v4 = vld [vmem:[%s17704_s4 + $0x348] sm:$0xff]  }
 0x4e5   : > { %v3961_v31 = vadd.f32 %v11020_v8, %v17889_v21  ;;  %v11023_v55 = vadd.f32 %v11022_v35, %v11021_v2  ;;  %11871 = vmatpush3.bf16.msra.mxu0 %v13283_v40  ;;  %v17893_v2 = vld [vmem:[#allocation41_spill] sm:$0xff] }
 0x4e6   : > { %5285 = vmatmul.mubr.bf16.gmra.mrb[116].mxu1 %v13219_v26  ;;  %11872 = vmatprep.subr.bf16.mxu0 %v13286_v4  ;;  %v13224_v40 = vld [vmem:[%s17703_s3 + $0x878] ss:$16 sps:$4 sm:$0xff]  }
 0x4e7   : > { %v3964_v16 = vadd.f32 %v11023_v55, %v17890_v54  ;;  %11561 = vmatpush3.bf16.msra.mxu1 %v13826_v46  ;;  %5292 = vmatprep.mubr.bf16.mxu1 %v9747_v13  ;;  %v9746_v46 = vcombine.low %v9727_v58, %v9727_v58  ;;  %v17892_v58 = vld [vmem:[#allocation40_spill] sm:$0xff]  ;;  %v13229_v55 = vld [vmem:[%s17703_s3 + $0x89c] ss:$16 sps:$4 sm:$0xff]   ;;  %v13231_v54 = vld [vmem:[%s17704_s4 + $0x80] sm:$0xff]  }
 0x4e8   : > { %11562 = vmatprep.subr.bf16.mxu1 %v13952_v25  ;;  %v13226_v25 = vld [vmem:[%s17703_s3 + $0x87c] ss:$16 sps:$4 sm:$0xff]  }
 0x4e9   : > { %v11024_v37 = vpop.f32.mrb[12].mxu1  ;;  %v3991_v61 = vpack.c.bf16 %v3964_v16, %v3961_v31  ;;  %11873 = vmatpush3.bf16.msra.mxu0 %v13287_v14  ;;  %v13294_v16 = vld [vmem:[%s17704_s4 + $0x360] sm:$0xff]  }
 0x4ea   : > { %v11025_v7 = vpop.f32.mrb[13].mxu1  ;;  %11874 = vmatprep.subr.bf16.mxu0 %v13290_v17  ;;  %v13295_v14 = vld [vmem:[%s17704_s4 + $0x320] sm:$0xff]  }
 0x4eb   : > { %v11026_v10 = vadd.f32 %v11025_v7, %v11024_v37  ;;  %11563 = vmatpush3.bf16.msra.mxu1 %v13840_v62  ;;  %v11027_v51 = vpop.f32.mrb[14].mxu1  ;;  %6926 = vmatprep.mubr.bf16.mxu0 %v3991_v61  ;;  %v13291_v62 = vld [vmem:[%s17704_s4 + $0x310] sm:$0xff]   ;;  %v17894_v37 = vld [vmem:[#allocation42_spill] sm:$0xff] }
 0x4ec   : > { %v11028_v24 = vpop.f32.mrb[15].mxu1  ;;  %6927 = vmatmul.mubr.bf16.gmra.mrb[156].mxu0 %v17891_v34  ;;  %11640 = vmatprep.subr.bf16.mxu1 %v13230_v53  ;;  %v13232_v53 = vld [vmem:[%s17704_s4 + $0xc8] sm:$0xff]  }
 0x4ed   : > { %v3969_v26 = vadd.f32 %v11026_v10, %v17892_v58  ;;  %v11029_v8 = vadd.f32 %v11028_v24, %v11027_v51  ;;  %11875 = vmatpush3.bf16.msra.mxu0 %v13291_v62  ;;  %v13297_v51 = vld [vmem:[%s17704_s4 + $0x328] sm:$0xff]  }
 0x4ee   : > { %5293 = vmatmul.mubr.bf16.gmra.mrb[120].mxu1 %v9746_v46  ;;  %11876 = vmatprep.subr.bf16.mxu0 %v13292_v48  ;;  %v17895_v46 = vld [vmem:[#allocation43_spill] sm:$0xff]  ;;  %v13239_v48 = vld [vmem:[%s17704_s4 + $0xd8] sm:$0xff]  }
 0x4ef   : > { %v3972_v13 = vadd.f32 %v11029_v8, %v17893_v2  ;;  %5522 = vmatprep.mubr.bf16.mxu1 %v13226_v25  ;;  %v13227_v34 = vld [vmem:[%s17703_s3 + $0x898] ss:$16 sps:$4 sm:$0xff]   ;;  %v13238_v8 = vld [vmem:[%s17704_s4 + $0x90] sm:$0xff]  }
 0x4f0   : > { %v13298_v2 = vld [vmem:[%s17704_s4 + $0x370] sm:$0xff]  }
 0x4f1   : > { %v11030_v22 = vpop.f32.mrb[16].mxu1  ;;  %v3992_v35 = vpack.c.bf16 %v3972_v13, %v3969_v26  ;;  %11877 = vmatpush3.bf16.msra.mxu0 %v13293_v45  ;;  %v13236_v26 = vld [vmem:[%s17703_s3 + $0x8bc] ss:$16 sps:$4 sm:$0xff]   ;;  %v13299_v45 = vld [vmem:[%s17704_s4 + $0x330] sm:$0xff]  }
 0x4f2   : > { %v11031_v3 = vpop.f32.mrb[17].mxu1  ;;  %11878 = vmatprep.subr.bf16.mxu0 %v13294_v16 }
 0x4f3   : > { %v11032_v21 = vadd.f32 %v11031_v3, %v11030_v22  ;;  %v11033_v31 = vpop.f32.mrb[18].mxu1  ;;  %6934 = vmatprep.mubr.bf16.mxu0 %v3992_v35  ;;  %v17896_v22 = vld [vmem:[#allocation44_spill] sm:$0xff] }
 0x4f4   : > { %v11034_v4 = vpop.f32.mrb[19].mxu1  ;;  %6935 = vmatmul.mubr.bf16.gmra.mrb[160].mxu0 %v3730_v1  ;;  %v13237_v1 = vld [vmem:[%s17704_s4 + $0xd0] sm:$0xff]  }
 0x4f5   : > { %v3977_v61 = vadd.f32 %v11032_v21, %v17894_v37  ;;  %v11035_v7 = vadd.f32 %v11034_v4, %v11033_v31  ;;  %11879 = vmatpush3.bf16.msra.mxu0 %v13295_v14  ;;  %v3732_v31 = vpack.c.bf16 %v15859_v59, %v15859_v59  ;;  %v13245_v14 = vld [vmem:[%s17704_s4 + $0xa0] sm:$0xff]   ;;  %v13246_v59 = vld [vmem:[%s17704_s4 + $0xe8] sm:$0xff]  }
 0x4f6   : > { %5523 = vmatmul.mubr.bf16.vlgmr.msra.gmra.mrb[124].mxu1 %v13224_v40  ;;  %11880 = vmatprep.subr.bf16.mxu0 %v13296_v23  ;;  %v13301_v40 = vld [vmem:[%s17704_s4 + $0x338] sm:$0xff]   ;;  %v13247_v23 = vld [vmem:[%s17704_s4 + $0xa8] sm:$0xff]  }
 0x4f7   : > { %v3980_v10 = vadd.f32 %v11035_v7, %v17895_v46  ;;  %5530 = vmatprep.mubr.bf16.mxu1 %v13229_v55  ;;  %11641 = vmatpush3.bf16.msra.mxu1 %v13231_v54  ;;  %v13234_v54 = vld [vmem:[%s17703_s3 + $0x8b8] ss:$16 sps:$4 sm:$0xff]  }
 0x4f8   : > { %11642 = vmatprep.subr.bf16.mxu1 %v13232_v53  ;;  %v13243_v53 = vld [vmem:[%s17703_s3 + $0x8dc] ss:$16 sps:$4 sm:$0xff]  }
 0x4f9   : > { %v11036_v25 = vpop.f32.mrb[20].mxu1  ;;  %v3993_v17 = vpack.c.bf16 %v3980_v10, %v3977_v61  ;;  %11881 = vmatpush3.bf16.msra.mxu0 %v13297_v51  ;;  %v17897_v61 = vld [vmem:[#allocation45_spill] sm:$0xff]  ;;  %v17898_v10 = vld [vmem:[#allocation46_spill] sm:$0xff]  ;;  %v13250_v51 = vld [vmem:[%s17704_s4 + $0xf0] sm:$0xff]  }
 0x4fa   : > { %v11037_v24 = vpop.f32.mrb[21].mxu1  ;;  %11882 = vmatprep.subr.bf16.mxu0 %v13298_v2 }
 0x4fb   : > { %v11038_v62 = vadd.f32 %v11037_v24, %v11036_v25  ;;  %v11039_v58 = vpop.f32.mrb[22].mxu1  ;;  %6942 = vmatprep.mubr.bf16.mxu0 %v3993_v17  ;;  %11643 = vmatpush3.bf16.msra.mxu1 %v13233_v56 }
 0x4fc   : > { %v11040_v13 = vpop.f32.mrb[23].mxu1  ;;  %6943 = vmatmul.mubr.bf16.gmra.mrb[164].mxu0 %v3731_v60  ;;  %11644 = vmatprep.subr.bf16.mxu1 %v13237_v1  ;;  %v13244_v60 = vld [vmem:[%s17704_s4 + $0xe0] sm:$0xff]   ;;  %v9765_v1 = vld [vmem:[%s17703_s3 + $0x8f8] sm:$0xff] }
 0x4fd   : > { %v3985_v35 = vadd.f32 %v11038_v62, %v17896_v22  ;;  %11883 = vmatpush3.bf16.msra.mxu0 %v13299_v45  ;;  %v13252_v13 = vld [vmem:[%s17704_s4 + $0xf8] sm:$0xff]  }
 0x4fe   : > { %5531 = vmatmul.mubr.bf16.gmra.mrb[128].mxu1 %v13227_v34  ;;  %11884 = vmatprep.subr.bf16.mxu0 %v13300_v5  ;;  %v13241_v34 = vld [vmem:[%s17703_s3 + $0x8d8] ss:$16 sps:$4 sm:$0xff]   ;;  %v13254_v5 = vld [vmem:[%s17704_s4 + $0x1c0] sm:$0xff]  }
 0x4ff   : > { %v3994_v3 = vpack.c.bf16 %v3985_v35, %v3985_v35  ;;  %5538 = vmatprep.mubr.bf16.mxu1 %v13236_v26  ;;  %11645 = vmatpush3.bf16.msra.mxu1 %v13238_v8  ;;  %v9785_v26 = vcombine.high %v9765_v1, %v9765_v1  ;;  %v13251_v8 = vld [vmem:[%s17704_s4 + $0xb0] sm:$0xff]  }
 0x500   : > { %11646 = vmatprep.subr.bf16.mxu1 %v13239_v48  ;;  %v17899_v48 = vld [vmem:[#allocation47_spill] sm:$0xff]  ;;  %v17900_v35 = vld [vmem:[#allocation48_spill] sm:$0xff] }
 0x501   : > { %v11104_v21 = vpop.f32.mrb[24].mxu1  ;;  %6950 = vmatprep.mubr.bf16.mxu0 %v3994_v3  ;;  %11885 = vmatpush3.bf16.msra.mxu0 %v13301_v40 }
 0x502   : > { %v11105_v55 = vpop.f32.mrb[25].mxu1 }
 0x503   : > { %v11106_v16 = vadd.f32 %v11105_v55, %v11104_v21  ;;  %v11107_v4 = vpop.f32.mrb[26].mxu1  ;;  %11647 = vmatpush3.bf16.msra.mxu1 %v13240_v43  ;;  %v13253_v43 = vld [vmem:[%s17704_s4 + $0xb8] sm:$0xff]  }
 0x504   : > { %v11108_v37 = vpop.f32.mrb[27].mxu1  ;;  %6951 = vmatmul.mubr.bf16.gmra.mrb[168].mxu0 %v3732_v31  ;;  %11648 = vmatprep.subr.bf16.mxu1 %v13244_v60  ;;  %v9784_v31 = vcombine.low %v9765_v1, %v9765_v1 }
 0x505   : > { %v16010_v7 = vadd.f32 %v11106_v16, %v17897_v61  ;;  %v11109_v46 = vadd.f32 %v11108_v37, %v11107_v4  ;;  %v17901_v4 = vld [vmem:[#allocation49_spill] sm:$0xff] }
 0x506   : > { %5539 = vmatmul.mubr.bf16.gmra.mrb[132].mxu1 %v13234_v54 }
 0x507   : > { %v16013_v56 = vadd.f32 %v11109_v46, %v17898_v10  ;;  %5546 = vmatprep.mubr.bf16.mxu1 %v13243_v53  ;;  %11649 = vmatpush3.bf16.msra.mxu1 %v13245_v14 }
 0x508   : > { %11650 = vmatprep.subr.bf16.mxu1 %v13246_v59  ;;  %v17902_v59 = vpack.c.bf16 %v15297_v19, %v15292_v42  ;;  %v13255_v42 = vld [vmem:[%s17704_s4 + $0x180] sm:$0xff]  }
 0x509   : > { %v4252_v25 = vpack.c.bf16 %v16013_v56, %v16010_v7  ;;  %v11110_v17 = vpop.f32.mrb[28].mxu1 }
 0x50a   : > { %v11111_v24 = vpop.f32.mrb[29].mxu1 }
 0x50b   : > { %v11112_v62 = vadd.f32 %v11111_v24, %v11110_v17  ;;  %v11113_v58 = vpop.f32.mrb[30].mxu1  ;;  %11651 = vmatpush3.bf16.msra.mxu1 %v13247_v23 }
 0x50c   : > { %v11114_v2 = vpop.f32.mrb[31].mxu1  ;;  %11652 = vmatprep.subr.bf16.mxu1 %v13250_v51 }
 0x50d   : > { %v16036_v45 = vadd.f32 %v11112_v62, %v17899_v48  ;;  %v11115_v22 = vadd.f32 %v11114_v2, %v11113_v58  ;;  %v13256_v58 = vld [vmem:[%s17704_s4 + $0x1c8] sm:$0xff]   ;;  %v17903_v2 = vpack.c.bf16 %v15072_v63, %v15062_v50  ;;  %v17904_v48 = vpack.c.bf16 %v15319_v49, %v15314_v15  ;;  %v13258_v50 = vld [vmem:[%s17704_s4 + $0x1d0] sm:$0xff]  }
 0x50e   : > { %5547 = vmatmul.mubr.bf16.gmra.mrb[136].mxu1 %v13241_v34 }
 0x50f   : > { %v16039_v3 = vadd.f32 %v11115_v22, %v17900_v35  ;;  %5554 = vmatprep.mubr.bf16.mxu1 %v9785_v26  ;;  %11653 = vmatpush3.bf16.msra.mxu1 %v13251_v8  ;;  %v13257_v35 = vld [vmem:[%s17704_s4 + $0x188] sm:$0xff]  }
 0x510   : > { %11654 = vmatprep.subr.bf16.mxu1 %v13252_v13 }
 0x511   : > { %v4253_v60 = vpack.c.bf16 %v16039_v3, %v16036_v45  ;;  %v11116_v40 = vpop.f32.mrb[32].mxu1  ;;  %v13311_v45 = vld [vmem:[%s17704_s4 + $0x3a0] sm:$0xff]  }
 0x512   : > { %v11117_v21 = vpop.f32.mrb[33].mxu1 }
 0x513   : > { %v11118_v55 = vadd.f32 %v11117_v21, %v11116_v40  ;;  %v11119_v54 = vpop.f32.mrb[34].mxu1  ;;  %11655 = vmatpush3.bf16.msra.mxu1 %v13253_v43 }
 0x514   : > { %v11120_v16 = vpop.f32.mrb[35].mxu1  ;;  %11732 = vmatprep.subr.bf16.mxu1 %v13254_v5 }
 0x515   : > { %v16050_v53 = vadd.f32 %v11118_v55, %v17901_v4  ;;  %v11121_v14 = vadd.f32 %v11120_v16, %v11119_v54  ;;  %v13259_v55 = vld [vmem:[%s17704_s4 + $0x190] sm:$0xff]   ;;  %v13260_v16 = vld [vmem:[%s17704_s4 + $0x1d8] sm:$0xff]  }
 0x516   : > { %5555 = vmatmul.mubr.bf16.gmra.mrb[140].mxu1 %v9784_v31 }
 0x517   : > { %v16053_v37 = vadd.f32 %v11121_v14, %v14983_v41  ;;  %6702 = vmatprep.mubr.bf16.mxu1 %v17902_v59  ;;  %v11702_v61 = vpop.f32.mrb[132].mxu0  ;;  %v17905_v14 = vld [vmem:[#allocation55_spill] sm:$0xff] }
 0x518   : > { %v11703_v46 = vpop.f32.mrb[133].mxu0  ;;  %v17906_v59 = vpack.c.bf16 %v15102_v33, %v17905_v14 }
 0x519   : > { %v4254_v10 = vpack.c.bf16 %v16053_v37, %v16050_v53  ;;  %v16060_v23 = vadd.f32 %v11703_v46, %v11702_v61  ;;  %v11122_v1 = vpop.f32.mrb[36].mxu1  ;;  %v11705_v51 = vpop.f32.mrb[134].mxu0  ;;  %v17907_v61 = vld [vmem:[#allocation83_spill] sm:$0xff]  ;;  %v17908_v46 = vld [vmem:[#allocation81_spill] sm:$0xff] }
 0x51a   : > { %v11123_v17 = vpop.f32.mrb[37].mxu1  ;;  %v11706_v24 = vpop.f32.mrb[135].mxu0 }
 0x51b   : > { %v11124_v34 = vadd.f32 %v11123_v17, %v11122_v1  ;;  %v16062_v62 = vadd.f32 %v11706_v24, %v11705_v51  ;;  %v11125_v41 = vpop.f32.mrb[38].mxu1  ;;  %v17909_v1 = vpack.c.bf16 %v17907_v61, %v17908_v46  ;;  %v13261_v17 = vld [vmem:[%s17704_s4 + $0x198] sm:$0xff]   ;;  %v13266_v46 = vld [vmem:[%s17704_s4 + $0x1f0] sm:$0xff]  }
 0x51c   : > { %v11126_v19 = vpop.f32.mrb[39].mxu1 }
 0x51d   : > { %v16071_v26 = vadd.f32 %v11124_v34, %v14996_v52  ;;  %v11127_v8 = vadd.f32 %v11126_v19, %v11125_v41 }
 0x51e   : > { %6703 = vmatmul.mubr.bf16.vlgmr.msra.gmra.mrb[144].mxu1 %v17903_v2 }
 0x51f   : > { %v16077_v13 = vadd.f32 %v11127_v8, %v15001_v9  ;;  %6710 = vmatprep.mubr.bf16.mxu1 %v17904_v48  ;;  %v11708_v22 = vpop.f32.mrb[136].mxu0  ;;  %11733 = vmatpush3.bf16.msra.mxu1 %v13255_v42  ;;  %v13263_v48 = vld [vmem:[%s17704_s4 + $0x1a0] sm:$0xff]  }
 0x520   : > { %v11709_v52 = vpop.f32.mrb[137].mxu0  ;;  %11734 = vmatprep.subr.bf16.mxu1 %v13256_v58 }
 0x521   : > { %v4255_v9 = vpack.c.bf16 %v16077_v13, %v16071_v26  ;;  %v16090_v63 = vadd.f32 %v11709_v52, %v11708_v22  ;;  %v11128_v43 = vpop.f32.mrb[40].mxu1  ;;  %v11711_v15 = vpop.f32.mrb[138].mxu0  ;;  %v17910_v52 = vld [vmem:[#allocation50_spill] sm:$0xff] }
 0x522   : > { %v11129_v49 = vpop.f32.mrb[41].mxu1  ;;  %v11712_v5 = vpop.f32.mrb[139].mxu0 }
 0x523   : > { %v11130_v40 = vadd.f32 %v11129_v49, %v11128_v43  ;;  %v16092_v21 = vadd.f32 %v11712_v5, %v11711_v15  ;;  %v11131_v31 = vpop.f32.mrb[42].mxu1  ;;  %11735 = vmatpush3.bf16.msra.mxu1 %v13257_v35  ;;  %v13264_v35 = vld [vmem:[%s17704_s4 + $0x1e8] sm:$0xff]   ;;  %v17911_v15 = vld [vmem:[#allocation60_spill] sm:$0xff]  ;;  %v17912_v49 = vld [vmem:[#allocation58_spill] sm:$0xff] }
 0x524   : > { %v11132_v54 = vpop.f32.mrb[43].mxu1  ;;  %11736 = vmatprep.subr.bf16.mxu1 %v13258_v50  ;;  %v17913_v5 = vpack.c.bf16 %v17911_v15, %v17912_v49  ;;  %v17920_v49 = vld [vmem:[#allocation63_spill] sm:$0xff] }
 0x525   : > { %v16101_v4 = vadd.f32 %v11130_v40, %v15014_v27  ;;  %v13262_v27 = vld [vmem:[%s17704_s4 + $0x1e0] sm:$0xff]   ;;  %v17914_v40 = vld [vmem:[#allocation51_spill] sm:$0xff]  ;;  %v17916_v54 = vld [vmem:[#allocation85_spill] sm:$0xff] }
 0x526   : > { %6711 = vmatmul.mubr.bf16.gmra.mrb[148].mxu1 %v17906_v59  ;;  %v13265_v59 = vld [vmem:[%s17704_s4 + $0x1a8] sm:$0xff]  }
 0x527   : > { %6718 = vmatprep.mubr.bf16.mxu1 %v17909_v1  ;;  %v11714_v51 = vpop.f32.mrb[140].mxu0  ;;  %11737 = vmatpush3.bf16.msra.mxu1 %v13259_v55  ;;  %v17915_v55 = vld [vmem:[#allocation86_spill] sm:$0xff]  ;;  %v4256_v26 = vpack.c.bf16 %v16101_v4, %v16101_v4  ;;  %v17955_v4 = vld [vmem:[#allocation80_spill] sm:$0xff] }
 0x528   : > { %v11715_v24 = vpop.f32.mrb[141].mxu0  ;;  %11738 = vmatprep.subr.bf16.mxu1 %v13260_v16  ;;  %v17917_v16 = vpack.c.bf16 %v17915_v55, %v17916_v54  ;;  %v17923_v55 = vld [vmem:[#allocation53_spill] sm:$0xff] }
 0x529   : > { %v16115_v34 = vadd.f32 %v11715_v24, %v11714_v51  ;;  %v11196_v33 = vpop.f32.mrb[44].mxu1  ;;  %v11717_v41 = vpop.f32.mrb[142].mxu0 }
 0x52a   : > { %v11197_v42 = vpop.f32.mrb[45].mxu1  ;;  %v11718_v19 = vpop.f32.mrb[143].mxu0 }
 0x52b   : > { %v11198_v58 = vadd.f32 %v11197_v42, %v11196_v33  ;;  %v16117_v8 = vadd.f32 %v11718_v19, %v11717_v41  ;;  %v11199_v2 = vpop.f32.mrb[46].mxu1  ;;  %11739 = vmatpush3.bf16.msra.mxu1 %v13261_v17 }
 0x52c   : > { %v11200_v22 = vpop.f32.mrb[47].mxu1  ;;  %11740 = vmatprep.subr.bf16.mxu1 %v13262_v27 }
 0x52d   : > { %v16126_v50 = vadd.f32 %v11198_v58, %v17910_v52  ;;  %v11201_v43 = vadd.f32 %v11200_v22, %v11199_v2  ;;  %v13267_v58 = vld [vmem:[%s17704_s4 + $0x1b0] sm:$0xff]  }
 0x52e   : > { %6719 = vmatmul.mubr.bf16.gmra.mrb[152].mxu1 %v17913_v5  ;;  %v17918_v22 = vld [vmem:[#allocation52_spill] sm:$0xff]  ;;  %v17921_v5 = vld [vmem:[#allocation62_spill] sm:$0xff] }
 0x52f   : > { %v16132_v31 = vadd.f32 %v11201_v43, %v17914_v40  ;;  %6726 = vmatprep.mubr.bf16.mxu1 %v17917_v16  ;;  %v11720_v14 = vpop.f32.mrb[144].mxu0  ;;  %11741 = vmatpush3.bf16.msra.mxu1 %v13263_v48  ;;  %v13268_v48 = vld [vmem:[%s17704_s4 + $0x1f8] sm:$0xff]   ;;  %v17922_v40 = vpack.c.bf16 %v17920_v49, %v17921_v5  ;;  %v17926_v49 = vld [vmem:[#allocation56_spill] sm:$0xff] }
 0x530   : > { %v11721_v61 = vpop.f32.mrb[145].mxu0  ;;  %11742 = vmatprep.subr.bf16.mxu1 %v13264_v35  ;;  %v17919_v43 = vld [vmem:[#allocation89_spill] sm:$0xff] }
 0x531   : > { %v16143_v1 = vadd.f32 %v11721_v61, %v11720_v14  ;;  %v11202_v51 = vpop.f32.mrb[48].mxu1  ;;  %v11723_v17 = vpop.f32.mrb[146].mxu0  ;;  %v4514_v24 = vpack.c.bf16 %v16132_v31, %v16126_v50  ;;  %v2422_v15 = vpack.c.bf16 %v17919_v43, %v17919_v43  ;;  %v13269_v14 = vld [vmem:[%s17704_s4 + $0x1b8] sm:$0xff]   ;;  %v13270_v61 = vld [vmem:[%s17704_s4 + $0x2c0] sm:$0xff]   ;;  %v17947_v31 = vld [vmem:[#allocation72_spill] sm:$0xff] }
 0x532   : > { %v11203_v27 = vpop.f32.mrb[49].mxu1  ;;  %v11724_v33 = vpop.f32.mrb[147].mxu0 }
 0x533   : > { %v11204_v41 = vadd.f32 %v11203_v27, %v11202_v51  ;;  %v16147_v42 = vadd.f32 %v11724_v33, %v11723_v17  ;;  %v11205_v19 = vpop.f32.mrb[50].mxu1  ;;  %11743 = vmatpush3.bf16.msra.mxu1 %v13265_v59 }
 0x534   : > { %v11206_v2 = vpop.f32.mrb[51].mxu1  ;;  %11744 = vmatprep.subr.bf16.mxu1 %v13266_v46 }
 0x535   : > { %v16156_v35 = vadd.f32 %v11204_v41, %v17918_v22  ;;  %v11207_v52 = vadd.f32 %v11206_v2, %v11205_v19  ;;  %v17924_v2 = vld [vmem:[#allocation65_spill] sm:$0xff] }
 0x536   : > { %6727 = vmatmul.mubr.bf16.gmra.mrb[156].mxu1 %v17922_v40  ;;  %v2160_v22 = vpack.c.bf16 %v17924_v2, %v17924_v2  ;;  %v17927_v40 = vpack.c.bf16 %v15719_v32, %v15716_v0  ;;  %v17929_v32 = vpack.c.bf16 %v15624_v38, %v15616_v28 }
 0x537   : > { %v16164_v54 = vadd.f32 %v11207_v52, %v17923_v55  ;;  %6734 = vmatprep.mubr.bf16.mxu1 %v2422_v15  ;;  %v11726_v16 = vpop.f32.mrb[148].mxu0  ;;  %11745 = vmatpush3.bf16.msra.mxu1 %v13267_v58  ;;  %v17925_v52 = vld [vmem:[#allocation54_spill] sm:$0xff] }
 0x538   : > { %v11727_v59 = vpop.f32.mrb[149].mxu0  ;;  %11746 = vmatprep.subr.bf16.mxu1 %v13268_v48 }
 0x539   : > { %v16172_v46 = vadd.f32 %v11727_v59, %v11726_v16  ;;  %v11208_v51 = vpop.f32.mrb[52].mxu1  ;;  %v11729_v17 = vpop.f32.mrb[150].mxu0  ;;  %v4515_v27 = vpack.c.bf16 %v16164_v54, %v16156_v35  ;;  %v13307_v35 = vld [vmem:[%s17704_s4 + $0x390] sm:$0xff]  }
 0x53a   : > { %v11209_v33 = vpop.f32.mrb[53].mxu1  ;;  %v11730_v41 = vpop.f32.mrb[151].mxu0 }
 0x53b   : > { %v11210_v19 = vadd.f32 %v11209_v33, %v11208_v51  ;;  %v11211_v58 = vpop.f32.mrb[54].mxu1  ;;  %11747 = vmatpush3.bf16.msra.mxu1 %v13269_v14  ;;  %v13272_v33 = vld [vmem:[%s17704_s4 + $0x2c8] sm:$0xff]   ;;  %v17928_v41 = vld [vmem:[#allocation57_spill] sm:$0xff] }
 0x53c   : > { %v11212_v48 = vpop.f32.mrb[55].mxu1  ;;  %11824 = vmatprep.subr.bf16.mxu1 %v13270_v61  ;;  %v13271_v61 = vld [vmem:[%s17704_s4 + $0x280] sm:$0xff]  }
 0x53d   : > { %v16179_v43 = vadd.f32 %v11210_v19, %v17925_v52  ;;  %v11213_v15 = vadd.f32 %v11212_v48, %v11211_v58  ;;  %v17930_v58 = vld [vmem:[#allocation59_spill] sm:$0xff]  ;;  %v13274_v52 = vld [vmem:[%s17704_s4 + $0x2d0] sm:$0xff]  }
 0x53e   : > { %6735 = vmatmul.mubr.bf16.gmra.mrb[160].mxu1 %v2160_v22  ;;  %v17931_v22 = vpack.c.bf16 %v15737_v47, %v15734_v18  ;;  %v13273_v48 = vld [vmem:[%s17704_s4 + $0x288] sm:$0xff]   ;;  %v13275_v47 = vld [vmem:[%s17704_s4 + $0x290] sm:$0xff]  }
 0x53f   : > { %v16182_v5 = vadd.f32 %v11213_v15, %v17926_v49  ;;  %6846 = vmatprep.mubr.bf16.mxu1 %v17927_v40 }
 0x541   : > { %v11214_v55 = vpop.f32.mrb[56].mxu1  ;;  %v4516_v16 = vpack.c.bf16 %v16182_v5, %v16179_v43  ;;  %v17949_v43 = vld [vmem:[#allocation74_spill] sm:$0xff] }
 0x542   : > { %v11215_v14 = vpop.f32.mrb[57].mxu1 }
 0x543   : > { %v11216_v59 = vadd.f32 %v11215_v14, %v11214_v55  ;;  %v11217_v51 = vpop.f32.mrb[58].mxu1  ;;  %v13276_v55 = vld [vmem:[%s17704_s4 + $0x2d8] sm:$0xff]  }
 0x544   : > { %v11218_v17 = vpop.f32.mrb[59].mxu1  ;;  %v17932_v14 = vld [vmem:[#allocation61_spill] sm:$0xff] }
 0x545   : > { %v16196_v19 = vadd.f32 %v11216_v59, %v17928_v41  ;;  %v11219_v0 = vadd.f32 %v11218_v17, %v11217_v51  ;;  %v17933_v51 = vpack.c.bf16 %v15647_v39, %v15644_v44  ;;  %v13277_v17 = vld [vmem:[%s17704_s4 + $0x298] sm:$0xff]   ;;  %v13279_v39 = vld [vmem:[%s17704_s4 + $0x2a0] sm:$0xff]  }
 0x546   : > { %6847 = vmatmul.mubr.bf16.vlgmr.msra.gmra.mrb[164].mxu1 %v17929_v32 }
 0x547   : > { %v16202_v2 = vadd.f32 %v11219_v0, %v17930_v58  ;;  %6854 = vmatprep.mubr.bf16.mxu1 %v17931_v22  ;;  %11825 = vmatpush3.bf16.msra.mxu1 %v13271_v61  ;;  %v17934_v61 = vpack.c.bf16 %v15752_v20, %v15749_v36  ;;  %v13280_v36 = vld [vmem:[%s17704_s4 + $0x2e8] sm:$0xff]   ;;  %v17935_v20 = vld [vmem:[#allocation64_spill] sm:$0xff] }
 0x548   : > { %11826 = vmatprep.subr.bf16.mxu1 %v13272_v33  ;;  %v13278_v33 = vld [vmem:[%s17704_s4 + $0x2e0] sm:$0xff]  }
 0x549   : > { %v11220_v15 = vpop.f32.mrb[60].mxu1  ;;  %v4517_v28 = vpack.c.bf16 %v16202_v2, %v16196_v19  ;;  %v13315_v19 = vld [vmem:[%s17704_s4 + $0x3b0] sm:$0xff]  }
 0x54a   : > { %v11221_v38 = vpop.f32.mrb[61].mxu1 }
 0x54b   : > { %v11222_v49 = vadd.f32 %v11221_v38, %v11220_v15  ;;  %v11223_v40 = vpop.f32.mrb[62].mxu1  ;;  %11827 = vmatpush3.bf16.msra.mxu1 %v13273_v48  ;;  %v17937_v15 = vld [vmem:[#allocation66_spill] sm:$0xff] }
 0x54c   : > { %v11224_v18 = vpop.f32.mrb[63].mxu1  ;;  %11828 = vmatprep.subr.bf16.mxu1 %v13274_v52  ;;  %v17936_v52 = vpack.c.bf16 %v15668_v29, %v15662_v11  ;;  %v13281_v40 = vld [vmem:[%s17704_s4 + $0x2a8] sm:$0xff]  }
 0x54d   : > { %v16222_v59 = vadd.f32 %v11222_v49, %v17932_v14  ;;  %v17938_v49 = vpack.c.bf16 %v15766_v6, %v15763_v12  ;;  %v13285_v12 = vld [vmem:[%s17704_s4 + $0x2b0] sm:$0xff]  }
 0x54e   : > { %6855 = vmatmul.mubr.bf16.gmra.mrb[168].mxu1 %v17933_v51  ;;  %v13288_v51 = vld [vmem:[%s17704_s4 + $0x2f8] sm:$0xff]  }
 0x54f   : > { %6862 = vmatprep.mubr.bf16.mxu1 %v17934_v61  ;;  %11829 = vmatpush3.bf16.msra.mxu1 %v13275_v47  ;;  %v13284_v47 = vld [vmem:[%s17704_s4 + $0x2f0] sm:$0xff]   ;;  %v17939_v61 = vld [vmem:[#allocation67_spill] sm:$0xff] }
 0x550   : > { %11830 = vmatprep.subr.bf16.mxu1 %v13276_v55 }
 0x551   : > { %v11288_v41 = vpop.f32.mrb[64].mxu1 }
 0x552   : > { %v11289_v0 = vpop.f32.mrb[65].mxu1 }
 0x553   : > { %v11290_v32 = vadd.f32 %v11289_v0, %v11288_v41  ;;  %v11291_v58 = vpop.f32.mrb[66].mxu1  ;;  %11831 = vmatpush3.bf16.msra.mxu1 %v13277_v17  ;;  %v3470_v41 = vpack.c.bf16 %v15781_v57, %v15781_v57  ;;  %v17940_v0 = vld [vmem:[#allocation24_spill] sm:$0xff] }
 0x554   : > { %v11292_v44 = vpop.f32.mrb[67].mxu1  ;;  %11832 = vmatprep.subr.bf16.mxu1 %v13278_v33 }
 0x555   : > { %v16243_v22 = vadd.f32 %v11290_v32, %v17935_v20  ;;  %v11293_v48 = vadd.f32 %v11292_v44, %v11291_v58  ;;  %v17941_v32 = vpack.c.bf16 %v15688_v30, %v17940_v0  ;;  %v17942_v58 = vld [vmem:[#allocation68_spill] sm:$0xff]  ;;  %v13289_v44 = vld [vmem:[%s17704_s4 + $0x2b8] sm:$0xff]  }
 0x556   : > { %6863 = vmatmul.mubr.bf16.gmra.mrb[172].mxu1 %v17936_v52 }
 0x557   : > { %v16249_v38 = vadd.f32 %v11293_v48, %v17937_v15  ;;  %6870 = vmatprep.mubr.bf16.mxu1 %v17938_v49  ;;  %11833 = vmatpush3.bf16.msra.mxu1 %v13279_v39  ;;  %v17943_v15 = vld [vmem:[#allocation26_spill] sm:$0xff] }
 0x558   : > { %11834 = vmatprep.subr.bf16.mxu1 %v13280_v36  ;;  %v13302_v36 = vld [vmem:[%s17704_s4 + $0x3c0] sm:$0xff]   ;;  %v3208_v49 = vpack.c.bf16 %v17943_v15, %v17943_v15 }
 0x559   : > { %v4776_v11 = vpack.c.bf16 %v16249_v38, %v16243_v22  ;;  %v11294_v29 = vpop.f32.mrb[68].mxu1  ;;  %v13317_v22 = vld [vmem:[%s17704_s4 + $0x3b8] sm:$0xff]  }
 0x55a   : > { %v11295_v18 = vpop.f32.mrb[69].mxu1 }
 0x55b   : > { %v11296_v55 = vadd.f32 %v11295_v18, %v11294_v29  ;;  %v11297_v14 = vpop.f32.mrb[70].mxu1  ;;  %11835 = vmatpush3.bf16.msra.mxu1 %v13281_v40 }
 0x55c   : > { %v11298_v6 = vpop.f32.mrb[71].mxu1  ;;  %11836 = vmatprep.subr.bf16.mxu1 %v13284_v47  ;;  %v17944_v47 = vld [vmem:[#allocation69_spill] sm:$0xff] }
 0x55d   : > { %v16269_v17 = vadd.f32 %v11296_v55, %v17939_v61  ;;  %v11299_v33 = vadd.f32 %v11298_v6, %v11297_v14  ;;  %v17945_v55 = vld [vmem:[#allocation70_spill] sm:$0xff] }
 0x55e   : > { %6871 = vmatmul.mubr.bf16.gmra.mrb[176].mxu1 %v17941_v32  ;;  %v13304_v32 = vld [vmem:[%s17704_s4 + $0x3c8] sm:$0xff]  }
 0x55f   : > { %v16277_v39 = vadd.f32 %v11299_v33, %v17942_v58  ;;  %6878 = vmatprep.mubr.bf16.mxu1 %v3470_v41  ;;  %11837 = vmatpush3.bf16.msra.mxu1 %v13285_v12  ;;  %v13303_v41 = vld [vmem:[%s17704_s4 + $0x380] sm:$0xff]   ;;  %v17946_v58 = vld [vmem:[#allocation71_spill] sm:$0xff] }
 0x560   : > { %11838 = vmatprep.subr.bf16.mxu1 %v13288_v51 }
 0x561   : > { %v4777_v57 = vpack.c.bf16 %v16277_v39, %v16269_v17  ;;  %v11300_v20 = vpop.f32.mrb[72].mxu1 }
 0x562   : > { %v11301_v30 = vpop.f32.mrb[73].mxu1 }
 0x563   : > { %v11302_v48 = vadd.f32 %v11301_v30, %v11300_v20  ;;  %v11303_v52 = vpop.f32.mrb[74].mxu1  ;;  %11839 = vmatpush3.bf16.msra.mxu1 %v13289_v44  ;;  %v13306_v20 = vld [vmem:[%s17704_s4 + $0x3d0] sm:$0xff]  }
 0x564   : > { %v11304_v40 = vpop.f32.mrb[75].mxu1  ;;  %11916 = vmatprep.subr.bf16.mxu1 %v13302_v36  ;;  %v13305_v36 = vld [vmem:[%s17704_s4 + $0x388] sm:$0xff]  }
 0x565   : > { %v16290_v29 = vadd.f32 %v11302_v48, %v17944_v47  ;;  %v11305_v18 = vadd.f32 %v11304_v40, %v11303_v52  ;;  %v17948_v52 = vld [vmem:[#allocation73_spill] sm:$0xff]  ;;  %v13310_v40 = vld [vmem:[%s17704_s4 + $0x3e0] sm:$0xff]  }
 0x566   : > { %6879 = vmatmul.mubr.bf16.gmra.mrb[180].mxu1 %v3208_v49  ;;  %v13309_v49 = vld [vmem:[%s17704_s4 + $0x398] sm:$0xff]  }
 0x567   : > { %v16293_v14 = vadd.f32 %v11305_v18, %v17945_v55  ;;  %6990 = vmatprep.mubr.bf16.mxu1 %v4514_v24 }
 0x569   : > { %v4778_v12 = vpack.c.bf16 %v16293_v14, %v16290_v29  ;;  %v11306_v6 = vpop.f32.mrb[76].mxu1 }
 0x56a   : > { %v11307_v51 = vpop.f32.mrb[77].mxu1 }
 0x56b   : > { %v11308_v61 = vadd.f32 %v11307_v51, %v11306_v6  ;;  %v11309_v33 = vpop.f32.mrb[78].mxu1  ;;  %v17950_v51 = vld [vmem:[#allocation75_spill] sm:$0xff] }
 0x56c   : > { %v11310_v0 = vpop.f32.mrb[79].mxu1 }
 0x56d   : > { %v16307_v44 = vadd.f32 %v11308_v61, %v17946_v58  ;;  %v11311_v50 = vadd.f32 %v11310_v0, %v11309_v33  ;;  %v13313_v33 = vld [vmem:[%s17704_s4 + $0x3a8] sm:$0xff]   ;;  %v4518_v58 = vpack.c.bf16 %v16222_v59, %v16222_v59 }
 0x56e   : > { %6991 = vmatmul.mubr.bf16.vlgmr.msra.gmra.mrb[184].mxu1 %v4252_v25 }
 0x56f   : > { %v16313_v24 = vadd.f32 %v11311_v50, %v17947_v31  ;;  %6998 = vmatprep.mubr.bf16.mxu1 %v4515_v27  ;;  %11917 = vmatpush3.bf16.msra.mxu1 %v13303_v41  ;;  %v13308_v27 = vld [vmem:[%s17704_s4 + $0x3d8] sm:$0xff]   ;;  %v13314_v41 = vld [vmem:[%s17704_s4 + $0x3f0] sm:$0xff]  }
 0x570   : > { %11918 = vmatprep.subr.bf16.mxu1 %v13304_v32  ;;  %v17951_v50 = vld [vmem:[#allocation76_spill] sm:$0xff] }
 0x571   : > { %v4779_v7 = vpack.c.bf16 %v16313_v24, %v16307_v44  ;;  %v11312_v56 = vpop.f32.mrb[80].mxu1 }
 0x572   : > { %v11313_v25 = vpop.f32.mrb[81].mxu1 }
 0x573   : > { %v11314_v30 = vadd.f32 %v11313_v25, %v11312_v56  ;;  %v11315_v48 = vpop.f32.mrb[82].mxu1  ;;  %11919 = vmatpush3.bf16.msra.mxu1 %v13305_v36 }
 0x574   : > { %v11316_v54 = vpop.f32.mrb[83].mxu1  ;;  %11920 = vmatprep.subr.bf16.mxu1 %v13306_v20  ;;  %v17952_v20 = vld [vmem:[#allocation77_spill] sm:$0xff] }
 0x575   : > { %v16333_v15 = vadd.f32 %v11314_v30, %v17948_v52  ;;  %v17954_v54 = vld [vmem:[#allocation79_spill] sm:$0xff] }
 0x576   : > { %6999 = vmatmul.mubr.bf16.gmra.mrb[188].mxu1 %v4253_v60  ;;  %v13312_v60 = vld [vmem:[%s17704_s4 + $0x3e8] sm:$0xff]  }
 0x577   : > { %7006 = vmatprep.mubr.bf16.mxu1 %v4516_v16  ;;  %11921 = vmatpush3.bf16.msra.mxu1 %v13307_v35 }
 0x578   : > { %11922 = vmatprep.subr.bf16.mxu1 %v13308_v27 }
 0x579   : > { %v11380_v47 = vpop.f32.mrb[84].mxu1 }
 0x57a   : > { %v11381_v18 = vpop.f32.mrb[85].mxu1 }
 0x57b   : > { %v11382_v55 = vadd.f32 %v11381_v18, %v11380_v47  ;;  %v11383_v6 = vpop.f32.mrb[86].mxu1  ;;  %11923 = vmatpush3.bf16.msra.mxu1 %v13309_v49 }
 0x57c   : > { %v11384_v3 = vpop.f32.mrb[87].mxu1  ;;  %11924 = vmatprep.subr.bf16.mxu1 %v13310_v40 }
 0x57d   : > { %v5001_v5 = vadd.f32 %v11382_v55, %v17949_v43  ;;  %v11385_v16 = vadd.f32 %v11384_v3, %v11383_v6 }
 0x57e   : > { %7007 = vmatmul.mubr.bf16.gmra.mrb[192].mxu1 %v4254_v10 }
 0x57f   : > { %v5004_v61 = vadd.f32 %v11385_v16, %v17950_v51  ;;  %7014 = vmatprep.mubr.bf16.mxu1 %v4517_v28  ;;  %11925 = vmatpush3.bf16.msra.mxu1 %v13311_v45  ;;  %v13316_v28 = vld [vmem:[%s17704_s4 + $0x3f8] sm:$0xff]   ;;  %v17957_v51 = vld [vmem:[#allocation84_spill] sm:$0xff] }
 0x580   : > { %11926 = vmatprep.subr.bf16.mxu1 %v13312_v60 }
 0x581   : > { %v11386_v0 = vpop.f32.mrb[88].mxu1  ;;  %v5038_v32 = vpack.c.bf16 %v5004_v61, %v5001_v5 }
 0x582   : > { %v11387_v53 = vpop.f32.mrb[89].mxu1 }
 0x583   : > { %v11388_v37 = vadd.f32 %v11387_v53, %v11386_v0  ;;  %v11389_v10 = vpop.f32.mrb[90].mxu1  ;;  %7062 = vmatprep.mubr.bf16.mxu0 %v5038_v32  ;;  %11927 = vmatpush3.bf16.msra.mxu1 %v13313_v33  ;;  %v17958_v53 = vld [vmem:[#allocation87_spill] sm:$0xff] }
 0x584   : > { %v11390_v2 = vpop.f32.mrb[91].mxu1  ;;  %7063 = vmatmul.mubr.bf16.vlgmr.msra.gmra.mrb[172].mxu0 %v4776_v11  ;;  %11928 = vmatprep.subr.bf16.mxu1 %v13314_v41 }
 0x585   : > { %v5009_v31 = vadd.f32 %v11388_v37, %v17951_v50  ;;  %v11391_v36 = vadd.f32 %v11390_v2, %v11389_v10  ;;  %v17960_v50 = vld [vmem:[#allocation90_spill] sm:$0xff] }
 0x586   : > { %7015 = vmatmul.mubr.bf16.gmra.mrb[196].mxu1 %v4255_v9  ;;  %v17953_v9 = vld [vmem:[#allocation78_spill] sm:$0xff] }
 0x587   : > { %v5012_v56 = vadd.f32 %v11391_v36, %v17952_v20  ;;  %7022 = vmatprep.mubr.bf16.mxu1 %v4518_v58  ;;  %11929 = vmatpush3.bf16.msra.mxu1 %v13315_v19  ;;  %v17959_v19 = vld [vmem:[#allocation88_spill] sm:$0xff]  ;;  %v17961_v20 = vld [vmem:[#allocation91_spill] sm:$0xff] }
 0x588   : > { %11930 = vmatprep.subr.bf16.mxu1 %v13316_v28 }
 0x589   : > { %v11392_v38 = vpop.f32.mrb[92].mxu1  ;;  %v5039_v11 = vpack.c.bf16 %v5012_v56, %v5009_v31 }
 0x58a   : > { %v11393_v25 = vpop.f32.mrb[93].mxu1 }
 0x58b   : > { %v11394_v59 = vadd.f32 %v11393_v25, %v11392_v38  ;;  %v11395_v30 = vpop.f32.mrb[94].mxu1  ;;  %7070 = vmatprep.mubr.bf16.mxu0 %v5039_v11  ;;  %11931 = vmatpush3.bf16.msra.mxu1 %v13317_v22 }
 0x58c   : > { %v11396_v13 = vpop.f32.mrb[95].mxu1  ;;  %7071 = vmatmul.mubr.bf16.gmra.mrb[176].mxu0 %v4777_v57  ;;  %v17956_v57 = vld [vmem:[#allocation82_spill] sm:$0xff] }
 0x58d   : > { %v5017_v48 = vadd.f32 %v11394_v59, %v17953_v9  ;;  %v11397_v35 = vadd.f32 %v11396_v13, %v11395_v30 }
 0x58e   : > { %7023 = vmatmul.mubr.bf16.gmra.mrb[200].mxu1 %v4256_v26  ;;  %v17962_v26 = vld [vmem:[#allocation2_spill] sm:$0xff] }
 0x58f   : > { %v5020_v27 = vadd.f32 %v11397_v35, %v17954_v54 }
 0x591   : > { %v11398_v52 = vpop.f32.mrb[96].mxu1  ;;  %v5040_v49 = vpack.c.bf16 %v5020_v27, %v5017_v48  ;;  %v17963_v48 = vld [vmem:[#allocation3_spill] sm:$0xff] }
 0x592   : > { %v11399_v40 = vpop.f32.mrb[97].mxu1 }
 0x593   : > { %v11400_v47 = vadd.f32 %v11399_v40, %v11398_v52  ;;  %v11401_v18 = vpop.f32.mrb[98].mxu1  ;;  %7078 = vmatprep.mubr.bf16.mxu0 %v5040_v49 }
 0x594   : > { %v11402_v55 = vpop.f32.mrb[99].mxu1  ;;  %7079 = vmatmul.mubr.bf16.gmra.mrb[180].mxu0 %v4778_v12  ;;  %v4780_v12 = vpack.c.bf16 %v16333_v15, %v16333_v15 }
 0x595   : > { %v5025_v17 = vadd.f32 %v11400_v47, %v17955_v4  ;;  %v11403_v39 = vadd.f32 %v11402_v55, %v11401_v18 }
 0x597   : > { %v5028_v6 = vadd.f32 %v11403_v39, %v17956_v57 }
 0x599   : > { %v11404_v45 = vpop.f32.mrb[100].mxu1  ;;  %v5041_v3 = vpack.c.bf16 %v5028_v6, %v5025_v17  ;;  %v17964_v6 = vld [vmem:[#allocation4_spill] sm:$0xff] }
 0x59a   : > { %v11405_v60 = vpop.f32.mrb[101].mxu1 }
 0x59b   : > { %v11406_v43 = vadd.f32 %v11405_v60, %v11404_v45  ;;  %v11407_v5 = vpop.f32.mrb[102].mxu1  ;;  %7086 = vmatprep.mubr.bf16.mxu0 %v5041_v3  ;;  %v17965_v60 = vld [vmem:[#allocation5_spill] sm:$0xff] }
 0x59c   : > { %v11408_v16 = vpop.f32.mrb[103].mxu1  ;;  %7087 = vmatmul.mubr.bf16.gmra.mrb[184].mxu0 %v4779_v7 }
 0x59d   : > { %v5033_v61 = vadd.f32 %v11406_v43, %v17957_v51 }
 0x59f   : > { %v5042_v29 = vpack.c.bf16 %v5033_v61, %v5033_v61 }
 0x5a1   : > { %v11472_v14 = vpop.f32.mrb[104].mxu1  ;;  %7094 = vmatprep.mubr.bf16.mxu0 %v5042_v29 }
 0x5a2   : > { %v11473_v33 = vpop.f32.mrb[105].mxu1 }
 0x5a3   : > { %v11474_v41 = vadd.f32 %v11473_v33, %v11472_v14  ;;  %v11475_v0 = vpop.f32.mrb[106].mxu1 }
 0x5a4   : > { %v11476_v32 = vpop.f32.mrb[107].mxu1  ;;  %7095 = vmatmul.mubr.bf16.gmra.mrb[188].mxu0 %v4780_v12 }
 0x5a5   : > { %v16405_v37 = vadd.f32 %v11474_v41, %v17958_v53  ;;  %v11477_v10 = vadd.f32 %v11476_v32, %v11475_v0 }
 0x5a7   : > { %v16408_v44 = vadd.f32 %v11477_v10, %v17959_v19  ;;  %v17966_v10 = vld [vmem:[#allocation6_spill] sm:$0xff] }
 0x5a9   : > { %v5300_v24 = vpack.c.bf16 %v16408_v44, %v16405_v37  ;;  %v11478_v7 = vpop.f32.mrb[108].mxu1  ;;  %v17971_v37 = vld [vmem:[#allocation11_spill] sm:$0xff] }
 0x5aa   : > { %v11479_v2 = vpop.f32.mrb[109].mxu1 }
 0x5ab   : > { %v11480_v28 = vadd.f32 %v11479_v2, %v11478_v7  ;;  %v11481_v58 = vpop.f32.mrb[110].mxu1 }
 0x5ac   : > { %v11482_v15 = vpop.f32.mrb[111].mxu1 }
 0x5ad   : > { %v16413_v31 = vadd.f32 %v11480_v28, %v17960_v50  ;;  %v11483_v36 = vadd.f32 %v11482_v15, %v11481_v58 }
 0x5af   : > { %v16416_v56 = vadd.f32 %v11483_v36, %v17961_v20 }
 0x5b1   : > { %v5301_v22 = vpack.c.bf16 %v16416_v56, %v16413_v31  ;;  %v11484_v38 = vpop.f32.mrb[112].mxu1  ;;  %v17974_v56 = vld [vmem:[#allocation14_spill] sm:$0xff] }
 0x5b2   : > { %v11485_v11 = vpop.f32.mrb[113].mxu1 }
 0x5b3   : > { %v11486_v25 = vadd.f32 %v11485_v11, %v11484_v38  ;;  %v11487_v59 = vpop.f32.mrb[114].mxu1 }
 0x5b4   : > { %v11488_v30 = vpop.f32.mrb[115].mxu1 }
 0x5b5   : > { %v16421_v13 = vadd.f32 %v11486_v25, %v17962_v26  ;;  %v11489_v9 = vadd.f32 %v11488_v30, %v11487_v59  ;;  %v17967_v59 = vld [vmem:[#allocation7_spill] sm:$0xff] }
 0x5b7   : > { %v16424_v35 = vadd.f32 %v11489_v9, %v17963_v48  ;;  %v11794_v54 = vpop.f32.mrb[152].mxu0  ;;  %v17968_v9 = vld [vmem:[#allocation8_spill] sm:$0xff] }
 0x5b8   : > { %v11795_v27 = vpop.f32.mrb[153].mxu0 }
 0x5b9   : > { %v5302_v52 = vpack.c.bf16 %v16424_v35, %v16421_v13  ;;  %v16428_v49 = vadd.f32 %v11795_v27, %v11794_v54  ;;  %v11490_v40 = vpop.f32.mrb[116].mxu1  ;;  %v11797_v47 = vpop.f32.mrb[154].mxu0 }
 0x5ba   : > { %v11491_v18 = vpop.f32.mrb[117].mxu1  ;;  %v11798_v55 = vpop.f32.mrb[155].mxu0 }
 0x5bb   : > { %v11492_v4 = vadd.f32 %v11491_v18, %v11490_v40  ;;  %v16430_v17 = vadd.f32 %v11798_v55, %v11797_v47  ;;  %v11493_v39 = vpop.f32.mrb[118].mxu1 }
 0x5bc   : > { %v11494_v57 = vpop.f32.mrb[119].mxu1 }
 0x5bd   : > { %v16433_v45 = vadd.f32 %v11492_v4, %v17964_v6  ;;  %v11495_v3 = vadd.f32 %v11494_v57, %v11493_v39 }
 0x5bf   : > { %v16436_v43 = vadd.f32 %v11495_v3, %v17965_v60  ;;  %v11800_v5 = vpop.f32.mrb[156].mxu0 }
 0x5c0   : > { %v11801_v16 = vpop.f32.mrb[157].mxu0 }
 0x5c1   : > { %v5303_v51 = vpack.c.bf16 %v16436_v43, %v16433_v45  ;;  %v16440_v61 = vadd.f32 %v11801_v16, %v11800_v5  ;;  %v11496_v29 = vpop.f32.mrb[120].mxu1  ;;  %v11803_v14 = vpop.f32.mrb[158].mxu0  ;;  %v17969_v5 = vld [vmem:[#allocation9_spill] sm:$0xff] }
 0x5c2   : > { %v11497_v12 = vpop.f32.mrb[121].mxu1  ;;  %v11804_v33 = vpop.f32.mrb[159].mxu0  ;;  %v17977_v43 = vld [vmem:[#allocation17_spill] sm:$0xff] }
 0x5c3   : > { %v11498_v41 = vadd.f32 %v11497_v12, %v11496_v29  ;;  %v16442_v0 = vadd.f32 %v11804_v33, %v11803_v14  ;;  %v11499_v32 = vpop.f32.mrb[122].mxu1  ;;  %v17970_v14 = vld [vmem:[#allocation10_spill] sm:$0xff] }
 0x5c4   : > { %v11500_v53 = vpop.f32.mrb[123].mxu1 }
 0x5c5   : > { %v16445_v19 = vadd.f32 %v11498_v41, %v17966_v10 }
 0x5c7   : > { %v11806_v7 = vpop.f32.mrb[160].mxu0 }
 0x5c8   : > { %v11807_v2 = vpop.f32.mrb[161].mxu0 }
 0x5c9   : > { %v16447_v28 = vadd.f32 %v11807_v2, %v11806_v7  ;;  %v11564_v58 = vpop.f32.mrb[124].mxu1  ;;  %v11809_v15 = vpop.f32.mrb[162].mxu0 }
 0x5ca   : > { %v11565_v50 = vpop.f32.mrb[125].mxu1  ;;  %v11810_v36 = vpop.f32.mrb[163].mxu0 }
 0x5cb   : > { %v11566_v20 = vadd.f32 %v11565_v50, %v11564_v58  ;;  %v16449_v38 = vadd.f32 %v11810_v36, %v11809_v15  ;;  %v11567_v11 = vpop.f32.mrb[126].mxu1 }
 0x5cc   : > { %v11568_v25 = vpop.f32.mrb[127].mxu1 }
 0x5cd   : > { %v5525_v30 = vadd.f32 %v11566_v20, %v17967_v59  ;;  %v11569_v26 = vadd.f32 %v11568_v25, %v11567_v11  ;;  %v17972_v20 = vld [vmem:[#allocation12_spill] sm:$0xff] }
 0x5cf   : > { %v5528_v48 = vadd.f32 %v11569_v26, %v17968_v9  ;;  %v11812_v54 = vpop.f32.mrb[164].mxu0 }
 0x5d0   : > { %v11813_v27 = vpop.f32.mrb[165].mxu0 }
 0x5d1   : > { %v16453_v40 = vadd.f32 %v11813_v27, %v11812_v54  ;;  %v11570_v47 = vpop.f32.mrb[128].mxu1  ;;  %v11815_v18 = vpop.f32.mrb[166].mxu0  ;;  %v5562_v55 = vpack.c.bf16 %v5528_v48, %v5525_v30  ;;  %v17973_v54 = vld [vmem:[#allocation13_spill] sm:$0xff] }
 0x5d2   : > { %v11571_v4 = vpop.f32.mrb[129].mxu1  ;;  %v11816_v39 = vpop.f32.mrb[167].mxu0 }
 0x5d3   : > { %v11572_v57 = vadd.f32 %v11571_v4, %v11570_v47  ;;  %v16455_v6 = vadd.f32 %v11816_v39, %v11815_v18  ;;  %v11573_v3 = vpop.f32.mrb[130].mxu1  ;;  %7134 = vmatprep.mubr.bf16.mxu1 %v5562_v55 }
 0x5d4   : > { %v11574_v60 = vpop.f32.mrb[131].mxu1  ;;  %7135 = vmatmul.mubr.bf16.vlgmr.msra.gmra.mrb[204].mxu1 %v5300_v24 }
 0x5d5   : > { %v5533_v16 = vadd.f32 %v11572_v57, %v17969_v5  ;;  %v11575_v29 = vadd.f32 %v11574_v60, %v11573_v3  ;;  %v17975_v3 = vld [vmem:[#allocation15_spill] sm:$0xff] }
 0x5d7   : > { %v5536_v12 = vadd.f32 %v11575_v29, %v17970_v14  ;;  %v11818_v33 = vpop.f32.mrb[168].mxu0  ;;  %v17976_v29 = vld [vmem:[#allocation16_spill] sm:$0xff] }
 0x5d8   : > { %v11819_v41 = vpop.f32.mrb[169].mxu0 }
 0x5d9   : > { %v16462_v32 = vadd.f32 %v11819_v41, %v11818_v33  ;;  %v11576_v53 = vpop.f32.mrb[132].mxu1  ;;  %v11821_v10 = vpop.f32.mrb[170].mxu0  ;;  %v5563_v7 = vpack.c.bf16 %v5536_v12, %v5533_v16  ;;  %v13390_v16 = vld [vmem:[%s17705_s5] ss:$0 sm:$0xff] }
 0x5da   : > { %v11577_v2 = vpop.f32.mrb[133].mxu1  ;;  %v11822_v58 = vpop.f32.mrb[171].mxu0  ;;  %v6633_v14 = vadd.f32 %v13390_v16, %v17976_v29 }
 0x5db   : > { %v11578_v15 = vadd.f32 %v11577_v2, %v11576_v53  ;;  %v11579_v50 = vpop.f32.mrb[134].mxu1  ;;  %7142 = vmatprep.mubr.bf16.mxu1 %v5563_v7 }
 0x5dc   : > { %v11580_v36 = vpop.f32.mrb[135].mxu1  ;;  %7143 = vmatmul.mubr.bf16.gmra.mrb[208].mxu1 %v5301_v22 }
 0x5dd   : > { %v5541_v44 = vadd.f32 %v11578_v15, %v17971_v37  ;;  %v11581_v24 = vadd.f32 %v11580_v36, %v11579_v50  ;;  %v17978_v15 = vld [vmem:[#allocation18_spill] sm:$0xff] }
 0x5de   : > { %v6641_v50 = vadd.f32 %v13390_v16, %v17978_v15 }
 0x5df   : > { %v5544_v11 = vadd.f32 %v11581_v24, %v17972_v20  ;;  %v13400_v20 = vmov 0.0  }
 0x5e0   : > { %12183 = vmatprep.subr.bf16.mxu0 %v13400_v20  ;;  %12223 = vmatprep.subr.bf16.mxu1 %v13400_v20 }
 0x5e1   : > { %v11582_v25 = vpop.f32.mrb[136].mxu1  ;;  %v5564_v59 = vpack.c.bf16 %v5544_v11, %v5541_v44  ;;  %v13318_v44 = vld [vmem:[%s17706_s6 + $0x40] sm:$0xff]   ;;  %12199 = vmatprep.mubr.msk.bf16.mxu0 %vm13401_vm0, %v13400_v20 }
 0x5e2   : > { %v11583_v30 = vpop.f32.mrb[137].mxu1  ;;  %12184 = vmatpush3.bf16.msra.mxu0 %v13318_v44 }
 0x5e3   : > { %v11584_v26 = vadd.f32 %v11583_v30, %v11582_v25  ;;  %v11585_v9 = vpop.f32.mrb[138].mxu1  ;;  %7150 = vmatprep.mubr.bf16.mxu1 %v5564_v59  ;;  %v13319_v25 = vld [vmem:[%s17706_s6 + $0x48] sm:$0xff]   ;;  %12185 = vmatprep.subr.bf16.mxu0 %v13400_v20 }
 0x5e4   : > { %v11586_v48 = vpop.f32.mrb[139].mxu1  ;;  %7151 = vmatmul.mubr.bf16.gmra.mrb[212].mxu1 %v5302_v52  ;;  %v5304_v52 = vpack.c.bf16 %v16445_v19, %v16445_v19  ;;  %v13323_v59 = vld [vmem:[%s17706_s6 + $0x88] sm:$0xff]  }
 0x5e5   : > { %v5549_v27 = vadd.f32 %v11584_v26, %v17973_v54  ;;  %v11587_v31 = vadd.f32 %v11586_v48, %v11585_v9  ;;  %v17979_v30 = vld [vmem:[#allocation19_spill] sm:$0xff] }
 0x5e6   : > { %12186 = vmatpush3.bf16.msra.mxu0 %v13319_v25 }
 0x5e7   : > { %v5552_v22 = vadd.f32 %v11587_v31, %v17974_v56  ;;  %12187 = vmatprep.subr.bf16.mxu0 %v13400_v20  ;;  %v17980_v56 = vld [vmem:[#allocation20_spill] sm:$0xff] }
 0x5e9   : > { %v11588_v47 = vpop.f32.mrb[140].mxu1  ;;  %v5565_v18 = vpack.c.bf16 %v5552_v22, %v5549_v27  ;;  %v13320_v27 = vld [vmem:[%s17706_s6 + $0x50] sm:$0xff]   ;;  %v6649_v22 = vadd.f32 %v13390_v16, %v17980_v56 }
 0x5ea   : > { %v11589_v55 = vpop.f32.mrb[141].mxu1  ;;  %12188 = vmatpush3.bf16.msra.mxu0 %v13320_v27 }
 0x5eb   : > { %7158 = vmatprep.mubr.bf16.mxu1 %v5565_v18  ;;  %v11590_v4 = vadd.f32 %v11589_v55, %v11588_v47  ;;  %v11591_v39 = vpop.f32.mrb[142].mxu1  ;;  %12189 = vmatprep.subr.bf16.mxu0 %v13400_v20 }
 0x5ec   : > { %7159 = vmatmul.mubr.bf16.gmra.mrb[216].mxu1 %v5303_v51  ;;  %v11592_v57 = vpop.f32.mrb[143].mxu1  ;;  %v6636_v51 = vadd.f32 %v13390_v16, %v17977_v43  ;;  %v13322_v39 = vld [vmem:[%s17706_s6 + $0x58] sm:$0xff]   ;;  %v17983_v43 = vld [vmem:[#allocation23_spill] sm:$0xff] }
 0x5ed   : > { %v5557_v60 = vadd.f32 %v11590_v4, %v17975_v3  ;;  %v13326_v57 = vld [vmem:[%s17706_s6 + $0x98] sm:$0xff]  }
 0x5ee   : > { %v17981_v3 = vld [vmem:[#allocation21_spill] sm:$0xff]  ;;  %12190 = vmatpush3.bf16.msra.mxu0 %v13322_v39 }
 0x5ef   : > { %v5566_v13 = vpack.c.bf16 %v5557_v60, %v5557_v60  ;;  %12191 = vmatprep.subr.bf16.mxu0 %v13400_v20 }
 0x5f1   : > { %v11656_v35 = vpop.f32.mrb[144].mxu1  ;;  %7166 = vmatprep.mubr.bf16.mxu1 %v5566_v13 }
 0x5f2   : > { %v11657_v5 = vpop.f32.mrb[145].mxu1 }
 0x5f3   : > { %v11658_v12 = vadd.f32 %v11657_v5, %v11656_v35  ;;  %v11659_v33 = vpop.f32.mrb[146].mxu1  ;;  %v13324_v5 = vld [vmem:[%s17706_s6 + $0x60] sm:$0xff]  }
 0x5f4   : > { %v11660_v45 = vpop.f32.mrb[147].mxu1  ;;  %7167 = vmatmul.mubr.bf16.gmra.mrb[220].mxu1 %v5304_v52  ;;  %12192 = vmatpush3.bf16.msra.mxu0 %v13324_v5 }
 0x5f5   : > { %v6705_v41 = vadd.f32 %v11658_v12, %v6633_v14  ;;  %v11661_v53 = vadd.f32 %v11660_v45, %v11659_v33  ;;  %v17982_v12 = vld [vmem:[#allocation22_spill] sm:$0xff]  ;;  %12193 = vmatprep.subr.bf16.mxu0 %v13400_v20  ;;  %12239 = vmatprep.mubr.msk.bf16.mxu1 %vm13401_vm0, %v13400_v20 }
 0x5f7   : > { %v6708_v10 = vadd.f32 %v11661_v53, %v6636_v51  ;;  %v16486_v7 = vadd.f32 %v16060_v23, %v6705_v41  ;;  %v13321_v23 = vld [vmem:[%s17706_s6 + $0x80] sm:$0xff]  }
 0x5f8   : > { %12224 = vmatpush3.bf16.msra.mxu1 %v13321_v23 }
 0x5f9   : > { %v11662_v19 = vpop.f32.mrb[148].mxu1  ;;  %v16489_v2 = vadd.f32 %v16062_v62, %v6708_v10  ;;  %12225 = vmatprep.subr.bf16.mxu1 %v13400_v20 }
 0x5fa   : > { %v11663_v58 = vpop.f32.mrb[149].mxu1 }
 0x5fb   : > { %v11664_v36 = vadd.f32 %v11663_v58, %v11662_v19  ;;  %v11665_v37 = vpop.f32.mrb[150].mxu1 }
 0x5fc   : > { %v11666_v24 = vpop.f32.mrb[151].mxu1  ;;  %12226 = vmatpush3.bf16.msra.mxu1 %v13323_v59 }
 0x5fd   : > { %v6713_v62 = vadd.f32 %v11664_v36, %v6641_v50  ;;  %v11667_v11 = vadd.f32 %v11666_v24, %v11665_v37  ;;  %12227 = vmatprep.subr.bf16.mxu1 %v13400_v20  ;;  %v17984_v36 = vld [vmem:[#allocation25_spill] sm:$0xff] }
 0x5ff   : > { %v6716_v26 = vadd.f32 %v11667_v11, %v17979_v30  ;;  %v16509_v9 = vadd.f32 %v16090_v63, %v6713_v62  ;;  %v13325_v63 = vld [vmem:[%s17706_s6 + $0x90] sm:$0xff]  }
 0x600   : > { %12228 = vmatpush3.bf16.msra.mxu1 %v13325_v63 }
 0x601   : > { %v11668_v48 = vpop.f32.mrb[152].mxu1  ;;  %v16513_v54 = vadd.f32 %v16092_v21, %v6716_v26  ;;  %12229 = vmatprep.subr.bf16.mxu1 %v13400_v20 }
 0x602   : > { %v11669_v31 = vpop.f32.mrb[153].mxu1 }
 0x603   : > { %v11670_v47 = vadd.f32 %v11669_v31, %v11668_v48  ;;  %v11671_v18 = vpop.f32.mrb[154].mxu1 }
 0x604   : > { %v11672_v21 = vpop.f32.mrb[155].mxu1  ;;  %12230 = vmatpush3.bf16.msra.mxu1 %v13326_v57 }
 0x605   : > { %v6721_v55 = vadd.f32 %v11670_v47, %v6649_v22  ;;  %v11673_v4 = vadd.f32 %v11672_v21, %v11671_v18  ;;  %12231 = vmatprep.subr.bf16.mxu1 %v13400_v20  ;;  %v13329_v21 = vld [vmem:[%s17706_s6 + $0x70] sm:$0xff]  }
 0x607   : > { %v6724_v60 = vadd.f32 %v11673_v4, %v17981_v3  ;;  %v6793_v13 = vadd.f32 %v16115_v34, %v6721_v55 }
 0x609   : > { %v11674_v35 = vpop.f32.mrb[156].mxu1  ;;  %v16535_v52 = vadd.f32 %v16117_v8, %v6724_v60  ;;  %v13327_v8 = vld [vmem:[%s17706_s6 + $0x68] sm:$0xff]   ;;  %v13332_v60 = vld [vmem:[%s17706_s6 + $0xb0] sm:$0xff]  }
 0x60a   : > { %v11675_v16 = vpop.f32.mrb[157].mxu1  ;;  %12194 = vmatpush3.bf16.msra.mxu0 %v13327_v8 }
 0x60b   : > { %v11676_v29 = vadd.f32 %v11675_v16, %v11674_v35  ;;  %v11677_v14 = vpop.f32.mrb[158].mxu1  ;;  %12195 = vmatprep.subr.bf16.mxu0 %v13400_v20 }
 0x60c   : > { %v11678_v34 = vpop.f32.mrb[159].mxu1 }
 0x60d   : > { %v6729_v33 = vadd.f32 %v11676_v29, %v17982_v12  ;;  %v11679_v45 = vadd.f32 %v11678_v34, %v11677_v14 }
 0x60e   : > { %12196 = vmatpush3.bf16.msra.mxu0 %v13329_v21 }
 0x60f   : > { %v6732_v51 = vadd.f32 %v11679_v45, %v17983_v43  ;;  %v16549_v41 = vadd.f32 %v16143_v1, %v6729_v33  ;;  %12197 = vmatprep.subr.bf16.mxu0 %v13400_v20 }
 0x611   : > { %v11680_v53 = vpop.f32.mrb[160].mxu1  ;;  %v16552_v10 = vadd.f32 %v16147_v42, %v6732_v51 }
 0x612   : > { %v11681_v19 = vpop.f32.mrb[161].mxu1 }
 0x613   : > { %v11682_v58 = vadd.f32 %v11681_v19, %v11680_v53  ;;  %v11683_v15 = vpop.f32.mrb[162].mxu1 }
 0x614   : > { %v11684_v50 = vpop.f32.mrb[163].mxu1 }
 0x615   : > { %v6737_v37 = vadd.f32 %v11682_v58, %v17984_v36 }
 0x617   : > { %v16557_v44 = vadd.f32 %v16172_v46, %v6737_v37 }
 0x619   : > { %v11748_v24 = vpop.f32.mrb[164].mxu1 }
 0x61a   : > { %v11749_v23 = vpop.f32.mrb[165].mxu1 }
 0x61b   : > { %v11750_v1 = vadd.f32 %v11749_v23, %v11748_v24  ;;  %v11751_v62 = vpop.f32.mrb[166].mxu1 }
 0x61c   : > { %v11752_v11 = vpop.f32.mrb[167].mxu1 }
 0x61d   : > { %v6849_v42 = vadd.f32 %v11750_v1, %v16486_v7  ;;  %v11753_v25 = vadd.f32 %v11752_v11, %v11751_v62 }
 0x61f   : > { %v6852_v59 = vadd.f32 %v11753_v25, %v16489_v2  ;;  %v16562_v30 = vadd.f32 %v16428_v49, %v6849_v42  ;;  %v13328_v49 = vld [vmem:[%s17706_s6 + $0xa0] sm:$0xff]  }
 0x620   : > { %12232 = vmatpush3.bf16.msra.mxu1 %v13328_v49 }
 0x621   : > { %v11754_v26 = vpop.f32.mrb[168].mxu1  ;;  %v16565_v48 = vadd.f32 %v16430_v17, %v6852_v59  ;;  %12233 = vmatprep.subr.bf16.mxu1 %v13400_v20 }
 0x622   : > { %v11755_v27 = vpop.f32.mrb[169].mxu1 }
 0x623   : > { %v11756_v46 = vadd.f32 %v11755_v27, %v11754_v26  ;;  %v11757_v31 = vpop.f32.mrb[170].mxu1 }
 0x624   : > { %v11758_v63 = vpop.f32.mrb[171].mxu1 }
 0x625   : > { %v6857_v56 = vadd.f32 %v11756_v46, %v16509_v9  ;;  %v11759_v22 = vadd.f32 %v11758_v63, %v11757_v31 }
 0x627   : > { %v6860_v47 = vadd.f32 %v11759_v22, %v16513_v54  ;;  %v16570_v7 = vadd.f32 %v16440_v61, %v6857_v56  ;;  %v13330_v61 = vld [vmem:[%s17706_s6 + $0xa8] sm:$0xff]  }
 0x628   : > { %12234 = vmatpush3.bf16.msra.mxu1 %v13330_v61 }
 0x629   : > { %v11760_v2 = vpop.f32.mrb[172].mxu1  ;;  %v6932_v17 = vadd.f32 %v16442_v0, %v6860_v47  ;;  %v13331_v0 = vld [vmem:[%s17706_s6 + $0x78] sm:$0xff]   ;;  %12235 = vmatprep.subr.bf16.mxu1 %v13400_v20 }
 0x62a   : > { %v11761_v18 = vpop.f32.mrb[173].mxu1  ;;  %12198 = vmatpush3.bf16.msra.mxu0 %v13331_v0 }
 0x62b   : > { %v11762_v9 = vadd.f32 %v11761_v18, %v11760_v2  ;;  %v11763_v55 = vpop.f32.mrb[174].mxu1  ;;  %12203 = vmatprep.subr.bf16.mxu0 %v13400_v20 }
 0x62c   : > { %v11764_v54 = vpop.f32.mrb[175].mxu1  ;;  %12236 = vmatpush3.bf16.msra.mxu1 %v13332_v60 }
 0x62d   : > { %v6865_v4 = vadd.f32 %v11762_v9, %v6793_v13  ;;  %v11765_v39 = vadd.f32 %v11764_v54, %v11763_v55  ;;  %12237 = vmatprep.subr.bf16.mxu1 %v13400_v20 }
 0x62f   : > { %v6868_v57 = vadd.f32 %v11765_v39, %v16535_v52  ;;  %v6937_v3 = vadd.f32 %v16447_v28, %v6865_v4  ;;  %v13334_v52 = vld [vmem:[%s17706_s6 + $0xb8] sm:$0xff]  }
 0x630   : > { %12238 = vmatpush3.bf16.msra.mxu1 %v13334_v52 }
 0x631   : > { %v11766_v13 = vpop.f32.mrb[176].mxu1  ;;  %v6940_v35 = vadd.f32 %v16449_v38, %v6868_v57  ;;  %12263 = vmatprep.subr.bf16.mxu1 %v13400_v20 }
 0x632   : > { %v11767_v5 = vpop.f32.mrb[177].mxu1 }
 0x633   : > { %v11768_v16 = vadd.f32 %v11767_v5, %v11766_v13  ;;  %v11769_v29 = vpop.f32.mrb[178].mxu1 }
 0x634   : > { %v11770_v28 = vpop.f32.mrb[179].mxu1 }
 0x635   : > { %v6873_v38 = vadd.f32 %v11768_v16, %v16549_v41  ;;  %v11771_v14 = vadd.f32 %v11770_v28, %v11769_v29 }
 0x637   : > { %v6876_v34 = vadd.f32 %v11771_v14, %v16552_v10  ;;  %v6945_v12 = vadd.f32 %v16453_v40, %v6873_v38 }
 0x639   : > { %v11772_v33 = vpop.f32.mrb[180].mxu1  ;;  %v6948_v45 = vadd.f32 %v16455_v6, %v6876_v34 }
 0x63a   : > { %v11773_v8 = vpop.f32.mrb[181].mxu1 }
 0x63b   : > { %v11774_v43 = vadd.f32 %v11773_v8, %v11772_v33  ;;  %v11775_v51 = vpop.f32.mrb[182].mxu1 }
 0x63c   : > { %v11776_v53 = vpop.f32.mrb[183].mxu1 }
 0x63d   : > { %v6881_v19 = vadd.f32 %v11774_v43, %v16557_v44 }
 0x63f   : > { %v6953_v58 = vadd.f32 %v16462_v32, %v6881_v19 }
 0x641   : > { %v11840_v41 = vpop.f32.mrb[184].mxu1 }
 0x642   : > { %v11841_v15 = vpop.f32.mrb[185].mxu1 }
 0x643   : > { %v11842_v50 = vadd.f32 %v11841_v15, %v11840_v41  ;;  %v11843_v36 = vpop.f32.mrb[186].mxu1 }
 0x644   : > { %v11844_v10 = vpop.f32.mrb[187].mxu1 }
 0x645   : > { %v6993_v40 = vadd.f32 %v11842_v50, %v16562_v30  ;;  %v11845_v37 = vadd.f32 %v11844_v10, %v11843_v36 }
 0x647   : > { %v6996_v24 = vadd.f32 %v11845_v37, %v16565_v48 }
 0x649   : > { %v11846_v23 = vpop.f32.mrb[188].mxu1 }
 0x64a   : > { %v11847_v6 = vpop.f32.mrb[189].mxu1 }
 0x64b   : > { %v11848_v1 = vadd.f32 %v11847_v6, %v11846_v23  ;;  %v11849_v62 = vpop.f32.mrb[190].mxu1 }
 0x64c   : > { %v11850_v11 = vpop.f32.mrb[191].mxu1 }
 0x64d   : > { %v7001_v42 = vadd.f32 %v11848_v1, %v16570_v7  ;;  %v11851_v44 = vadd.f32 %v11850_v11, %v11849_v62 }
 0x64f   : > { %v7004_v25 = vadd.f32 %v11851_v44, %v6932_v17 }
 0x651   : > { %v11852_v32 = vpop.f32.mrb[192].mxu1 }
 0x652   : > { %v11853_v59 = vpop.f32.mrb[193].mxu1 }
 0x653   : > { %v11854_v26 = vadd.f32 %v11853_v59, %v11852_v32  ;;  %v11855_v27 = vpop.f32.mrb[194].mxu1 }
 0x654   : > { %v11856_v46 = vpop.f32.mrb[195].mxu1 }
 0x655   : > { %v7009_v31 = vadd.f32 %v11854_v26, %v6937_v3  ;;  %v11857_v63 = vadd.f32 %v11856_v46, %v11855_v27 }
 0x657   : > { %v7012_v30 = vadd.f32 %v11857_v63, %v6940_v35  ;;  %v11886_v56 = vpop.f32.mrb[172].mxu0 }
 0x658   : > { %v11887_v22 = vpop.f32.mrb[173].mxu0 }
 0x659   : > { %v11888_v48 = vadd.f32 %v11887_v22, %v11886_v56  ;;  %v11858_v47 = vpop.f32.mrb[196].mxu1  ;;  %v11889_v49 = vpop.f32.mrb[174].mxu0  ;;  %v13333_v56 = vld [vmem:[%s17706_s6] sm:$0xff]  }
 0x65a   : > { %v11859_v2 = vpop.f32.mrb[197].mxu1  ;;  %v11890_v18 = vpop.f32.mrb[175].mxu0 }
 0x65b   : > { %v7065_v21 = vadd.f32 %v11888_v48, %v6993_v40  ;;  %v11860_v9 = vadd.f32 %v11859_v2, %v11858_v47  ;;  %v11891_v7 = vadd.f32 %v11890_v18, %v11889_v49  ;;  %v11861_v55 = vpop.f32.mrb[198].mxu1 }
 0x65c   : > { %v11862_v17 = vpop.f32.mrb[199].mxu1 }
 0x65d   : > { %v7017_v54 = vadd.f32 %v11860_v9, %v6945_v12  ;;  %v7068_v61 = vadd.f32 %v11891_v7, %v6996_v24  ;;  %v11863_v4 = vadd.f32 %v11862_v17, %v11861_v55  ;;  %v13336_v55 = vld [vmem:[%s17706_s6 + $0x100] sm:$0xff]  }
 0x65f   : > { %v7020_v39 = vadd.f32 %v11863_v4, %v6948_v45  ;;  %v11892_v0 = vpop.f32.mrb[176].mxu0  ;;  %v13337_v4 = vld [vmem:[%s17706_s6 + $0x10] sm:$0xff]  }
 0x660   : > { %v11893_v57 = vpop.f32.mrb[177].mxu0 }
 0x661   : > { %v11894_v3 = vadd.f32 %v11893_v57, %v11892_v0  ;;  %v11864_v60 = vpop.f32.mrb[200].mxu1  ;;  %v11895_v13 = vpop.f32.mrb[178].mxu0 }
 0x662   : > { %v11865_v35 = vpop.f32.mrb[201].mxu1  ;;  %v11896_v5 = vpop.f32.mrb[179].mxu0 }
 0x663   : > { %v7073_v16 = vadd.f32 %v11894_v3, %v7001_v42  ;;  %v11866_v29 = vadd.f32 %v11865_v35, %v11864_v60  ;;  %v11897_v28 = vadd.f32 %v11896_v5, %v11895_v13  ;;  %v11867_v52 = vpop.f32.mrb[202].mxu1  ;;  %v13338_v3 = vld [vmem:[%s17706_s6 + $0x108] sm:$0xff]   ;;  %v13339_v35 = vld [vmem:[%s17706_s6 + $0x18] sm:$0xff]  }
 0x664   : > { %v11868_v38 = vpop.f32.mrb[203].mxu1  ;;  %v13341_v52 = vld [vmem:[%s17706_s6 + $0x20] sm:$0xff]  }
 0x665   : > { %v7025_v14 = vadd.f32 %v11866_v29, %v6953_v58  ;;  %v7076_v34 = vadd.f32 %v11897_v28, %v7004_v25 }
 0x667   : > { %v11898_v33 = vpop.f32.mrb[180].mxu0 }
 0x668   : > { %v11899_v8 = vpop.f32.mrb[181].mxu0 }
 0x669   : > { %v11900_v12 = vadd.f32 %v11899_v8, %v11898_v33  ;;  %v11901_v43 = vpop.f32.mrb[182].mxu0  ;;  %v13342_v33 = vld [vmem:[%s17706_s6 + $0x118] sm:$0xff]  }
 0x66a   : > { %v11902_v51 = vpop.f32.mrb[183].mxu0 }
 0x66b   : > { %v7081_v45 = vadd.f32 %v11900_v12, %v7009_v31  ;;  %v11903_v53 = vadd.f32 %v11902_v51, %v11901_v43  ;;  %v13343_v43 = vld [vmem:[%s17706_s6 + $0x28] sm:$0xff]  }
 0x66d   : > { %v7084_v19 = vadd.f32 %v11903_v53, %v7012_v30 }
 0x66f   : > { %v11904_v41 = vpop.f32.mrb[184].mxu0 }
 0x670   : > { %v11905_v15 = vpop.f32.mrb[185].mxu0 }
 0x671   : > { %v11906_v50 = vadd.f32 %v11905_v15, %v11904_v41  ;;  %v11907_v36 = vpop.f32.mrb[186].mxu0  ;;  %v13345_v41 = vld [vmem:[%s17706_s6 + $0x30] sm:$0xff]  }
 0x672   : > { %v11908_v10 = vpop.f32.mrb[187].mxu0 }
 0x673   : > { %v16613_v40 = vadd.f32 %v11906_v50, %v7017_v54  ;;  %v11909_v37 = vadd.f32 %v11908_v10, %v11907_v36  ;;  %v13346_v10 = vld [vmem:[%s17706_s6 + $0x128] sm:$0xff]  }
 0x675   : > { %v16615_v24 = vadd.f32 %v11909_v37, %v7020_v39  ;;  %v13347_v37 = vld [vmem:[%s17706_s6 + $0x38] sm:$0xff]  }
 0x677   : > { %v11910_v58 = vpop.f32.mrb[188].mxu0 }
 0x678   : > { %v11911_v23 = vpop.f32.mrb[189].mxu0 }
 0x679   : > { %v11912_v6 = vadd.f32 %v11911_v23, %v11910_v58  ;;  %v11913_v1 = vpop.f32.mrb[190].mxu0  ;;  %v13348_v58 = vld [vmem:[%s17706_s6 + $0x130] sm:$0xff]   ;;  %v13349_v23 = vld [vmem:[%s17706_s6 + $0xc0] sm:$0xff]  }
 0x67a   : > { %v11914_v62 = vpop.f32.mrb[191].mxu0  ;;  %v13350_v1 = vld [vmem:[%s17706_s6 + $0x138] sm:$0xff]  }
 0x67b   : > { %v16617_v11 = vadd.f32 %v11912_v6, %v7025_v14 }
 0x6a7   : > { %v11932_v42 = vpop.f32.mrb[204].mxu1 }
 0x6a8   : > { %v11933_v44 = vpop.f32.mrb[205].mxu1 }
 0x6a9   : > { %v11934_v25 = vadd.f32 %v11933_v44, %v11932_v42  ;;  %v11935_v32 = vpop.f32.mrb[206].mxu1  ;;  %v13352_v42 = vld [vmem:[%s17706_s6 + $0x180] sm:$0xff]  }
 0x6aa   : > { %v11936_v59 = vpop.f32.mrb[207].mxu1 }
 0x6ab   : > { %v16619_v26 = vadd.f32 %v11934_v25, %v7065_v21  ;;  %v11937_v27 = vadd.f32 %v11936_v59, %v11935_v32  ;;  %v13335_v21 = vld [vmem:[%s17706_s6 + $0x8] sm:$0xff]   ;;  %v13353_v25 = vld [vmem:[%s17706_s6 + $0xd0] sm:$0xff]   ;;  %v13355_v59 = vld [vmem:[%s17706_s6 + $0xd8] sm:$0xff]  }
 0x6ac   : > { %v13354_v32 = vld [vmem:[%s17706_s6 + $0x188] sm:$0xff]  }
 0x6ad   : > { %v7140_v46 = vadd.f32 %v11937_v27, %v7068_v61  ;;  %v13357_v27 = vld [vmem:[%s17706_s6 + $0xe0] sm:$0xff]  }
 0x6af   : > { %v7175_v31 = vmax.f32 %v7140_v46, 0.0  ;;  %v11938_v63 = vpop.f32.mrb[208].mxu1  ;;  %v13358_v46 = vld [vmem:[%s17706_s6 + $0x198] sm:$0xff]  }
 0x6b0   : > { %v11939_v30 = vpop.f32.mrb[209].mxu1 }
 0x6b1   : > { %v7200_v22 = vpack.c.bf16 %v7175_v31, %v7175_v31  ;;  %v11940_v48 = vadd.f32 %v11939_v30, %v11938_v63  ;;  %v11941_v47 = vpop.f32.mrb[210].mxu1  ;;  %v13359_v31 = vld [vmem:[%s17706_s6 + $0xe8] sm:$0xff]   ;;  %v13360_v63 = vld [vmem:[%s17706_s6 + $0x1a0] sm:$0xff]   ;;  %v13361_v30 = vld [vmem:[%s17706_s6 + $0xf0] sm:$0xff]  }
 0x6b2   : > { %v11942_v49 = vpop.f32.mrb[211].mxu1 }
 0x6b3   : > { %v7145_v2 = vadd.f32 %v11940_v48, %v7073_v16  ;;  %v11943_v18 = vadd.f32 %v11942_v49, %v11941_v47  ;;  %12200 = vmatmul.mubr.bf16.vlgmr.msra.gmra.mrb[192].mxu0 %v7200_v22  ;;  %v13340_v16 = vld [vmem:[%s17706_s6 + $0x110] sm:$0xff]   ;;  %v13363_v22 = vld [vmem:[%s17706_s6 + $0xf8] sm:$0xff]   ;;  %v13365_v49 = vld [vmem:[%s17706_s6 + $0x140] sm:$0xff]  }
 0x6b4   : > { %12204 = vmatpush3.bf16.msra.mxu0 %v13333_v56  ;;  %12219 = vmatprep.mubr.msk.bf16.mxu0 %vm13401_vm0, %v13400_v20  ;;  %v13362_v56 = vld [vmem:[%s17706_s6 + $0x1a8] sm:$0xff]   ;;  %v13364_v47 = vld [vmem:[%s17706_s6 + $0x1b0] sm:$0xff]  }
 0x6b5   : > { %v7176_v9 = vmax.f32 %v7145_v2, 0.0  ;;  %v16629_v7 = vadd.f32 %v11943_v18, %v7076_v34  ;;  %12205 = vmatprep.subr.bf16.mxu0 %v13400_v20  ;;  %v13366_v18 = vld [vmem:[%s17706_s6 + $0x1b8] sm:$0xff]  }
 0x6b7   : > { %v7394_v17 = vpack.c.bf16 %v7176_v9, %v7176_v9  ;;  %v11944_v54 = vpop.f32.mrb[212].mxu1  ;;  %v7177_v48 = vmax.f32 %v16629_v7, 0.0  ;;  %v13367_v9 = vld [vmem:[%s17706_s6 + $0x148] sm:$0xff]   ;;  %v13368_v7 = vld [vmem:[%s17706_s6 + $0x200] sm:$0xff]  }
 0x6b8   : > { %12206 = vmatpush3.bf16.msra.mxu0 %v13335_v21  ;;  %v11945_v61 = vpop.f32.mrb[213].mxu1 }
 0x6b9   : > { %v11946_v39 = vadd.f32 %v11945_v61, %v11944_v54  ;;  %v11947_v0 = vpop.f32.mrb[214].mxu1  ;;  %12240 = vmatmul.mubr.bf16.vlgmr.msra.gmra.mrb[224].mxu1 %v7394_v17  ;;  %12207 = vmatprep.subr.bf16.mxu0 %v13400_v20  ;;  %v7501_v2 = vpack.c.bf16 %v7177_v48, %v7177_v48  ;;  %v13369_v17 = vld [vmem:[%s17706_s6 + $0x150] sm:$0xff]   ;;  %v13370_v54 = vld [vmem:[%s17706_s6 + $0x208] sm:$0xff]   ;;  %v13371_v61 = vld [vmem:[%s17706_s6 + $0x158] sm:$0xff]  }
 0x6ba   : > { %12264 = vmatpush3.bf16.msra.mxu1 %v13336_v55  ;;  %v11948_v57 = vpop.f32.mrb[215].mxu1  ;;  %12279 = vmatprep.mubr.msk.bf16.mxu1 %vm13401_vm0, %v13400_v20  ;;  %v8195_v48 = vld [vmem:[%s17708_s8 + $0x158] sm:$0xff] }
 0x6bb   : > { %v16644_v60 = vadd.f32 %v11946_v39, %v7081_v45  ;;  %v11949_v13 = vadd.f32 %v11948_v57, %v11947_v0  ;;  %12265 = vmatprep.subr.bf16.mxu1 %v13400_v20  ;;  %v13344_v45 = vld [vmem:[%s17706_s6 + $0x120] sm:$0xff]   ;;  %v13374_v0 = vld [vmem:[%s17706_s6 + $0x218] sm:$0xff]   ;;  %v13375_v57 = vld [vmem:[%s17706_s6 + $0x168] sm:$0xff]  }
 0x6bc   : > { %12208 = vmatpush3.bf16.msra.mxu0 %v13337_v4  ;;  %v13372_v4 = vld [vmem:[%s17706_s6 + $0x210] sm:$0xff]   ;;  %v13373_v39 = vld [vmem:[%s17706_s6 + $0x160] sm:$0xff]  }
 0x6bd   : > { %v16650_v5 = vadd.f32 %v11949_v13, %v7084_v19  ;;  %12209 = vmatprep.subr.bf16.mxu0 %v13400_v20  ;;  %v7178_v62 = vmax.f32 %v16644_v60, 0.0  ;;  %v13377_v60 = vld [vmem:[%s17706_s6 + $0x170] sm:$0xff]   ;;  %v13378_v13 = vld [vmem:[%s17706_s6 + $0x228] sm:$0xff]  }
 0x6be   : > { %12266 = vmatpush3.bf16.msra.mxu1 %v13338_v3  ;;  %v13376_v3 = vld [vmem:[%s17706_s6 + $0x220] sm:$0xff]  }
 0x6bf   : > { %v11950_v29 = vpop.f32.mrb[216].mxu1  ;;  %12267 = vmatprep.subr.bf16.mxu1 %v13400_v20  ;;  %v7608_v44 = vpack.c.bf16 %v7178_v62, %v7178_v62  ;;  %v8169_v62 = vld [vmem:[%s17708_s8 + $0x88] sm:$0xff] }
 0x6c0   : > { %12210 = vmatpush3.bf16.msra.mxu0 %v13339_v35  ;;  %v11951_v28 = vpop.f32.mrb[217].mxu1  ;;  %v13379_v35 = vld [vmem:[%s17706_s6 + $0x178] sm:$0xff]  }
 0x6c1   : > { %v11952_v38 = vadd.f32 %v11951_v28, %v11950_v29  ;;  %v11953_v14 = vpop.f32.mrb[218].mxu1  ;;  %12211 = vmatprep.subr.bf16.mxu0 %v13400_v20  ;;  %v13380_v29 = vld [vmem:[%s17706_s6 + $0x230] sm:$0xff]   ;;  %v13381_v28 = vld [vmem:[%s17706_s6 + $0x1c0] sm:$0xff]  }
 0x6c2   : > { %12268 = vmatpush3.bf16.msra.mxu1 %v13340_v16  ;;  %v11954_v34 = vpop.f32.mrb[219].mxu1  ;;  %v7179_v16 = vmax.f32 %v16650_v5, 0.0  ;;  %v13382_v5 = vld [vmem:[%s17706_s6 + $0x238] sm:$0xff]  }
 0x6c3   : > { %v16665_v8 = vadd.f32 %v11952_v38, %v16613_v40  ;;  %v11955_v12 = vadd.f32 %v11954_v34, %v11953_v14  ;;  %12269 = vmatprep.subr.bf16.mxu1 %v13400_v20  ;;  %v13383_v14 = vld [vmem:[%s17706_s6 + $0x1c8] sm:$0xff]  }
 0x6c4   : > { %12212 = vmatpush3.bf16.msra.mxu0 %v13341_v52  ;;  %v7715_v52 = vpack.c.bf16 %v7179_v16, %v7179_v16  ;;  %v8217_v16 = vld [vmem:[%s17708_s8 + $0x208] sm:$0xff] }
 0x6c5   : > { %v16672_v51 = vadd.f32 %v11955_v12, %v16615_v24  ;;  %12213 = vmatprep.subr.bf16.mxu0 %v13400_v20  ;;  %v7174_v24 = vmax.f32 %v16619_v26, 0.0  ;;  %v13356_v26 = vld [vmem:[%s17706_s6 + $0x190] sm:$0xff]   ;;  %v7180_v21 = vmax.f32 %v16665_v8, 0.0  ;;  %v13385_v8 = vld [vmem:[%s17706_s6 + $0x1d8] sm:$0xff]   ;;  %v13386_v12 = vld [vmem:[%s17706_s6 + $0x1e0] sm:$0xff]  }
 0x6c6   : > { %12270 = vmatpush3.bf16.msra.mxu1 %v13342_v33  ;;  %v13384_v33 = vld [vmem:[%s17706_s6 + $0x1d0] sm:$0xff]  }
 0x6c7   : > { %v11956_v53 = vpop.f32.mrb[220].mxu1  ;;  %12271 = vmatprep.subr.bf16.mxu1 %v13400_v20  ;;  %v7183_v6 = vpack.c.bf16 %v7174_v24, %v7174_v24  ;;  %v7822_v55 = vpack.c.bf16 %v7180_v21, %v7180_v21  ;;  %v8186_v21 = vld [vmem:[%s17708_s8 + $0x110] sm:$0xff] }
 0x6c8   : > { %12214 = vmatpush3.bf16.msra.mxu0 %v13343_v43  ;;  %v11957_v19 = vpop.f32.mrb[221].mxu1  ;;  %v13387_v43 = vld [vmem:[%s17706_s6 + $0x1e8] sm:$0xff]  }
 0x6c9   : > { %v11958_v15 = vadd.f32 %v11957_v19, %v11956_v53  ;;  %v11959_v50 = vpop.f32.mrb[222].mxu1  ;;  %12215 = vmatprep.subr.bf16.mxu0 %v13400_v20  ;;  %v13389_v53 = vld [vmem:[%s17706_s6 + $0x1f8] sm:$0xff]   ;;  %v7181_v19 = vmax.f32 %v16672_v51, 0.0 }
 0x6ca   : > { %12272 = vmatpush3.bf16.msra.mxu1 %v13344_v45  ;;  %v11960_v36 = vpop.f32.mrb[223].mxu1  ;;  %v13388_v45 = vld [vmem:[%s17706_s6 + $0x1f0] sm:$0xff]   ;;  %v8161_v50 = vld [vmem:[%s17708_s8 + $0x48] sm:$0xff] }
 0x6cb   : > { %v16687_v40 = vadd.f32 %v11958_v15, %v16617_v11  ;;  %12273 = vmatprep.subr.bf16.mxu1 %v13400_v20  ;;  %v13351_v11 = vld [vmem:[%s17706_s6 + $0xc8] sm:$0xff]   ;;  %v8155_v36 = vld [vmem:[%s17708_s8 + $0x18] sm:$0xff] }
 0x6cc   : > { %12216 = vmatpush3.bf16.msra.mxu0 %v13345_v41  ;;  %v7929_v41 = vpack.c.bf16 %v7181_v19, %v7181_v19  ;;  %v8153_v15 = vld [vmem:[%s17708_s8 + $0x8] sm:$0xff]  ;;  %v8243_v19 = vld [vmem:[%s17708_s8 + $0x2d8] sm:$0xff] }
 0x6cd   : > { %12217 = vmatprep.subr.bf16.mxu0 %v13400_v20  ;;  %v7182_v38 = vmax.f32 %v16687_v40, 0.0  ;;  %v12363_v51 = vpack.c.bf16 %v8161_v50, %v8153_v15  ;;  %v8152_v40 = vld [vmem:[%s17708_s8] sm:$0xff] }
 0x6ce   : > { %12274 = vmatpush3.bf16.msra.mxu1 %v13346_v10  ;;  %v8163_v10 = vld [vmem:[%s17708_s8 + $0x58] sm:$0xff] }
 0x6cf   : > { %12275 = vmatprep.subr.bf16.mxu1 %v13400_v20  ;;  %v8036_v34 = vpack.c.bf16 %v7182_v38, %v7182_v38  ;;  %v12395_v24 = vpack.c.bf16 %v8163_v10, %v8155_v36  ;;  %v8227_v38 = vld [vmem:[%s17708_s8 + $0x258] sm:$0xff]  ;;  %v8232_v36 = vld [vmem:[%s17708_s8 + $0x280] sm:$0xff] }
 0x6d0   : > { %12218 = vmatpush3.bf16.msra.mxu0 %v13347_v37  ;;  %v8160_v37 = vld [vmem:[%s17708_s8 + $0x40] sm:$0xff] }
 0x6d1   : > { %12243 = vmatprep.subr.bf16.mxu0 %v13400_v20 }
 0x6d2   : > { %12276 = vmatpush3.bf16.msra.mxu1 %v13348_v58  ;;  %v12365_v58 = vpack.c.bf16 %v8160_v37, %v8152_v40  ;;  %v8234_v40 = vld [vmem:[%s17708_s8 + $0x290] sm:$0xff] }
 0x6d3   : > { %12220 = vmatmul.mubr.bf16.vlgmr.msra.gmra.mrb[196].mxu0 %v7183_v6  ;;  %12277 = vmatprep.subr.bf16.mxu1 %v13400_v20  ;;  %v8162_v6 = vld [vmem:[%s17708_s8 + $0x50] sm:$0xff] }
 0x6d4   : > { %12244 = vmatpush3.bf16.msra.mxu0 %v13349_v23  ;;  %12259 = vmatprep.mubr.msk.bf16.mxu0 %vm13401_vm0, %v13400_v20  ;;  %v8154_v23 = vld [vmem:[%s17708_s8 + $0x10] sm:$0xff] }
 0x6d5   : > { %12245 = vmatprep.subr.bf16.mxu0 %v13400_v20  ;;  %v8242_v37 = vld [vmem:[%s17708_s8 + $0x2d0] sm:$0xff] }
 0x6d6   : > { %12278 = vmatpush3.bf16.msra.mxu1 %v13350_v1  ;;  %v12397_v1 = vpack.c.bf16 %v8162_v6, %v8154_v23  ;;  %v8249_v23 = vld [vmem:[%s17708_s8 + $0x308] sm:$0xff] }
 0x6d7   : > { %12303 = vmatprep.subr.bf16.mxu1 %v13400_v20  ;;  %v8257_v6 = vld [vmem:[%s17708_s8 + $0x348] sm:$0xff] }
 0x6d8   : > { %12246 = vmatpush3.bf16.msra.mxu0 %v13351_v11  ;;  %v8177_v11 = vld [vmem:[%s17708_s8 + $0xc8] sm:$0xff] }
 0x6d9   : > { %12280 = vmatmul.mubr.bf16.vlgmr.msra.gmra.mrb[228].mxu1 %v7608_v44  ;;  %12247 = vmatprep.subr.bf16.mxu0 %v13400_v20  ;;  %v12367_v44 = vpack.c.bf16 %v8177_v11, %v8169_v62  ;;  %v12387_v62 = vpack.c.bf16 %v8257_v6, %v8249_v23  ;;  %v8259_v11 = vld [vmem:[%s17708_s8 + $0x358] sm:$0xff] }
 0x6da   : > { %12304 = vmatpush3.bf16.msra.mxu1 %v13352_v42  ;;  %12319 = vmatprep.mubr.msk.bf16.mxu1 %vm13401_vm0, %v13400_v20  ;;  %v8171_v42 = vld [vmem:[%s17708_s8 + $0x98] sm:$0xff] }
 0x6db   : > { %12305 = vmatprep.subr.bf16.mxu1 %v13400_v20 }
 0x6dc   : > { %12248 = vmatpush3.bf16.msra.mxu0 %v13353_v25  ;;  %v8179_v25 = vld [vmem:[%s17708_s8 + $0xd8] sm:$0xff] }
 0x6dd   : > { %12249 = vmatprep.subr.bf16.mxu0 %v13400_v20 }
 0x6de   : > { %12306 = vmatpush3.bf16.msra.mxu1 %v13354_v32  ;;  %v8168_v32 = vld [vmem:[%s17708_s8 + $0x80] sm:$0xff] }
 0x6df   : > { %12307 = vmatprep.subr.bf16.mxu1 %v13400_v20 }
 0x6e0   : > { %12250 = vmatpush3.bf16.msra.mxu0 %v13355_v59  ;;  %v8176_v59 = vld [vmem:[%s17708_s8 + $0xc0] sm:$0xff] }
 0x6e1   : > { %12251 = vmatprep.subr.bf16.mxu0 %v13400_v20 }
 0x6e2   : > { %12308 = vmatpush3.bf16.msra.mxu1 %v13356_v26  ;;  %v12399_v26 = vpack.c.bf16 %v8179_v25, %v8171_v42  ;;  %v8248_v42 = vld [vmem:[%s17708_s8 + $0x300] sm:$0xff] }
 0x6e3   : > { %12309 = vmatprep.subr.bf16.mxu1 %v13400_v20 }
 0x6e4   : > { %12252 = vmatpush3.bf16.msra.mxu0 %v13357_v27  ;;  %v12369_v27 = vpack.c.bf16 %v8176_v59, %v8168_v32  ;;  %v8250_v59 = vld [vmem:[%s17708_s8 + $0x310] sm:$0xff] }
 0x6e5   : > { %12253 = vmatprep.subr.bf16.mxu0 %v13400_v20 }
 0x6e6   : > { %12310 = vmatpush3.bf16.msra.mxu1 %v13358_v46  ;;  %v8170_v46 = vld [vmem:[%s17708_s8 + $0x90] sm:$0xff] }
 0x6e7   : > { %12311 = vmatprep.subr.bf16.mxu1 %v13400_v20 }
 0x6e8   : > { %12254 = vmatpush3.bf16.msra.mxu0 %v13359_v31  ;;  %v8178_v31 = vld [vmem:[%s17708_s8 + $0xd0] sm:$0xff] }
 0x6e9   : > { %12255 = vmatprep.subr.bf16.mxu0 %v13400_v20 }
 0x6ea   : > { %12312 = vmatpush3.bf16.msra.mxu1 %v13360_v63  ;;  %v8185_v63 = vld [vmem:[%s17708_s8 + $0x108] sm:$0xff] }
 0x6eb   : > { %12313 = vmatprep.subr.bf16.mxu1 %v13400_v20 }
 0x6ec   : > { %12256 = vmatpush3.bf16.msra.mxu0 %v13361_v30  ;;  %v12401_v30 = vpack.c.bf16 %v8178_v31, %v8170_v46 }
 0x6ed   : > { %12257 = vmatprep.subr.bf16.mxu0 %v13400_v20 }
 0x6ee   : > { %12314 = vmatpush3.bf16.msra.mxu1 %v13362_v56  ;;  %v8193_v56 = vld [vmem:[%s17708_s8 + $0x148] sm:$0xff] }
 0x6ef   : > { %12315 = vmatprep.subr.bf16.mxu1 %v13400_v20 }
 0x6f0   : > { %12258 = vmatpush3.bf16.msra.mxu0 %v13363_v22  ;;  %v8187_v22 = vld [vmem:[%s17708_s8 + $0x118] sm:$0xff] }
 0x6f1   : > { %12283 = vmatprep.subr.bf16.mxu0 %v13400_v20 }
 0x6f2   : > { %12316 = vmatpush3.bf16.msra.mxu1 %v13364_v47  ;;  %v12371_v47 = vpack.c.bf16 %v8193_v56, %v8185_v63  ;;  %v8265_v63 = vld [vmem:[%s17708_s8 + $0x388] sm:$0xff]  ;;  %v8267_v56 = vld [vmem:[%s17708_s8 + $0x398] sm:$0xff] }
 0x6f3   : > { %12260 = vmatmul.mubr.bf16.vlgmr.msra.gmra.mrb[200].mxu0 %v7501_v2  ;;  %12317 = vmatprep.subr.bf16.mxu1 %v13400_v20  ;;  %v8184_v2 = vld [vmem:[%s17708_s8 + $0x100] sm:$0xff] }
 0x6f4   : > { %12284 = vmatpush3.bf16.msra.mxu0 %v13365_v49  ;;  %12299 = vmatprep.mubr.msk.bf16.mxu0 %vm13401_vm0, %v13400_v20  ;;  %v12403_v49 = vpack.c.bf16 %v8195_v48, %v8187_v22 }
 0x6f5   : > { %12285 = vmatprep.subr.bf16.mxu0 %v13400_v20 }
 0x6f6   : > { %12318 = vmatpush3.bf16.msra.mxu1 %v13366_v18  ;;  %v8192_v18 = vld [vmem:[%s17708_s8 + $0x140] sm:$0xff] }
 0x6f7   : > { %12343 = vmatprep.subr.bf16.mxu1 %v13400_v20 }
 0x6f8   : > { %12286 = vmatpush3.bf16.msra.mxu0 %v13367_v9  ;;  %v12373_v9 = vpack.c.bf16 %v8192_v18, %v8184_v2  ;;  %v8272_v2 = vld [vmem:[%s17708_s8 + $0x3c0] sm:$0xff] }
 0x6f9   : > { %12320 = vmatmul.mubr.bf16.vlgmr.msra.gmra.mrb[232].mxu1 %v7822_v55  ;;  %12287 = vmatprep.subr.bf16.mxu0 %v13400_v20  ;;  %v8201_v55 = vld [vmem:[%s17708_s8 + $0x188] sm:$0xff] }
 0x6fa   : > { %12344 = vmatpush3.bf16.msra.mxu1 %v13368_v7  ;;  %12359 = vmatprep.mubr.msk.bf16.mxu1 %vm13401_vm0, %v13400_v20  ;;  %v8194_v7 = vld [vmem:[%s17708_s8 + $0x150] sm:$0xff] }
 0x6fb   : > { %12345 = vmatprep.subr.bf16.mxu1 %v13400_v20 }
 0x6fc   : > { %12288 = vmatpush3.bf16.msra.mxu0 %v13369_v17  ;;  %v8209_v17 = vld [vmem:[%s17708_s8 + $0x1c8] sm:$0xff] }
 0x6fd   : > { %12289 = vmatprep.subr.bf16.mxu0 %v13400_v20 }
 0x6fe   : > { %12346 = vmatpush3.bf16.msra.mxu1 %v13370_v54  ;;  %v12405_v54 = vpack.c.bf16 %v8194_v7, %v8186_v21  ;;  %v8266_v7 = vld [vmem:[%s17708_s8 + $0x390] sm:$0xff] }
 0x6ff   : > { %12347 = vmatprep.subr.bf16.mxu1 %v13400_v20 }
 0x700   : > { %12290 = vmatpush3.bf16.msra.mxu0 %v13371_v61  ;;  %v12375_v61 = vpack.c.bf16 %v8209_v17, %v8201_v55  ;;  %v8274_v55 = vld [vmem:[%s17708_s8 + $0x3d0] sm:$0xff] }
 0x701   : > { %12291 = vmatprep.subr.bf16.mxu0 %v13400_v20  ;;  %v12425_v17 = vpack.c.bf16 %v8274_v55, %v8266_v7 }
 0x702   : > { %12348 = vmatpush3.bf16.msra.mxu1 %v13372_v4  ;;  %v8203_v4 = vld [vmem:[%s17708_s8 + $0x198] sm:$0xff] }
 0x703   : > { %12349 = vmatprep.subr.bf16.mxu1 %v13400_v20 }
 0x704   : > { %12292 = vmatpush3.bf16.msra.mxu0 %v13373_v39  ;;  %v8211_v39 = vld [vmem:[%s17708_s8 + $0x1d8] sm:$0xff] }
 0x705   : > { %12293 = vmatprep.subr.bf16.mxu0 %v13400_v20 }
 0x706   : > { %12350 = vmatpush3.bf16.msra.mxu1 %v13374_v0  ;;  %v8200_v0 = vld [vmem:[%s17708_s8 + $0x180] sm:$0xff] }
 0x707   : > { %12351 = vmatprep.subr.bf16.mxu1 %v13400_v20 }
 0x708   : > { %12294 = vmatpush3.bf16.msra.mxu0 %v13375_v57  ;;  %v12407_v57 = vpack.c.bf16 %v8211_v39, %v8203_v4  ;;  %v8159_v4 = vld [vmem:[%s17708_s8 + $0x38] sm:$0xff] }
 0x709   : > { %12295 = vmatprep.subr.bf16.mxu0 %v13400_v20 }
 0x70a   : > { %12352 = vmatpush3.bf16.msra.mxu1 %v13376_v3  ;;  %v8208_v3 = vld [vmem:[%s17708_s8 + $0x1c0] sm:$0xff] }
 0x70b   : > { %12353 = vmatprep.subr.bf16.mxu1 %v13400_v20 }
 0x70c   : > { %12296 = vmatpush3.bf16.msra.mxu0 %v13377_v60  ;;  %v8202_v60 = vld [vmem:[%s17708_s8 + $0x190] sm:$0xff] }
 0x70d   : > { %12297 = vmatprep.subr.bf16.mxu0 %v13400_v20 }
 0x70e   : > { %12354 = vmatpush3.bf16.msra.mxu1 %v13378_v13  ;;  %v8210_v13 = vld [vmem:[%s17708_s8 + $0x1d0] sm:$0xff] }
 0x70f   : > { %12355 = vmatprep.subr.bf16.mxu1 %v13400_v20 }
 0x710   : > { %12298 = vmatpush3.bf16.msra.mxu0 %v13379_v35  ;;  %v12377_v35 = vpack.c.bf16 %v8208_v3, %v8200_v0 }
 0x711   : > { %12323 = vmatprep.subr.bf16.mxu0 %v13400_v20 }
 0x712   : > { %12356 = vmatpush3.bf16.msra.mxu1 %v13380_v29  ;;  %v8225_v29 = vld [vmem:[%s17708_s8 + $0x248] sm:$0xff] }
 0x713   : > { %12300 = vmatmul.mubr.bf16.vlgmr.msra.gmra.mrb[204].mxu0 %v7715_v52  ;;  %12357 = vmatprep.subr.bf16.mxu1 %v13400_v20  ;;  %v12409_v52 = vpack.c.bf16 %v8210_v13, %v8202_v60 }
 0x714   : > { %12324 = vmatpush3.bf16.msra.mxu0 %v13381_v28  ;;  %12339 = vmatprep.mubr.msk.bf16.mxu0 %vm13401_vm0, %v13400_v20  ;;  %v8219_v28 = vld [vmem:[%s17708_s8 + $0x218] sm:$0xff] }
 0x715   : > { %12325 = vmatprep.subr.bf16.mxu0 %v13400_v20 }
 0x716   : > { %12358 = vmatpush3.bf16.msra.mxu1 %v13382_v5  ;;  %v12379_v5 = vpack.c.bf16 %v8225_v29, %v8217_v16 }
 0x717   : > { %12396 = vmatprep.subr.bf16.mxu1 %v12395_v24 }
 0x718   : > { %12326 = vmatpush3.bf16.msra.mxu0 %v13383_v14  ;;  %v8216_v14 = vld [vmem:[%s17708_s8 + $0x200] sm:$0xff] }
 0x719   : > { %12360 = vmatmul.mubr.bf16.vlgmr.msra.gmra.mrb[236].mxu1 %v8036_v34  ;;  %12327 = vmatprep.subr.bf16.mxu0 %v13400_v20  ;;  %v8224_v34 = vld [vmem:[%s17708_s8 + $0x240] sm:$0xff] }
 0x71a   : > { %8457 = vmatprep.mubr.f32.mxu1 %v13400_v20  ;;  %12398 = vmatpush1.bf16.msra.mxu1 %v12397_v1  ;;  %v8251_v1 = vld [vmem:[%s17708_s8 + $0x318] sm:$0xff] }
 0x71b   : > { %12400 = vmatprep.subr.bf16.mxu1 %v12399_v26  ;;  %v12419_v25 = vpack.c.bf16 %v8259_v11, %v8251_v1  ;;  %v8258_v26 = vld [vmem:[%s17708_s8 + $0x350] sm:$0xff] }
 0x71c   : > { %12328 = vmatpush3.bf16.msra.mxu0 %v13384_v33  ;;  %v12411_v33 = vpack.c.bf16 %v8227_v38, %v8219_v28  ;;  %v12421_v46 = vpack.c.bf16 %v8258_v26, %v8250_v59  ;;  %v8156_v26 = vld [vmem:[%s17708_s8 + $0x20] sm:$0xff] }
 0x71d   : > { %12329 = vmatprep.subr.bf16.mxu0 %v13400_v20 }
 0x71e   : > { %12402 = vmatpush1.bf16.msra.mxu1 %v12401_v30  ;;  %v8273_v30 = vld [vmem:[%s17708_s8 + $0x3c8] sm:$0xff] }
 0x71f   : > { %12404 = vmatprep.subr.bf16.mxu1 %v12403_v49  ;;  %v12391_v48 = vpack.c.bf16 %v8273_v30, %v8265_v63  ;;  %v8264_v49 = vld [vmem:[%s17708_s8 + $0x380] sm:$0xff]  ;;  %v8158_v63 = vld [vmem:[%s17708_s8 + $0x30] sm:$0xff] }
 0x720   : > { %12330 = vmatpush3.bf16.msra.mxu0 %v13385_v8  ;;  %v8218_v8 = vld [vmem:[%s17708_s8 + $0x210] sm:$0xff] }
 0x721   : > { %12331 = vmatprep.subr.bf16.mxu0 %v13400_v20  ;;  %v8166_v30 = vld [vmem:[%s17708_s8 + $0x70] sm:$0xff] }
 0x722   : > { %12406 = vmatpush1.bf16.msra.mxu1 %v12405_v54  ;;  %v8157_v54 = vld [vmem:[%s17708_s8 + $0x28] sm:$0xff] }
 0x723   : > { %12408 = vmatprep.subr.bf16.mxu1 %v12407_v57  ;;  %v8167_v57 = vld [vmem:[%s17708_s8 + $0x78] sm:$0xff] }
 0x724   : > { %12332 = vmatpush3.bf16.msra.mxu0 %v13386_v12  ;;  %v8226_v12 = vld [vmem:[%s17708_s8 + $0x250] sm:$0xff]  ;;  %v12459_v60 = vpack.c.bf16 %v8167_v57, %v8159_v4  ;;  %v8189_v4 = vld [vmem:[%s17708_s8 + $0x128] sm:$0xff]  ;;  %v8199_v57 = vld [vmem:[%s17708_s8 + $0x178] sm:$0xff] }
 0x725   : > { %12333 = vmatprep.subr.bf16.mxu0 %v13400_v20  ;;  %v12413_v15 = vpack.c.bf16 %v8226_v12, %v8218_v8 }
 0x726   : > { %12410 = vmatpush1.bf16.msra.mxu1 %v12409_v52 }
 0x727   : > { %12412 = vmatprep.subr.bf16.mxu1 %v12411_v33 }
 0x728   : > { %12334 = vmatpush3.bf16.msra.mxu0 %v13387_v43  ;;  %v8233_v43 = vld [vmem:[%s17708_s8 + $0x288] sm:$0xff] }
 0x729   : > { %12335 = vmatprep.subr.bf16.mxu0 %v13400_v20 }
 0x72a   : > { %12414 = vmatpush1.bf16.msra.mxu1 %v12413_v15 }
 0x72c   : > { %12336 = vmatpush3.bf16.msra.mxu0 %v13388_v45  ;;  %v8241_v45 = vld [vmem:[%s17708_s8 + $0x2c8] sm:$0xff] }
 0x72d   : > { %12337 = vmatprep.subr.bf16.mxu0 %v13400_v20  ;;  %v12383_v50 = vpack.c.bf16 %v8241_v45, %v8233_v43 }
 0x730   : > { %12338 = vmatpush3.bf16.msra.mxu0 %v13389_v53  ;;  %v8235_v53 = vld [vmem:[%s17708_s8 + $0x298] sm:$0xff] }
 0x731   : > { %12364 = vmatprep.subr.bf16.mxu0 %v12363_v51  ;;  %v8240_v51 = vld [vmem:[%s17708_s8 + $0x2c0] sm:$0xff]  ;;  %v12415_v10 = vpack.c.bf16 %v8243_v19, %v8235_v53 }
 0x732   : > { %v12385_v24 = vpack.c.bf16 %v8240_v51, %v8232_v36 }
 0x733   : > { %12340 = vmatmul.mubr.bf16.vlgmr.msra.gmra.mrb[208].mxu0 %v7929_v41  ;;  %v12381_v41 = vpack.c.bf16 %v8224_v34, %v8216_v14  ;;  %12416 = vmatprep.subr.bf16.mxu1 %v12415_v10 }
 0x734   : > { %8386 = vmatprep.mubr.f32.mxu0 %v13400_v20  ;;  %12366 = vmatpush1.bf16.msra.mxu0 %v12365_v58  ;;  %v12417_v58 = vpack.c.bf16 %v8242_v37, %v8234_v40 }
 0x735   : > { %12368 = vmatprep.subr.bf16.mxu0 %v12367_v44  ;;  %v8256_v44 = vld [vmem:[%s17708_s8 + $0x340] sm:$0xff] }
 0x736   : > { %12418 = vmatpush1.bf16.msra.mxu1 %v12417_v58  ;;  %v12389_v32 = vpack.c.bf16 %v8256_v44, %v8248_v42 }
 0x737   : > { %12420 = vmatprep.subr.bf16.mxu1 %v12419_v25 }
 0x738   : > { %12370 = vmatpush1.bf16.msra.mxu0 %v12369_v27 }
 0x739   : > { %12372 = vmatprep.subr.bf16.mxu0 %v12371_v47  ;;  %v8275_v47 = vld [vmem:[%s17708_s8 + $0x3d8] sm:$0xff] }
 0x73a   : > { %12422 = vmatpush1.bf16.msra.mxu1 %v12421_v46  ;;  %v12423_v21 = vpack.c.bf16 %v8275_v47, %v8267_v56  ;;  %v8173_v56 = vld [vmem:[%s17708_s8 + $0xa8] sm:$0xff]  ;;  %v8183_v47 = vld [vmem:[%s17708_s8 + $0xf8] sm:$0xff] }
 0x73c   : > { %12374 = vmatpush1.bf16.msra.mxu0 %v12373_v9  ;;  %v12393_v9 = vpack.c.bf16 %v8272_v2, %v8264_v49  ;;  %12424 = vmatprep.subr.bf16.mxu1 %v12423_v21  ;;  %v8172_v21 = vld [vmem:[%s17708_s8 + $0xa0] sm:$0xff] }
 0x73d   : > { %12376 = vmatprep.subr.bf16.mxu0 %v12375_v61  ;;  %v8165_v61 = vld [vmem:[%s17708_s8 + $0x68] sm:$0xff] }
 0x73e   : > { %12426 = vmatpush1.bf16.msra.mxu1 %v12425_v17  ;;  %v12427_v0 = vpack.c.bf16 %v8165_v61, %v8157_v54  ;;  %v8174_v54 = vld [vmem:[%s17708_s8 + $0xb0] sm:$0xff] }
 0x73f   : > { %12460 = vmatprep.subr.bf16.mxu1 %v12459_v60  ;;  %v8182_v61 = vld [vmem:[%s17708_s8 + $0xf0] sm:$0xff] }
 0x740   : > { %12378 = vmatpush1.bf16.msra.mxu0 %v12377_v35  ;;  %v12465_v60 = vpack.c.bf16 %v8182_v61, %v8174_v54  ;;  %v8277_v54 = vld [vmem:[%s17708_s8 + $0x3e8] sm:$0xff]  ;;  %v8271_v61 = vld [vmem:[%s17708_s8 + $0x3b8] sm:$0xff] }
 0x741   : > { %12380 = vmatprep.subr.bf16.mxu0 %v12379_v5 }
 0x744   : > { %12382 = vmatpush1.bf16.msra.mxu0 %v12381_v41 }
 0x745   : > { %12384 = vmatprep.subr.bf16.mxu0 %v12383_v50 }
 0x748   : > { %12386 = vmatpush1.bf16.msra.mxu0 %v12385_v24 }
 0x749   : > { %12388 = vmatprep.subr.bf16.mxu0 %v12387_v62 }
 0x74c   : > { %12390 = vmatpush1.bf16.msra.mxu0 %v12389_v32  ;;  %v10115_v32 = vld [vmem:[%s17707_s7] ss:$0 sm:$0xff] }
 0x74d   : > { %12392 = vmatprep.subr.bf16.mxu0 %v12391_v48  ;;  %v8175_v48 = vld [vmem:[%s17708_s8 + $0xb8] sm:$0xff] }
 0x74e   : > { %v12463_v17 = vpack.c.bf16 %v8183_v47, %v8175_v48 }
 0x750   : > { %12394 = vmatpush1.bf16.msra.mxu0 %v12393_v9  ;;  %v8180_v9 = vld [vmem:[%s17708_s8 + $0xe0] sm:$0xff] }
 0x751   : > { %12428 = vmatprep.subr.bf16.mxu0 %v12427_v0  ;;  %v8191_v0 = vld [vmem:[%s17708_s8 + $0x138] sm:$0xff] }
 0x786   : > { %v7300_v27 = vpop.f32.mrb[192].mxu0 }
 0x787   : > { %v12201_v31 = vpop.f32.mrb[193].mxu0 }
 0x788   : > { %v7303_v22 = vpop.f32.mrb[194].mxu0 }
 0x789   : > { %v12202_v18 = vpop.f32.mrb[195].mxu0  ;;  %v8181_v22 = vld [vmem:[%s17708_s8 + $0xe8] sm:$0xff] }
 0x78a   : > { %v12461_v18 = vpack.c.bf16 %v8166_v30, %v8158_v63  ;;  %v12431_v55 = vpack.c.bf16 %v8181_v22, %v8173_v56  ;;  %v8253_v63 = vld [vmem:[%s17708_s8 + $0x328] sm:$0xff]  ;;  %v8255_v56 = vld [vmem:[%s17708_s8 + $0x338] sm:$0xff] }
 0x78b   : > { %v8261_v30 = vld [vmem:[%s17708_s8 + $0x368] sm:$0xff]  ;;  %v8263_v22 = vld [vmem:[%s17708_s8 + $0x378] sm:$0xff] }
 0x78c   : > { %v7494_v39 = vpop.f32.mrb[224].mxu1 }
 0x78d   : > { %v12241_v3 = vpop.f32.mrb[225].mxu1 }
 0x78e   : > { %v7497_v13 = vpop.f32.mrb[226].mxu1  ;;  %v12433_v3 = vpack.c.bf16 %v8180_v9, %v8172_v21  ;;  %v12483_v21 = vpack.c.bf16 %v8263_v22, %v8255_v56  ;;  %v8254_v9 = vld [vmem:[%s17708_s8 + $0x330] sm:$0xff]  ;;  %v8621_v22 = vld [vmem:[%s17710_s10 + $0x38] sm:$0xff] }
 0x78f   : > { %v12242_v35 = vpop.f32.mrb[227].mxu1  ;;  %v8188_v13 = vld [vmem:[%s17708_s8 + $0x120] sm:$0xff]  ;;  %v8620_v56 = vld [vmem:[%s17710_s10 + $0x30] sm:$0xff] }
 0x790   : > { %v8196_v35 = vld [vmem:[%s17708_s8 + $0x160] sm:$0xff] }
 0x7a6   : > { %v7388_v16 = vpop.f32.mrb[196].mxu0 }
 0x7a7   : > { %v7389_v29 = vadd.f32 %v7388_v16, %v7300_v27  ;;  %v12221_v28 = vpop.f32.mrb[197].mxu0  ;;  %v8164_v27 = vld [vmem:[%s17708_s8 + $0x60] sm:$0xff] }
 0x7a8   : > { %v7391_v52 = vpop.f32.mrb[198].mxu0  ;;  %v12429_v2 = vpack.c.bf16 %v8164_v27, %v8156_v26  ;;  %v8190_v28 = vld [vmem:[%s17708_s8 + $0x130] sm:$0xff] }
 0x7a9   : > { %v12222_v5 = vpop.f32.mrb[199].mxu0  ;;  %v7500_v38 = vadd.f32 %v7494_v39, %v7389_v29  ;;  %v8197_v39 = vld [vmem:[%s17708_s8 + $0x168] sm:$0xff]  ;;  %v12467_v29 = vpack.c.bf16 %v8199_v57, %v8191_v0  ;;  %v8198_v52 = vld [vmem:[%s17708_s8 + $0x170] sm:$0xff]  ;;  %v8268_v57 = vld [vmem:[%s17708_s8 + $0x3a0] sm:$0xff] }
 0x7aa   : > { %v12435_v16 = vpack.c.bf16 %v8197_v39, %v8189_v4  ;;  %v8205_v5 = vld [vmem:[%s17708_s8 + $0x1a8] sm:$0xff]  ;;  %v8279_v4 = vld [vmem:[%s17708_s8 + $0x3f8] sm:$0xff] }
 0x7ac   : > { %v7708_v14 = vpop.f32.mrb[228].mxu1 }
 0x7ad   : > { %v12281_v34 = vpop.f32.mrb[229].mxu1 }
 0x7ae   : > { %v7711_v33 = vpop.f32.mrb[230].mxu1  ;;  %v8215_v34 = vld [vmem:[%s17708_s8 + $0x1f8] sm:$0xff] }
 0x7af   : > { %v12282_v8 = vpop.f32.mrb[231].mxu1  ;;  %v12437_v33 = vpack.c.bf16 %v8196_v35, %v8188_v13  ;;  %v12487_v13 = vpack.c.bf16 %v8279_v4, %v8271_v61  ;;  %v8270_v35 = vld [vmem:[%s17708_s8 + $0x3b0] sm:$0xff]  ;;  %v8622_v61 = vld [vmem:[%s17710_s10 + $0x40] sm:$0xff]  ;;  %v8623_v4 = vld [vmem:[%s17710_s10 + $0x48] sm:$0xff] }
 0x7b0   : > { %v12469_v8 = vpack.c.bf16 %v8198_v52, %v8190_v28  ;;  %v8631_v28 = vld [vmem:[%s17710_s10 + $0x88] sm:$0xff]  ;;  %v8662_v52 = vld [vmem:[%s17710_s10 + $0x180] sm:$0xff] }
 0x7c6   : > { %v7601_v12 = vpop.f32.mrb[200].mxu0 }
 0x7c7   : > { %v7607_v43 = vadd.f32 %v7601_v12, %v7500_v38  ;;  %v12261_v45 = vpop.f32.mrb[201].mxu0  ;;  %v8213_v38 = vld [vmem:[%s17708_s8 + $0x1e8] sm:$0xff]  ;;  %v8204_v12 = vld [vmem:[%s17708_s8 + $0x1a0] sm:$0xff] }
 0x7c8   : > { %v7604_v53 = vpop.f32.mrb[202].mxu0  ;;  %v12439_v45 = vpack.c.bf16 %v8213_v38, %v8205_v5  ;;  %v8663_v5 = vld [vmem:[%s17710_s10 + $0x188] sm:$0xff] }
 0x7c9   : > { %v12262_v19 = vpop.f32.mrb[203].mxu0  ;;  %v7714_v41 = vadd.f32 %v7708_v14, %v7607_v43  ;;  %v8207_v14 = vld [vmem:[%s17708_s8 + $0x1b8] sm:$0xff]  ;;  %v8212_v43 = vld [vmem:[%s17708_s8 + $0x1e0] sm:$0xff] }
 0x7ca   : > { %v12471_v53 = vpack.c.bf16 %v8215_v34, %v8207_v14  ;;  %v8214_v19 = vld [vmem:[%s17708_s8 + $0x1f0] sm:$0xff]  ;;  %v8614_v34 = vld [vmem:[%s17710_s10] sm:$0xff] }
 0x7cc   : > { %v7922_v15 = vpop.f32.mrb[232].mxu1 }
 0x7cd   : > { %v12321_v50 = vpop.f32.mrb[233].mxu1 }
 0x7ce   : > { %v7925_v36 = vpop.f32.mrb[234].mxu1  ;;  %v8223_v50 = vld [vmem:[%s17708_s8 + $0x238] sm:$0xff] }
 0x7cf   : > { %v12322_v51 = vpop.f32.mrb[235].mxu1  ;;  %v8231_v36 = vld [vmem:[%s17708_s8 + $0x278] sm:$0xff] }
 0x7d0   : > { %v12441_v51 = vpack.c.bf16 %v8212_v43, %v8204_v12  ;;  %v12523_v12 = vpack.c.bf16 %v8663_v5, %v8662_v52  ;;  %v8646_v43 = vld [vmem:[%s17710_s10 + $0x100] sm:$0xff]  ;;  %v8624_v52 = vld [vmem:[%s17710_s10 + $0x50] sm:$0xff]  ;;  %v8625_v5 = vld [vmem:[%s17710_s10 + $0x58] sm:$0xff] }
 0x7e6   : > { %v7815_v10 = vpop.f32.mrb[204].mxu0 }
 0x7e7   : > { %v7821_v40 = vadd.f32 %v7815_v10, %v7714_v41  ;;  %v12301_v37 = vpop.f32.mrb[205].mxu0  ;;  %v8221_v41 = vld [vmem:[%s17708_s8 + $0x228] sm:$0xff] }
 0x7e8   : > { %v7818_v24 = vpop.f32.mrb[206].mxu0  ;;  %v8228_v37 = vld [vmem:[%s17708_s8 + $0x260] sm:$0xff] }
 0x7e9   : > { %v12302_v58 = vpop.f32.mrb[207].mxu0  ;;  %v7928_v23 = vadd.f32 %v7922_v15, %v7821_v40  ;;  %v8229_v15 = vld [vmem:[%s17708_s8 + $0x268] sm:$0xff]  ;;  %v8220_v40 = vld [vmem:[%s17708_s8 + $0x220] sm:$0xff] }
 0x7ea   : > { %v12443_v24 = vpack.c.bf16 %v8229_v15, %v8221_v41  ;;  %v12475_v58 = vpack.c.bf16 %v8231_v36, %v8223_v50  ;;  %v8665_v41 = vld [vmem:[%s17710_s10 + $0x198] sm:$0xff]  ;;  %v8616_v36 = vld [vmem:[%s17710_s10 + $0x10] sm:$0xff] }
 0x7ec   : > { %v8136_v6 = vpop.f32.mrb[236].mxu1 }
 0x7ed   : > { %v12361_v1 = vpop.f32.mrb[237].mxu1 }
 0x7ee   : > { %v8139_v62 = vpop.f32.mrb[238].mxu1  ;;  %v8237_v1 = vld [vmem:[%s17708_s8 + $0x2a8] sm:$0xff] }
 0x7ef   : > { %v12362_v11 = vpop.f32.mrb[239].mxu1  ;;  %v8245_v62 = vld [vmem:[%s17708_s8 + $0x2e8] sm:$0xff] }
 0x7f0   : > { %v8239_v11 = vld [vmem:[%s17708_s8 + $0x2b8] sm:$0xff]  ;;  %v12447_v26 = vpack.c.bf16 %v8245_v62, %v8237_v1  ;;  %v8667_v1 = vld [vmem:[%s17710_s10 + $0x1a8] sm:$0xff] }
 0x806   : > { %v8029_v42 = vpop.f32.mrb[208].mxu0 }
 0x807   : > { %v8035_v44 = vadd.f32 %v8029_v42, %v7928_v23  ;;  %v12341_v25 = vpop.f32.mrb[209].mxu0  ;;  %v8222_v23 = vld [vmem:[%s17708_s8 + $0x230] sm:$0xff]  ;;  %v8247_v42 = vld [vmem:[%s17708_s8 + $0x2f8] sm:$0xff] }
 0x808   : > { %v8032_v59 = vpop.f32.mrb[210].mxu0  ;;  %v12479_v27 = vpack.c.bf16 %v8247_v42, %v8239_v11  ;;  %v8618_v42 = vld [vmem:[%s17710_s10 + $0x20] sm:$0xff] }
 0x809   : > { %v8142_v46 = vadd.f32 %v8136_v6, %v8035_v44  ;;  %v12342_v31 = vpop.f32.mrb[211].mxu0  ;;  %v8230_v6 = vld [vmem:[%s17708_s8 + $0x270] sm:$0xff]  ;;  %v12445_v44 = vpack.c.bf16 %v8228_v37, %v8220_v40  ;;  %v8244_v59 = vld [vmem:[%s17708_s8 + $0x2e0] sm:$0xff] }
 0x80a   : > { %v12477_v25 = vpack.c.bf16 %v8230_v6, %v8222_v23  ;;  %v8246_v31 = vld [vmem:[%s17708_s8 + $0x2f0] sm:$0xff]  ;;  %v8635_v23 = vld [vmem:[%s17710_s10 + $0xa8] sm:$0xff]  ;;  %v8666_v6 = vld [vmem:[%s17710_s10 + $0x1a0] sm:$0xff] }
 0x80b   : > { %v8150_v49 = vadd.f32 %v10115_v32, %v8142_v46  ;;  %v8236_v32 = vld [vmem:[%s17708_s8 + $0x2a0] sm:$0xff]  ;;  %v8238_v46 = vld [vmem:[%s17708_s8 + $0x2b0] sm:$0xff] }
 0x80c   : > { %v12449_v48 = vpack.c.bf16 %v8244_v59, %v8236_v32  ;;  %v12481_v47 = vpack.c.bf16 %v8246_v31, %v8238_v46  ;;  %v8648_v37 = vld [vmem:[%s17710_s10 + $0x110] sm:$0xff]  ;;  %v12531_v32 = vpack.c.bf16 %v8667_v1, %v8666_v6  ;;  %v8651_v59 = vld [vmem:[%s17710_s10 + $0x128] sm:$0xff]  ;;  %v8669_v31 = vld [vmem:[%s17710_s10 + $0x1b8] sm:$0xff] }
 0x80d   : > { %v17118_v7 = vmax.f32 %v8150_v49, 0.0  ;;  %v8252_v49 = vld [vmem:[%s17708_s8 + $0x320] sm:$0xff]  ;;  %v8668_v46 = vld [vmem:[%s17710_s10 + $0x1b0] sm:$0xff]  ;;  %v8677_v6 = vld [vmem:[%s17710_s10 + $0x1f8] sm:$0xff] }
 0x80e   : > { %v8628_v1 = vld [vmem:[%s17710_s10 + $0x70] sm:$0xff] }
 0x80f   : > { %8387 = vmatmul.mubr.f32.vlgmr.msra.gmra.mrb[212].mxu0 %v17118_v7  ;;  %8458 = vmatmul.mubr.f32.vlgmr.msra.gmra.mrb[240].mxu1 %v17118_v7 }
 0x810   : > { %12430 = vmatpush1.bf16.msra.mxu0 %v12429_v2  ;;  %12462 = vmatpush1.bf16.msra.mxu1 %v12461_v18  ;;  %v8260_v2 = vld [vmem:[%s17708_s8 + $0x360] sm:$0xff]  ;;  %v12451_v18 = vpack.c.bf16 %v8261_v30, %v8253_v63 }
 0x811   : > { %12432 = vmatprep.subr.bf16.mxu0 %v12431_v55  ;;  %12464 = vmatprep.subr.bf16.mxu1 %v12463_v17  ;;  %v8262_v55 = vld [vmem:[%s17708_s8 + $0x370] sm:$0xff]  ;;  %v8269_v17 = vld [vmem:[%s17708_s8 + $0x3a8] sm:$0xff]  ;;  %v12453_v39 = vpack.c.bf16 %v8260_v2, %v8252_v49  ;;  %v8653_v2 = vld [vmem:[%s17710_s10 + $0x138] sm:$0xff] }
 0x812   : > { %8528 = vmatprep.mubr.f32.mxu0 %v13400_v20  ;;  %8599 = vmatprep.mubr.f32.mxu1 %v13400_v20  ;;  %v8206_v20 = vld [vmem:[%s17708_s8 + $0x1b0] sm:$0xff]  ;;  %v12485_v0 = vpack.c.bf16 %v8262_v55, %v8254_v9  ;;  %v8670_v9 = vld [vmem:[%s17710_s10 + $0x1c0] sm:$0xff]  ;;  %v8671_v55 = vld [vmem:[%s17710_s10 + $0x1c8] sm:$0xff] }
 0x813   : > { %v12473_v10 = vpack.c.bf16 %v8214_v19, %v8206_v20  ;;  %v8633_v20 = vld [vmem:[%s17710_s10 + $0x98] sm:$0xff]  ;;  %v8664_v19 = vld [vmem:[%s17710_s10 + $0x190] sm:$0xff] }
 0x814   : > { %12434 = vmatpush1.bf16.msra.mxu0 %v12433_v3  ;;  %12466 = vmatpush1.bf16.msra.mxu1 %v12465_v60  ;;  %v8276_v3 = vld [vmem:[%s17708_s8 + $0x3e0] sm:$0xff]  ;;  %v12455_v60 = vpack.c.bf16 %v8277_v54, %v8269_v17  ;;  %v12527_v40 = vpack.c.bf16 %v8665_v41, %v8664_v19  ;;  %v8652_v49 = vld [vmem:[%s17710_s10 + $0x130] sm:$0xff]  ;;  %v12505_v17 = vpack.c.bf16 %v8621_v22, %v8620_v56 }
 0x815   : > { %12436 = vmatprep.subr.bf16.mxu0 %v12435_v16  ;;  %12468 = vmatprep.subr.bf16.mxu1 %v12467_v29  ;;  %v8278_v16 = vld [vmem:[%s17708_s8 + $0x3f0] sm:$0xff]  ;;  %v8630_v29 = vld [vmem:[%s17710_s10 + $0x80] sm:$0xff]  ;;  %v12457_v38 = vpack.c.bf16 %v8276_v3, %v8268_v57  ;;  %v12537_v54 = vpack.c.bf16 %v8653_v2, %v8652_v49  ;;  %v8655_v3 = vld [vmem:[%s17710_s10 + $0x148] sm:$0xff] }
 0x816   : > { %v12489_v14 = vpack.c.bf16 %v8278_v16, %v8270_v35  ;;  %v8654_v57 = vld [vmem:[%s17710_s10 + $0x140] sm:$0xff]  ;;  %v8672_v35 = vld [vmem:[%s17710_s10 + $0x1d0] sm:$0xff]  ;;  %v8673_v16 = vld [vmem:[%s17710_s10 + $0x1d8] sm:$0xff] }
 0x817   : > { %v8626_v19 = vld [vmem:[%s17710_s10 + $0x60] sm:$0xff] }
 0x818   : > { %12438 = vmatpush1.bf16.msra.mxu0 %v12437_v33  ;;  %12470 = vmatpush1.bf16.msra.mxu1 %v12469_v8  ;;  %v8615_v33 = vld [vmem:[%s17710_s10 + $0x8] sm:$0xff]  ;;  %v12491_v8 = vpack.c.bf16 %v8631_v28, %v8630_v29  ;;  %v12509_v29 = vpack.c.bf16 %v8623_v4, %v8622_v61  ;;  %v12541_v28 = vpack.c.bf16 %v8655_v3, %v8654_v57  ;;  %v8710_v3 = vld [vmem:[%s17710_s10 + $0x300] sm:$0xff] }
 0x819   : > { %12440 = vmatprep.subr.bf16.mxu0 %v12439_v45  ;;  %12472 = vmatprep.subr.bf16.mxu1 %v12471_v53  ;;  %v8647_v45 = vld [vmem:[%s17710_s10 + $0x108] sm:$0xff]  ;;  %v8632_v53 = vld [vmem:[%s17710_s10 + $0x90] sm:$0xff]  ;;  %v12493_v15 = vpack.c.bf16 %v8615_v33, %v8614_v34  ;;  %v8657_v33 = vld [vmem:[%s17710_s10 + $0x158] sm:$0xff] }
 0x81a   : > { %v12525_v50 = vpack.c.bf16 %v8647_v45, %v8646_v43  ;;  %v8656_v34 = vld [vmem:[%s17710_s10 + $0x150] sm:$0xff]  ;;  %v8674_v43 = vld [vmem:[%s17710_s10 + $0x1e0] sm:$0xff]  ;;  %v8675_v45 = vld [vmem:[%s17710_s10 + $0x1e8] sm:$0xff] }
 0x81b   : > { %v8679_v61 = vld [vmem:[%s17710_s10 + $0x208] sm:$0xff] }
 0x81c   : > { %12442 = vmatpush1.bf16.msra.mxu0 %v12441_v51  ;;  %12474 = vmatpush1.bf16.msra.mxu1 %v12473_v10  ;;  %v8617_v51 = vld [vmem:[%s17710_s10 + $0x18] sm:$0xff]  ;;  %v12495_v10 = vpack.c.bf16 %v8633_v20, %v8632_v53  ;;  %v12513_v53 = vpack.c.bf16 %v8625_v5, %v8624_v52  ;;  %v12545_v20 = vpack.c.bf16 %v8657_v33, %v8656_v34  ;;  %v8680_v33 = vld [vmem:[%s17710_s10 + $0x210] sm:$0xff] }
 0x81d   : > { %12444 = vmatprep.subr.bf16.mxu0 %v12443_v24  ;;  %12476 = vmatprep.subr.bf16.mxu1 %v12475_v58  ;;  %v8649_v24 = vld [vmem:[%s17710_s10 + $0x118] sm:$0xff]  ;;  %v8634_v58 = vld [vmem:[%s17710_s10 + $0xa0] sm:$0xff]  ;;  %v12497_v62 = vpack.c.bf16 %v8617_v51, %v8616_v36  ;;  %v8659_v51 = vld [vmem:[%s17710_s10 + $0x168] sm:$0xff] }
 0x81e   : > { %v12529_v11 = vpack.c.bf16 %v8649_v24, %v8648_v37  ;;  %v8658_v36 = vld [vmem:[%s17710_s10 + $0x160] sm:$0xff]  ;;  %v8644_v37 = vld [vmem:[%s17710_s10 + $0xf0] sm:$0xff]  ;;  %v8645_v24 = vld [vmem:[%s17710_s10 + $0xf8] sm:$0xff] }
 0x81f   : > { %v8729_v52 = vld [vmem:[%s17710_s10 + $0x398] sm:$0xff] }
 0x820   : > { %12446 = vmatpush1.bf16.msra.mxu0 %v12445_v44  ;;  %12478 = vmatpush1.bf16.msra.mxu1 %v12477_v25  ;;  %v8619_v44 = vld [vmem:[%s17710_s10 + $0x28] sm:$0xff]  ;;  %v12499_v25 = vpack.c.bf16 %v8635_v23, %v8634_v58  ;;  %v8676_v58 = vld [vmem:[%s17710_s10 + $0x1f0] sm:$0xff]  ;;  %v12519_v23 = vpack.c.bf16 %v8645_v24, %v8644_v37 }
 0x821   : > { %12448 = vmatprep.subr.bf16.mxu0 %v12447_v26  ;;  %12480 = vmatprep.subr.bf16.mxu1 %v12479_v27  ;;  %v8636_v26 = vld [vmem:[%s17710_s10 + $0xb0] sm:$0xff]  ;;  %v8637_v27 = vld [vmem:[%s17710_s10 + $0xb8] sm:$0xff]  ;;  %v12501_v63 = vpack.c.bf16 %v8619_v44, %v8618_v42  ;;  %v8683_v37 = vld [vmem:[%s17710_s10 + $0x228] sm:$0xff] }
 0x822   : > { %v8660_v44 = vld [vmem:[%s17710_s10 + $0x170] sm:$0xff] }
 0x824   : > { %12450 = vmatpush1.bf16.msra.mxu0 %v12449_v48  ;;  %12482 = vmatpush1.bf16.msra.mxu1 %v12481_v47  ;;  %v12503_v48 = vpack.c.bf16 %v8637_v27, %v8636_v26  ;;  %v12535_v47 = vpack.c.bf16 %v8669_v31, %v8668_v46  ;;  %v8726_v26 = vld [vmem:[%s17710_s10 + $0x380] sm:$0xff]  ;;  %v8727_v46 = vld [vmem:[%s17710_s10 + $0x388] sm:$0xff] }
 0x825   : > { %12452 = vmatprep.subr.bf16.mxu0 %v12451_v18  ;;  %12484 = vmatprep.subr.bf16.mxu1 %v12483_v21  ;;  %v8638_v18 = vld [vmem:[%s17710_s10 + $0xc0] sm:$0xff]  ;;  %v8639_v21 = vld [vmem:[%s17710_s10 + $0xc8] sm:$0xff]  ;;  %v12587_v31 = vpack.c.bf16 %v8727_v46, %v8726_v26  ;;  %v8717_v46 = vld [vmem:[%s17710_s10 + $0x338] sm:$0xff] }
 0x828   : > { %12454 = vmatpush1.bf16.msra.mxu0 %v12453_v39  ;;  %12486 = vmatpush1.bf16.msra.mxu1 %v12485_v0  ;;  %v12507_v39 = vpack.c.bf16 %v8639_v21, %v8638_v18  ;;  %v12539_v0 = vpack.c.bf16 %v8671_v55, %v8670_v9 }
 0x829   : > { %12456 = vmatprep.subr.bf16.mxu0 %v12455_v60  ;;  %12488 = vmatprep.subr.bf16.mxu1 %v12487_v13  ;;  %v8640_v60 = vld [vmem:[%s17710_s10 + $0xd0] sm:$0xff]  ;;  %v8641_v13 = vld [vmem:[%s17710_s10 + $0xd8] sm:$0xff] }
 0x82c   : > { %12458 = vmatpush1.bf16.msra.mxu0 %v12457_v38  ;;  %12490 = vmatpush1.bf16.msra.mxu1 %v12489_v14  ;;  %v12511_v38 = vpack.c.bf16 %v8641_v13, %v8640_v60  ;;  %v12543_v14 = vpack.c.bf16 %v8673_v16, %v8672_v35  ;;  %v8711_v60 = vld [vmem:[%s17710_s10 + $0x308] sm:$0xff]  ;;  %v8696_v13 = vld [vmem:[%s17710_s10 + $0x290] sm:$0xff] }
 0x82d   : > { %12492 = vmatprep.subr.bf16.mxu0 %v12491_v8  ;;  %12524 = vmatprep.subr.bf16.mxu1 %v12523_v12  ;;  %v8642_v8 = vld [vmem:[%s17710_s10 + $0xe0] sm:$0xff]  ;;  %v8643_v12 = vld [vmem:[%s17710_s10 + $0xe8] sm:$0xff]  ;;  %v12589_v34 = vpack.c.bf16 %v8711_v60, %v8710_v3  ;;  %v8688_v3 = vld [vmem:[%s17710_s10 + $0x250] sm:$0xff] }
 0x82e   : > { %v12515_v41 = vpack.c.bf16 %v8643_v12, %v8642_v8  ;;  %v8681_v8 = vld [vmem:[%s17710_s10 + $0x218] sm:$0xff] }
 0x82f   : > { %8529 = vmatmul.mubr.f32.vlgmr.msra.gmra.mrb[214].mxu0 %v17118_v7  ;;  %8600 = vmatmul.mubr.f32.vlgmr.msra.gmra.mrb[242].mxu1 %v17118_v7  ;;  %v8650_v7 = vld [vmem:[%s17710_s10 + $0x120] sm:$0xff]  ;;  %v8689_v60 = vld [vmem:[%s17710_s10 + $0x258] sm:$0xff] }
 0x830   : > { %12494 = vmatpush3.bf16.msra.mxu0 %v12493_v15  ;;  %12526 = vmatpush3.bf16.msra.mxu1 %v12525_v50  ;;  %v12533_v30 = vpack.c.bf16 %v8651_v59, %v8650_v7  ;;  %v12547_v15 = vpack.c.bf16 %v8675_v45, %v8674_v43  ;;  %v8627_v50 = vld [vmem:[%s17710_s10 + $0x68] sm:$0xff]  ;;  %v8694_v7 = vld [vmem:[%s17710_s10 + $0x280] sm:$0xff] }
 0x831   : > { %12496 = vmatprep.subr.bf16.mxu0 %v12495_v10  ;;  %12528 = vmatprep.subr.bf16.mxu1 %v12527_v40  ;;  %v12517_v10 = vpack.c.bf16 %v8627_v50, %v8626_v19  ;;  %v12549_v40 = vpack.c.bf16 %v8659_v51, %v8658_v36  ;;  %v8695_v59 = vld [vmem:[%s17710_s10 + $0x288] sm:$0xff]  ;;  %v8713_v19 = vld [vmem:[%s17710_s10 + $0x318] sm:$0xff]  ;;  %v8730_v50 = vld [vmem:[%s17710_s10 + $0x3a0] sm:$0xff]  ;;  %v12561_v51 = vpack.c.bf16 %v8681_v8, %v8680_v33 }
 0x832   : > { %v12555_v27 = vpack.c.bf16 %v8695_v59, %v8694_v7  ;;  %v8731_v36 = vld [vmem:[%s17710_s10 + $0x3a8] sm:$0xff]  ;;  %v8685_v7 = vld [vmem:[%s17710_s10 + $0x238] sm:$0xff]  ;;  %v8690_v8 = vld [vmem:[%s17710_s10 + $0x260] sm:$0xff] }
 0x834   : > { %12498 = vmatpush3.bf16.msra.mxu0 %v12497_v62  ;;  %12530 = vmatpush3.bf16.msra.mxu1 %v12529_v11  ;;  %v8629_v62 = vld [vmem:[%s17710_s10 + $0x78] sm:$0xff]  ;;  %v12551_v11 = vpack.c.bf16 %v8677_v6, %v8676_v58  ;;  %v12595_v58 = vpack.c.bf16 %v8731_v36, %v8730_v50  ;;  %v8715_v6 = vld [vmem:[%s17710_s10 + $0x328] sm:$0xff] }
 0x835   : > { %12500 = vmatprep.subr.bf16.mxu0 %v12499_v25  ;;  %12532 = vmatprep.subr.bf16.mxu1 %v12531_v32  ;;  %v12521_v42 = vpack.c.bf16 %v8629_v62, %v8628_v1  ;;  %v8661_v25 = vld [vmem:[%s17710_s10 + $0x178] sm:$0xff]  ;;  %v8700_v1 = vld [vmem:[%s17710_s10 + $0x2b0] sm:$0xff] }
 0x836   : > { %v12553_v32 = vpack.c.bf16 %v8661_v25, %v8660_v44  ;;  %v8701_v62 = vld [vmem:[%s17710_s10 + $0x2b8] sm:$0xff] }
 0x837   : > { %v12567_v59 = vpack.c.bf16 %v8701_v62, %v8700_v1  ;;  %v8709_v36 = vld [vmem:[%s17710_s10 + $0x2f8] sm:$0xff]  ;;  %v8724_v62 = vld [vmem:[%s17710_s10 + $0x370] sm:$0xff] }
 0x838   : > { %12502 = vmatpush3.bf16.msra.mxu0 %v12501_v63  ;;  %12534 = vmatpush3.bf16.msra.mxu1 %v12533_v30  ;;  %v8282_v63 = vlaneseq  ;;  %v8693_v1 = vld [vmem:[%s17710_s10 + $0x278] sm:$0xff] }
 0x839   : > { %12504 = vmatprep.subr.bf16.mxu0 %v12503_v48  ;;  %12536 = vmatprep.subr.bf16.mxu1 %v12535_v47  ;;  %v17487_v48 = vld [vmem:[%s17709_s9] sm:$0xff] }
 0x83a   : > { %v17480_v30 = vshrl.u32 %v8282_v63, 7  ;;  %v8703_v63 = vld [vmem:[%s17710_s10 + $0x2c8] sm:$0xff] }
 0x83c   : > { %12506 = vmatpush3.bf16.msra.mxu0 %v12505_v17  ;;  %12538 = vmatpush3.bf16.msra.mxu1 %v12537_v54  ;;  %v8284_v56 = vsub.s32 0, %v17480_v30  ;;  %v8292_v22 = vsub.s32 2, %v17480_v30  ;;  %v8288_v47 = vsub.s32 1, %v17480_v30  ;;  %v8296_v49 = vsub.s32 3, %v17480_v30  ;;  %v8678_v54 = vld [vmem:[%s17710_s10 + $0x200] sm:$0xff] }
 0x83d   : > { %12508 = vmatprep.subr.bf16.mxu0 %v12507_v39  ;;  %12540 = vmatprep.subr.bf16.mxu1 %v12539_v0  ;;  %v8300_v33 = vsub.s32 4, %v17480_v30  ;;  %v8312_v50 = vsub.s32 7, %v17480_v30 }
 0x83e   : > { %v8285_v2 = vrot.slane %v17487_v48, %v8284_v56  ;;  %v8293_v18 = vrot.slane %v17487_v48, %v8292_v22  ;;  %v8289_v21 = vrot.slane %v17487_v48, %v8288_v47  ;;  %v8297_v9 = vrot.slane %v17487_v48, %v8296_v49  ;;  %v8734_v56 = vld [vmem:[%s17710_s10 + $0x3c0] sm:$0xff]  ;;  %v8735_v22 = vld [vmem:[%s17710_s10 + $0x3c8] sm:$0xff] }
 0x840   : > { %12510 = vmatpush3.bf16.msra.mxu0 %v12509_v29  ;;  %12542 = vmatpush3.bf16.msra.mxu1 %v12541_v28  ;;  %v8697_v29 = vld [vmem:[%s17710_s10 + $0x298] sm:$0xff]  ;;  %v8728_v28 = vld [vmem:[%s17710_s10 + $0x390] sm:$0xff] }
 0x841   : > { %12512 = vmatprep.subr.bf16.mxu0 %v12511_v38  ;;  %12544 = vmatprep.subr.bf16.mxu1 %v12543_v14  ;;  %v12557_v14 = vpack.c.bf16 %v8679_v61, %v8678_v54  ;;  %v12559_v45 = vpack.c.bf16 %v8697_v29, %v8696_v13  ;;  %v8704_v54 = vld [vmem:[%s17710_s10 + $0x2d0] sm:$0xff]  ;;  %v8705_v61 = vld [vmem:[%s17710_s10 + $0x2d8] sm:$0xff] }
 0x842   : > { %v12575_v13 = vpack.c.bf16 %v8705_v61, %v8704_v54  ;;  %v8721_v29 = vld [vmem:[%s17710_s10 + $0x358] sm:$0xff] }
 0x844   : > { %12514 = vmatpush3.bf16.msra.mxu0 %v12513_v53  ;;  %12546 = vmatpush3.bf16.msra.mxu1 %v12545_v20  ;;  %v12591_v53 = vpack.c.bf16 %v8729_v52, %v8728_v28  ;;  %v8712_v20 = vld [vmem:[%s17710_s10 + $0x310] sm:$0xff]  ;;  %v8706_v28 = vld [vmem:[%s17710_s10 + $0x2e0] sm:$0xff]  ;;  %v8707_v52 = vld [vmem:[%s17710_s10 + $0x2e8] sm:$0xff] }
 0x845   : > { %12516 = vmatprep.subr.bf16.mxu0 %v12515_v41  ;;  %12548 = vmatprep.subr.bf16.mxu1 %v12547_v15  ;;  %v8698_v41 = vld [vmem:[%s17710_s10 + $0x2a0] sm:$0xff]  ;;  %v8699_v15 = vld [vmem:[%s17710_s10 + $0x2a8] sm:$0xff] }
 0x846   : > { %v12563_v24 = vpack.c.bf16 %v8699_v15, %v8698_v41  ;;  %v8708_v41 = vld [vmem:[%s17710_s10 + $0x2f0] sm:$0xff]  ;;  %v8304_v15 = vsub.s32 5, %v17480_v30 }
 0x848   : > { %12518 = vmatpush3.bf16.msra.mxu0 %v12517_v10  ;;  %12550 = vmatpush3.bf16.msra.mxu1 %v12549_v40  ;;  %v12593_v10 = vpack.c.bf16 %v8713_v19, %v8712_v20  ;;  %v8682_v40 = vld [vmem:[%s17710_s10 + $0x220] sm:$0xff]  ;;  %v8723_v19 = vld [vmem:[%s17710_s10 + $0x368] sm:$0xff] }
 0x849   : > { %12520 = vmatprep.subr.bf16.mxu0 %v12519_v23  ;;  %12552 = vmatprep.subr.bf16.mxu1 %v12551_v11  ;;  %v8714_v23 = vld [vmem:[%s17710_s10 + $0x320] sm:$0xff]  ;;  %v8732_v11 = vld [vmem:[%s17710_s10 + $0x3b0] sm:$0xff]  ;;  %v12565_v44 = vpack.c.bf16 %v8683_v37, %v8682_v40  ;;  %v8301_v40 = vrot.slane %v17487_v48, %v8300_v33 }
 0x84a   : > { %v12597_v25 = vpack.c.bf16 %v8715_v6, %v8714_v23  ;;  %v8722_v20 = vld [vmem:[%s17710_s10 + $0x360] sm:$0xff]  ;;  %v12583_v23 = vpack.c.bf16 %v8709_v36, %v8708_v41 }
 0x84c   : > { %12522 = vmatpush3.bf16.msra.mxu0 %v12521_v42  ;;  %12554 = vmatpush3.bf16.msra.mxu1 %v12553_v32  ;;  %v8733_v42 = vld [vmem:[%s17710_s10 + $0x3b8] sm:$0xff]  ;;  %v8684_v32 = vld [vmem:[%s17710_s10 + $0x230] sm:$0xff] }
 0x84d   : > { %12556 = vmatprep.subr.bf16.mxu0 %v12555_v27  ;;  %12588 = vmatprep.subr.bf16.mxu1 %v12587_v31  ;;  %v12599_v26 = vpack.c.bf16 %v8733_v42, %v8732_v11  ;;  %v8716_v27 = vld [vmem:[%s17710_s10 + $0x330] sm:$0xff]  ;;  %v8702_v31 = vld [vmem:[%s17710_s10 + $0x2c0] sm:$0xff]  ;;  %v12569_v47 = vpack.c.bf16 %v8685_v7, %v8684_v32  ;;  %v8725_v11 = vld [vmem:[%s17710_s10 + $0x378] sm:$0xff]  ;;  %v8305_v42 = vrot.slane %v17487_v48, %v8304_v15 }
 0x84e   : > { %v12601_v49 = vpack.c.bf16 %v8717_v46, %v8716_v27 }
 0x8e2   : > { %v8388_v55 = vpop.f32.mrb[212].mxu0  ;;  %v8459_v17 = vpop.f32.mrb[240].mxu1 }
 0x8e3   : > { %v8389_v4 = vadd.f32 %v8388_v55, %v8285_v2  ;;  %v8460_v39 = vadd.f32 %v8459_v17, %v8293_v18  ;;  %v8390_v0 = vpop.f32.mrb[213].mxu0  ;;  %v8461_v57 = vpop.f32.mrb[241].mxu1  ;;  %v8686_v2 = vld [vmem:[%s17710_s10 + $0x240] sm:$0xff]  ;;  %v8687_v18 = vld [vmem:[%s17710_s10 + $0x248] sm:$0xff] }
 0x8e4   : > { %v8391_v35 = vadd.f32 %v8390_v0, %v8289_v21  ;;  %v8462_v16 = vadd.f32 %v8461_v57, %v8297_v9  ;;  %v12571_v21 = vpack.c.bf16 %v8703_v63, %v8702_v31  ;;  %v12603_v9 = vpack.c.bf16 %v8735_v22, %v8734_v56  ;;  %v8718_v55 = vld [vmem:[%s17710_s10 + $0x340] sm:$0xff]  ;;  %v8719_v17 = vld [vmem:[%s17710_s10 + $0x348] sm:$0xff] }
 0x8e5   : > { %v8606_v12 = vmax.f32 %v8389_v4, 0.0  ;;  %v8608_v43 = vmax.f32 %v8460_v39, 0.0  ;;  %v8736_v4 = vld [vmem:[%s17710_s10 + $0x3d0] sm:$0xff]  ;;  %v8737_v39 = vld [vmem:[%s17710_s10 + $0x3d8] sm:$0xff]  ;;  %v12573_v0 = vpack.c.bf16 %v8687_v18, %v8686_v2  ;;  %v12605_v57 = vpack.c.bf16 %v8719_v17, %v8718_v55 }
 0x8e6   : > { %v8607_v5 = vmax.f32 %v8391_v35, 0.0  ;;  %v8609_v38 = vmax.f32 %v8462_v16, 0.0  ;;  %v12607_v35 = vpack.c.bf16 %v8737_v39, %v8736_v4  ;;  %v8720_v16 = vld [vmem:[%s17710_s10 + $0x350] sm:$0xff] }
 0x8e8   : > { %8813 = vmatprep.mubr.f32.mxu0 %v8607_v5  ;;  %8883 = vmatprep.mubr.f32.mxu1 %v8609_v38  ;;  %v8738_v5 = vld [vmem:[%s17710_s10 + $0x3e0] sm:$0xff]  ;;  %v8739_v38 = vld [vmem:[%s17710_s10 + $0x3e8] sm:$0xff] }
 0x8e9   : > { %8814 = vmatmul.mubr.f32.vlgmr.msra.gmra.mrb[216].mxu0 %v8606_v12  ;;  %8884 = vmatmul.mubr.f32.vlgmr.msra.gmra.mrb[244].mxu1 %v8608_v43  ;;  %v8691_v12 = vld [vmem:[%s17710_s10 + $0x268] sm:$0xff]  ;;  %v12579_v43 = vpack.c.bf16 %v8707_v52, %v8706_v28  ;;  %v10117_v52 = vld [vmem:[%s17713_s13] ss:$0 sm:$0xff] }
 0x8ea   : > { %12558 = vmatpush3.bf16.msra.mxu0 %v12557_v14  ;;  %12590 = vmatpush3.bf16.msra.mxu1 %v12589_v34  ;;  %v12577_v14 = vpack.c.bf16 %v8689_v60, %v8688_v3  ;;  %v12609_v34 = vpack.c.bf16 %v8721_v29, %v8720_v16  ;;  %v12581_v37 = vpack.c.bf16 %v8691_v12, %v8690_v8  ;;  %v10118_v16 = vld [vmem:[%s17712_s12] ss:$0 sm:$0xff] }
 0x8eb   : > { %12560 = vmatprep.subr.bf16.mxu0 %v12559_v45  ;;  %12592 = vmatprep.subr.bf16.mxu1 %v12591_v53  ;;  %v12611_v45 = vpack.c.bf16 %v8739_v38, %v8738_v5  ;;  %v8308_v53 = vsub.s32 6, %v17480_v30  ;;  %v8692_v30 = vld [vmem:[%s17710_s10 + $0x270] sm:$0xff] }
 0x8ec   : > { %v12585_v7 = vpack.c.bf16 %v8693_v1, %v8692_v30 }
 0x8ee   : > { %12562 = vmatpush3.bf16.msra.mxu0 %v12561_v51  ;;  %12594 = vmatpush3.bf16.msra.mxu1 %v12593_v10  ;;  %v8740_v51 = vld [vmem:[%s17710_s10 + $0x3f0] sm:$0xff]  ;;  %v8741_v10 = vld [vmem:[%s17710_s10 + $0x3f8] sm:$0xff] }
 0x8ef   : > { %12564 = vmatprep.subr.bf16.mxu0 %v12563_v24  ;;  %12596 = vmatprep.subr.bf16.mxu1 %v12595_v58  ;;  %v12613_v24 = vpack.c.bf16 %v8723_v19, %v8722_v20  ;;  %v8309_v58 = vrot.slane %v17487_v48, %v8308_v53  ;;  %v12615_v6 = vpack.c.bf16 %v8741_v10, %v8740_v51 }
 0x8f2   : > { %12566 = vmatpush3.bf16.msra.mxu0 %v12565_v44  ;;  %12598 = vmatpush3.bf16.msra.mxu1 %v12597_v25  ;;  %v8313_v44 = vrot.slane %v17487_v48, %v8312_v50 }
 0x8f3   : > { %12568 = vmatprep.subr.bf16.mxu0 %v12567_v59  ;;  %12600 = vmatprep.subr.bf16.mxu1 %v12599_v26  ;;  %v12617_v59 = vpack.c.bf16 %v8725_v11, %v8724_v62 }
 0x8f6   : > { %12570 = vmatpush3.bf16.msra.mxu0 %v12569_v47  ;;  %12602 = vmatpush3.bf16.msra.mxu1 %v12601_v49 }
 0x8f7   : > { %12572 = vmatprep.subr.bf16.mxu0 %v12571_v21  ;;  %12604 = vmatprep.subr.bf16.mxu1 %v12603_v9  ;;  %v10116_v21 = vld [vmem:[%s17711_s11] ss:$0 sm:$0xff] }
 0x8fa   : > { %12574 = vmatpush3.bf16.msra.mxu0 %v12573_v0  ;;  %12606 = vmatpush3.bf16.msra.mxu1 %v12605_v57 }
 0x8fb   : > { %12576 = vmatprep.subr.bf16.mxu0 %v12575_v13  ;;  %12608 = vmatprep.subr.bf16.mxu1 %v12607_v35 }
 0x8fe   : > { %12578 = vmatpush3.bf16.msra.mxu0 %v12577_v14  ;;  %12610 = vmatpush3.bf16.msra.mxu1 %v12609_v34 }
 0x8ff   : > { %12580 = vmatprep.subr.bf16.mxu0 %v12579_v43  ;;  %12612 = vmatprep.subr.bf16.mxu1 %v12611_v45 }
 0x902   : > { %v8530_v25 = vpop.f32.mrb[214].mxu0  ;;  %v8601_v32 = vpop.f32.mrb[242].mxu1  ;;  %12582 = vmatpush3.bf16.msra.mxu0 %v12581_v37  ;;  %12614 = vmatpush3.bf16.msra.mxu1 %v12613_v24 }
 0x903   : > { %v8531_v26 = vadd.f32 %v8530_v25, %v8301_v40  ;;  %v8602_v27 = vadd.f32 %v8601_v32, %v8309_v58  ;;  %v8532_v46 = vpop.f32.mrb[215].mxu0  ;;  %v8603_v31 = vpop.f32.mrb[243].mxu1  ;;  %12584 = vmatprep.subr.bf16.mxu0 %v12583_v23  ;;  %12616 = vmatprep.subr.bf16.mxu1 %v12615_v6 }
 0x904   : > { %v8533_v63 = vadd.f32 %v8532_v46, %v8305_v42  ;;  %v8604_v56 = vadd.f32 %v8603_v31, %v8313_v44 }
 0x905   : > { %v8610_v49 = vmax.f32 %v8531_v26, 0.0  ;;  %v8612_v48 = vmax.f32 %v8602_v27, 0.0 }
 0x906   : > { %v8611_v22 = vmax.f32 %v8533_v63, 0.0  ;;  %v8613_v47 = vmax.f32 %v8604_v56, 0.0  ;;  %12586 = vmatpush3.bf16.msra.mxu0 %v12585_v7  ;;  %12618 = vmatpush3.bf16.msra.mxu1 %v12617_v59 }
 0x908   : > { %8953 = vmatprep.mubr.f32.mxu0 %v8611_v22  ;;  %9023 = vmatprep.mubr.f32.mxu1 %v8613_v47 }
 0x909   : > { %8954 = vmatmul.mubr.f32.vlgmr.msra.gmra.mrb[218].mxu0 %v8610_v49  ;;  %9024 = vmatmul.mubr.f32.vlgmr.msra.gmra.mrb[246].mxu1 %v8612_v48 }
 0x9bc   : > { %v12075_v2 = vpop.f32.mrb[216].mxu0  ;;  %v12110_v18 = vpop.f32.mrb[244].mxu1 }
 0x9bd   : > { %v12076_v9 = vpop.f32.mrb[217].mxu0  ;;  %v12111_v55 = vpop.f32.mrb[245].mxu1 }
 0x9be   : > { %v12077_v17 = vadd.f32 %v12076_v9, %v12075_v2  ;;  %v12112_v54 = vadd.f32 %v12111_v55, %v12110_v18 }
 0x9c0   : > { %v8816_v61 = vadd.f32 %v12077_v17, %v10116_v21 }
 0x9c2   : > { %v8886_v4 = vadd.f32 %v12112_v54, %v8816_v61 }
 0x9dc   : > { %v12145_v39 = vpop.f32.mrb[218].mxu0  ;;  %v12180_v0 = vpop.f32.mrb[246].mxu1 }
 0x9dd   : > { %v12146_v57 = vpop.f32.mrb[219].mxu0  ;;  %v12181_v3 = vpop.f32.mrb[247].mxu1 }
 0x9de   : > { %v12147_v60 = vadd.f32 %v12146_v57, %v12145_v39  ;;  %v12182_v13 = vadd.f32 %v12181_v3, %v12180_v0 }
 0x9e0   : > { %v8956_v35 = vadd.f32 %v12147_v60, %v8886_v4 }
 0x9e2   : > { %v9026_v29 = vadd.f32 %v12182_v13, %v8956_v35 }
 0x9e4   : > { %v9046_v28 = vmul.f32 %v10118_v16, %v9026_v29  ;;  %v9036_v5 = vmul.f32 %v10117_v52, %v9026_v29 }
 0x9e6   : > { %9047 = vadd.xlane.f32.xlu0 %v9046_v28 }
 0x9ea   : > { %9037 = vadd.xlane.f32.xlu0 %v9036_v5 }
 0xa73   : > { %v9048_v38 = vpop.xlane.xlu0 %9047 }
 0xa74   : > { %v9049_v14 = vmul.f32 0.16666667, %v9048_v38 }
 0xa77   : > { %v9038_v34 = vpop.xlane.xlu0 %9037 }
 0xa78   : > { %v9050_v33 = vsub.f32 %v9038_v34, %v9049_v14 }
 0xa7a   : > { %v9051_v8 = vadd.f32 %v9050_v33, %v9026_v29 }
 0xa7c   : > { %9052 = vst [vmem:[%s470_s20] sm:$0xff] %v9051_v8 }
 0xa7d PF: > { %s24_s29 = sadd.s32 1, %s13397_s29  }
 0xa7e   : > { %p21_p5 = scmp.ge.s32.totalorder %s24_s29, 4  }
 0xa80   :  { %23 = sbr.rel (!%p21_p5) target bundleno = 1 (0x1), region = 129 }

</bundles_post_ra>
